<compile_context>
chip_gen: v7x
topology: tpu7x:2x2x1
jax: 0.10.0
libtpu: 0.0.40
codegen_flags: <defaults>
</compile_context>

<pallas_src>
import functools

import jax
import jax.numpy as jnp
from jax.experimental import pallas as pl
from jax.experimental.pallas import tpu as pltpu


# ----------------------------------------------------------------------------
# small helpers
# ----------------------------------------------------------------------------
def _round_up(x, m):
    return (x + m - 1) // m * m


def _bn_fold(bn, cout):
    """Fold eval-mode BatchNorm into a per-output-channel (scale, shift)."""
    if bn is None:
        return jnp.ones((cout,), jnp.float32), jnp.zeros((cout,), jnp.float32)
    scale = bn['gamma'] * jax.lax.rsqrt(bn['var'] + bn['eps'])
    shift = bn['beta'] - bn['mean'] * scale
    return scale, shift


_CPARAMS = pltpu.CompilerParams(
    dimension_semantics=("parallel",),
    vmem_limit_bytes=32 * 1024 * 1024,
)


def _choose_tile(m):
    """Lane tile for the N*H*W axis: 512/256/128 if divisible, else pad / full."""
    for t in (512, 256, 128):
        if m % t == 0:
            return t, m
    if m <= 128:
        return m, m
    return 128, _round_up(m, 128)


# ----------------------------------------------------------------------------
# Pallas kernels
# ----------------------------------------------------------------------------
def _pw_kernel(*refs, n_in, relu, add_res):
    """out = act( sum_k W_k @ X_k + b [+ residual] ), lane-dense (Cout, tM) blocks."""
    xs = refs[:n_in]
    ws = refs[n_in:2 * n_in]
    b_ref = refs[2 * n_in]
    o_ref = refs[-1]
    acc = jnp.dot(ws[0][...], xs[0][...], preferred_element_type=jnp.float32)
    for k in range(1, n_in):
        acc = acc + jnp.dot(ws[k][...], xs[k][...], preferred_element_type=jnp.float32)
    acc = acc + b_ref[...]                              # folded bias + BN shift
    if add_res:
        acc = acc + refs[2 * n_in + 1][...].astype(jnp.float32)
    if relu:
        acc = jnp.maximum(acc, 0.0)
    o_ref[...] = acc.astype(o_ref.dtype)


def _conv3x3_kernel(x_ref, w_ref, b_ref, o_ref, *, rel, win, relu):
    """9-tap 'same' conv on a zero-guarded flat padded input (resident in VMEM)."""
    i = pl.program_id(0)
    cout, t = o_ref.shape
    start = pl.multiple_of(i * t, 128)                  # 128-aligned dynamic lane offset
    xwin = x_ref[:, pl.ds(start, win)]                  # (Cin, t + 2*G)
    acc = jnp.zeros((cout, t), jnp.float32)
    for k in range(9):
        xt = xwin[:, rel[k]:rel[k] + t]                 # static lane sub-slice per tap
        acc = acc + jnp.dot(w_ref[k], xt, preferred_element_type=jnp.float32)
    acc = acc + b_ref[...]
    if relu:
        acc = jnp.maximum(acc, 0.0)
    o_ref[...] = acc.astype(o_ref.dtype)


# ----------------------------------------------------------------------------
# conv wrappers (bf16 operands, f32 accumulate, lane-dense)
# ----------------------------------------------------------------------------
def conv1x1(xs, w, b, bn=None, relu=False, residual=None, out_dtype=jnp.bfloat16):
    """Fused pointwise conv: act(BN(W @ concat(xs) + b)) [+ residual].

    xs: list of (C_i, M) channel-major activations; the concat is never materialized.
    w: (Cout, sum_i C_i); b: (Cout,).  BN folded on the host.
    """
    cout = int(w.shape[0])
    m = int(xs[0].shape[1])
    t, mpad = _choose_tile(m)

    scale, shift = _bn_fold(bn, cout)
    wf = w.astype(jnp.float32) * scale[:, None]
    bf = (b.astype(jnp.float32) * scale + shift).reshape(cout, 1)

    sizes = [int(x.shape[0]) for x in xs]
    assert sum(sizes) == int(wf.shape[1])
    ws, off = [], 0
    for s in sizes:
        ws.append(wf[:, off:off + s].astype(jnp.bfloat16))
        off += s

    def pad_m(a):
        return a if mpad == m else jnp.pad(a, ((0, 0), (0, mpad - m)))

    xs_p = [pad_m(x.astype(jnp.bfloat16)) for x in xs]
    args = xs_p + ws + [bf]
    in_specs = ([pl.BlockSpec((int(x.shape[0]), t), lambda i: (0, i)) for x in xs_p]
                + [pl.BlockSpec((cout, s), lambda i: (0, 0)) for s in sizes]
                + [pl.BlockSpec((cout, 1), lambda i: (0, 0))])
    add_res = residual is not None
    if add_res:
        args.append(pad_m(residual.astype(jnp.bfloat16)))
        in_specs.append(pl.BlockSpec((cout, t), lambda i: (0, i)))

    kern = functools.partial(_pw_kernel, n_in=len(xs), relu=relu, add_res=add_res)
    flops = 2 * mpad * cout * sum(sizes)
    bytes_acc = 2 * mpad * (sum(sizes) + cout) + 2 * cout * sum(sizes) + 4 * cout
    out = pl.pallas_call(
        kern,
        out_shape=jax.ShapeDtypeStruct((cout, mpad), out_dtype),
        grid=(mpad // t,),
        in_specs=in_specs,
        out_specs=pl.BlockSpec((cout, t), lambda i: (0, i)),
        compiler_params=_CPARAMS,
        cost_estimate=pl.CostEstimate(flops=int(flops), transcendentals=0,
                                      bytes_accessed=int(bytes_acc)),
    )(*args)
    return out if mpad == m else out[:, :m]


def conv3x3(x, dims, w, b, bn=None, relu=False):
    """Fused 3x3 'same' conv: act(BN(conv3x3(x) + b)), no HBM im2col.

    x: (Cin, N*H*W) channel-major; w: (Cout, Cin, 3, 3); b: (Cout,).
    The input is spatially zero-padded, flattened and zero-guarded; the 9 taps are
    accumulated inside one Pallas kernel over lane-dense output tiles.
    """
    n, h, wd = dims
    cin, m = int(x.shape[0]), int(x.shape[1])
    assert m == n * h * wd
    cout = int(w.shape[0])
    hp, wp = h + 2, wd + 2
    g = wp + 1                                   # max |tap offset| in flat padded coords
    mp = n * hp * wp
    if mp >= 512:
        l_out, t = _round_up(mp, 512), 512
    else:
        l_out = _round_up(mp, 128)
        t = l_out
    cpad = _round_up(cin, 8)

    x4 = x.reshape(cin, n, h, wd)
    xp = jnp.pad(x4, ((0, cpad - cin), (0, 0), (1, 1), (1, 1)))
    xg = jnp.pad(xp.reshape(cpad, mp),
                 ((0, 0), (g, l_out + g - mp))).astype(jnp.bfloat16)
    lx = l_out + 2 * g

    scale, shift = _bn_fold(bn, cout)
    wf = w.astype(jnp.float32) * scale[:, None, None, None]
    wf = jnp.pad(wf, ((0, 0), (0, cpad - cin), (0, 0), (0, 0)))
    wf = jnp.transpose(wf, (2, 3, 0, 1)).reshape(9, cout, cpad).astype(jnp.bfloat16)
    bf = (b.astype(jnp.float32) * scale + shift).reshape(cout, 1)

    rel = tuple(ky * wp + kx for ky in range(3) for kx in range(3))
    kern = functools.partial(_conv3x3_kernel, rel=rel, win=t + 2 * g, relu=relu)
    flops = 2 * l_out * cout * 9 * cpad
    bytes_acc = 2 * (cpad * lx + cout * l_out) + 2 * 9 * cout * cpad + 4 * cout
    y = pl.pallas_call(
        kern,
        out_shape=jax.ShapeDtypeStruct((cout, l_out), jnp.bfloat16),
        grid=(l_out // t,),
        in_specs=[
            pl.BlockSpec((cpad, lx), lambda i: (0, 0)),        # guarded input, VMEM-resident
            pl.BlockSpec((9, cout, cpad), lambda i: (0, 0, 0)),
            pl.BlockSpec((cout, 1), lambda i: (0, 0)),
        ],
        out_specs=pl.BlockSpec((cout, t), lambda i: (0, i)),
        compiler_params=_CPARAMS,
        cost_estimate=pl.CostEstimate(flops=int(flops), transcendentals=0,
                                      bytes_accessed=int(bytes_acc)),
    )(xg, wf, bf)
    y = y[:, :mp].reshape(cout, n, hp, wp)[:, :, 1:h + 1, 1:wd + 1]
    return y.reshape(cout, m)


# ----------------------------------------------------------------------------
# pooling / upsampling / blocks (thin JAX glue around the Pallas conv kernels)
# ----------------------------------------------------------------------------
def maxpool2x2(x, dims):
    """nn.MaxPool2d(2) as one fused reshape+max (no strided HBM copies).
    Assumes even H, W (PyTorch floors odd sizes)."""
    n, h, w = dims
    c = int(x.shape[0])
    y = jnp.max(x.reshape(c, n, h // 2, 2, w // 2, 2), axis=(3, 5))
    return y.reshape(c, n * (h // 2) * (w // 2)), (n, h // 2, w // 2)


def _interp_matrix(n_in):
    n_out = 2 * n_in
    src = jnp.arange(n_out, dtype=jnp.float32) * (n_in - 1) / (n_out - 1)
    i0 = jnp.floor(src).astype(jnp.int32)
    i1 = jnp.minimum(i0 + 1, n_in - 1)
    f = src - i0.astype(jnp.float32)
    return (jax.nn.one_hot(i0, n_in, dtype=jnp.float32) * (1.0 - f)[:, None]
            + jax.nn.one_hot(i1, n_in, dtype=jnp.float32) * f[:, None])


def upsample2x(x, dims):
    """nn.Upsample(scale_factor=2, mode='bilinear', align_corners=True):
    two small interpolation matmuls (no gathers)."""
    n, h, w = dims
    c = int(x.shape[0])
    x4 = x.reshape(c, n, h, w).astype(jnp.float32)
    y = jnp.einsum('oh,cnhw->cnow', _interp_matrix(h), x4)
    y = jnp.einsum('pw,cnow->cnop', _interp_matrix(w), y)
    return y.reshape(c, n * 2 * h * 2 * w).astype(jnp.bfloat16), (n, 2 * h, 2 * w)


def gcb_forward(p, x, dims):
    """Global Context Block (GCNet style): softmax-pooled context + channel MLP.
    # TODO(synk): exact GCB definition not in the provided source."""
    c, m = int(x.shape[0]), int(x.shape[1])
    n, h, w = dims
    hw = h * w
    logits = conv1x1([x], p['mask_w'], p['mask_b'], out_dtype=jnp.float32)   # (1, M)
    attn = jax.nn.softmax(logits.reshape(n, hw), axis=1)
    xr = x.astype(jnp.float32).reshape(c, n, hw)
    context = jnp.einsum('cnm,nm->nc', xr, attn)                             # (N, C)
    hid = context @ p['t1_w'].T + p['t1_b']                                  # (N, r)
    mu = jnp.mean(hid, axis=-1, keepdims=True)
    var = jnp.var(hid, axis=-1, keepdims=True)
    hid = (hid - mu) * jax.lax.rsqrt(var + 1e-5) * p['ln_g'] + p['ln_b']     # LayerNorm
    hid = jnp.maximum(hid, 0.0)
    trn = hid @ p['t2_w'].T + p['t2_b']                                      # (N, C)
    y = xr + trn.T[:, :, None]
    return y.reshape(c, m).astype(jnp.bfloat16)


def rdb_forward(p, x, dims):
    """Residual Dense Block: dense 3x3 convs + fused 1x1 + residual (+ optional GCB).
    # TODO(synk): exact RDB definition not in the provided source."""
    feats = x
    n_dense = len(p['dense'])
    last = None
    for k, (wk, bk) in enumerate(p['dense']):
        out = conv3x3(feats, dims, wk, bk, relu=True)
        if k + 1 < n_dense:
            feats = jnp.concatenate([feats, out], axis=0)
        else:
            last = out
    has_gcb = 'gcb' in p
    # 1x1 fuse over [feats, last] with the concat and (if no GCB) the residual fused in.
    y = conv1x1([feats, last], p['fuse_w'], p['fuse_b'],
                residual=None if has_gcb else x)
    if has_gcb:
        y = gcb_forward(p['gcb'], y, dims)
        y = (y.astype(jnp.float32) + x.astype(jnp.float32)).astype(jnp.bfloat16)
    return y


def head_forward(p, x, dims):
    # Conv3x3 -> Dropout2d(identity, eval) -> BN -> ReLU, twice (BN/bias folded).
    x = conv3x3(x, dims, p['c1_w'], p['c1_b'], p['bn1'], relu=True)
    x = conv3x3(x, dims, p['c2_w'], p['c2_b'], p['bn2'], relu=True)
    return x


def up_forward(p, x_low, d_low, skip, d_skip):
    xu, du = upsample2x(x_low, d_low)
    assert du == d_skip
    # cat([up, skip]) -> 1x1 conv -> Dropout(identity) -> BN -> ReLU; concat fused away.
    y = conv1x1([xu, skip], p['c_w'], p['c_b'], p['bn'], relu=True)
    return rdb_forward(p['rdb'], y, d_skip)


def network_forward(params, x_nchw):
    n, cin, h, w = x_nchw.shape
    d1 = (n, h, w)
    x = jnp.transpose(x_nchw, (1, 0, 2, 3)).reshape(cin, n * h * w).astype(jnp.bfloat16)

    x1 = head_forward(params['head'], x, d1)
    p2, d2 = maxpool2x2(x1, d1)
    x2 = rdb_forward(params['down1'], p2, d2)
    p3, d3 = maxpool2x2(x2, d2)
    x3 = rdb_forward(params['down2'], p3, d3)
    p4, d4 = maxpool2x2(x3, d3)
    x4 = rdb_forward(params['down3'], p4, d4)
    p5, d5 = maxpool2x2(x4, d4)
    x5 = rdb_forward(params['down4'], p5, d5)            # has_GCB=True

    y = up_forward(params['up1'], x5, d5, x4, d4)
    y = up_forward(params['up2'], y, d4, x3, d3)
    y = up_forward(params['up3'], y, d3, x2, d2)
    y = up_forward(params['up4'], y, d2, x1, d1)

    out = conv1x1([y], params['tail_w'], params['tail_b'], out_dtype=jnp.float32)
    return jnp.transpose(out.reshape(1, n, h, w), (1, 0, 2, 3))   # (N, 1, H, W) f32


# ----------------------------------------------------------------------------
# Deterministic synthetic parameters (match module shapes; eval-mode BN stats)
# ----------------------------------------------------------------------------
def make_params(key, base_channel, inter_channel, rdb_block_num):
    keys = iter(jax.random.split(key, 512))

    def nrm(shape, s=0.1):
        return s * jax.random.normal(next(keys), shape, jnp.float32)

    def bn_p(c):
        return {'gamma': 1.0 + nrm((c,)), 'beta': nrm((c,)),
                'mean': nrm((c,)), 'var': 1.0 + 0.1 * jnp.abs(nrm((c,))),
                'eps': 1e-5}

    def conv_p(cout, cin, k):
        if k == 1:
            return nrm((cout, cin)), nrm((cout,))
        return nrm((cout, cin, k, k)), nrm((cout,))

    def rdb_p(ch, has_gcb=False):
        dense, c = [], ch
        for _ in range(rdb_block_num):
            dense.append(conv_p(inter_channel, c, 3))
            c += inter_channel
        fw, fb = conv_p(ch, c, 1)
        p = {'dense': dense, 'fuse_w': fw, 'fuse_b': fb}
        if has_gcb:
            r = max(ch // 4, 1)
            p['gcb'] = {'mask_w': nrm((1, ch)), 'mask_b': nrm((1,)),
                        't1_w': nrm((r, ch)), 't1_b': nrm((r,)),
                        'ln_g': 1.0 + nrm((r,)), 'ln_b': nrm((r,)),
                        't2_w': nrm((ch, r)), 't2_b': nrm((ch,))}
        return p

    B = base_channel
    head = {}
    head['c1_w'], head['c1_b'] = conv_p(B, 3, 3)
    head['bn1'] = bn_p(B)
    head['c2_w'], head['c2_b'] = conv_p(B, B, 3)
    head['bn2'] = bn_p(B)

    def up_p():
        cw, cb = conv_p(B, 2 * B, 1)
        return {'c_w': cw, 'c_b': cb, 'bn': bn_p(B), 'rdb': rdb_p(B)}

    tw, tb = conv_p(1, B, 1)
    return {'head': head,
            'down1': rdb_p(B), 'down2': rdb_p(B), 'down3': rdb_p(B),
            'down4': rdb_p(B, has_gcb=True),
            'up1': up_p(), 'up2': up_p(), 'up3': up_p(), 'up4': up_p(),
            'tail_w': tw, 'tail_b': tb}


if __name__ == "__main__":
    key = jax.random.PRNGKey(0)
    pkey, xkey = jax.random.split(key)
    params = make_params(pkey, base_channel=8, inter_channel=8, rdb_block_num=2)
    x = jax.random.normal(xkey, (2, 3, 32, 32), jnp.float32)      # NCHW like PyTorch
    out = jax.jit(network_forward)(params, x)
    out = jax.block_until_ready(out)
    assert out.shape == (2, 1, 32, 32) and out.dtype == jnp.float32
    print("KERNEL_OK")
</pallas_src>

<mosaic_0001>
module attributes {stable_mosaic.version = 11 : i64} {
  func.func @_conv3x3_kernel(%arg0: i32, %arg1: memref<8x2630xbf16, #tpu.memory_space<vmem>>, %arg2: memref<9x8x8xbf16, #tpu.memory_space<vmem>>, %arg3: memref<8x1xf32, #tpu.memory_space<vmem>>, %arg4: memref<8x512xbf16, #tpu.memory_space<vmem>>) attributes {dimension_semantics = [#tpu.dimension_semantics<parallel>], iteration_bounds = array<i64: 5>, scalar_prefetch = 0 : i64, scratch_operands = 0 : i64, tpu.core_type = #tpu.core_type<tc>, window_params = [{pipeline_mode = #tpu.pipeline_mode<synchronous>, transform_indices = @transform_0, window_bounds = array<i64: 8, 2630>}, {pipeline_mode = #tpu.pipeline_mode<synchronous>, transform_indices = @transform_1, window_bounds = array<i64: 9, 8, 8>}, {pipeline_mode = #tpu.pipeline_mode<synchronous>, transform_indices = @transform_2, window_bounds = array<i64: 8, 1>}, {transform_indices = @transform_3, window_bounds = array<i64: 8, 512>}]} {
    %c512_i32 = arith.constant 512 : i32
    %0 = arith.muli %arg0, %c512_i32 : i32
    %1 = tpu.assume_multiple %0, 128 : i32
    %c0 = arith.constant 0 : index
    %2 = arith.index_cast %1 : i32 to index
    %3 = vector.load %arg1[%c0, %2] : memref<8x2630xbf16, #tpu.memory_space<vmem>>, vector<8x582xbf16>
    %cst = arith.constant 0.000000e+00 : f32
    %4 = vector.broadcast %cst : f32 to vector<8x512xf32>
    %5 = vector.extract_strided_slice %3 {offsets = [0, 0], sizes = [8, 512], strides = [1, 1]} : vector<8x582xbf16> to vector<8x512xbf16>
    %c0_0 = arith.constant 0 : index
    %c0_1 = arith.constant 0 : index
    %c0_2 = arith.constant 0 : index
    %6 = vector.load %arg2[%c0_0, %c0_1, %c0_2] : memref<9x8x8xbf16, #tpu.memory_space<vmem>>, vector<1x8x8xbf16>
    %7 = vector.shape_cast %6 : vector<1x8x8xbf16> to vector<8x8xbf16>
    %cst_3 = arith.constant dense<0.000000e+00> : vector<8x512xf32>
    %8 = tpu.matmul %7, %5, %cst_3 {dimension_numbers = #tpu.dot_dimension_numbers<[1], [0], [0], [1], [0, 0, 1, 1], [], []>} : vector<8x8xbf16>, vector<8x512xbf16>, vector<8x512xf32> -> vector<8x512xf32>
    %9 = arith.addf %4, %8 : vector<8x512xf32>
    %10 = vector.extract_strided_slice %3 {offsets = [0, 1], sizes = [8, 512], strides = [1, 1]} : vector<8x582xbf16> to vector<8x512xbf16>
    %c1 = arith.constant 1 : index
    %c0_4 = arith.constant 0 : index
    %c0_5 = arith.constant 0 : index
    %11 = vector.load %arg2[%c1, %c0_4, %c0_5] : memref<9x8x8xbf16, #tpu.memory_space<vmem>>, vector<1x8x8xbf16>
    %12 = vector.shape_cast %11 : vector<1x8x8xbf16> to vector<8x8xbf16>
    %cst_6 = arith.constant dense<0.000000e+00> : vector<8x512xf32>
    %13 = tpu.matmul %12, %10, %cst_6 {dimension_numbers = #tpu.dot_dimension_numbers<[1], [0], [0], [1], [0, 0, 1, 1], [], []>} : vector<8x8xbf16>, vector<8x512xbf16>, vector<8x512xf32> -> vector<8x512xf32>
    %14 = arith.addf %9, %13 : vector<8x512xf32>
    %15 = vector.extract_strided_slice %3 {offsets = [0, 2], sizes = [8, 512], strides = [1, 1]} : vector<8x582xbf16> to vector<8x512xbf16>
    %c2 = arith.constant 2 : index
    %c0_7 = arith.constant 0 : index
    %c0_8 = arith.constant 0 : index
    %16 = vector.load %arg2[%c2, %c0_7, %c0_8] : memref<9x8x8xbf16, #tpu.memory_space<vmem>>, vector<1x8x8xbf16>
    %17 = vector.shape_cast %16 : vector<1x8x8xbf16> to vector<8x8xbf16>
    %cst_9 = arith.constant dense<0.000000e+00> : vector<8x512xf32>
    %18 = tpu.matmul %17, %15, %cst_9 {dimension_numbers = #tpu.dot_dimension_numbers<[1], [0], [0], [1], [0, 0, 1, 1], [], []>} : vector<8x8xbf16>, vector<8x512xbf16>, vector<8x512xf32> -> vector<8x512xf32>
    %19 = arith.addf %14, %18 : vector<8x512xf32>
    %20 = vector.extract_strided_slice %3 {offsets = [0, 34], sizes = [8, 512], strides = [1, 1]} : vector<8x582xbf16> to vector<8x512xbf16>
    %c3 = arith.constant 3 : index
    %c0_10 = arith.constant 0 : index
    %c0_11 = arith.constant 0 : index
    %21 = vector.load %arg2[%c3, %c0_10, %c0_11] : memref<9x8x8xbf16, #tpu.memory_space<vmem>>, vector<1x8x8xbf16>
    %22 = vector.shape_cast %21 : vector<1x8x8xbf16> to vector<8x8xbf16>
    %cst_12 = arith.constant dense<0.000000e+00> : vector<8x512xf32>
    %23 = tpu.matmul %22, %20, %cst_12 {dimension_numbers = #tpu.dot_dimension_numbers<[1], [0], [0], [1], [0, 0, 1, 1], [], []>} : vector<8x8xbf16>, vector<8x512xbf16>, vector<8x512xf32> -> vector<8x512xf32>
    %24 = arith.addf %19, %23 : vector<8x512xf32>
    %25 = vector.extract_strided_slice %3 {offsets = [0, 35], sizes = [8, 512], strides = [1, 1]} : vector<8x582xbf16> to vector<8x512xbf16>
    %c4 = arith.constant 4 : index
    %c0_13 = arith.constant 0 : index
    %c0_14 = arith.constant 0 : index
    %26 = vector.load %arg2[%c4, %c0_13, %c0_14] : memref<9x8x8xbf16, #tpu.memory_space<vmem>>, vector<1x8x8xbf16>
    %27 = vector.shape_cast %26 : vector<1x8x8xbf16> to vector<8x8xbf16>
    %cst_15 = arith.constant dense<0.000000e+00> : vector<8x512xf32>
    %28 = tpu.matmul %27, %25, %cst_15 {dimension_numbers = #tpu.dot_dimension_numbers<[1], [0], [0], [1], [0, 0, 1, 1], [], []>} : vector<8x8xbf16>, vector<8x512xbf16>, vector<8x512xf32> -> vector<8x512xf32>
    %29 = arith.addf %24, %28 : vector<8x512xf32>
    %30 = vector.extract_strided_slice %3 {offsets = [0, 36], sizes = [8, 512], strides = [1, 1]} : vector<8x582xbf16> to vector<8x512xbf16>
    %c5 = arith.constant 5 : index
    %c0_16 = arith.constant 0 : index
    %c0_17 = arith.constant 0 : index
    %31 = vector.load %arg2[%c5, %c0_16, %c0_17] : memref<9x8x8xbf16, #tpu.memory_space<vmem>>, vector<1x8x8xbf16>
    %32 = vector.shape_cast %31 : vector<1x8x8xbf16> to vector<8x8xbf16>
    %cst_18 = arith.constant dense<0.000000e+00> : vector<8x512xf32>
    %33 = tpu.matmul %32, %30, %cst_18 {dimension_numbers = #tpu.dot_dimension_numbers<[1], [0], [0], [1], [0, 0, 1, 1], [], []>} : vector<8x8xbf16>, vector<8x512xbf16>, vector<8x512xf32> -> vector<8x512xf32>
    %34 = arith.addf %29, %33 : vector<8x512xf32>
    %35 = vector.extract_strided_slice %3 {offsets = [0, 68], sizes = [8, 512], strides = [1, 1]} : vector<8x582xbf16> to vector<8x512xbf16>
    %c6 = arith.constant 6 : index
    %c0_19 = arith.constant 0 : index
    %c0_20 = arith.constant 0 : index
    %36 = vector.load %arg2[%c6, %c0_19, %c0_20] : memref<9x8x8xbf16, #tpu.memory_space<vmem>>, vector<1x8x8xbf16>
    %37 = vector.shape_cast %36 : vector<1x8x8xbf16> to vector<8x8xbf16>
    %cst_21 = arith.constant dense<0.000000e+00> : vector<8x512xf32>
    %38 = tpu.matmul %37, %35, %cst_21 {dimension_numbers = #tpu.dot_dimension_numbers<[1], [0], [0], [1], [0, 0, 1, 1], [], []>} : vector<8x8xbf16>, vector<8x512xbf16>, vector<8x512xf32> -> vector<8x512xf32>
    %39 = arith.addf %34, %38 : vector<8x512xf32>
    %40 = vector.extract_strided_slice %3 {offsets = [0, 69], sizes = [8, 512], strides = [1, 1]} : vector<8x582xbf16> to vector<8x512xbf16>
    %c7 = arith.constant 7 : index
    %c0_22 = arith.constant 0 : index
    %c0_23 = arith.constant 0 : index
    %41 = vector.load %arg2[%c7, %c0_22, %c0_23] : memref<9x8x8xbf16, #tpu.memory_space<vmem>>, vector<1x8x8xbf16>
    %42 = vector.shape_cast %41 : vector<1x8x8xbf16> to vector<8x8xbf16>
    %cst_24 = arith.constant dense<0.000000e+00> : vector<8x512xf32>
    %43 = tpu.matmul %42, %40, %cst_24 {dimension_numbers = #tpu.dot_dimension_numbers<[1], [0], [0], [1], [0, 0, 1, 1], [], []>} : vector<8x8xbf16>, vector<8x512xbf16>, vector<8x512xf32> -> vector<8x512xf32>
    %44 = arith.addf %39, %43 : vector<8x512xf32>
    %45 = vector.extract_strided_slice %3 {offsets = [0, 70], sizes = [8, 512], strides = [1, 1]} : vector<8x582xbf16> to vector<8x512xbf16>
    %c8 = arith.constant 8 : index
    %c0_25 = arith.constant 0 : index
    %c0_26 = arith.constant 0 : index
    %46 = vector.load %arg2[%c8, %c0_25, %c0_26] : memref<9x8x8xbf16, #tpu.memory_space<vmem>>, vector<1x8x8xbf16>
    %47 = vector.shape_cast %46 : vector<1x8x8xbf16> to vector<8x8xbf16>
    %cst_27 = arith.constant dense<0.000000e+00> : vector<8x512xf32>
    %48 = tpu.matmul %47, %45, %cst_27 {dimension_numbers = #tpu.dot_dimension_numbers<[1], [0], [0], [1], [0, 0, 1, 1], [], []>} : vector<8x8xbf16>, vector<8x512xbf16>, vector<8x512xf32> -> vector<8x512xf32>
    %49 = arith.addf %44, %48 : vector<8x512xf32>
    %c0_28 = arith.constant 0 : index
    %c0_29 = arith.constant 0 : index
    %50 = vector.load %arg3[%c0_28, %c0_29] : memref<8x1xf32, #tpu.memory_space<vmem>>, vector<8x1xf32>
    %51 = vector.broadcast %50 : vector<8x1xf32> to vector<8x512xf32>
    %52 = arith.addf %49, %51 : vector<8x512xf32>
    %cst_30 = arith.constant 0.000000e+00 : f32
    %53 = vector.broadcast %cst_30 : f32 to vector<8x512xf32>
    %54 = arith.maximumf %52, %53 : vector<8x512xf32>
    %55 = arith.truncf %54 : vector<8x512xf32> to vector<8x512xbf16>
    %c0_31 = arith.constant 0 : index
    %c0_32 = arith.constant 0 : index
    %56 = vector.load %arg4[%c0_31, %c0_32] : memref<8x512xbf16, #tpu.memory_space<vmem>>, vector<8x512xbf16>
    tpu.vector_store %arg4[%c0_31, %c0_32], %55 {strides = array<i32>} : memref<8x512xbf16, #tpu.memory_space<vmem>>, vector<8x512xbf16>,
    return
  }
  func.func @transform_0(%arg0: i32) -> (i32, i32) {
    %c0_i32 = arith.constant 0 : i32
    %c0_i32_0 = arith.constant 0 : i32
    %c0_i32_1 = arith.constant 0 : i32
    return %c0_i32, %c0_i32_0 : i32, i32
  }
  func.func @transform_1(%arg0: i32) -> (i32, i32, i32) {
    %c0_i32 = arith.constant 0 : i32
    %c0_i32_0 = arith.constant 0 : i32
    %c0_i32_1 = arith.constant 0 : i32
    %c0_i32_2 = arith.constant 0 : i32
    return %c0_i32, %c0_i32_0, %c0_i32_1 : i32, i32, i32
  }
  func.func @transform_2(%arg0: i32) -> (i32, i32) {
    %c0_i32 = arith.constant 0 : i32
    %c0_i32_0 = arith.constant 0 : i32
    %c0_i32_1 = arith.constant 0 : i32
    return %c0_i32, %c0_i32_0 : i32, i32
  }
  func.func @transform_3(%arg0: i32) -> (i32, i32) {
    %c0_i32 = arith.constant 0 : i32
    %c0_i32_0 = arith.constant 0 : i32
    return %c0_i32, %arg0 : i32, i32
  }
}

module attributes {stable_mosaic.version = 11 : i64} {
  func.func @_conv3x3_kernel(%arg0: i32, %arg1: memref<8x1062xbf16, #tpu.memory_space<vmem>>, %arg2: memref<9x8x8xbf16, #tpu.memory_space<vmem>>, %arg3: memref<8x1xf32, #tpu.memory_space<vmem>>, %arg4: memref<8x512xbf16, #tpu.memory_space<vmem>>) attributes {dimension_semantics = [#tpu.dimension_semantics<parallel>], iteration_bounds = array<i64: 2>, scalar_prefetch = 0 : i64, scratch_operands = 0 : i64, tpu.core_type = #tpu.core_type<tc>, window_params = [{pipeline_mode = #tpu.pipeline_mode<synchronous>, transform_indices = @transform_0, window_bounds = array<i64: 8, 1062>}, {pipeline_mode = #tpu.pipeline_mode<synchronous>, transform_indices = @transform_1, window_bounds = array<i64: 9, 8, 8>}, {pipeline_mode = #tpu.pipeline_mode<synchronous>, transform_indices = @transform_2, window_bounds = array<i64: 8, 1>}, {transform_indices = @transform_3, window_bounds = array<i64: 8, 512>}]} {
    %c512_i32 = arith.constant 512 : i32
    %0 = arith.muli %arg0, %c512_i32 : i32
    %1 = tpu.assume_multiple %0, 128 : i32
    %c0 = arith.constant 0 : index
    %2 = arith.index_cast %1 : i32 to index
    %3 = vector.load %arg1[%c0, %2] : memref<8x1062xbf16, #tpu.memory_space<vmem>>, vector<8x550xbf16>
    %cst = arith.constant 0.000000e+00 : f32
    %4 = vector.broadcast %cst : f32 to vector<8x512xf32>
    %5 = vector.extract_strided_slice %3 {offsets = [0, 0], sizes = [8, 512], strides = [1, 1]} : vector<8x550xbf16> to vector<8x512xbf16>
    %c0_0 = arith.constant 0 : index
    %c0_1 = arith.constant 0 : index
    %c0_2 = arith.constant 0 : index
    %6 = vector.load %arg2[%c0_0, %c0_1, %c0_2] : memref<9x8x8xbf16, #tpu.memory_space<vmem>>, vector<1x8x8xbf16>
    %7 = vector.shape_cast %6 : vector<1x8x8xbf16> to vector<8x8xbf16>
    %cst_3 = arith.constant dense<0.000000e+00> : vector<8x512xf32>
    %8 = tpu.matmul %7, %5, %cst_3 {dimension_numbers = #tpu.dot_dimension_numbers<[1], [0], [0], [1], [0, 0, 1, 1], [], []>} : vector<8x8xbf16>, vector<8x512xbf16>, vector<8x512xf32> -> vector<8x512xf32>
    %9 = arith.addf %4, %8 : vector<8x512xf32>
    %10 = vector.extract_strided_slice %3 {offsets = [0, 1], sizes = [8, 512], strides = [1, 1]} : vector<8x550xbf16> to vector<8x512xbf16>
    %c1 = arith.constant 1 : index
    %c0_4 = arith.constant 0 : index
    %c0_5 = arith.constant 0 : index
    %11 = vector.load %arg2[%c1, %c0_4, %c0_5] : memref<9x8x8xbf16, #tpu.memory_space<vmem>>, vector<1x8x8xbf16>
    %12 = vector.shape_cast %11 : vector<1x8x8xbf16> to vector<8x8xbf16>
    %cst_6 = arith.constant dense<0.000000e+00> : vector<8x512xf32>
    %13 = tpu.matmul %12, %10, %cst_6 {dimension_numbers = #tpu.dot_dimension_numbers<[1], [0], [0], [1], [0, 0, 1, 1], [], []>} : vector<8x8xbf16>, vector<8x512xbf16>, vector<8x512xf32> -> vector<8x512xf32>
    %14 = arith.addf %9, %13 : vector<8x512xf32>
    %15 = vector.extract_strided_slice %3 {offsets = [0, 2], sizes = [8, 512], strides = [1, 1]} : vector<8x550xbf16> to vector<8x512xbf16>
    %c2 = arith.constant 2 : index
    %c0_7 = arith.constant 0 : index
    %c0_8 = arith.constant 0 : index
    %16 = vector.load %arg2[%c2, %c0_7, %c0_8] : memref<9x8x8xbf16, #tpu.memory_space<vmem>>, vector<1x8x8xbf16>
    %17 = vector.shape_cast %16 : vector<1x8x8xbf16> to vector<8x8xbf16>
    %cst_9 = arith.constant dense<0.000000e+00> : vector<8x512xf32>
    %18 = tpu.matmul %17, %15, %cst_9 {dimension_numbers = #tpu.dot_dimension_numbers<[1], [0], [0], [1], [0, 0, 1, 1], [], []>} : vector<8x8xbf16>, vector<8x512xbf16>, vector<8x512xf32> -> vector<8x512xf32>
    %19 = arith.addf %14, %18 : vector<8x512xf32>
    %20 = vector.extract_strided_slice %3 {offsets = [0, 18], sizes = [8, 512], strides = [1, 1]} : vector<8x550xbf16> to vector<8x512xbf16>
    %c3 = arith.constant 3 : index
    %c0_10 = arith.constant 0 : index
    %c0_11 = arith.constant 0 : index
    %21 = vector.load %arg2[%c3, %c0_10, %c0_11] : memref<9x8x8xbf16, #tpu.memory_space<vmem>>, vector<1x8x8xbf16>
    %22 = vector.shape_cast %21 : vector<1x8x8xbf16> to vector<8x8xbf16>
    %cst_12 = arith.constant dense<0.000000e+00> : vector<8x512xf32>
    %23 = tpu.matmul %22, %20, %cst_12 {dimension_numbers = #tpu.dot_dimension_numbers<[1], [0], [0], [1], [0, 0, 1, 1], [], []>} : vector<8x8xbf16>, vector<8x512xbf16>, vector<8x512xf32> -> vector<8x512xf32>
    %24 = arith.addf %19, %23 : vector<8x512xf32>
    %25 = vector.extract_strided_slice %3 {offsets = [0, 19], sizes = [8, 512], strides = [1, 1]} : vector<8x550xbf16> to vector<8x512xbf16>
    %c4 = arith.constant 4 : index
    %c0_13 = arith.constant 0 : index
    %c0_14 = arith.constant 0 : index
    %26 = vector.load %arg2[%c4, %c0_13, %c0_14] : memref<9x8x8xbf16, #tpu.memory_space<vmem>>, vector<1x8x8xbf16>
    %27 = vector.shape_cast %26 : vector<1x8x8xbf16> to vector<8x8xbf16>
    %cst_15 = arith.constant dense<0.000000e+00> : vector<8x512xf32>
    %28 = tpu.matmul %27, %25, %cst_15 {dimension_numbers = #tpu.dot_dimension_numbers<[1], [0], [0], [1], [0, 0, 1, 1], [], []>} : vector<8x8xbf16>, vector<8x512xbf16>, vector<8x512xf32> -> vector<8x512xf32>
    %29 = arith.addf %24, %28 : vector<8x512xf32>
    %30 = vector.extract_strided_slice %3 {offsets = [0, 20], sizes = [8, 512], strides = [1, 1]} : vector<8x550xbf16> to vector<8x512xbf16>
    %c5 = arith.constant 5 : index
    %c0_16 = arith.constant 0 : index
    %c0_17 = arith.constant 0 : index
    %31 = vector.load %arg2[%c5, %c0_16, %c0_17] : memref<9x8x8xbf16, #tpu.memory_space<vmem>>, vector<1x8x8xbf16>
    %32 = vector.shape_cast %31 : vector<1x8x8xbf16> to vector<8x8xbf16>
    %cst_18 = arith.constant dense<0.000000e+00> : vector<8x512xf32>
    %33 = tpu.matmul %32, %30, %cst_18 {dimension_numbers = #tpu.dot_dimension_numbers<[1], [0], [0], [1], [0, 0, 1, 1], [], []>} : vector<8x8xbf16>, vector<8x512xbf16>, vector<8x512xf32> -> vector<8x512xf32>
    %34 = arith.addf %29, %33 : vector<8x512xf32>
    %35 = vector.extract_strided_slice %3 {offsets = [0, 36], sizes = [8, 512], strides = [1, 1]} : vector<8x550xbf16> to vector<8x512xbf16>
    %c6 = arith.constant 6 : index
    %c0_19 = arith.constant 0 : index
    %c0_20 = arith.constant 0 : index
    %36 = vector.load %arg2[%c6, %c0_19, %c0_20] : memref<9x8x8xbf16, #tpu.memory_space<vmem>>, vector<1x8x8xbf16>
    %37 = vector.shape_cast %36 : vector<1x8x8xbf16> to vector<8x8xbf16>
    %cst_21 = arith.constant dense<0.000000e+00> : vector<8x512xf32>
    %38 = tpu.matmul %37, %35, %cst_21 {dimension_numbers = #tpu.dot_dimension_numbers<[1], [0], [0], [1], [0, 0, 1, 1], [], []>} : vector<8x8xbf16>, vector<8x512xbf16>, vector<8x512xf32> -> vector<8x512xf32>
    %39 = arith.addf %34, %38 : vector<8x512xf32>
    %40 = vector.extract_strided_slice %3 {offsets = [0, 37], sizes = [8, 512], strides = [1, 1]} : vector<8x550xbf16> to vector<8x512xbf16>
    %c7 = arith.constant 7 : index
    %c0_22 = arith.constant 0 : index
    %c0_23 = arith.constant 0 : index
    %41 = vector.load %arg2[%c7, %c0_22, %c0_23] : memref<9x8x8xbf16, #tpu.memory_space<vmem>>, vector<1x8x8xbf16>
    %42 = vector.shape_cast %41 : vector<1x8x8xbf16> to vector<8x8xbf16>
    %cst_24 = arith.constant dense<0.000000e+00> : vector<8x512xf32>
    %43 = tpu.matmul %42, %40, %cst_24 {dimension_numbers = #tpu.dot_dimension_numbers<[1], [0], [0], [1], [0, 0, 1, 1], [], []>} : vector<8x8xbf16>, vector<8x512xbf16>, vector<8x512xf32> -> vector<8x512xf32>
    %44 = arith.addf %39, %43 : vector<8x512xf32>
    %45 = vector.extract_strided_slice %3 {offsets = [0, 38], sizes = [8, 512], strides = [1, 1]} : vector<8x550xbf16> to vector<8x512xbf16>
    %c8 = arith.constant 8 : index
    %c0_25 = arith.constant 0 : index
    %c0_26 = arith.constant 0 : index
    %46 = vector.load %arg2[%c8, %c0_25, %c0_26] : memref<9x8x8xbf16, #tpu.memory_space<vmem>>, vector<1x8x8xbf16>
    %47 = vector.shape_cast %46 : vector<1x8x8xbf16> to vector<8x8xbf16>
    %cst_27 = arith.constant dense<0.000000e+00> : vector<8x512xf32>
    %48 = tpu.matmul %47, %45, %cst_27 {dimension_numbers = #tpu.dot_dimension_numbers<[1], [0], [0], [1], [0, 0, 1, 1], [], []>} : vector<8x8xbf16>, vector<8x512xbf16>, vector<8x512xf32> -> vector<8x512xf32>
    %49 = arith.addf %44, %48 : vector<8x512xf32>
    %c0_28 = arith.constant 0 : index
    %c0_29 = arith.constant 0 : index
    %50 = vector.load %arg3[%c0_28, %c0_29] : memref<8x1xf32, #tpu.memory_space<vmem>>, vector<8x1xf32>
    %51 = vector.broadcast %50 : vector<8x1xf32> to vector<8x512xf32>
    %52 = arith.addf %49, %51 : vector<8x512xf32>
    %cst_30 = arith.constant 0.000000e+00 : f32
    %53 = vector.broadcast %cst_30 : f32 to vector<8x512xf32>
    %54 = arith.maximumf %52, %53 : vector<8x512xf32>
    %55 = arith.truncf %54 : vector<8x512xf32> to vector<8x512xbf16>
    %c0_31 = arith.constant 0 : index
    %c0_32 = arith.constant 0 : index
    %56 = vector.load %arg4[%c0_31, %c0_32] : memref<8x512xbf16, #tpu.memory_space<vmem>>, vector<8x512xbf16>
    tpu.vector_store %arg4[%c0_31, %c0_32], %55 {strides = array<i32>} : memref<8x512xbf16, #tpu.memory_space<vmem>>, vector<8x512xbf16>,
    return
  }
  func.func @transform_0(%arg0: i32) -> (i32, i32) {
    %c0_i32 = arith.constant 0 : i32
    %c0_i32_0 = arith.constant 0 : i32
    %c0_i32_1 = arith.constant 0 : i32
    return %c0_i32, %c0_i32_0 : i32, i32
  }
  func.func @transform_1(%arg0: i32) -> (i32, i32, i32) {
    %c0_i32 = arith.constant 0 : i32
    %c0_i32_0 = arith.constant 0 : i32
    %c0_i32_1 = arith.constant 0 : i32
    %c0_i32_2 = arith.constant 0 : i32
    return %c0_i32, %c0_i32_0, %c0_i32_1 : i32, i32, i32
  }
  func.func @transform_2(%arg0: i32) -> (i32, i32) {
    %c0_i32 = arith.constant 0 : i32
    %c0_i32_0 = arith.constant 0 : i32
    %c0_i32_1 = arith.constant 0 : i32
    return %c0_i32, %c0_i32_0 : i32, i32
  }
  func.func @transform_3(%arg0: i32) -> (i32, i32) {
    %c0_i32 = arith.constant 0 : i32
    %c0_i32_0 = arith.constant 0 : i32
    return %c0_i32, %arg0 : i32, i32
  }
}

module attributes {stable_mosaic.version = 11 : i64} {
  func.func @_conv3x3_kernel(%arg0: i32, %arg1: memref<16x1062xbf16, #tpu.memory_space<vmem>>, %arg2: memref<9x8x16xbf16, #tpu.memory_space<vmem>>, %arg3: memref<8x1xf32, #tpu.memory_space<vmem>>, %arg4: memref<8x512xbf16, #tpu.memory_space<vmem>>) attributes {dimension_semantics = [#tpu.dimension_semantics<parallel>], iteration_bounds = array<i64: 2>, scalar_prefetch = 0 : i64, scratch_operands = 0 : i64, tpu.core_type = #tpu.core_type<tc>, window_params = [{pipeline_mode = #tpu.pipeline_mode<synchronous>, transform_indices = @transform_0, window_bounds = array<i64: 16, 1062>}, {pipeline_mode = #tpu.pipeline_mode<synchronous>, transform_indices = @transform_1, window_bounds = array<i64: 9, 8, 16>}, {pipeline_mode = #tpu.pipeline_mode<synchronous>, transform_indices = @transform_2, window_bounds = array<i64: 8, 1>}, {transform_indices = @transform_3, window_bounds = array<i64: 8, 512>}]} {
    %c512_i32 = arith.constant 512 : i32
    %0 = arith.muli %arg0, %c512_i32 : i32
    %1 = tpu.assume_multiple %0, 128 : i32
    %c0 = arith.constant 0 : index
    %2 = arith.index_cast %1 : i32 to index
    %3 = vector.load %arg1[%c0, %2] : memref<16x1062xbf16, #tpu.memory_space<vmem>>, vector<16x550xbf16>
    %cst = arith.constant 0.000000e+00 : f32
    %4 = vector.broadcast %cst : f32 to vector<8x512xf32>
    %5 = vector.extract_strided_slice %3 {offsets = [0, 0], sizes = [16, 512], strides = [1, 1]} : vector<16x550xbf16> to vector<16x512xbf16>
    %c0_0 = arith.constant 0 : index
    %c0_1 = arith.constant 0 : index
    %c0_2 = arith.constant 0 : index
    %6 = vector.load %arg2[%c0_0, %c0_1, %c0_2] : memref<9x8x16xbf16, #tpu.memory_space<vmem>>, vector<1x8x16xbf16>
    %7 = vector.shape_cast %6 : vector<1x8x16xbf16> to vector<8x16xbf16>
    %cst_3 = arith.constant dense<0.000000e+00> : vector<8x512xf32>
    %8 = tpu.matmul %7, %5, %cst_3 {dimension_numbers = #tpu.dot_dimension_numbers<[1], [0], [0], [1], [0, 0, 1, 1], [], []>} : vector<8x16xbf16>, vector<16x512xbf16>, vector<8x512xf32> -> vector<8x512xf32>
    %9 = arith.addf %4, %8 : vector<8x512xf32>
    %10 = vector.extract_strided_slice %3 {offsets = [0, 1], sizes = [16, 512], strides = [1, 1]} : vector<16x550xbf16> to vector<16x512xbf16>
    %c1 = arith.constant 1 : index
    %c0_4 = arith.constant 0 : index
    %c0_5 = arith.constant 0 : index
    %11 = vector.load %arg2[%c1, %c0_4, %c0_5] : memref<9x8x16xbf16, #tpu.memory_space<vmem>>, vector<1x8x16xbf16>
    %12 = vector.shape_cast %11 : vector<1x8x16xbf16> to vector<8x16xbf16>
    %cst_6 = arith.constant dense<0.000000e+00> : vector<8x512xf32>
    %13 = tpu.matmul %12, %10, %cst_6 {dimension_numbers = #tpu.dot_dimension_numbers<[1], [0], [0], [1], [0, 0, 1, 1], [], []>} : vector<8x16xbf16>, vector<16x512xbf16>, vector<8x512xf32> -> vector<8x512xf32>
    %14 = arith.addf %9, %13 : vector<8x512xf32>
    %15 = vector.extract_strided_slice %3 {offsets = [0, 2], sizes = [16, 512], strides = [1, 1]} : vector<16x550xbf16> to vector<16x512xbf16>
    %c2 = arith.constant 2 : index
    %c0_7 = arith.constant 0 : index
    %c0_8 = arith.constant 0 : index
    %16 = vector.load %arg2[%c2, %c0_7, %c0_8] : memref<9x8x16xbf16, #tpu.memory_space<vmem>>, vector<1x8x16xbf16>
    %17 = vector.shape_cast %16 : vector<1x8x16xbf16> to vector<8x16xbf16>
    %cst_9 = arith.constant dense<0.000000e+00> : vector<8x512xf32>
    %18 = tpu.matmul %17, %15, %cst_9 {dimension_numbers = #tpu.dot_dimension_numbers<[1], [0], [0], [1], [0, 0, 1, 1], [], []>} : vector<8x16xbf16>, vector<16x512xbf16>, vector<8x512xf32> -> vector<8x512xf32>
    %19 = arith.addf %14, %18 : vector<8x512xf32>
    %20 = vector.extract_strided_slice %3 {offsets = [0, 18], sizes = [16, 512], strides = [1, 1]} : vector<16x550xbf16> to vector<16x512xbf16>
    %c3 = arith.constant 3 : index
    %c0_10 = arith.constant 0 : index
    %c0_11 = arith.constant 0 : index
    %21 = vector.load %arg2[%c3, %c0_10, %c0_11] : memref<9x8x16xbf16, #tpu.memory_space<vmem>>, vector<1x8x16xbf16>
    %22 = vector.shape_cast %21 : vector<1x8x16xbf16> to vector<8x16xbf16>
    %cst_12 = arith.constant dense<0.000000e+00> : vector<8x512xf32>
    %23 = tpu.matmul %22, %20, %cst_12 {dimension_numbers = #tpu.dot_dimension_numbers<[1], [0], [0], [1], [0, 0, 1, 1], [], []>} : vector<8x16xbf16>, vector<16x512xbf16>, vector<8x512xf32> -> vector<8x512xf32>
    %24 = arith.addf %19, %23 : vector<8x512xf32>
    %25 = vector.extract_strided_slice %3 {offsets = [0, 19], sizes = [16, 512], strides = [1, 1]} : vector<16x550xbf16> to vector<16x512xbf16>
    %c4 = arith.constant 4 : index
    %c0_13 = arith.constant 0 : index
    %c0_14 = arith.constant 0 : index
    %26 = vector.load %arg2[%c4, %c0_13, %c0_14] : memref<9x8x16xbf16, #tpu.memory_space<vmem>>, vector<1x8x16xbf16>
    %27 = vector.shape_cast %26 : vector<1x8x16xbf16> to vector<8x16xbf16>
    %cst_15 = arith.constant dense<0.000000e+00> : vector<8x512xf32>
    %28 = tpu.matmul %27, %25, %cst_15 {dimension_numbers = #tpu.dot_dimension_numbers<[1], [0], [0], [1], [0, 0, 1, 1], [], []>} : vector<8x16xbf16>, vector<16x512xbf16>, vector<8x512xf32> -> vector<8x512xf32>
    %29 = arith.addf %24, %28 : vector<8x512xf32>
    %30 = vector.extract_strided_slice %3 {offsets = [0, 20], sizes = [16, 512], strides = [1, 1]} : vector<16x550xbf16> to vector<16x512xbf16>
    %c5 = arith.constant 5 : index
    %c0_16 = arith.constant 0 : index
    %c0_17 = arith.constant 0 : index
    %31 = vector.load %arg2[%c5, %c0_16, %c0_17] : memref<9x8x16xbf16, #tpu.memory_space<vmem>>, vector<1x8x16xbf16>
    %32 = vector.shape_cast %31 : vector<1x8x16xbf16> to vector<8x16xbf16>
    %cst_18 = arith.constant dense<0.000000e+00> : vector<8x512xf32>
    %33 = tpu.matmul %32, %30, %cst_18 {dimension_numbers = #tpu.dot_dimension_numbers<[1], [0], [0], [1], [0, 0, 1, 1], [], []>} : vector<8x16xbf16>, vector<16x512xbf16>, vector<8x512xf32> -> vector<8x512xf32>
    %34 = arith.addf %29, %33 : vector<8x512xf32>
    %35 = vector.extract_strided_slice %3 {offsets = [0, 36], sizes = [16, 512], strides = [1, 1]} : vector<16x550xbf16> to vector<16x512xbf16>
    %c6 = arith.constant 6 : index
    %c0_19 = arith.constant 0 : index
    %c0_20 = arith.constant 0 : index
    %36 = vector.load %arg2[%c6, %c0_19, %c0_20] : memref<9x8x16xbf16, #tpu.memory_space<vmem>>, vector<1x8x16xbf16>
    %37 = vector.shape_cast %36 : vector<1x8x16xbf16> to vector<8x16xbf16>
    %cst_21 = arith.constant dense<0.000000e+00> : vector<8x512xf32>
    %38 = tpu.matmul %37, %35, %cst_21 {dimension_numbers = #tpu.dot_dimension_numbers<[1], [0], [0], [1], [0, 0, 1, 1], [], []>} : vector<8x16xbf16>, vector<16x512xbf16>, vector<8x512xf32> -> vector<8x512xf32>
    %39 = arith.addf %34, %38 : vector<8x512xf32>
    %40 = vector.extract_strided_slice %3 {offsets = [0, 37], sizes = [16, 512], strides = [1, 1]} : vector<16x550xbf16> to vector<16x512xbf16>
    %c7 = arith.constant 7 : index
    %c0_22 = arith.constant 0 : index
    %c0_23 = arith.constant 0 : index
    %41 = vector.load %arg2[%c7, %c0_22, %c0_23] : memref<9x8x16xbf16, #tpu.memory_space<vmem>>, vector<1x8x16xbf16>
    %42 = vector.shape_cast %41 : vector<1x8x16xbf16> to vector<8x16xbf16>
    %cst_24 = arith.constant dense<0.000000e+00> : vector<8x512xf32>
    %43 = tpu.matmul %42, %40, %cst_24 {dimension_numbers = #tpu.dot_dimension_numbers<[1], [0], [0], [1], [0, 0, 1, 1], [], []>} : vector<8x16xbf16>, vector<16x512xbf16>, vector<8x512xf32> -> vector<8x512xf32>
    %44 = arith.addf %39, %43 : vector<8x512xf32>
    %45 = vector.extract_strided_slice %3 {offsets = [0, 38], sizes = [16, 512], strides = [1, 1]} : vector<16x550xbf16> to vector<16x512xbf16>
    %c8 = arith.constant 8 : index
    %c0_25 = arith.constant 0 : index
    %c0_26 = arith.constant 0 : index
    %46 = vector.load %arg2[%c8, %c0_25, %c0_26] : memref<9x8x16xbf16, #tpu.memory_space<vmem>>, vector<1x8x16xbf16>
    %47 = vector.shape_cast %46 : vector<1x8x16xbf16> to vector<8x16xbf16>
    %cst_27 = arith.constant dense<0.000000e+00> : vector<8x512xf32>
    %48 = tpu.matmul %47, %45, %cst_27 {dimension_numbers = #tpu.dot_dimension_numbers<[1], [0], [0], [1], [0, 0, 1, 1], [], []>} : vector<8x16xbf16>, vector<16x512xbf16>, vector<8x512xf32> -> vector<8x512xf32>
    %49 = arith.addf %44, %48 : vector<8x512xf32>
    %c0_28 = arith.constant 0 : index
    %c0_29 = arith.constant 0 : index
    %50 = vector.load %arg3[%c0_28, %c0_29] : memref<8x1xf32, #tpu.memory_space<vmem>>, vector<8x1xf32>
    %51 = vector.broadcast %50 : vector<8x1xf32> to vector<8x512xf32>
    %52 = arith.addf %49, %51 : vector<8x512xf32>
    %cst_30 = arith.constant 0.000000e+00 : f32
    %53 = vector.broadcast %cst_30 : f32 to vector<8x512xf32>
    %54 = arith.maximumf %52, %53 : vector<8x512xf32>
    %55 = arith.truncf %54 : vector<8x512xf32> to vector<8x512xbf16>
    %c0_31 = arith.constant 0 : index
    %c0_32 = arith.constant 0 : index
    %56 = vector.load %arg4[%c0_31, %c0_32] : memref<8x512xbf16, #tpu.memory_space<vmem>>, vector<8x512xbf16>
    tpu.vector_store %arg4[%c0_31, %c0_32], %55 {strides = array<i32>} : memref<8x512xbf16, #tpu.memory_space<vmem>>, vector<8x512xbf16>,
    return
  }
  func.func @transform_0(%arg0: i32) -> (i32, i32) {
    %c0_i32 = arith.constant 0 : i32
    %c0_i32_0 = arith.constant 0 : i32
    %c0_i32_1 = arith.constant 0 : i32
    return %c0_i32, %c0_i32_0 : i32, i32
  }
  func.func @transform_1(%arg0: i32) -> (i32, i32, i32) {
    %c0_i32 = arith.constant 0 : i32
    %c0_i32_0 = arith.constant 0 : i32
    %c0_i32_1 = arith.constant 0 : i32
    %c0_i32_2 = arith.constant 0 : i32
    return %c0_i32, %c0_i32_0, %c0_i32_1 : i32, i32, i32
  }
  func.func @transform_2(%arg0: i32) -> (i32, i32) {
    %c0_i32 = arith.constant 0 : i32
    %c0_i32_0 = arith.constant 0 : i32
    %c0_i32_1 = arith.constant 0 : i32
    return %c0_i32, %c0_i32_0 : i32, i32
  }
  func.func @transform_3(%arg0: i32) -> (i32, i32) {
    %c0_i32 = arith.constant 0 : i32
    %c0_i32_0 = arith.constant 0 : i32
    return %c0_i32, %arg0 : i32, i32
  }
}

module attributes {stable_mosaic.version = 11 : i64} {
  func.func @_pw_kernel(%arg0: i32, %arg1: memref<16x512xbf16, #tpu.memory_space<vmem>>, %arg2: memref<8x512xbf16, #tpu.memory_space<vmem>>, %arg3: memref<8x16xbf16, #tpu.memory_space<vmem>>, %arg4: memref<8x8xbf16, #tpu.memory_space<vmem>>, %arg5: memref<8x1xf32, #tpu.memory_space<vmem>>, %arg6: memref<8x512xbf16, #tpu.memory_space<vmem>>, %arg7: memref<8x512xbf16, #tpu.memory_space<vmem>>) attributes {dimension_semantics = [#tpu.dimension_semantics<parallel>], iteration_bounds = array<i64: 1>, scalar_prefetch = 0 : i64, scratch_operands = 0 : i64, tpu.core_type = #tpu.core_type<tc>, window_params = [{transform_indices = @transform_0, window_bounds = array<i64: 16, 512>}, {transform_indices = @transform_1, window_bounds = array<i64: 8, 512>}, {pipeline_mode = #tpu.pipeline_mode<synchronous>, transform_indices = @transform_2, window_bounds = array<i64: 8, 16>}, {pipeline_mode = #tpu.pipeline_mode<synchronous>, transform_indices = @transform_3, window_bounds = array<i64: 8, 8>}, {pipeline_mode = #tpu.pipeline_mode<synchronous>, transform_indices = @transform_4, window_bounds = array<i64: 8, 1>}, {transform_indices = @transform_5, window_bounds = array<i64: 8, 512>}, {transform_indices = @transform_6, window_bounds = array<i64: 8, 512>}]} {
    %c0 = arith.constant 0 : index
    %c0_0 = arith.constant 0 : index
    %0 = vector.load %arg3[%c0, %c0_0] : memref<8x16xbf16, #tpu.memory_space<vmem>>, vector<8x16xbf16>
    %c0_1 = arith.constant 0 : index
    %c0_2 = arith.constant 0 : index
    %1 = vector.load %arg1[%c0_1, %c0_2] : memref<16x512xbf16, #tpu.memory_space<vmem>>, vector<16x512xbf16>
    %cst = arith.constant dense<0.000000e+00> : vector<8x512xf32>
    %2 = tpu.matmul %0, %1, %cst {dimension_numbers = #tpu.dot_dimension_numbers<[1], [0], [0], [1], [0, 0, 1, 1], [], []>} : vector<8x16xbf16>, vector<16x512xbf16>, vector<8x512xf32> -> vector<8x512xf32>
    %c0_3 = arith.constant 0 : index
    %c0_4 = arith.constant 0 : index
    %3 = vector.load %arg4[%c0_3, %c0_4] : memref<8x8xbf16, #tpu.memory_space<vmem>>, vector<8x8xbf16>
    %c0_5 = arith.constant 0 : index
    %c0_6 = arith.constant 0 : index
    %4 = vector.load %arg2[%c0_5, %c0_6] : memref<8x512xbf16, #tpu.memory_space<vmem>>, vector<8x512xbf16>
    %cst_7 = arith.constant dense<0.000000e+00> : vector<8x512xf32>
    %5 = tpu.matmul %3, %4, %cst_7 {dimension_numbers = #tpu.dot_dimension_numbers<[1], [0], [0], [1], [0, 0, 1, 1], [], []>} : vector<8x8xbf16>, vector<8x512xbf16>, vector<8x512xf32> -> vector<8x512xf32>
    %6 = arith.addf %2, %5 : vector<8x512xf32>
    %c0_8 = arith.constant 0 : index
    %c0_9 = arith.constant 0 : index
    %7 = vector.load %arg5[%c0_8, %c0_9] : memref<8x1xf32, #tpu.memory_space<vmem>>, vector<8x1xf32>
    %8 = vector.broadcast %7 : vector<8x1xf32> to vector<8x512xf32>
    %9 = arith.addf %6, %8 : vector<8x512xf32>
    %c0_10 = arith.constant 0 : index
    %c0_11 = arith.constant 0 : index
    %10 = vector.load %arg6[%c0_10, %c0_11] : memref<8x512xbf16, #tpu.memory_space<vmem>>, vector<8x512xbf16>
    %11 = arith.extf %10 : vector<8x512xbf16> to vector<8x512xf32>
    %12 = arith.addf %9, %11 : vector<8x512xf32>
    %13 = arith.truncf %12 : vector<8x512xf32> to vector<8x512xbf16>
    %c0_12 = arith.constant 0 : index
    %c0_13 = arith.constant 0 : index
    %14 = vector.load %arg7[%c0_12, %c0_13] : memref<8x512xbf16, #tpu.memory_space<vmem>>, vector<8x512xbf16>
    tpu.vector_store %arg7[%c0_12, %c0_13], %13 {strides = array<i32>} : memref<8x512xbf16, #tpu.memory_space<vmem>>, vector<8x512xbf16>,
    return
  }
  func.func @transform_0(%arg0: i32) -> (i32, i32) {
    %c0_i32 = arith.constant 0 : i32
    %c0_i32_0 = arith.constant 0 : i32
    return %c0_i32, %arg0 : i32, i32
  }
  func.func @transform_1(%arg0: i32) -> (i32, i32) {
    %c0_i32 = arith.constant 0 : i32
    %c0_i32_0 = arith.constant 0 : i32
    return %c0_i32, %arg0 : i32, i32
  }
  func.func @transform_2(%arg0: i32) -> (i32, i32) {
    %c0_i32 = arith.constant 0 : i32
    %c0_i32_0 = arith.constant 0 : i32
    %c0_i32_1 = arith.constant 0 : i32
    return %c0_i32, %c0_i32_0 : i32, i32
  }
  func.func @transform_3(%arg0: i32) -> (i32, i32) {
    %c0_i32 = arith.constant 0 : i32
    %c0_i32_0 = arith.constant 0 : i32
    %c0_i32_1 = arith.constant 0 : i32
    return %c0_i32, %c0_i32_0 : i32, i32
  }
  func.func @transform_4(%arg0: i32) -> (i32, i32) {
    %c0_i32 = arith.constant 0 : i32
    %c0_i32_0 = arith.constant 0 : i32
    %c0_i32_1 = arith.constant 0 : i32
    return %c0_i32, %c0_i32_0 : i32, i32
  }
  func.func @transform_5(%arg0: i32) -> (i32, i32) {
    %c0_i32 = arith.constant 0 : i32
    %c0_i32_0 = arith.constant 0 : i32
    return %c0_i32, %arg0 : i32, i32
  }
  func.func @transform_6(%arg0: i32) -> (i32, i32) {
    %c0_i32 = arith.constant 0 : i32
    %c0_i32_0 = arith.constant 0 : i32
    return %c0_i32, %arg0 : i32, i32
  }
}

module attributes {stable_mosaic.version = 11 : i64} {
  func.func @_conv3x3_kernel(%arg0: i32, %arg1: memref<8x278xbf16, #tpu.memory_space<vmem>>, %arg2: memref<9x8x8xbf16, #tpu.memory_space<vmem>>, %arg3: memref<8x1xf32, #tpu.memory_space<vmem>>, %arg4: memref<8x256xbf16, #tpu.memory_space<vmem>>) attributes {dimension_semantics = [#tpu.dimension_semantics<parallel>], iteration_bounds = array<i64: 1>, scalar_prefetch = 0 : i64, scratch_operands = 0 : i64, tpu.core_type = #tpu.core_type<tc>, window_params = [{pipeline_mode = #tpu.pipeline_mode<synchronous>, transform_indices = @transform_0, window_bounds = array<i64: 8, 278>}, {pipeline_mode = #tpu.pipeline_mode<synchronous>, transform_indices = @transform_1, window_bounds = array<i64: 9, 8, 8>}, {pipeline_mode = #tpu.pipeline_mode<synchronous>, transform_indices = @transform_2, window_bounds = array<i64: 8, 1>}, {transform_indices = @transform_3, window_bounds = array<i64: 8, 256>}]} {
    %c256_i32 = arith.constant 256 : i32
    %0 = arith.muli %arg0, %c256_i32 : i32
    %1 = tpu.assume_multiple %0, 128 : i32
    %c0 = arith.constant 0 : index
    %2 = arith.index_cast %1 : i32 to index
    %3 = vector.load %arg1[%c0, %2] : memref<8x278xbf16, #tpu.memory_space<vmem>>, vector<8x278xbf16>
    %cst = arith.constant 0.000000e+00 : f32
    %4 = vector.broadcast %cst : f32 to vector<8x256xf32>
    %5 = vector.extract_strided_slice %3 {offsets = [0, 0], sizes = [8, 256], strides = [1, 1]} : vector<8x278xbf16> to vector<8x256xbf16>
    %c0_0 = arith.constant 0 : index
    %c0_1 = arith.constant 0 : index
    %c0_2 = arith.constant 0 : index
    %6 = vector.load %arg2[%c0_0, %c0_1, %c0_2] : memref<9x8x8xbf16, #tpu.memory_space<vmem>>, vector<1x8x8xbf16>
    %7 = vector.shape_cast %6 : vector<1x8x8xbf16> to vector<8x8xbf16>
    %cst_3 = arith.constant dense<0.000000e+00> : vector<8x256xf32>
    %8 = tpu.matmul %7, %5, %cst_3 {dimension_numbers = #tpu.dot_dimension_numbers<[1], [0], [0], [1], [0, 0, 1, 1], [], []>} : vector<8x8xbf16>, vector<8x256xbf16>, vector<8x256xf32> -> vector<8x256xf32>
    %9 = arith.addf %4, %8 : vector<8x256xf32>
    %10 = vector.extract_strided_slice %3 {offsets = [0, 1], sizes = [8, 256], strides = [1, 1]} : vector<8x278xbf16> to vector<8x256xbf16>
    %c1 = arith.constant 1 : index
    %c0_4 = arith.constant 0 : index
    %c0_5 = arith.constant 0 : index
    %11 = vector.load %arg2[%c1, %c0_4, %c0_5] : memref<9x8x8xbf16, #tpu.memory_space<vmem>>, vector<1x8x8xbf16>
    %12 = vector.shape_cast %11 : vector<1x8x8xbf16> to vector<8x8xbf16>
    %cst_6 = arith.constant dense<0.000000e+00> : vector<8x256xf32>
    %13 = tpu.matmul %12, %10, %cst_6 {dimension_numbers = #tpu.dot_dimension_numbers<[1], [0], [0], [1], [0, 0, 1, 1], [], []>} : vector<8x8xbf16>, vector<8x256xbf16>, vector<8x256xf32> -> vector<8x256xf32>
    %14 = arith.addf %9, %13 : vector<8x256xf32>
    %15 = vector.extract_strided_slice %3 {offsets = [0, 2], sizes = [8, 256], strides = [1, 1]} : vector<8x278xbf16> to vector<8x256xbf16>
    %c2 = arith.constant 2 : index
    %c0_7 = arith.constant 0 : index
    %c0_8 = arith.constant 0 : index
    %16 = vector.load %arg2[%c2, %c0_7, %c0_8] : memref<9x8x8xbf16, #tpu.memory_space<vmem>>, vector<1x8x8xbf16>
    %17 = vector.shape_cast %16 : vector<1x8x8xbf16> to vector<8x8xbf16>
    %cst_9 = arith.constant dense<0.000000e+00> : vector<8x256xf32>
    %18 = tpu.matmul %17, %15, %cst_9 {dimension_numbers = #tpu.dot_dimension_numbers<[1], [0], [0], [1], [0, 0, 1, 1], [], []>} : vector<8x8xbf16>, vector<8x256xbf16>, vector<8x256xf32> -> vector<8x256xf32>
    %19 = arith.addf %14, %18 : vector<8x256xf32>
    %20 = vector.extract_strided_slice %3 {offsets = [0, 10], sizes = [8, 256], strides = [1, 1]} : vector<8x278xbf16> to vector<8x256xbf16>
    %c3 = arith.constant 3 : index
    %c0_10 = arith.constant 0 : index
    %c0_11 = arith.constant 0 : index
    %21 = vector.load %arg2[%c3, %c0_10, %c0_11] : memref<9x8x8xbf16, #tpu.memory_space<vmem>>, vector<1x8x8xbf16>
    %22 = vector.shape_cast %21 : vector<1x8x8xbf16> to vector<8x8xbf16>
    %cst_12 = arith.constant dense<0.000000e+00> : vector<8x256xf32>
    %23 = tpu.matmul %22, %20, %cst_12 {dimension_numbers = #tpu.dot_dimension_numbers<[1], [0], [0], [1], [0, 0, 1, 1], [], []>} : vector<8x8xbf16>, vector<8x256xbf16>, vector<8x256xf32> -> vector<8x256xf32>
    %24 = arith.addf %19, %23 : vector<8x256xf32>
    %25 = vector.extract_strided_slice %3 {offsets = [0, 11], sizes = [8, 256], strides = [1, 1]} : vector<8x278xbf16> to vector<8x256xbf16>
    %c4 = arith.constant 4 : index
    %c0_13 = arith.constant 0 : index
    %c0_14 = arith.constant 0 : index
    %26 = vector.load %arg2[%c4, %c0_13, %c0_14] : memref<9x8x8xbf16, #tpu.memory_space<vmem>>, vector<1x8x8xbf16>
    %27 = vector.shape_cast %26 : vector<1x8x8xbf16> to vector<8x8xbf16>
    %cst_15 = arith.constant dense<0.000000e+00> : vector<8x256xf32>
    %28 = tpu.matmul %27, %25, %cst_15 {dimension_numbers = #tpu.dot_dimension_numbers<[1], [0], [0], [1], [0, 0, 1, 1], [], []>} : vector<8x8xbf16>, vector<8x256xbf16>, vector<8x256xf32> -> vector<8x256xf32>
    %29 = arith.addf %24, %28 : vector<8x256xf32>
    %30 = vector.extract_strided_slice %3 {offsets = [0, 12], sizes = [8, 256], strides = [1, 1]} : vector<8x278xbf16> to vector<8x256xbf16>
    %c5 = arith.constant 5 : index
    %c0_16 = arith.constant 0 : index
    %c0_17 = arith.constant 0 : index
    %31 = vector.load %arg2[%c5, %c0_16, %c0_17] : memref<9x8x8xbf16, #tpu.memory_space<vmem>>, vector<1x8x8xbf16>
    %32 = vector.shape_cast %31 : vector<1x8x8xbf16> to vector<8x8xbf16>
    %cst_18 = arith.constant dense<0.000000e+00> : vector<8x256xf32>
    %33 = tpu.matmul %32, %30, %cst_18 {dimension_numbers = #tpu.dot_dimension_numbers<[1], [0], [0], [1], [0, 0, 1, 1], [], []>} : vector<8x8xbf16>, vector<8x256xbf16>, vector<8x256xf32> -> vector<8x256xf32>
    %34 = arith.addf %29, %33 : vector<8x256xf32>
    %35 = vector.extract_strided_slice %3 {offsets = [0, 20], sizes = [8, 256], strides = [1, 1]} : vector<8x278xbf16> to vector<8x256xbf16>
    %c6 = arith.constant 6 : index
    %c0_19 = arith.constant 0 : index
    %c0_20 = arith.constant 0 : index
    %36 = vector.load %arg2[%c6, %c0_19, %c0_20] : memref<9x8x8xbf16, #tpu.memory_space<vmem>>, vector<1x8x8xbf16>
    %37 = vector.shape_cast %36 : vector<1x8x8xbf16> to vector<8x8xbf16>
    %cst_21 = arith.constant dense<0.000000e+00> : vector<8x256xf32>
    %38 = tpu.matmul %37, %35, %cst_21 {dimension_numbers = #tpu.dot_dimension_numbers<[1], [0], [0], [1], [0, 0, 1, 1], [], []>} : vector<8x8xbf16>, vector<8x256xbf16>, vector<8x256xf32> -> vector<8x256xf32>
    %39 = arith.addf %34, %38 : vector<8x256xf32>
    %40 = vector.extract_strided_slice %3 {offsets = [0, 21], sizes = [8, 256], strides = [1, 1]} : vector<8x278xbf16> to vector<8x256xbf16>
    %c7 = arith.constant 7 : index
    %c0_22 = arith.constant 0 : index
    %c0_23 = arith.constant 0 : index
    %41 = vector.load %arg2[%c7, %c0_22, %c0_23] : memref<9x8x8xbf16, #tpu.memory_space<vmem>>, vector<1x8x8xbf16>
    %42 = vector.shape_cast %41 : vector<1x8x8xbf16> to vector<8x8xbf16>
    %cst_24 = arith.constant dense<0.000000e+00> : vector<8x256xf32>
    %43 = tpu.matmul %42, %40, %cst_24 {dimension_numbers = #tpu.dot_dimension_numbers<[1], [0], [0], [1], [0, 0, 1, 1], [], []>} : vector<8x8xbf16>, vector<8x256xbf16>, vector<8x256xf32> -> vector<8x256xf32>
    %44 = arith.addf %39, %43 : vector<8x256xf32>
    %45 = vector.extract_strided_slice %3 {offsets = [0, 22], sizes = [8, 256], strides = [1, 1]} : vector<8x278xbf16> to vector<8x256xbf16>
    %c8 = arith.constant 8 : index
    %c0_25 = arith.constant 0 : index
    %c0_26 = arith.constant 0 : index
    %46 = vector.load %arg2[%c8, %c0_25, %c0_26] : memref<9x8x8xbf16, #tpu.memory_space<vmem>>, vector<1x8x8xbf16>
    %47 = vector.shape_cast %46 : vector<1x8x8xbf16> to vector<8x8xbf16>
    %cst_27 = arith.constant dense<0.000000e+00> : vector<8x256xf32>
    %48 = tpu.matmul %47, %45, %cst_27 {dimension_numbers = #tpu.dot_dimension_numbers<[1], [0], [0], [1], [0, 0, 1, 1], [], []>} : vector<8x8xbf16>, vector<8x256xbf16>, vector<8x256xf32> -> vector<8x256xf32>
    %49 = arith.addf %44, %48 : vector<8x256xf32>
    %c0_28 = arith.constant 0 : index
    %c0_29 = arith.constant 0 : index
    %50 = vector.load %arg3[%c0_28, %c0_29] : memref<8x1xf32, #tpu.memory_space<vmem>>, vector<8x1xf32>
    %51 = vector.broadcast %50 : vector<8x1xf32> to vector<8x256xf32>
    %52 = arith.addf %49, %51 : vector<8x256xf32>
    %cst_30 = arith.constant 0.000000e+00 : f32
    %53 = vector.broadcast %cst_30 : f32 to vector<8x256xf32>
    %54 = arith.maximumf %52, %53 : vector<8x256xf32>
    %55 = arith.truncf %54 : vector<8x256xf32> to vector<8x256xbf16>
    %c0_31 = arith.constant 0 : index
    %c0_32 = arith.constant 0 : index
    %56 = vector.load %arg4[%c0_31, %c0_32] : memref<8x256xbf16, #tpu.memory_space<vmem>>, vector<8x256xbf16>
    tpu.vector_store %arg4[%c0_31, %c0_32], %55 {strides = array<i32>} : memref<8x256xbf16, #tpu.memory_space<vmem>>, vector<8x256xbf16>,
    return
  }
  func.func @transform_0(%arg0: i32) -> (i32, i32) {
    %c0_i32 = arith.constant 0 : i32
    %c0_i32_0 = arith.constant 0 : i32
    %c0_i32_1 = arith.constant 0 : i32
    return %c0_i32, %c0_i32_0 : i32, i32
  }
  func.func @transform_1(%arg0: i32) -> (i32, i32, i32) {
    %c0_i32 = arith.constant 0 : i32
    %c0_i32_0 = arith.constant 0 : i32
    %c0_i32_1 = arith.constant 0 : i32
    %c0_i32_2 = arith.constant 0 : i32
    return %c0_i32, %c0_i32_0, %c0_i32_1 : i32, i32, i32
  }
  func.func @transform_2(%arg0: i32) -> (i32, i32) {
    %c0_i32 = arith.constant 0 : i32
    %c0_i32_0 = arith.constant 0 : i32
    %c0_i32_1 = arith.constant 0 : i32
    return %c0_i32, %c0_i32_0 : i32, i32
  }
  func.func @transform_3(%arg0: i32) -> (i32, i32) {
    %c0_i32 = arith.constant 0 : i32
    %c0_i32_0 = arith.constant 0 : i32
    return %c0_i32, %arg0 : i32, i32
  }
}

module attributes {stable_mosaic.version = 11 : i64} {
  func.func @_pw_kernel(%arg0: i32, %arg1: memref<16x128xbf16, #tpu.memory_space<vmem>>, %arg2: memref<8x128xbf16, #tpu.memory_space<vmem>>, %arg3: memref<8x16xbf16, #tpu.memory_space<vmem>>, %arg4: memref<8x8xbf16, #tpu.memory_space<vmem>>, %arg5: memref<8x1xf32, #tpu.memory_space<vmem>>, %arg6: memref<8x128xbf16, #tpu.memory_space<vmem>>, %arg7: memref<8x128xbf16, #tpu.memory_space<vmem>>) attributes {dimension_semantics = [#tpu.dimension_semantics<parallel>], iteration_bounds = array<i64: 1>, scalar_prefetch = 0 : i64, scratch_operands = 0 : i64, tpu.core_type = #tpu.core_type<tc>, window_params = [{transform_indices = @transform_0, window_bounds = array<i64: 16, 128>}, {transform_indices = @transform_1, window_bounds = array<i64: 8, 128>}, {pipeline_mode = #tpu.pipeline_mode<synchronous>, transform_indices = @transform_2, window_bounds = array<i64: 8, 16>}, {pipeline_mode = #tpu.pipeline_mode<synchronous>, transform_indices = @transform_3, window_bounds = array<i64: 8, 8>}, {pipeline_mode = #tpu.pipeline_mode<synchronous>, transform_indices = @transform_4, window_bounds = array<i64: 8, 1>}, {transform_indices = @transform_5, window_bounds = array<i64: 8, 128>}, {transform_indices = @transform_6, window_bounds = array<i64: 8, 128>}]} {
    %c0 = arith.constant 0 : index
    %c0_0 = arith.constant 0 : index
    %0 = vector.load %arg3[%c0, %c0_0] : memref<8x16xbf16, #tpu.memory_space<vmem>>, vector<8x16xbf16>
    %c0_1 = arith.constant 0 : index
    %c0_2 = arith.constant 0 : index
    %1 = vector.load %arg1[%c0_1, %c0_2] : memref<16x128xbf16, #tpu.memory_space<vmem>>, vector<16x128xbf16>
    %cst = arith.constant dense<0.000000e+00> : vector<8x128xf32>
    %2 = tpu.matmul %0, %1, %cst {dimension_numbers = #tpu.dot_dimension_numbers<[1], [0], [0], [1], [0, 0, 1, 1], [], []>} : vector<8x16xbf16>, vector<16x128xbf16>, vector<8x128xf32> -> vector<8x128xf32>
    %c0_3 = arith.constant 0 : index
    %c0_4 = arith.constant 0 : index
    %3 = vector.load %arg4[%c0_3, %c0_4] : memref<8x8xbf16, #tpu.memory_space<vmem>>, vector<8x8xbf16>
    %c0_5 = arith.constant 0 : index
    %c0_6 = arith.constant 0 : index
    %4 = vector.load %arg2[%c0_5, %c0_6] : memref<8x128xbf16, #tpu.memory_space<vmem>>, vector<8x128xbf16>
    %cst_7 = arith.constant dense<0.000000e+00> : vector<8x128xf32>
    %5 = tpu.matmul %3, %4, %cst_7 {dimension_numbers = #tpu.dot_dimension_numbers<[1], [0], [0], [1], [0, 0, 1, 1], [], []>} : vector<8x8xbf16>, vector<8x128xbf16>, vector<8x128xf32> -> vector<8x128xf32>
    %6 = arith.addf %2, %5 : vector<8x128xf32>
    %c0_8 = arith.constant 0 : index
    %c0_9 = arith.constant 0 : index
    %7 = vector.load %arg5[%c0_8, %c0_9] : memref<8x1xf32, #tpu.memory_space<vmem>>, vector<8x1xf32>
    %8 = vector.broadcast %7 : vector<8x1xf32> to vector<8x128xf32>
    %9 = arith.addf %6, %8 : vector<8x128xf32>
    %c0_10 = arith.constant 0 : index
    %c0_11 = arith.constant 0 : index
    %10 = vector.load %arg6[%c0_10, %c0_11] : memref<8x128xbf16, #tpu.memory_space<vmem>>, vector<8x128xbf16>
    %11 = arith.extf %10 : vector<8x128xbf16> to vector<8x128xf32>
    %12 = arith.addf %9, %11 : vector<8x128xf32>
    %13 = arith.truncf %12 : vector<8x128xf32> to vector<8x128xbf16>
    %c0_12 = arith.constant 0 : index
    %c0_13 = arith.constant 0 : index
    %14 = vector.load %arg7[%c0_12, %c0_13] : memref<8x128xbf16, #tpu.memory_space<vmem>>, vector<8x128xbf16>
    tpu.vector_store %arg7[%c0_12, %c0_13], %13 {strides = array<i32>} : memref<8x128xbf16, #tpu.memory_space<vmem>>, vector<8x128xbf16>,
    return
  }
  func.func @transform_0(%arg0: i32) -> (i32, i32) {
    %c0_i32 = arith.constant 0 : i32
    %c0_i32_0 = arith.constant 0 : i32
    return %c0_i32, %arg0 : i32, i32
  }
  func.func @transform_1(%arg0: i32) -> (i32, i32) {
    %c0_i32 = arith.constant 0 : i32
    %c0_i32_0 = arith.constant 0 : i32
    return %c0_i32, %arg0 : i32, i32
  }
  func.func @transform_2(%arg0: i32) -> (i32, i32) {
    %c0_i32 = arith.constant 0 : i32
    %c0_i32_0 = arith.constant 0 : i32
    %c0_i32_1 = arith.constant 0 : i32
    return %c0_i32, %c0_i32_0 : i32, i32
  }
  func.func @transform_3(%arg0: i32) -> (i32, i32) {
    %c0_i32 = arith.constant 0 : i32
    %c0_i32_0 = arith.constant 0 : i32
    %c0_i32_1 = arith.constant 0 : i32
    return %c0_i32, %c0_i32_0 : i32, i32
  }
  func.func @transform_4(%arg0: i32) -> (i32, i32) {
    %c0_i32 = arith.constant 0 : i32
    %c0_i32_0 = arith.constant 0 : i32
    %c0_i32_1 = arith.constant 0 : i32
    return %c0_i32, %c0_i32_0 : i32, i32
  }
  func.func @transform_5(%arg0: i32) -> (i32, i32) {
    %c0_i32 = arith.constant 0 : i32
    %c0_i32_0 = arith.constant 0 : i32
    return %c0_i32, %arg0 : i32, i32
  }
  func.func @transform_6(%arg0: i32) -> (i32, i32) {
    %c0_i32 = arith.constant 0 : i32
    %c0_i32_0 = arith.constant 0 : i32
    return %c0_i32, %arg0 : i32, i32
  }
}

module attributes {stable_mosaic.version = 11 : i64} {
  func.func @_conv3x3_kernel(%arg0: i32, %arg1: memref<16x278xbf16, #tpu.memory_space<vmem>>, %arg2: memref<9x8x16xbf16, #tpu.memory_space<vmem>>, %arg3: memref<8x1xf32, #tpu.memory_space<vmem>>, %arg4: memref<8x256xbf16, #tpu.memory_space<vmem>>) attributes {dimension_semantics = [#tpu.dimension_semantics<parallel>], iteration_bounds = array<i64: 1>, scalar_prefetch = 0 : i64, scratch_operands = 0 : i64, tpu.core_type = #tpu.core_type<tc>, window_params = [{pipeline_mode = #tpu.pipeline_mode<synchronous>, transform_indices = @transform_0, window_bounds = array<i64: 16, 278>}, {pipeline_mode = #tpu.pipeline_mode<synchronous>, transform_indices = @transform_1, window_bounds = array<i64: 9, 8, 16>}, {pipeline_mode = #tpu.pipeline_mode<synchronous>, transform_indices = @transform_2, window_bounds = array<i64: 8, 1>}, {transform_indices = @transform_3, window_bounds = array<i64: 8, 256>}]} {
    %c256_i32 = arith.constant 256 : i32
    %0 = arith.muli %arg0, %c256_i32 : i32
    %1 = tpu.assume_multiple %0, 128 : i32
    %c0 = arith.constant 0 : index
    %2 = arith.index_cast %1 : i32 to index
    %3 = vector.load %arg1[%c0, %2] : memref<16x278xbf16, #tpu.memory_space<vmem>>, vector<16x278xbf16>
    %cst = arith.constant 0.000000e+00 : f32
    %4 = vector.broadcast %cst : f32 to vector<8x256xf32>
    %5 = vector.extract_strided_slice %3 {offsets = [0, 0], sizes = [16, 256], strides = [1, 1]} : vector<16x278xbf16> to vector<16x256xbf16>
    %c0_0 = arith.constant 0 : index
    %c0_1 = arith.constant 0 : index
    %c0_2 = arith.constant 0 : index
    %6 = vector.load %arg2[%c0_0, %c0_1, %c0_2] : memref<9x8x16xbf16, #tpu.memory_space<vmem>>, vector<1x8x16xbf16>
    %7 = vector.shape_cast %6 : vector<1x8x16xbf16> to vector<8x16xbf16>
    %cst_3 = arith.constant dense<0.000000e+00> : vector<8x256xf32>
    %8 = tpu.matmul %7, %5, %cst_3 {dimension_numbers = #tpu.dot_dimension_numbers<[1], [0], [0], [1], [0, 0, 1, 1], [], []>} : vector<8x16xbf16>, vector<16x256xbf16>, vector<8x256xf32> -> vector<8x256xf32>
    %9 = arith.addf %4, %8 : vector<8x256xf32>
    %10 = vector.extract_strided_slice %3 {offsets = [0, 1], sizes = [16, 256], strides = [1, 1]} : vector<16x278xbf16> to vector<16x256xbf16>
    %c1 = arith.constant 1 : index
    %c0_4 = arith.constant 0 : index
    %c0_5 = arith.constant 0 : index
    %11 = vector.load %arg2[%c1, %c0_4, %c0_5] : memref<9x8x16xbf16, #tpu.memory_space<vmem>>, vector<1x8x16xbf16>
    %12 = vector.shape_cast %11 : vector<1x8x16xbf16> to vector<8x16xbf16>
    %cst_6 = arith.constant dense<0.000000e+00> : vector<8x256xf32>
    %13 = tpu.matmul %12, %10, %cst_6 {dimension_numbers = #tpu.dot_dimension_numbers<[1], [0], [0], [1], [0, 0, 1, 1], [], []>} : vector<8x16xbf16>, vector<16x256xbf16>, vector<8x256xf32> -> vector<8x256xf32>
    %14 = arith.addf %9, %13 : vector<8x256xf32>
    %15 = vector.extract_strided_slice %3 {offsets = [0, 2], sizes = [16, 256], strides = [1, 1]} : vector<16x278xbf16> to vector<16x256xbf16>
    %c2 = arith.constant 2 : index
    %c0_7 = arith.constant 0 : index
    %c0_8 = arith.constant 0 : index
    %16 = vector.load %arg2[%c2, %c0_7, %c0_8] : memref<9x8x16xbf16, #tpu.memory_space<vmem>>, vector<1x8x16xbf16>
    %17 = vector.shape_cast %16 : vector<1x8x16xbf16> to vector<8x16xbf16>
    %cst_9 = arith.constant dense<0.000000e+00> : vector<8x256xf32>
    %18 = tpu.matmul %17, %15, %cst_9 {dimension_numbers = #tpu.dot_dimension_numbers<[1], [0], [0], [1], [0, 0, 1, 1], [], []>} : vector<8x16xbf16>, vector<16x256xbf16>, vector<8x256xf32> -> vector<8x256xf32>
    %19 = arith.addf %14, %18 : vector<8x256xf32>
    %20 = vector.extract_strided_slice %3 {offsets = [0, 10], sizes = [16, 256], strides = [1, 1]} : vector<16x278xbf16> to vector<16x256xbf16>
    %c3 = arith.constant 3 : index
    %c0_10 = arith.constant 0 : index
    %c0_11 = arith.constant 0 : index
    %21 = vector.load %arg2[%c3, %c0_10, %c0_11] : memref<9x8x16xbf16, #tpu.memory_space<vmem>>, vector<1x8x16xbf16>
    %22 = vector.shape_cast %21 : vector<1x8x16xbf16> to vector<8x16xbf16>
    %cst_12 = arith.constant dense<0.000000e+00> : vector<8x256xf32>
    %23 = tpu.matmul %22, %20, %cst_12 {dimension_numbers = #tpu.dot_dimension_numbers<[1], [0], [0], [1], [0, 0, 1, 1], [], []>} : vector<8x16xbf16>, vector<16x256xbf16>, vector<8x256xf32> -> vector<8x256xf32>
    %24 = arith.addf %19, %23 : vector<8x256xf32>
    %25 = vector.extract_strided_slice %3 {offsets = [0, 11], sizes = [16, 256], strides = [1, 1]} : vector<16x278xbf16> to vector<16x256xbf16>
    %c4 = arith.constant 4 : index
    %c0_13 = arith.constant 0 : index
    %c0_14 = arith.constant 0 : index
    %26 = vector.load %arg2[%c4, %c0_13, %c0_14] : memref<9x8x16xbf16, #tpu.memory_space<vmem>>, vector<1x8x16xbf16>
    %27 = vector.shape_cast %26 : vector<1x8x16xbf16> to vector<8x16xbf16>
    %cst_15 = arith.constant dense<0.000000e+00> : vector<8x256xf32>
    %28 = tpu.matmul %27, %25, %cst_15 {dimension_numbers = #tpu.dot_dimension_numbers<[1], [0], [0], [1], [0, 0, 1, 1], [], []>} : vector<8x16xbf16>, vector<16x256xbf16>, vector<8x256xf32> -> vector<8x256xf32>
    %29 = arith.addf %24, %28 : vector<8x256xf32>
    %30 = vector.extract_strided_slice %3 {offsets = [0, 12], sizes = [16, 256], strides = [1, 1]} : vector<16x278xbf16> to vector<16x256xbf16>
    %c5 = arith.constant 5 : index
    %c0_16 = arith.constant 0 : index
    %c0_17 = arith.constant 0 : index
    %31 = vector.load %arg2[%c5, %c0_16, %c0_17] : memref<9x8x16xbf16, #tpu.memory_space<vmem>>, vector<1x8x16xbf16>
    %32 = vector.shape_cast %31 : vector<1x8x16xbf16> to vector<8x16xbf16>
    %cst_18 = arith.constant dense<0.000000e+00> : vector<8x256xf32>
    %33 = tpu.matmul %32, %30, %cst_18 {dimension_numbers = #tpu.dot_dimension_numbers<[1], [0], [0], [1], [0, 0, 1, 1], [], []>} : vector<8x16xbf16>, vector<16x256xbf16>, vector<8x256xf32> -> vector<8x256xf32>
    %34 = arith.addf %29, %33 : vector<8x256xf32>
    %35 = vector.extract_strided_slice %3 {offsets = [0, 20], sizes = [16, 256], strides = [1, 1]} : vector<16x278xbf16> to vector<16x256xbf16>
    %c6 = arith.constant 6 : index
    %c0_19 = arith.constant 0 : index
    %c0_20 = arith.constant 0 : index
    %36 = vector.load %arg2[%c6, %c0_19, %c0_20] : memref<9x8x16xbf16, #tpu.memory_space<vmem>>, vector<1x8x16xbf16>
    %37 = vector.shape_cast %36 : vector<1x8x16xbf16> to vector<8x16xbf16>
    %cst_21 = arith.constant dense<0.000000e+00> : vector<8x256xf32>
    %38 = tpu.matmul %37, %35, %cst_21 {dimension_numbers = #tpu.dot_dimension_numbers<[1], [0], [0], [1], [0, 0, 1, 1], [], []>} : vector<8x16xbf16>, vector<16x256xbf16>, vector<8x256xf32> -> vector<8x256xf32>
    %39 = arith.addf %34, %38 : vector<8x256xf32>
    %40 = vector.extract_strided_slice %3 {offsets = [0, 21], sizes = [16, 256], strides = [1, 1]} : vector<16x278xbf16> to vector<16x256xbf16>
    %c7 = arith.constant 7 : index
    %c0_22 = arith.constant 0 : index
    %c0_23 = arith.constant 0 : index
    %41 = vector.load %arg2[%c7, %c0_22, %c0_23] : memref<9x8x16xbf16, #tpu.memory_space<vmem>>, vector<1x8x16xbf16>
    %42 = vector.shape_cast %41 : vector<1x8x16xbf16> to vector<8x16xbf16>
    %cst_24 = arith.constant dense<0.000000e+00> : vector<8x256xf32>
    %43 = tpu.matmul %42, %40, %cst_24 {dimension_numbers = #tpu.dot_dimension_numbers<[1], [0], [0], [1], [0, 0, 1, 1], [], []>} : vector<8x16xbf16>, vector<16x256xbf16>, vector<8x256xf32> -> vector<8x256xf32>
    %44 = arith.addf %39, %43 : vector<8x256xf32>
    %45 = vector.extract_strided_slice %3 {offsets = [0, 22], sizes = [16, 256], strides = [1, 1]} : vector<16x278xbf16> to vector<16x256xbf16>
    %c8 = arith.constant 8 : index
    %c0_25 = arith.constant 0 : index
    %c0_26 = arith.constant 0 : index
    %46 = vector.load %arg2[%c8, %c0_25, %c0_26] : memref<9x8x16xbf16, #tpu.memory_space<vmem>>, vector<1x8x16xbf16>
    %47 = vector.shape_cast %46 : vector<1x8x16xbf16> to vector<8x16xbf16>
    %cst_27 = arith.constant dense<0.000000e+00> : vector<8x256xf32>
    %48 = tpu.matmul %47, %45, %cst_27 {dimension_numbers = #tpu.dot_dimension_numbers<[1], [0], [0], [1], [0, 0, 1, 1], [], []>} : vector<8x16xbf16>, vector<16x256xbf16>, vector<8x256xf32> -> vector<8x256xf32>
    %49 = arith.addf %44, %48 : vector<8x256xf32>
    %c0_28 = arith.constant 0 : index
    %c0_29 = arith.constant 0 : index
    %50 = vector.load %arg3[%c0_28, %c0_29] : memref<8x1xf32, #tpu.memory_space<vmem>>, vector<8x1xf32>
    %51 = vector.broadcast %50 : vector<8x1xf32> to vector<8x256xf32>
    %52 = arith.addf %49, %51 : vector<8x256xf32>
    %cst_30 = arith.constant 0.000000e+00 : f32
    %53 = vector.broadcast %cst_30 : f32 to vector<8x256xf32>
    %54 = arith.maximumf %52, %53 : vector<8x256xf32>
    %55 = arith.truncf %54 : vector<8x256xf32> to vector<8x256xbf16>
    %c0_31 = arith.constant 0 : index
    %c0_32 = arith.constant 0 : index
    %56 = vector.load %arg4[%c0_31, %c0_32] : memref<8x256xbf16, #tpu.memory_space<vmem>>, vector<8x256xbf16>
    tpu.vector_store %arg4[%c0_31, %c0_32], %55 {strides = array<i32>} : memref<8x256xbf16, #tpu.memory_space<vmem>>, vector<8x256xbf16>,
    return
  }
  func.func @transform_0(%arg0: i32) -> (i32, i32) {
    %c0_i32 = arith.constant 0 : i32
    %c0_i32_0 = arith.constant 0 : i32
    %c0_i32_1 = arith.constant 0 : i32
    return %c0_i32, %c0_i32_0 : i32, i32
  }
  func.func @transform_1(%arg0: i32) -> (i32, i32, i32) {
    %c0_i32 = arith.constant 0 : i32
    %c0_i32_0 = arith.constant 0 : i32
    %c0_i32_1 = arith.constant 0 : i32
    %c0_i32_2 = arith.constant 0 : i32
    return %c0_i32, %c0_i32_0, %c0_i32_1 : i32, i32, i32
  }
  func.func @transform_2(%arg0: i32) -> (i32, i32) {
    %c0_i32 = arith.constant 0 : i32
    %c0_i32_0 = arith.constant 0 : i32
    %c0_i32_1 = arith.constant 0 : i32
    return %c0_i32, %c0_i32_0 : i32, i32
  }
  func.func @transform_3(%arg0: i32) -> (i32, i32) {
    %c0_i32 = arith.constant 0 : i32
    %c0_i32_0 = arith.constant 0 : i32
    return %c0_i32, %arg0 : i32, i32
  }
}

module attributes {stable_mosaic.version = 11 : i64} {
  func.func @_conv3x3_kernel(%arg0: i32, %arg1: memref<8x142xbf16, #tpu.memory_space<vmem>>, %arg2: memref<9x8x8xbf16, #tpu.memory_space<vmem>>, %arg3: memref<8x1xf32, #tpu.memory_space<vmem>>, %arg4: memref<8x128xbf16, #tpu.memory_space<vmem>>) attributes {dimension_semantics = [#tpu.dimension_semantics<parallel>], iteration_bounds = array<i64: 1>, scalar_prefetch = 0 : i64, scratch_operands = 0 : i64, tpu.core_type = #tpu.core_type<tc>, window_params = [{pipeline_mode = #tpu.pipeline_mode<synchronous>, transform_indices = @transform_0, window_bounds = array<i64: 8, 142>}, {pipeline_mode = #tpu.pipeline_mode<synchronous>, transform_indices = @transform_1, window_bounds = array<i64: 9, 8, 8>}, {pipeline_mode = #tpu.pipeline_mode<synchronous>, transform_indices = @transform_2, window_bounds = array<i64: 8, 1>}, {transform_indices = @transform_3, window_bounds = array<i64: 8, 128>}]} {
    %c128_i32 = arith.constant 128 : i32
    %0 = arith.muli %arg0, %c128_i32 : i32
    %1 = tpu.assume_multiple %0, 128 : i32
    %c0 = arith.constant 0 : index
    %2 = arith.index_cast %1 : i32 to index
    %3 = vector.load %arg1[%c0, %2] : memref<8x142xbf16, #tpu.memory_space<vmem>>, vector<8x142xbf16>
    %cst = arith.constant 0.000000e+00 : f32
    %4 = vector.broadcast %cst : f32 to vector<8x128xf32>
    %5 = vector.extract_strided_slice %3 {offsets = [0, 0], sizes = [8, 128], strides = [1, 1]} : vector<8x142xbf16> to vector<8x128xbf16>
    %c0_0 = arith.constant 0 : index
    %c0_1 = arith.constant 0 : index
    %c0_2 = arith.constant 0 : index
    %6 = vector.load %arg2[%c0_0, %c0_1, %c0_2] : memref<9x8x8xbf16, #tpu.memory_space<vmem>>, vector<1x8x8xbf16>
    %7 = vector.shape_cast %6 : vector<1x8x8xbf16> to vector<8x8xbf16>
    %cst_3 = arith.constant dense<0.000000e+00> : vector<8x128xf32>
    %8 = tpu.matmul %7, %5, %cst_3 {dimension_numbers = #tpu.dot_dimension_numbers<[1], [0], [0], [1], [0, 0, 1, 1], [], []>} : vector<8x8xbf16>, vector<8x128xbf16>, vector<8x128xf32> -> vector<8x128xf32>
    %9 = arith.addf %4, %8 : vector<8x128xf32>
    %10 = vector.extract_strided_slice %3 {offsets = [0, 1], sizes = [8, 128], strides = [1, 1]} : vector<8x142xbf16> to vector<8x128xbf16>
    %c1 = arith.constant 1 : index
    %c0_4 = arith.constant 0 : index
    %c0_5 = arith.constant 0 : index
    %11 = vector.load %arg2[%c1, %c0_4, %c0_5] : memref<9x8x8xbf16, #tpu.memory_space<vmem>>, vector<1x8x8xbf16>
    %12 = vector.shape_cast %11 : vector<1x8x8xbf16> to vector<8x8xbf16>
    %cst_6 = arith.constant dense<0.000000e+00> : vector<8x128xf32>
    %13 = tpu.matmul %12, %10, %cst_6 {dimension_numbers = #tpu.dot_dimension_numbers<[1], [0], [0], [1], [0, 0, 1, 1], [], []>} : vector<8x8xbf16>, vector<8x128xbf16>, vector<8x128xf32> -> vector<8x128xf32>
    %14 = arith.addf %9, %13 : vector<8x128xf32>
    %15 = vector.extract_strided_slice %3 {offsets = [0, 2], sizes = [8, 128], strides = [1, 1]} : vector<8x142xbf16> to vector<8x128xbf16>
    %c2 = arith.constant 2 : index
    %c0_7 = arith.constant 0 : index
    %c0_8 = arith.constant 0 : index
    %16 = vector.load %arg2[%c2, %c0_7, %c0_8] : memref<9x8x8xbf16, #tpu.memory_space<vmem>>, vector<1x8x8xbf16>
    %17 = vector.shape_cast %16 : vector<1x8x8xbf16> to vector<8x8xbf16>
    %cst_9 = arith.constant dense<0.000000e+00> : vector<8x128xf32>
    %18 = tpu.matmul %17, %15, %cst_9 {dimension_numbers = #tpu.dot_dimension_numbers<[1], [0], [0], [1], [0, 0, 1, 1], [], []>} : vector<8x8xbf16>, vector<8x128xbf16>, vector<8x128xf32> -> vector<8x128xf32>
    %19 = arith.addf %14, %18 : vector<8x128xf32>
    %20 = vector.extract_strided_slice %3 {offsets = [0, 6], sizes = [8, 128], strides = [1, 1]} : vector<8x142xbf16> to vector<8x128xbf16>
    %c3 = arith.constant 3 : index
    %c0_10 = arith.constant 0 : index
    %c0_11 = arith.constant 0 : index
    %21 = vector.load %arg2[%c3, %c0_10, %c0_11] : memref<9x8x8xbf16, #tpu.memory_space<vmem>>, vector<1x8x8xbf16>
    %22 = vector.shape_cast %21 : vector<1x8x8xbf16> to vector<8x8xbf16>
    %cst_12 = arith.constant dense<0.000000e+00> : vector<8x128xf32>
    %23 = tpu.matmul %22, %20, %cst_12 {dimension_numbers = #tpu.dot_dimension_numbers<[1], [0], [0], [1], [0, 0, 1, 1], [], []>} : vector<8x8xbf16>, vector<8x128xbf16>, vector<8x128xf32> -> vector<8x128xf32>
    %24 = arith.addf %19, %23 : vector<8x128xf32>
    %25 = vector.extract_strided_slice %3 {offsets = [0, 7], sizes = [8, 128], strides = [1, 1]} : vector<8x142xbf16> to vector<8x128xbf16>
    %c4 = arith.constant 4 : index
    %c0_13 = arith.constant 0 : index
    %c0_14 = arith.constant 0 : index
    %26 = vector.load %arg2[%c4, %c0_13, %c0_14] : memref<9x8x8xbf16, #tpu.memory_space<vmem>>, vector<1x8x8xbf16>
    %27 = vector.shape_cast %26 : vector<1x8x8xbf16> to vector<8x8xbf16>
    %cst_15 = arith.constant dense<0.000000e+00> : vector<8x128xf32>
    %28 = tpu.matmul %27, %25, %cst_15 {dimension_numbers = #tpu.dot_dimension_numbers<[1], [0], [0], [1], [0, 0, 1, 1], [], []>} : vector<8x8xbf16>, vector<8x128xbf16>, vector<8x128xf32> -> vector<8x128xf32>
    %29 = arith.addf %24, %28 : vector<8x128xf32>
    %30 = vector.extract_strided_slice %3 {offsets = [0, 8], sizes = [8, 128], strides = [1, 1]} : vector<8x142xbf16> to vector<8x128xbf16>
    %c5 = arith.constant 5 : index
    %c0_16 = arith.constant 0 : index
    %c0_17 = arith.constant 0 : index
    %31 = vector.load %arg2[%c5, %c0_16, %c0_17] : memref<9x8x8xbf16, #tpu.memory_space<vmem>>, vector<1x8x8xbf16>
    %32 = vector.shape_cast %31 : vector<1x8x8xbf16> to vector<8x8xbf16>
    %cst_18 = arith.constant dense<0.000000e+00> : vector<8x128xf32>
    %33 = tpu.matmul %32, %30, %cst_18 {dimension_numbers = #tpu.dot_dimension_numbers<[1], [0], [0], [1], [0, 0, 1, 1], [], []>} : vector<8x8xbf16>, vector<8x128xbf16>, vector<8x128xf32> -> vector<8x128xf32>
    %34 = arith.addf %29, %33 : vector<8x128xf32>
    %35 = vector.extract_strided_slice %3 {offsets = [0, 12], sizes = [8, 128], strides = [1, 1]} : vector<8x142xbf16> to vector<8x128xbf16>
    %c6 = arith.constant 6 : index
    %c0_19 = arith.constant 0 : index
    %c0_20 = arith.constant 0 : index
    %36 = vector.load %arg2[%c6, %c0_19, %c0_20] : memref<9x8x8xbf16, #tpu.memory_space<vmem>>, vector<1x8x8xbf16>
    %37 = vector.shape_cast %36 : vector<1x8x8xbf16> to vector<8x8xbf16>
    %cst_21 = arith.constant dense<0.000000e+00> : vector<8x128xf32>
    %38 = tpu.matmul %37, %35, %cst_21 {dimension_numbers = #tpu.dot_dimension_numbers<[1], [0], [0], [1], [0, 0, 1, 1], [], []>} : vector<8x8xbf16>, vector<8x128xbf16>, vector<8x128xf32> -> vector<8x128xf32>
    %39 = arith.addf %34, %38 : vector<8x128xf32>
    %40 = vector.extract_strided_slice %3 {offsets = [0, 13], sizes = [8, 128], strides = [1, 1]} : vector<8x142xbf16> to vector<8x128xbf16>
    %c7 = arith.constant 7 : index
    %c0_22 = arith.constant 0 : index
    %c0_23 = arith.constant 0 : index
    %41 = vector.load %arg2[%c7, %c0_22, %c0_23] : memref<9x8x8xbf16, #tpu.memory_space<vmem>>, vector<1x8x8xbf16>
    %42 = vector.shape_cast %41 : vector<1x8x8xbf16> to vector<8x8xbf16>
    %cst_24 = arith.constant dense<0.000000e+00> : vector<8x128xf32>
    %43 = tpu.matmul %42, %40, %cst_24 {dimension_numbers = #tpu.dot_dimension_numbers<[1], [0], [0], [1], [0, 0, 1, 1], [], []>} : vector<8x8xbf16>, vector<8x128xbf16>, vector<8x128xf32> -> vector<8x128xf32>
    %44 = arith.addf %39, %43 : vector<8x128xf32>
    %45 = vector.extract_strided_slice %3 {offsets = [0, 14], sizes = [8, 128], strides = [1, 1]} : vector<8x142xbf16> to vector<8x128xbf16>
    %c8 = arith.constant 8 : index
    %c0_25 = arith.constant 0 : index
    %c0_26 = arith.constant 0 : index
    %46 = vector.load %arg2[%c8, %c0_25, %c0_26] : memref<9x8x8xbf16, #tpu.memory_space<vmem>>, vector<1x8x8xbf16>
    %47 = vector.shape_cast %46 : vector<1x8x8xbf16> to vector<8x8xbf16>
    %cst_27 = arith.constant dense<0.000000e+00> : vector<8x128xf32>
    %48 = tpu.matmul %47, %45, %cst_27 {dimension_numbers = #tpu.dot_dimension_numbers<[1], [0], [0], [1], [0, 0, 1, 1], [], []>} : vector<8x8xbf16>, vector<8x128xbf16>, vector<8x128xf32> -> vector<8x128xf32>
    %49 = arith.addf %44, %48 : vector<8x128xf32>
    %c0_28 = arith.constant 0 : index
    %c0_29 = arith.constant 0 : index
    %50 = vector.load %arg3[%c0_28, %c0_29] : memref<8x1xf32, #tpu.memory_space<vmem>>, vector<8x1xf32>
    %51 = vector.broadcast %50 : vector<8x1xf32> to vector<8x128xf32>
    %52 = arith.addf %49, %51 : vector<8x128xf32>
    %cst_30 = arith.constant 0.000000e+00 : f32
    %53 = vector.broadcast %cst_30 : f32 to vector<8x128xf32>
    %54 = arith.maximumf %52, %53 : vector<8x128xf32>
    %55 = arith.truncf %54 : vector<8x128xf32> to vector<8x128xbf16>
    %c0_31 = arith.constant 0 : index
    %c0_32 = arith.constant 0 : index
    %56 = vector.load %arg4[%c0_31, %c0_32] : memref<8x128xbf16, #tpu.memory_space<vmem>>, vector<8x128xbf16>
    tpu.vector_store %arg4[%c0_31, %c0_32], %55 {strides = array<i32>} : memref<8x128xbf16, #tpu.memory_space<vmem>>, vector<8x128xbf16>,
    return
  }
  func.func @transform_0(%arg0: i32) -> (i32, i32) {
    %c0_i32 = arith.constant 0 : i32
    %c0_i32_0 = arith.constant 0 : i32
    %c0_i32_1 = arith.constant 0 : i32
    return %c0_i32, %c0_i32_0 : i32, i32
  }
  func.func @transform_1(%arg0: i32) -> (i32, i32, i32) {
    %c0_i32 = arith.constant 0 : i32
    %c0_i32_0 = arith.constant 0 : i32
    %c0_i32_1 = arith.constant 0 : i32
    %c0_i32_2 = arith.constant 0 : i32
    return %c0_i32, %c0_i32_0, %c0_i32_1 : i32, i32, i32
  }
  func.func @transform_2(%arg0: i32) -> (i32, i32) {
    %c0_i32 = arith.constant 0 : i32
    %c0_i32_0 = arith.constant 0 : i32
    %c0_i32_1 = arith.constant 0 : i32
    return %c0_i32, %c0_i32_0 : i32, i32
  }
  func.func @transform_3(%arg0: i32) -> (i32, i32) {
    %c0_i32 = arith.constant 0 : i32
    %c0_i32_0 = arith.constant 0 : i32
    return %c0_i32, %arg0 : i32, i32
  }
}

module attributes {stable_mosaic.version = 11 : i64} {
  func.func @_pw_kernel(%arg0: i32, %arg1: memref<16x32xbf16, #tpu.memory_space<vmem>>, %arg2: memref<8x32xbf16, #tpu.memory_space<vmem>>, %arg3: memref<8x16xbf16, #tpu.memory_space<vmem>>, %arg4: memref<8x8xbf16, #tpu.memory_space<vmem>>, %arg5: memref<8x1xf32, #tpu.memory_space<vmem>>, %arg6: memref<8x32xbf16, #tpu.memory_space<vmem>>, %arg7: memref<8x32xbf16, #tpu.memory_space<vmem>>) attributes {dimension_semantics = [#tpu.dimension_semantics<parallel>], iteration_bounds = array<i64: 1>, scalar_prefetch = 0 : i64, scratch_operands = 0 : i64, tpu.core_type = #tpu.core_type<tc>, window_params = [{transform_indices = @transform_0, window_bounds = array<i64: 16, 32>}, {transform_indices = @transform_1, window_bounds = array<i64: 8, 32>}, {pipeline_mode = #tpu.pipeline_mode<synchronous>, transform_indices = @transform_2, window_bounds = array<i64: 8, 16>}, {pipeline_mode = #tpu.pipeline_mode<synchronous>, transform_indices = @transform_3, window_bounds = array<i64: 8, 8>}, {pipeline_mode = #tpu.pipeline_mode<synchronous>, transform_indices = @transform_4, window_bounds = array<i64: 8, 1>}, {transform_indices = @transform_5, window_bounds = array<i64: 8, 32>}, {transform_indices = @transform_6, window_bounds = array<i64: 8, 32>}]} {
    %c0 = arith.constant 0 : index
    %c0_0 = arith.constant 0 : index
    %0 = vector.load %arg3[%c0, %c0_0] : memref<8x16xbf16, #tpu.memory_space<vmem>>, vector<8x16xbf16>
    %c0_1 = arith.constant 0 : index
    %c0_2 = arith.constant 0 : index
    %1 = vector.load %arg1[%c0_1, %c0_2] : memref<16x32xbf16, #tpu.memory_space<vmem>>, vector<16x32xbf16>
    %cst = arith.constant dense<0.000000e+00> : vector<8x32xf32>
    %2 = tpu.matmul %0, %1, %cst {dimension_numbers = #tpu.dot_dimension_numbers<[1], [0], [0], [1], [0, 0, 1, 1], [], []>} : vector<8x16xbf16>, vector<16x32xbf16>, vector<8x32xf32> -> vector<8x32xf32>
    %c0_3 = arith.constant 0 : index
    %c0_4 = arith.constant 0 : index
    %3 = vector.load %arg4[%c0_3, %c0_4] : memref<8x8xbf16, #tpu.memory_space<vmem>>, vector<8x8xbf16>
    %c0_5 = arith.constant 0 : index
    %c0_6 = arith.constant 0 : index
    %4 = vector.load %arg2[%c0_5, %c0_6] : memref<8x32xbf16, #tpu.memory_space<vmem>>, vector<8x32xbf16>
    %cst_7 = arith.constant dense<0.000000e+00> : vector<8x32xf32>
    %5 = tpu.matmul %3, %4, %cst_7 {dimension_numbers = #tpu.dot_dimension_numbers<[1], [0], [0], [1], [0, 0, 1, 1], [], []>} : vector<8x8xbf16>, vector<8x32xbf16>, vector<8x32xf32> -> vector<8x32xf32>
    %6 = arith.addf %2, %5 : vector<8x32xf32>
    %c0_8 = arith.constant 0 : index
    %c0_9 = arith.constant 0 : index
    %7 = vector.load %arg5[%c0_8, %c0_9] : memref<8x1xf32, #tpu.memory_space<vmem>>, vector<8x1xf32>
    %8 = vector.broadcast %7 : vector<8x1xf32> to vector<8x32xf32>
    %9 = arith.addf %6, %8 : vector<8x32xf32>
    %c0_10 = arith.constant 0 : index
    %c0_11 = arith.constant 0 : index
    %10 = vector.load %arg6[%c0_10, %c0_11] : memref<8x32xbf16, #tpu.memory_space<vmem>>, vector<8x32xbf16>
    %11 = arith.extf %10 : vector<8x32xbf16> to vector<8x32xf32>
    %12 = arith.addf %9, %11 : vector<8x32xf32>
    %13 = arith.truncf %12 : vector<8x32xf32> to vector<8x32xbf16>
    %c0_12 = arith.constant 0 : index
    %c0_13 = arith.constant 0 : index
    %14 = vector.load %arg7[%c0_12, %c0_13] : memref<8x32xbf16, #tpu.memory_space<vmem>>, vector<8x32xbf16>
    tpu.vector_store %arg7[%c0_12, %c0_13], %13 {strides = array<i32>} : memref<8x32xbf16, #tpu.memory_space<vmem>>, vector<8x32xbf16>,
    return
  }
  func.func @transform_0(%arg0: i32) -> (i32, i32) {
    %c0_i32 = arith.constant 0 : i32
    %c0_i32_0 = arith.constant 0 : i32
    return %c0_i32, %arg0 : i32, i32
  }
  func.func @transform_1(%arg0: i32) -> (i32, i32) {
    %c0_i32 = arith.constant 0 : i32
    %c0_i32_0 = arith.constant 0 : i32
    return %c0_i32, %arg0 : i32, i32
  }
  func.func @transform_2(%arg0: i32) -> (i32, i32) {
    %c0_i32 = arith.constant 0 : i32
    %c0_i32_0 = arith.constant 0 : i32
    %c0_i32_1 = arith.constant 0 : i32
    return %c0_i32, %c0_i32_0 : i32, i32
  }
  func.func @transform_3(%arg0: i32) -> (i32, i32) {
    %c0_i32 = arith.constant 0 : i32
    %c0_i32_0 = arith.constant 0 : i32
    %c0_i32_1 = arith.constant 0 : i32
    return %c0_i32, %c0_i32_0 : i32, i32
  }
  func.func @transform_4(%arg0: i32) -> (i32, i32) {
    %c0_i32 = arith.constant 0 : i32
    %c0_i32_0 = arith.constant 0 : i32
    %c0_i32_1 = arith.constant 0 : i32
    return %c0_i32, %c0_i32_0 : i32, i32
  }
  func.func @transform_5(%arg0: i32) -> (i32, i32) {
    %c0_i32 = arith.constant 0 : i32
    %c0_i32_0 = arith.constant 0 : i32
    return %c0_i32, %arg0 : i32, i32
  }
  func.func @transform_6(%arg0: i32) -> (i32, i32) {
    %c0_i32 = arith.constant 0 : i32
    %c0_i32_0 = arith.constant 0 : i32
    return %c0_i32, %arg0 : i32, i32
  }
}

module attributes {stable_mosaic.version = 11 : i64} {
  func.func @_conv3x3_kernel(%arg0: i32, %arg1: memref<16x142xbf16, #tpu.memory_space<vmem>>, %arg2: memref<9x8x16xbf16, #tpu.memory_space<vmem>>, %arg3: memref<8x1xf32, #tpu.memory_space<vmem>>, %arg4: memref<8x128xbf16, #tpu.memory_space<vmem>>) attributes {dimension_semantics = [#tpu.dimension_semantics<parallel>], iteration_bounds = array<i64: 1>, scalar_prefetch = 0 : i64, scratch_operands = 0 : i64, tpu.core_type = #tpu.core_type<tc>, window_params = [{pipeline_mode = #tpu.pipeline_mode<synchronous>, transform_indices = @transform_0, window_bounds = array<i64: 16, 142>}, {pipeline_mode = #tpu.pipeline_mode<synchronous>, transform_indices = @transform_1, window_bounds = array<i64: 9, 8, 16>}, {pipeline_mode = #tpu.pipeline_mode<synchronous>, transform_indices = @transform_2, window_bounds = array<i64: 8, 1>}, {transform_indices = @transform_3, window_bounds = array<i64: 8, 128>}]} {
    %c128_i32 = arith.constant 128 : i32
    %0 = arith.muli %arg0, %c128_i32 : i32
    %1 = tpu.assume_multiple %0, 128 : i32
    %c0 = arith.constant 0 : index
    %2 = arith.index_cast %1 : i32 to index
    %3 = vector.load %arg1[%c0, %2] : memref<16x142xbf16, #tpu.memory_space<vmem>>, vector<16x142xbf16>
    %cst = arith.constant 0.000000e+00 : f32
    %4 = vector.broadcast %cst : f32 to vector<8x128xf32>
    %5 = vector.extract_strided_slice %3 {offsets = [0, 0], sizes = [16, 128], strides = [1, 1]} : vector<16x142xbf16> to vector<16x128xbf16>
    %c0_0 = arith.constant 0 : index
    %c0_1 = arith.constant 0 : index
    %c0_2 = arith.constant 0 : index
    %6 = vector.load %arg2[%c0_0, %c0_1, %c0_2] : memref<9x8x16xbf16, #tpu.memory_space<vmem>>, vector<1x8x16xbf16>
    %7 = vector.shape_cast %6 : vector<1x8x16xbf16> to vector<8x16xbf16>
    %cst_3 = arith.constant dense<0.000000e+00> : vector<8x128xf32>
    %8 = tpu.matmul %7, %5, %cst_3 {dimension_numbers = #tpu.dot_dimension_numbers<[1], [0], [0], [1], [0, 0, 1, 1], [], []>} : vector<8x16xbf16>, vector<16x128xbf16>, vector<8x128xf32> -> vector<8x128xf32>
    %9 = arith.addf %4, %8 : vector<8x128xf32>
    %10 = vector.extract_strided_slice %3 {offsets = [0, 1], sizes = [16, 128], strides = [1, 1]} : vector<16x142xbf16> to vector<16x128xbf16>
    %c1 = arith.constant 1 : index
    %c0_4 = arith.constant 0 : index
    %c0_5 = arith.constant 0 : index
    %11 = vector.load %arg2[%c1, %c0_4, %c0_5] : memref<9x8x16xbf16, #tpu.memory_space<vmem>>, vector<1x8x16xbf16>
    %12 = vector.shape_cast %11 : vector<1x8x16xbf16> to vector<8x16xbf16>
    %cst_6 = arith.constant dense<0.000000e+00> : vector<8x128xf32>
    %13 = tpu.matmul %12, %10, %cst_6 {dimension_numbers = #tpu.dot_dimension_numbers<[1], [0], [0], [1], [0, 0, 1, 1], [], []>} : vector<8x16xbf16>, vector<16x128xbf16>, vector<8x128xf32> -> vector<8x128xf32>
    %14 = arith.addf %9, %13 : vector<8x128xf32>
    %15 = vector.extract_strided_slice %3 {offsets = [0, 2], sizes = [16, 128], strides = [1, 1]} : vector<16x142xbf16> to vector<16x128xbf16>
    %c2 = arith.constant 2 : index
    %c0_7 = arith.constant 0 : index
    %c0_8 = arith.constant 0 : index
    %16 = vector.load %arg2[%c2, %c0_7, %c0_8] : memref<9x8x16xbf16, #tpu.memory_space<vmem>>, vector<1x8x16xbf16>
    %17 = vector.shape_cast %16 : vector<1x8x16xbf16> to vector<8x16xbf16>
    %cst_9 = arith.constant dense<0.000000e+00> : vector<8x128xf32>
    %18 = tpu.matmul %17, %15, %cst_9 {dimension_numbers = #tpu.dot_dimension_numbers<[1], [0], [0], [1], [0, 0, 1, 1], [], []>} : vector<8x16xbf16>, vector<16x128xbf16>, vector<8x128xf32> -> vector<8x128xf32>
    %19 = arith.addf %14, %18 : vector<8x128xf32>
    %20 = vector.extract_strided_slice %3 {offsets = [0, 6], sizes = [16, 128], strides = [1, 1]} : vector<16x142xbf16> to vector<16x128xbf16>
    %c3 = arith.constant 3 : index
    %c0_10 = arith.constant 0 : index
    %c0_11 = arith.constant 0 : index
    %21 = vector.load %arg2[%c3, %c0_10, %c0_11] : memref<9x8x16xbf16, #tpu.memory_space<vmem>>, vector<1x8x16xbf16>
    %22 = vector.shape_cast %21 : vector<1x8x16xbf16> to vector<8x16xbf16>
    %cst_12 = arith.constant dense<0.000000e+00> : vector<8x128xf32>
    %23 = tpu.matmul %22, %20, %cst_12 {dimension_numbers = #tpu.dot_dimension_numbers<[1], [0], [0], [1], [0, 0, 1, 1], [], []>} : vector<8x16xbf16>, vector<16x128xbf16>, vector<8x128xf32> -> vector<8x128xf32>
    %24 = arith.addf %19, %23 : vector<8x128xf32>
    %25 = vector.extract_strided_slice %3 {offsets = [0, 7], sizes = [16, 128], strides = [1, 1]} : vector<16x142xbf16> to vector<16x128xbf16>
    %c4 = arith.constant 4 : index
    %c0_13 = arith.constant 0 : index
    %c0_14 = arith.constant 0 : index
    %26 = vector.load %arg2[%c4, %c0_13, %c0_14] : memref<9x8x16xbf16, #tpu.memory_space<vmem>>, vector<1x8x16xbf16>
    %27 = vector.shape_cast %26 : vector<1x8x16xbf16> to vector<8x16xbf16>
    %cst_15 = arith.constant dense<0.000000e+00> : vector<8x128xf32>
    %28 = tpu.matmul %27, %25, %cst_15 {dimension_numbers = #tpu.dot_dimension_numbers<[1], [0], [0], [1], [0, 0, 1, 1], [], []>} : vector<8x16xbf16>, vector<16x128xbf16>, vector<8x128xf32> -> vector<8x128xf32>
    %29 = arith.addf %24, %28 : vector<8x128xf32>
    %30 = vector.extract_strided_slice %3 {offsets = [0, 8], sizes = [16, 128], strides = [1, 1]} : vector<16x142xbf16> to vector<16x128xbf16>
    %c5 = arith.constant 5 : index
    %c0_16 = arith.constant 0 : index
    %c0_17 = arith.constant 0 : index
    %31 = vector.load %arg2[%c5, %c0_16, %c0_17] : memref<9x8x16xbf16, #tpu.memory_space<vmem>>, vector<1x8x16xbf16>
    %32 = vector.shape_cast %31 : vector<1x8x16xbf16> to vector<8x16xbf16>
    %cst_18 = arith.constant dense<0.000000e+00> : vector<8x128xf32>
    %33 = tpu.matmul %32, %30, %cst_18 {dimension_numbers = #tpu.dot_dimension_numbers<[1], [0], [0], [1], [0, 0, 1, 1], [], []>} : vector<8x16xbf16>, vector<16x128xbf16>, vector<8x128xf32> -> vector<8x128xf32>
    %34 = arith.addf %29, %33 : vector<8x128xf32>
    %35 = vector.extract_strided_slice %3 {offsets = [0, 12], sizes = [16, 128], strides = [1, 1]} : vector<16x142xbf16> to vector<16x128xbf16>
    %c6 = arith.constant 6 : index
    %c0_19 = arith.constant 0 : index
    %c0_20 = arith.constant 0 : index
    %36 = vector.load %arg2[%c6, %c0_19, %c0_20] : memref<9x8x16xbf16, #tpu.memory_space<vmem>>, vector<1x8x16xbf16>
    %37 = vector.shape_cast %36 : vector<1x8x16xbf16> to vector<8x16xbf16>
    %cst_21 = arith.constant dense<0.000000e+00> : vector<8x128xf32>
    %38 = tpu.matmul %37, %35, %cst_21 {dimension_numbers = #tpu.dot_dimension_numbers<[1], [0], [0], [1], [0, 0, 1, 1], [], []>} : vector<8x16xbf16>, vector<16x128xbf16>, vector<8x128xf32> -> vector<8x128xf32>
    %39 = arith.addf %34, %38 : vector<8x128xf32>
    %40 = vector.extract_strided_slice %3 {offsets = [0, 13], sizes = [16, 128], strides = [1, 1]} : vector<16x142xbf16> to vector<16x128xbf16>
    %c7 = arith.constant 7 : index
    %c0_22 = arith.constant 0 : index
    %c0_23 = arith.constant 0 : index
    %41 = vector.load %arg2[%c7, %c0_22, %c0_23] : memref<9x8x16xbf16, #tpu.memory_space<vmem>>, vector<1x8x16xbf16>
    %42 = vector.shape_cast %41 : vector<1x8x16xbf16> to vector<8x16xbf16>
    %cst_24 = arith.constant dense<0.000000e+00> : vector<8x128xf32>
    %43 = tpu.matmul %42, %40, %cst_24 {dimension_numbers = #tpu.dot_dimension_numbers<[1], [0], [0], [1], [0, 0, 1, 1], [], []>} : vector<8x16xbf16>, vector<16x128xbf16>, vector<8x128xf32> -> vector<8x128xf32>
    %44 = arith.addf %39, %43 : vector<8x128xf32>
    %45 = vector.extract_strided_slice %3 {offsets = [0, 14], sizes = [16, 128], strides = [1, 1]} : vector<16x142xbf16> to vector<16x128xbf16>
    %c8 = arith.constant 8 : index
    %c0_25 = arith.constant 0 : index
    %c0_26 = arith.constant 0 : index
    %46 = vector.load %arg2[%c8, %c0_25, %c0_26] : memref<9x8x16xbf16, #tpu.memory_space<vmem>>, vector<1x8x16xbf16>
    %47 = vector.shape_cast %46 : vector<1x8x16xbf16> to vector<8x16xbf16>
    %cst_27 = arith.constant dense<0.000000e+00> : vector<8x128xf32>
    %48 = tpu.matmul %47, %45, %cst_27 {dimension_numbers = #tpu.dot_dimension_numbers<[1], [0], [0], [1], [0, 0, 1, 1], [], []>} : vector<8x16xbf16>, vector<16x128xbf16>, vector<8x128xf32> -> vector<8x128xf32>
    %49 = arith.addf %44, %48 : vector<8x128xf32>
    %c0_28 = arith.constant 0 : index
    %c0_29 = arith.constant 0 : index
    %50 = vector.load %arg3[%c0_28, %c0_29] : memref<8x1xf32, #tpu.memory_space<vmem>>, vector<8x1xf32>
    %51 = vector.broadcast %50 : vector<8x1xf32> to vector<8x128xf32>
    %52 = arith.addf %49, %51 : vector<8x128xf32>
    %cst_30 = arith.constant 0.000000e+00 : f32
    %53 = vector.broadcast %cst_30 : f32 to vector<8x128xf32>
    %54 = arith.maximumf %52, %53 : vector<8x128xf32>
    %55 = arith.truncf %54 : vector<8x128xf32> to vector<8x128xbf16>
    %c0_31 = arith.constant 0 : index
    %c0_32 = arith.constant 0 : index
    %56 = vector.load %arg4[%c0_31, %c0_32] : memref<8x128xbf16, #tpu.memory_space<vmem>>, vector<8x128xbf16>
    tpu.vector_store %arg4[%c0_31, %c0_32], %55 {strides = array<i32>} : memref<8x128xbf16, #tpu.memory_space<vmem>>, vector<8x128xbf16>,
    return
  }
  func.func @transform_0(%arg0: i32) -> (i32, i32) {
    %c0_i32 = arith.constant 0 : i32
    %c0_i32_0 = arith.constant 0 : i32
    %c0_i32_1 = arith.constant 0 : i32
    return %c0_i32, %c0_i32_0 : i32, i32
  }
  func.func @transform_1(%arg0: i32) -> (i32, i32, i32) {
    %c0_i32 = arith.constant 0 : i32
    %c0_i32_0 = arith.constant 0 : i32
    %c0_i32_1 = arith.constant 0 : i32
    %c0_i32_2 = arith.constant 0 : i32
    return %c0_i32, %c0_i32_0, %c0_i32_1 : i32, i32, i32
  }
  func.func @transform_2(%arg0: i32) -> (i32, i32) {
    %c0_i32 = arith.constant 0 : i32
    %c0_i32_0 = arith.constant 0 : i32
    %c0_i32_1 = arith.constant 0 : i32
    return %c0_i32, %c0_i32_0 : i32, i32
  }
  func.func @transform_3(%arg0: i32) -> (i32, i32) {
    %c0_i32 = arith.constant 0 : i32
    %c0_i32_0 = arith.constant 0 : i32
    return %c0_i32, %arg0 : i32, i32
  }
}

module attributes {stable_mosaic.version = 11 : i64} {
  func.func @_conv3x3_kernel(%arg0: i32, %arg1: memref<8x138xbf16, #tpu.memory_space<vmem>>, %arg2: memref<9x8x8xbf16, #tpu.memory_space<vmem>>, %arg3: memref<8x1xf32, #tpu.memory_space<vmem>>, %arg4: memref<8x128xbf16, #tpu.memory_space<vmem>>) attributes {dimension_semantics = [#tpu.dimension_semantics<parallel>], iteration_bounds = array<i64: 1>, scalar_prefetch = 0 : i64, scratch_operands = 0 : i64, tpu.core_type = #tpu.core_type<tc>, window_params = [{pipeline_mode = #tpu.pipeline_mode<synchronous>, transform_indices = @transform_0, window_bounds = array<i64: 8, 138>}, {pipeline_mode = #tpu.pipeline_mode<synchronous>, transform_indices = @transform_1, window_bounds = array<i64: 9, 8, 8>}, {pipeline_mode = #tpu.pipeline_mode<synchronous>, transform_indices = @transform_2, window_bounds = array<i64: 8, 1>}, {transform_indices = @transform_3, window_bounds = array<i64: 8, 128>}]} {
    %c128_i32 = arith.constant 128 : i32
    %0 = arith.muli %arg0, %c128_i32 : i32
    %1 = tpu.assume_multiple %0, 128 : i32
    %c0 = arith.constant 0 : index
    %2 = arith.index_cast %1 : i32 to index
    %3 = vector.load %arg1[%c0, %2] : memref<8x138xbf16, #tpu.memory_space<vmem>>, vector<8x138xbf16>
    %cst = arith.constant 0.000000e+00 : f32
    %4 = vector.broadcast %cst : f32 to vector<8x128xf32>
    %5 = vector.extract_strided_slice %3 {offsets = [0, 0], sizes = [8, 128], strides = [1, 1]} : vector<8x138xbf16> to vector<8x128xbf16>
    %c0_0 = arith.constant 0 : index
    %c0_1 = arith.constant 0 : index
    %c0_2 = arith.constant 0 : index
    %6 = vector.load %arg2[%c0_0, %c0_1, %c0_2] : memref<9x8x8xbf16, #tpu.memory_space<vmem>>, vector<1x8x8xbf16>
    %7 = vector.shape_cast %6 : vector<1x8x8xbf16> to vector<8x8xbf16>
    %cst_3 = arith.constant dense<0.000000e+00> : vector<8x128xf32>
    %8 = tpu.matmul %7, %5, %cst_3 {dimension_numbers = #tpu.dot_dimension_numbers<[1], [0], [0], [1], [0, 0, 1, 1], [], []>} : vector<8x8xbf16>, vector<8x128xbf16>, vector<8x128xf32> -> vector<8x128xf32>
    %9 = arith.addf %4, %8 : vector<8x128xf32>
    %10 = vector.extract_strided_slice %3 {offsets = [0, 1], sizes = [8, 128], strides = [1, 1]} : vector<8x138xbf16> to vector<8x128xbf16>
    %c1 = arith.constant 1 : index
    %c0_4 = arith.constant 0 : index
    %c0_5 = arith.constant 0 : index
    %11 = vector.load %arg2[%c1, %c0_4, %c0_5] : memref<9x8x8xbf16, #tpu.memory_space<vmem>>, vector<1x8x8xbf16>
    %12 = vector.shape_cast %11 : vector<1x8x8xbf16> to vector<8x8xbf16>
    %cst_6 = arith.constant dense<0.000000e+00> : vector<8x128xf32>
    %13 = tpu.matmul %12, %10, %cst_6 {dimension_numbers = #tpu.dot_dimension_numbers<[1], [0], [0], [1], [0, 0, 1, 1], [], []>} : vector<8x8xbf16>, vector<8x128xbf16>, vector<8x128xf32> -> vector<8x128xf32>
    %14 = arith.addf %9, %13 : vector<8x128xf32>
    %15 = vector.extract_strided_slice %3 {offsets = [0, 2], sizes = [8, 128], strides = [1, 1]} : vector<8x138xbf16> to vector<8x128xbf16>
    %c2 = arith.constant 2 : index
    %c0_7 = arith.constant 0 : index
    %c0_8 = arith.constant 0 : index
    %16 = vector.load %arg2[%c2, %c0_7, %c0_8] : memref<9x8x8xbf16, #tpu.memory_space<vmem>>, vector<1x8x8xbf16>
    %17 = vector.shape_cast %16 : vector<1x8x8xbf16> to vector<8x8xbf16>
    %cst_9 = arith.constant dense<0.000000e+00> : vector<8x128xf32>
    %18 = tpu.matmul %17, %15, %cst_9 {dimension_numbers = #tpu.dot_dimension_numbers<[1], [0], [0], [1], [0, 0, 1, 1], [], []>} : vector<8x8xbf16>, vector<8x128xbf16>, vector<8x128xf32> -> vector<8x128xf32>
    %19 = arith.addf %14, %18 : vector<8x128xf32>
    %20 = vector.extract_strided_slice %3 {offsets = [0, 4], sizes = [8, 128], strides = [1, 1]} : vector<8x138xbf16> to vector<8x128xbf16>
    %c3 = arith.constant 3 : index
    %c0_10 = arith.constant 0 : index
    %c0_11 = arith.constant 0 : index
    %21 = vector.load %arg2[%c3, %c0_10, %c0_11] : memref<9x8x8xbf16, #tpu.memory_space<vmem>>, vector<1x8x8xbf16>
    %22 = vector.shape_cast %21 : vector<1x8x8xbf16> to vector<8x8xbf16>
    %cst_12 = arith.constant dense<0.000000e+00> : vector<8x128xf32>
    %23 = tpu.matmul %22, %20, %cst_12 {dimension_numbers = #tpu.dot_dimension_numbers<[1], [0], [0], [1], [0, 0, 1, 1], [], []>} : vector<8x8xbf16>, vector<8x128xbf16>, vector<8x128xf32> -> vector<8x128xf32>
    %24 = arith.addf %19, %23 : vector<8x128xf32>
    %25 = vector.extract_strided_slice %3 {offsets = [0, 5], sizes = [8, 128], strides = [1, 1]} : vector<8x138xbf16> to vector<8x128xbf16>
    %c4 = arith.constant 4 : index
    %c0_13 = arith.constant 0 : index
    %c0_14 = arith.constant 0 : index
    %26 = vector.load %arg2[%c4, %c0_13, %c0_14] : memref<9x8x8xbf16, #tpu.memory_space<vmem>>, vector<1x8x8xbf16>
    %27 = vector.shape_cast %26 : vector<1x8x8xbf16> to vector<8x8xbf16>
    %cst_15 = arith.constant dense<0.000000e+00> : vector<8x128xf32>
    %28 = tpu.matmul %27, %25, %cst_15 {dimension_numbers = #tpu.dot_dimension_numbers<[1], [0], [0], [1], [0, 0, 1, 1], [], []>} : vector<8x8xbf16>, vector<8x128xbf16>, vector<8x128xf32> -> vector<8x128xf32>
    %29 = arith.addf %24, %28 : vector<8x128xf32>
    %30 = vector.extract_strided_slice %3 {offsets = [0, 6], sizes = [8, 128], strides = [1, 1]} : vector<8x138xbf16> to vector<8x128xbf16>
    %c5 = arith.constant 5 : index
    %c0_16 = arith.constant 0 : index
    %c0_17 = arith.constant 0 : index
    %31 = vector.load %arg2[%c5, %c0_16, %c0_17] : memref<9x8x8xbf16, #tpu.memory_space<vmem>>, vector<1x8x8xbf16>
    %32 = vector.shape_cast %31 : vector<1x8x8xbf16> to vector<8x8xbf16>
    %cst_18 = arith.constant dense<0.000000e+00> : vector<8x128xf32>
    %33 = tpu.matmul %32, %30, %cst_18 {dimension_numbers = #tpu.dot_dimension_numbers<[1], [0], [0], [1], [0, 0, 1, 1], [], []>} : vector<8x8xbf16>, vector<8x128xbf16>, vector<8x128xf32> -> vector<8x128xf32>
    %34 = arith.addf %29, %33 : vector<8x128xf32>
    %35 = vector.extract_strided_slice %3 {offsets = [0, 8], sizes = [8, 128], strides = [1, 1]} : vector<8x138xbf16> to vector<8x128xbf16>
    %c6 = arith.constant 6 : index
    %c0_19 = arith.constant 0 : index
    %c0_20 = arith.constant 0 : index
    %36 = vector.load %arg2[%c6, %c0_19, %c0_20] : memref<9x8x8xbf16, #tpu.memory_space<vmem>>, vector<1x8x8xbf16>
    %37 = vector.shape_cast %36 : vector<1x8x8xbf16> to vector<8x8xbf16>
    %cst_21 = arith.constant dense<0.000000e+00> : vector<8x128xf32>
    %38 = tpu.matmul %37, %35, %cst_21 {dimension_numbers = #tpu.dot_dimension_numbers<[1], [0], [0], [1], [0, 0, 1, 1], [], []>} : vector<8x8xbf16>, vector<8x128xbf16>, vector<8x128xf32> -> vector<8x128xf32>
    %39 = arith.addf %34, %38 : vector<8x128xf32>
    %40 = vector.extract_strided_slice %3 {offsets = [0, 9], sizes = [8, 128], strides = [1, 1]} : vector<8x138xbf16> to vector<8x128xbf16>
    %c7 = arith.constant 7 : index
    %c0_22 = arith.constant 0 : index
    %c0_23 = arith.constant 0 : index
    %41 = vector.load %arg2[%c7, %c0_22, %c0_23] : memref<9x8x8xbf16, #tpu.memory_space<vmem>>, vector<1x8x8xbf16>
    %42 = vector.shape_cast %41 : vector<1x8x8xbf16> to vector<8x8xbf16>
    %cst_24 = arith.constant dense<0.000000e+00> : vector<8x128xf32>
    %43 = tpu.matmul %42, %40, %cst_24 {dimension_numbers = #tpu.dot_dimension_numbers<[1], [0], [0], [1], [0, 0, 1, 1], [], []>} : vector<8x8xbf16>, vector<8x128xbf16>, vector<8x128xf32> -> vector<8x128xf32>
    %44 = arith.addf %39, %43 : vector<8x128xf32>
    %45 = vector.extract_strided_slice %3 {offsets = [0, 10], sizes = [8, 128], strides = [1, 1]} : vector<8x138xbf16> to vector<8x128xbf16>
    %c8 = arith.constant 8 : index
    %c0_25 = arith.constant 0 : index
    %c0_26 = arith.constant 0 : index
    %46 = vector.load %arg2[%c8, %c0_25, %c0_26] : memref<9x8x8xbf16, #tpu.memory_space<vmem>>, vector<1x8x8xbf16>
    %47 = vector.shape_cast %46 : vector<1x8x8xbf16> to vector<8x8xbf16>
    %cst_27 = arith.constant dense<0.000000e+00> : vector<8x128xf32>
    %48 = tpu.matmul %47, %45, %cst_27 {dimension_numbers = #tpu.dot_dimension_numbers<[1], [0], [0], [1], [0, 0, 1, 1], [], []>} : vector<8x8xbf16>, vector<8x128xbf16>, vector<8x128xf32> -> vector<8x128xf32>
    %49 = arith.addf %44, %48 : vector<8x128xf32>
    %c0_28 = arith.constant 0 : index
    %c0_29 = arith.constant 0 : index
    %50 = vector.load %arg3[%c0_28, %c0_29] : memref<8x1xf32, #tpu.memory_space<vmem>>, vector<8x1xf32>
    %51 = vector.broadcast %50 : vector<8x1xf32> to vector<8x128xf32>
    %52 = arith.addf %49, %51 : vector<8x128xf32>
    %cst_30 = arith.constant 0.000000e+00 : f32
    %53 = vector.broadcast %cst_30 : f32 to vector<8x128xf32>
    %54 = arith.maximumf %52, %53 : vector<8x128xf32>
    %55 = arith.truncf %54 : vector<8x128xf32> to vector<8x128xbf16>
    %c0_31 = arith.constant 0 : index
    %c0_32 = arith.constant 0 : index
    %56 = vector.load %arg4[%c0_31, %c0_32] : memref<8x128xbf16, #tpu.memory_space<vmem>>, vector<8x128xbf16>
    tpu.vector_store %arg4[%c0_31, %c0_32], %55 {strides = array<i32>} : memref<8x128xbf16, #tpu.memory_space<vmem>>, vector<8x128xbf16>,
    return
  }
  func.func @transform_0(%arg0: i32) -> (i32, i32) {
    %c0_i32 = arith.constant 0 : i32
    %c0_i32_0 = arith.constant 0 : i32
    %c0_i32_1 = arith.constant 0 : i32
    return %c0_i32, %c0_i32_0 : i32, i32
  }
  func.func @transform_1(%arg0: i32) -> (i32, i32, i32) {
    %c0_i32 = arith.constant 0 : i32
    %c0_i32_0 = arith.constant 0 : i32
    %c0_i32_1 = arith.constant 0 : i32
    %c0_i32_2 = arith.constant 0 : i32
    return %c0_i32, %c0_i32_0, %c0_i32_1 : i32, i32, i32
  }
  func.func @transform_2(%arg0: i32) -> (i32, i32) {
    %c0_i32 = arith.constant 0 : i32
    %c0_i32_0 = arith.constant 0 : i32
    %c0_i32_1 = arith.constant 0 : i32
    return %c0_i32, %c0_i32_0 : i32, i32
  }
  func.func @transform_3(%arg0: i32) -> (i32, i32) {
    %c0_i32 = arith.constant 0 : i32
    %c0_i32_0 = arith.constant 0 : i32
    return %c0_i32, %arg0 : i32, i32
  }
}

module attributes {stable_mosaic.version = 11 : i64} {
  func.func @_conv3x3_kernel(%arg0: i32, %arg1: memref<16x138xbf16, #tpu.memory_space<vmem>>, %arg2: memref<9x8x16xbf16, #tpu.memory_space<vmem>>, %arg3: memref<8x1xf32, #tpu.memory_space<vmem>>, %arg4: memref<8x128xbf16, #tpu.memory_space<vmem>>) attributes {dimension_semantics = [#tpu.dimension_semantics<parallel>], iteration_bounds = array<i64: 1>, scalar_prefetch = 0 : i64, scratch_operands = 0 : i64, tpu.core_type = #tpu.core_type<tc>, window_params = [{pipeline_mode = #tpu.pipeline_mode<synchronous>, transform_indices = @transform_0, window_bounds = array<i64: 16, 138>}, {pipeline_mode = #tpu.pipeline_mode<synchronous>, transform_indices = @transform_1, window_bounds = array<i64: 9, 8, 16>}, {pipeline_mode = #tpu.pipeline_mode<synchronous>, transform_indices = @transform_2, window_bounds = array<i64: 8, 1>}, {transform_indices = @transform_3, window_bounds = array<i64: 8, 128>}]} {
    %c128_i32 = arith.constant 128 : i32
    %0 = arith.muli %arg0, %c128_i32 : i32
    %1 = tpu.assume_multiple %0, 128 : i32
    %c0 = arith.constant 0 : index
    %2 = arith.index_cast %1 : i32 to index
    %3 = vector.load %arg1[%c0, %2] : memref<16x138xbf16, #tpu.memory_space<vmem>>, vector<16x138xbf16>
    %cst = arith.constant 0.000000e+00 : f32
    %4 = vector.broadcast %cst : f32 to vector<8x128xf32>
    %5 = vector.extract_strided_slice %3 {offsets = [0, 0], sizes = [16, 128], strides = [1, 1]} : vector<16x138xbf16> to vector<16x128xbf16>
    %c0_0 = arith.constant 0 : index
    %c0_1 = arith.constant 0 : index
    %c0_2 = arith.constant 0 : index
    %6 = vector.load %arg2[%c0_0, %c0_1, %c0_2] : memref<9x8x16xbf16, #tpu.memory_space<vmem>>, vector<1x8x16xbf16>
    %7 = vector.shape_cast %6 : vector<1x8x16xbf16> to vector<8x16xbf16>
    %cst_3 = arith.constant dense<0.000000e+00> : vector<8x128xf32>
    %8 = tpu.matmul %7, %5, %cst_3 {dimension_numbers = #tpu.dot_dimension_numbers<[1], [0], [0], [1], [0, 0, 1, 1], [], []>} : vector<8x16xbf16>, vector<16x128xbf16>, vector<8x128xf32> -> vector<8x128xf32>
    %9 = arith.addf %4, %8 : vector<8x128xf32>
    %10 = vector.extract_strided_slice %3 {offsets = [0, 1], sizes = [16, 128], strides = [1, 1]} : vector<16x138xbf16> to vector<16x128xbf16>
    %c1 = arith.constant 1 : index
    %c0_4 = arith.constant 0 : index
    %c0_5 = arith.constant 0 : index
    %11 = vector.load %arg2[%c1, %c0_4, %c0_5] : memref<9x8x16xbf16, #tpu.memory_space<vmem>>, vector<1x8x16xbf16>
    %12 = vector.shape_cast %11 : vector<1x8x16xbf16> to vector<8x16xbf16>
    %cst_6 = arith.constant dense<0.000000e+00> : vector<8x128xf32>
    %13 = tpu.matmul %12, %10, %cst_6 {dimension_numbers = #tpu.dot_dimension_numbers<[1], [0], [0], [1], [0, 0, 1, 1], [], []>} : vector<8x16xbf16>, vector<16x128xbf16>, vector<8x128xf32> -> vector<8x128xf32>
    %14 = arith.addf %9, %13 : vector<8x128xf32>
    %15 = vector.extract_strided_slice %3 {offsets = [0, 2], sizes = [16, 128], strides = [1, 1]} : vector<16x138xbf16> to vector<16x128xbf16>
    %c2 = arith.constant 2 : index
    %c0_7 = arith.constant 0 : index
    %c0_8 = arith.constant 0 : index
    %16 = vector.load %arg2[%c2, %c0_7, %c0_8] : memref<9x8x16xbf16, #tpu.memory_space<vmem>>, vector<1x8x16xbf16>
    %17 = vector.shape_cast %16 : vector<1x8x16xbf16> to vector<8x16xbf16>
    %cst_9 = arith.constant dense<0.000000e+00> : vector<8x128xf32>
    %18 = tpu.matmul %17, %15, %cst_9 {dimension_numbers = #tpu.dot_dimension_numbers<[1], [0], [0], [1], [0, 0, 1, 1], [], []>} : vector<8x16xbf16>, vector<16x128xbf16>, vector<8x128xf32> -> vector<8x128xf32>
    %19 = arith.addf %14, %18 : vector<8x128xf32>
    %20 = vector.extract_strided_slice %3 {offsets = [0, 4], sizes = [16, 128], strides = [1, 1]} : vector<16x138xbf16> to vector<16x128xbf16>
    %c3 = arith.constant 3 : index
    %c0_10 = arith.constant 0 : index
    %c0_11 = arith.constant 0 : index
    %21 = vector.load %arg2[%c3, %c0_10, %c0_11] : memref<9x8x16xbf16, #tpu.memory_space<vmem>>, vector<1x8x16xbf16>
    %22 = vector.shape_cast %21 : vector<1x8x16xbf16> to vector<8x16xbf16>
    %cst_12 = arith.constant dense<0.000000e+00> : vector<8x128xf32>
    %23 = tpu.matmul %22, %20, %cst_12 {dimension_numbers = #tpu.dot_dimension_numbers<[1], [0], [0], [1], [0, 0, 1, 1], [], []>} : vector<8x16xbf16>, vector<16x128xbf16>, vector<8x128xf32> -> vector<8x128xf32>
    %24 = arith.addf %19, %23 : vector<8x128xf32>
    %25 = vector.extract_strided_slice %3 {offsets = [0, 5], sizes = [16, 128], strides = [1, 1]} : vector<16x138xbf16> to vector<16x128xbf16>
    %c4 = arith.constant 4 : index
    %c0_13 = arith.constant 0 : index
    %c0_14 = arith.constant 0 : index
    %26 = vector.load %arg2[%c4, %c0_13, %c0_14] : memref<9x8x16xbf16, #tpu.memory_space<vmem>>, vector<1x8x16xbf16>
    %27 = vector.shape_cast %26 : vector<1x8x16xbf16> to vector<8x16xbf16>
    %cst_15 = arith.constant dense<0.000000e+00> : vector<8x128xf32>
    %28 = tpu.matmul %27, %25, %cst_15 {dimension_numbers = #tpu.dot_dimension_numbers<[1], [0], [0], [1], [0, 0, 1, 1], [], []>} : vector<8x16xbf16>, vector<16x128xbf16>, vector<8x128xf32> -> vector<8x128xf32>
    %29 = arith.addf %24, %28 : vector<8x128xf32>
    %30 = vector.extract_strided_slice %3 {offsets = [0, 6], sizes = [16, 128], strides = [1, 1]} : vector<16x138xbf16> to vector<16x128xbf16>
    %c5 = arith.constant 5 : index
    %c0_16 = arith.constant 0 : index
    %c0_17 = arith.constant 0 : index
    %31 = vector.load %arg2[%c5, %c0_16, %c0_17] : memref<9x8x16xbf16, #tpu.memory_space<vmem>>, vector<1x8x16xbf16>
    %32 = vector.shape_cast %31 : vector<1x8x16xbf16> to vector<8x16xbf16>
    %cst_18 = arith.constant dense<0.000000e+00> : vector<8x128xf32>
    %33 = tpu.matmul %32, %30, %cst_18 {dimension_numbers = #tpu.dot_dimension_numbers<[1], [0], [0], [1], [0, 0, 1, 1], [], []>} : vector<8x16xbf16>, vector<16x128xbf16>, vector<8x128xf32> -> vector<8x128xf32>
    %34 = arith.addf %29, %33 : vector<8x128xf32>
    %35 = vector.extract_strided_slice %3 {offsets = [0, 8], sizes = [16, 128], strides = [1, 1]} : vector<16x138xbf16> to vector<16x128xbf16>
    %c6 = arith.constant 6 : index
    %c0_19 = arith.constant 0 : index
    %c0_20 = arith.constant 0 : index
    %36 = vector.load %arg2[%c6, %c0_19, %c0_20] : memref<9x8x16xbf16, #tpu.memory_space<vmem>>, vector<1x8x16xbf16>
    %37 = vector.shape_cast %36 : vector<1x8x16xbf16> to vector<8x16xbf16>
    %cst_21 = arith.constant dense<0.000000e+00> : vector<8x128xf32>
    %38 = tpu.matmul %37, %35, %cst_21 {dimension_numbers = #tpu.dot_dimension_numbers<[1], [0], [0], [1], [0, 0, 1, 1], [], []>} : vector<8x16xbf16>, vector<16x128xbf16>, vector<8x128xf32> -> vector<8x128xf32>
    %39 = arith.addf %34, %38 : vector<8x128xf32>
    %40 = vector.extract_strided_slice %3 {offsets = [0, 9], sizes = [16, 128], strides = [1, 1]} : vector<16x138xbf16> to vector<16x128xbf16>
    %c7 = arith.constant 7 : index
    %c0_22 = arith.constant 0 : index
    %c0_23 = arith.constant 0 : index
    %41 = vector.load %arg2[%c7, %c0_22, %c0_23] : memref<9x8x16xbf16, #tpu.memory_space<vmem>>, vector<1x8x16xbf16>
    %42 = vector.shape_cast %41 : vector<1x8x16xbf16> to vector<8x16xbf16>
    %cst_24 = arith.constant dense<0.000000e+00> : vector<8x128xf32>
    %43 = tpu.matmul %42, %40, %cst_24 {dimension_numbers = #tpu.dot_dimension_numbers<[1], [0], [0], [1], [0, 0, 1, 1], [], []>} : vector<8x16xbf16>, vector<16x128xbf16>, vector<8x128xf32> -> vector<8x128xf32>
    %44 = arith.addf %39, %43 : vector<8x128xf32>
    %45 = vector.extract_strided_slice %3 {offsets = [0, 10], sizes = [16, 128], strides = [1, 1]} : vector<16x138xbf16> to vector<16x128xbf16>
    %c8 = arith.constant 8 : index
    %c0_25 = arith.constant 0 : index
    %c0_26 = arith.constant 0 : index
    %46 = vector.load %arg2[%c8, %c0_25, %c0_26] : memref<9x8x16xbf16, #tpu.memory_space<vmem>>, vector<1x8x16xbf16>
    %47 = vector.shape_cast %46 : vector<1x8x16xbf16> to vector<8x16xbf16>
    %cst_27 = arith.constant dense<0.000000e+00> : vector<8x128xf32>
    %48 = tpu.matmul %47, %45, %cst_27 {dimension_numbers = #tpu.dot_dimension_numbers<[1], [0], [0], [1], [0, 0, 1, 1], [], []>} : vector<8x16xbf16>, vector<16x128xbf16>, vector<8x128xf32> -> vector<8x128xf32>
    %49 = arith.addf %44, %48 : vector<8x128xf32>
    %c0_28 = arith.constant 0 : index
    %c0_29 = arith.constant 0 : index
    %50 = vector.load %arg3[%c0_28, %c0_29] : memref<8x1xf32, #tpu.memory_space<vmem>>, vector<8x1xf32>
    %51 = vector.broadcast %50 : vector<8x1xf32> to vector<8x128xf32>
    %52 = arith.addf %49, %51 : vector<8x128xf32>
    %cst_30 = arith.constant 0.000000e+00 : f32
    %53 = vector.broadcast %cst_30 : f32 to vector<8x128xf32>
    %54 = arith.maximumf %52, %53 : vector<8x128xf32>
    %55 = arith.truncf %54 : vector<8x128xf32> to vector<8x128xbf16>
    %c0_31 = arith.constant 0 : index
    %c0_32 = arith.constant 0 : index
    %56 = vector.load %arg4[%c0_31, %c0_32] : memref<8x128xbf16, #tpu.memory_space<vmem>>, vector<8x128xbf16>
    tpu.vector_store %arg4[%c0_31, %c0_32], %55 {strides = array<i32>} : memref<8x128xbf16, #tpu.memory_space<vmem>>, vector<8x128xbf16>,
    return
  }
  func.func @transform_0(%arg0: i32) -> (i32, i32) {
    %c0_i32 = arith.constant 0 : i32
    %c0_i32_0 = arith.constant 0 : i32
    %c0_i32_1 = arith.constant 0 : i32
    return %c0_i32, %c0_i32_0 : i32, i32
  }
  func.func @transform_1(%arg0: i32) -> (i32, i32, i32) {
    %c0_i32 = arith.constant 0 : i32
    %c0_i32_0 = arith.constant 0 : i32
    %c0_i32_1 = arith.constant 0 : i32
    %c0_i32_2 = arith.constant 0 : i32
    return %c0_i32, %c0_i32_0, %c0_i32_1 : i32, i32, i32
  }
  func.func @transform_2(%arg0: i32) -> (i32, i32) {
    %c0_i32 = arith.constant 0 : i32
    %c0_i32_0 = arith.constant 0 : i32
    %c0_i32_1 = arith.constant 0 : i32
    return %c0_i32, %c0_i32_0 : i32, i32
  }
  func.func @transform_3(%arg0: i32) -> (i32, i32) {
    %c0_i32 = arith.constant 0 : i32
    %c0_i32_0 = arith.constant 0 : i32
    return %c0_i32, %arg0 : i32, i32
  }
}

module attributes {stable_mosaic.version = 11 : i64} {
  func.func @_pw_kernel(%arg0: i32, %arg1: memref<16x8xbf16, #tpu.memory_space<vmem>>, %arg2: memref<8x8xbf16, #tpu.memory_space<vmem>>, %arg3: memref<8x16xbf16, #tpu.memory_space<vmem>>, %arg4: memref<8x8xbf16, #tpu.memory_space<vmem>>, %arg5: memref<8x1xf32, #tpu.memory_space<vmem>>, %arg6: memref<8x8xbf16, #tpu.memory_space<vmem>>) attributes {dimension_semantics = [#tpu.dimension_semantics<parallel>], iteration_bounds = array<i64: 1>, scalar_prefetch = 0 : i64, scratch_operands = 0 : i64, tpu.core_type = #tpu.core_type<tc>, window_params = [{transform_indices = @transform_0, window_bounds = array<i64: 16, 8>}, {transform_indices = @transform_1, window_bounds = array<i64: 8, 8>}, {pipeline_mode = #tpu.pipeline_mode<synchronous>, transform_indices = @transform_2, window_bounds = array<i64: 8, 16>}, {pipeline_mode = #tpu.pipeline_mode<synchronous>, transform_indices = @transform_3, window_bounds = array<i64: 8, 8>}, {pipeline_mode = #tpu.pipeline_mode<synchronous>, transform_indices = @transform_4, window_bounds = array<i64: 8, 1>}, {transform_indices = @transform_5, window_bounds = array<i64: 8, 8>}]} {
    %c0 = arith.constant 0 : index
    %c0_0 = arith.constant 0 : index
    %0 = vector.load %arg3[%c0, %c0_0] : memref<8x16xbf16, #tpu.memory_space<vmem>>, vector<8x16xbf16>
    %c0_1 = arith.constant 0 : index
    %c0_2 = arith.constant 0 : index
    %1 = vector.load %arg1[%c0_1, %c0_2] : memref<16x8xbf16, #tpu.memory_space<vmem>>, vector<16x8xbf16>
    %cst = arith.constant dense<0.000000e+00> : vector<8x8xf32>
    %2 = tpu.matmul %0, %1, %cst {dimension_numbers = #tpu.dot_dimension_numbers<[1], [0], [0], [1], [0, 0, 1, 1], [], []>} : vector<8x16xbf16>, vector<16x8xbf16>, vector<8x8xf32> -> vector<8x8xf32>
    %c0_3 = arith.constant 0 : index
    %c0_4 = arith.constant 0 : index
    %3 = vector.load %arg4[%c0_3, %c0_4] : memref<8x8xbf16, #tpu.memory_space<vmem>>, vector<8x8xbf16>
    %c0_5 = arith.constant 0 : index
    %c0_6 = arith.constant 0 : index
    %4 = vector.load %arg2[%c0_5, %c0_6] : memref<8x8xbf16, #tpu.memory_space<vmem>>, vector<8x8xbf16>
    %cst_7 = arith.constant dense<0.000000e+00> : vector<8x8xf32>
    %5 = tpu.matmul %3, %4, %cst_7 {dimension_numbers = #tpu.dot_dimension_numbers<[1], [0], [0], [1], [0, 0, 1, 1], [], []>} : vector<8x8xbf16>, vector<8x8xbf16>, vector<8x8xf32> -> vector<8x8xf32>
    %6 = arith.addf %2, %5 : vector<8x8xf32>
    %c0_8 = arith.constant 0 : index
    %c0_9 = arith.constant 0 : index
    %7 = vector.load %arg5[%c0_8, %c0_9] : memref<8x1xf32, #tpu.memory_space<vmem>>, vector<8x1xf32>
    %8 = vector.broadcast %7 : vector<8x1xf32> to vector<8x8xf32>
    %9 = arith.addf %6, %8 : vector<8x8xf32>
    %10 = arith.truncf %9 : vector<8x8xf32> to vector<8x8xbf16>
    %c0_10 = arith.constant 0 : index
    %c0_11 = arith.constant 0 : index
    %11 = vector.load %arg6[%c0_10, %c0_11] : memref<8x8xbf16, #tpu.memory_space<vmem>>, vector<8x8xbf16>
    tpu.vector_store %arg6[%c0_10, %c0_11], %10 {strides = array<i32>} : memref<8x8xbf16, #tpu.memory_space<vmem>>, vector<8x8xbf16>,
    return
  }
  func.func @transform_0(%arg0: i32) -> (i32, i32) {
    %c0_i32 = arith.constant 0 : i32
    %c0_i32_0 = arith.constant 0 : i32
    return %c0_i32, %arg0 : i32, i32
  }
  func.func @transform_1(%arg0: i32) -> (i32, i32) {
    %c0_i32 = arith.constant 0 : i32
    %c0_i32_0 = arith.constant 0 : i32
    return %c0_i32, %arg0 : i32, i32
  }
  func.func @transform_2(%arg0: i32) -> (i32, i32) {
    %c0_i32 = arith.constant 0 : i32
    %c0_i32_0 = arith.constant 0 : i32
    %c0_i32_1 = arith.constant 0 : i32
    return %c0_i32, %c0_i32_0 : i32, i32
  }
  func.func @transform_3(%arg0: i32) -> (i32, i32) {
    %c0_i32 = arith.constant 0 : i32
    %c0_i32_0 = arith.constant 0 : i32
    %c0_i32_1 = arith.constant 0 : i32
    return %c0_i32, %c0_i32_0 : i32, i32
  }
  func.func @transform_4(%arg0: i32) -> (i32, i32) {
    %c0_i32 = arith.constant 0 : i32
    %c0_i32_0 = arith.constant 0 : i32
    %c0_i32_1 = arith.constant 0 : i32
    return %c0_i32, %c0_i32_0 : i32, i32
  }
  func.func @transform_5(%arg0: i32) -> (i32, i32) {
    %c0_i32 = arith.constant 0 : i32
    %c0_i32_0 = arith.constant 0 : i32
    return %c0_i32, %arg0 : i32, i32
  }
}

module attributes {stable_mosaic.version = 11 : i64} {
  func.func @_pw_kernel(%arg0: i32, %arg1: memref<8x8xbf16, #tpu.memory_space<vmem>>, %arg2: memref<1x8xbf16, #tpu.memory_space<vmem>>, %arg3: memref<1x1xf32, #tpu.memory_space<vmem>>, %arg4: memref<1x8xf32, #tpu.memory_space<vmem>>) attributes {dimension_semantics = [#tpu.dimension_semantics<parallel>], iteration_bounds = array<i64: 1>, scalar_prefetch = 0 : i64, scratch_operands = 0 : i64, tpu.core_type = #tpu.core_type<tc>, window_params = [{transform_indices = @transform_0, window_bounds = array<i64: 8, 8>}, {pipeline_mode = #tpu.pipeline_mode<synchronous>, transform_indices = @transform_1, window_bounds = array<i64: 1, 8>}, {pipeline_mode = #tpu.pipeline_mode<synchronous>, transform_indices = @transform_2, window_bounds = array<i64: 1, 1>}, {transform_indices = @transform_3, window_bounds = array<i64: 1, 8>}]} {
    %c0 = arith.constant 0 : index
    %c0_0 = arith.constant 0 : index
    %0 = vector.load %arg2[%c0, %c0_0] : memref<1x8xbf16, #tpu.memory_space<vmem>>, vector<1x8xbf16>
    %c0_1 = arith.constant 0 : index
    %c0_2 = arith.constant 0 : index
    %1 = vector.load %arg1[%c0_1, %c0_2] : memref<8x8xbf16, #tpu.memory_space<vmem>>, vector<8x8xbf16>
    %cst = arith.constant dense<0.000000e+00> : vector<1x8xf32>
    %2 = tpu.matmul %0, %1, %cst {dimension_numbers = #tpu.dot_dimension_numbers<[1], [0], [0], [1], [0, 0, 1, 1], [], []>} : vector<1x8xbf16>, vector<8x8xbf16>, vector<1x8xf32> -> vector<1x8xf32>
    %c0_3 = arith.constant 0 : index
    %c0_4 = arith.constant 0 : index
    %3 = vector.load %arg3[%c0_3, %c0_4] : memref<1x1xf32, #tpu.memory_space<vmem>>, vector<1x1xf32>
    %4 = vector.broadcast %3 : vector<1x1xf32> to vector<1x8xf32>
    %5 = arith.addf %2, %4 : vector<1x8xf32>
    %c0_5 = arith.constant 0 : index
    %c0_6 = arith.constant 0 : index
    %6 = vector.load %arg4[%c0_5, %c0_6] : memref<1x8xf32, #tpu.memory_space<vmem>>, vector<1x8xf32>
    tpu.vector_store %arg4[%c0_5, %c0_6], %5 {strides = array<i32>} : memref<1x8xf32, #tpu.memory_space<vmem>>, vector<1x8xf32>,
    return
  }
  func.func @transform_0(%arg0: i32) -> (i32, i32) {
    %c0_i32 = arith.constant 0 : i32
    %c0_i32_0 = arith.constant 0 : i32
    return %c0_i32, %arg0 : i32, i32
  }
  func.func @transform_1(%arg0: i32) -> (i32, i32) {
    %c0_i32 = arith.constant 0 : i32
    %c0_i32_0 = arith.constant 0 : i32
    %c0_i32_1 = arith.constant 0 : i32
    return %c0_i32, %c0_i32_0 : i32, i32
  }
  func.func @transform_2(%arg0: i32) -> (i32, i32) {
    %c0_i32 = arith.constant 0 : i32
    %c0_i32_0 = arith.constant 0 : i32
    %c0_i32_1 = arith.constant 0 : i32
    return %c0_i32, %c0_i32_0 : i32, i32
  }
  func.func @transform_3(%arg0: i32) -> (i32, i32) {
    %c0_i32 = arith.constant 0 : i32
    %c0_i32_0 = arith.constant 0 : i32
    return %c0_i32, %arg0 : i32, i32
  }
}

module attributes {stable_mosaic.version = 11 : i64} {
  func.func @_pw_kernel(%arg0: i32, %arg1: memref<8x32xbf16, #tpu.memory_space<vmem>>, %arg2: memref<8x32xbf16, #tpu.memory_space<vmem>>, %arg3: memref<8x8xbf16, #tpu.memory_space<vmem>>, %arg4: memref<8x8xbf16, #tpu.memory_space<vmem>>, %arg5: memref<8x1xf32, #tpu.memory_space<vmem>>, %arg6: memref<8x32xbf16, #tpu.memory_space<vmem>>) attributes {dimension_semantics = [#tpu.dimension_semantics<parallel>], iteration_bounds = array<i64: 1>, scalar_prefetch = 0 : i64, scratch_operands = 0 : i64, tpu.core_type = #tpu.core_type<tc>, window_params = [{transform_indices = @transform_0, window_bounds = array<i64: 8, 32>}, {transform_indices = @transform_1, window_bounds = array<i64: 8, 32>}, {pipeline_mode = #tpu.pipeline_mode<synchronous>, transform_indices = @transform_2, window_bounds = array<i64: 8, 8>}, {pipeline_mode = #tpu.pipeline_mode<synchronous>, transform_indices = @transform_3, window_bounds = array<i64: 8, 8>}, {pipeline_mode = #tpu.pipeline_mode<synchronous>, transform_indices = @transform_4, window_bounds = array<i64: 8, 1>}, {transform_indices = @transform_5, window_bounds = array<i64: 8, 32>}]} {
    %c0 = arith.constant 0 : index
    %c0_0 = arith.constant 0 : index
    %0 = vector.load %arg3[%c0, %c0_0] : memref<8x8xbf16, #tpu.memory_space<vmem>>, vector<8x8xbf16>
    %c0_1 = arith.constant 0 : index
    %c0_2 = arith.constant 0 : index
    %1 = vector.load %arg1[%c0_1, %c0_2] : memref<8x32xbf16, #tpu.memory_space<vmem>>, vector<8x32xbf16>
    %cst = arith.constant dense<0.000000e+00> : vector<8x32xf32>
    %2 = tpu.matmul %0, %1, %cst {dimension_numbers = #tpu.dot_dimension_numbers<[1], [0], [0], [1], [0, 0, 1, 1], [], []>} : vector<8x8xbf16>, vector<8x32xbf16>, vector<8x32xf32> -> vector<8x32xf32>
    %c0_3 = arith.constant 0 : index
    %c0_4 = arith.constant 0 : index
    %3 = vector.load %arg4[%c0_3, %c0_4] : memref<8x8xbf16, #tpu.memory_space<vmem>>, vector<8x8xbf16>
    %c0_5 = arith.constant 0 : index
    %c0_6 = arith.constant 0 : index
    %4 = vector.load %arg2[%c0_5, %c0_6] : memref<8x32xbf16, #tpu.memory_space<vmem>>, vector<8x32xbf16>
    %cst_7 = arith.constant dense<0.000000e+00> : vector<8x32xf32>
    %5 = tpu.matmul %3, %4, %cst_7 {dimension_numbers = #tpu.dot_dimension_numbers<[1], [0], [0], [1], [0, 0, 1, 1], [], []>} : vector<8x8xbf16>, vector<8x32xbf16>, vector<8x32xf32> -> vector<8x32xf32>
    %6 = arith.addf %2, %5 : vector<8x32xf32>
    %c0_8 = arith.constant 0 : index
    %c0_9 = arith.constant 0 : index
    %7 = vector.load %arg5[%c0_8, %c0_9] : memref<8x1xf32, #tpu.memory_space<vmem>>, vector<8x1xf32>
    %8 = vector.broadcast %7 : vector<8x1xf32> to vector<8x32xf32>
    %9 = arith.addf %6, %8 : vector<8x32xf32>
    %cst_10 = arith.constant 0.000000e+00 : f32
    %10 = vector.broadcast %cst_10 : f32 to vector<8x32xf32>
    %11 = arith.maximumf %9, %10 : vector<8x32xf32>
    %12 = arith.truncf %11 : vector<8x32xf32> to vector<8x32xbf16>
    %c0_11 = arith.constant 0 : index
    %c0_12 = arith.constant 0 : index
    %13 = vector.load %arg6[%c0_11, %c0_12] : memref<8x32xbf16, #tpu.memory_space<vmem>>, vector<8x32xbf16>
    tpu.vector_store %arg6[%c0_11, %c0_12], %12 {strides = array<i32>} : memref<8x32xbf16, #tpu.memory_space<vmem>>, vector<8x32xbf16>,
    return
  }
  func.func @transform_0(%arg0: i32) -> (i32, i32) {
    %c0_i32 = arith.constant 0 : i32
    %c0_i32_0 = arith.constant 0 : i32
    return %c0_i32, %arg0 : i32, i32
  }
  func.func @transform_1(%arg0: i32) -> (i32, i32) {
    %c0_i32 = arith.constant 0 : i32
    %c0_i32_0 = arith.constant 0 : i32
    return %c0_i32, %arg0 : i32, i32
  }
  func.func @transform_2(%arg0: i32) -> (i32, i32) {
    %c0_i32 = arith.constant 0 : i32
    %c0_i32_0 = arith.constant 0 : i32
    %c0_i32_1 = arith.constant 0 : i32
    return %c0_i32, %c0_i32_0 : i32, i32
  }
  func.func @transform_3(%arg0: i32) -> (i32, i32) {
    %c0_i32 = arith.constant 0 : i32
    %c0_i32_0 = arith.constant 0 : i32
    %c0_i32_1 = arith.constant 0 : i32
    return %c0_i32, %c0_i32_0 : i32, i32
  }
  func.func @transform_4(%arg0: i32) -> (i32, i32) {
    %c0_i32 = arith.constant 0 : i32
    %c0_i32_0 = arith.constant 0 : i32
    %c0_i32_1 = arith.constant 0 : i32
    return %c0_i32, %c0_i32_0 : i32, i32
  }
  func.func @transform_5(%arg0: i32) -> (i32, i32) {
    %c0_i32 = arith.constant 0 : i32
    %c0_i32_0 = arith.constant 0 : i32
    return %c0_i32, %arg0 : i32, i32
  }
}

module attributes {stable_mosaic.version = 11 : i64} {
  func.func @_pw_kernel(%arg0: i32, %arg1: memref<8x128xbf16, #tpu.memory_space<vmem>>, %arg2: memref<8x128xbf16, #tpu.memory_space<vmem>>, %arg3: memref<8x8xbf16, #tpu.memory_space<vmem>>, %arg4: memref<8x8xbf16, #tpu.memory_space<vmem>>, %arg5: memref<8x1xf32, #tpu.memory_space<vmem>>, %arg6: memref<8x128xbf16, #tpu.memory_space<vmem>>) attributes {dimension_semantics = [#tpu.dimension_semantics<parallel>], iteration_bounds = array<i64: 1>, scalar_prefetch = 0 : i64, scratch_operands = 0 : i64, tpu.core_type = #tpu.core_type<tc>, window_params = [{transform_indices = @transform_0, window_bounds = array<i64: 8, 128>}, {transform_indices = @transform_1, window_bounds = array<i64: 8, 128>}, {pipeline_mode = #tpu.pipeline_mode<synchronous>, transform_indices = @transform_2, window_bounds = array<i64: 8, 8>}, {pipeline_mode = #tpu.pipeline_mode<synchronous>, transform_indices = @transform_3, window_bounds = array<i64: 8, 8>}, {pipeline_mode = #tpu.pipeline_mode<synchronous>, transform_indices = @transform_4, window_bounds = array<i64: 8, 1>}, {transform_indices = @transform_5, window_bounds = array<i64: 8, 128>}]} {
    %c0 = arith.constant 0 : index
    %c0_0 = arith.constant 0 : index
    %0 = vector.load %arg3[%c0, %c0_0] : memref<8x8xbf16, #tpu.memory_space<vmem>>, vector<8x8xbf16>
    %c0_1 = arith.constant 0 : index
    %c0_2 = arith.constant 0 : index
    %1 = vector.load %arg1[%c0_1, %c0_2] : memref<8x128xbf16, #tpu.memory_space<vmem>>, vector<8x128xbf16>
    %cst = arith.constant dense<0.000000e+00> : vector<8x128xf32>
    %2 = tpu.matmul %0, %1, %cst {dimension_numbers = #tpu.dot_dimension_numbers<[1], [0], [0], [1], [0, 0, 1, 1], [], []>} : vector<8x8xbf16>, vector<8x128xbf16>, vector<8x128xf32> -> vector<8x128xf32>
    %c0_3 = arith.constant 0 : index
    %c0_4 = arith.constant 0 : index
    %3 = vector.load %arg4[%c0_3, %c0_4] : memref<8x8xbf16, #tpu.memory_space<vmem>>, vector<8x8xbf16>
    %c0_5 = arith.constant 0 : index
    %c0_6 = arith.constant 0 : index
    %4 = vector.load %arg2[%c0_5, %c0_6] : memref<8x128xbf16, #tpu.memory_space<vmem>>, vector<8x128xbf16>
    %cst_7 = arith.constant dense<0.000000e+00> : vector<8x128xf32>
    %5 = tpu.matmul %3, %4, %cst_7 {dimension_numbers = #tpu.dot_dimension_numbers<[1], [0], [0], [1], [0, 0, 1, 1], [], []>} : vector<8x8xbf16>, vector<8x128xbf16>, vector<8x128xf32> -> vector<8x128xf32>
    %6 = arith.addf %2, %5 : vector<8x128xf32>
    %c0_8 = arith.constant 0 : index
    %c0_9 = arith.constant 0 : index
    %7 = vector.load %arg5[%c0_8, %c0_9] : memref<8x1xf32, #tpu.memory_space<vmem>>, vector<8x1xf32>
    %8 = vector.broadcast %7 : vector<8x1xf32> to vector<8x128xf32>
    %9 = arith.addf %6, %8 : vector<8x128xf32>
    %cst_10 = arith.constant 0.000000e+00 : f32
    %10 = vector.broadcast %cst_10 : f32 to vector<8x128xf32>
    %11 = arith.maximumf %9, %10 : vector<8x128xf32>
    %12 = arith.truncf %11 : vector<8x128xf32> to vector<8x128xbf16>
    %c0_11 = arith.constant 0 : index
    %c0_12 = arith.constant 0 : index
    %13 = vector.load %arg6[%c0_11, %c0_12] : memref<8x128xbf16, #tpu.memory_space<vmem>>, vector<8x128xbf16>
    tpu.vector_store %arg6[%c0_11, %c0_12], %12 {strides = array<i32>} : memref<8x128xbf16, #tpu.memory_space<vmem>>, vector<8x128xbf16>,
    return
  }
  func.func @transform_0(%arg0: i32) -> (i32, i32) {
    %c0_i32 = arith.constant 0 : i32
    %c0_i32_0 = arith.constant 0 : i32
    return %c0_i32, %arg0 : i32, i32
  }
  func.func @transform_1(%arg0: i32) -> (i32, i32) {
    %c0_i32 = arith.constant 0 : i32
    %c0_i32_0 = arith.constant 0 : i32
    return %c0_i32, %arg0 : i32, i32
  }
  func.func @transform_2(%arg0: i32) -> (i32, i32) {
    %c0_i32 = arith.constant 0 : i32
    %c0_i32_0 = arith.constant 0 : i32
    %c0_i32_1 = arith.constant 0 : i32
    return %c0_i32, %c0_i32_0 : i32, i32
  }
  func.func @transform_3(%arg0: i32) -> (i32, i32) {
    %c0_i32 = arith.constant 0 : i32
    %c0_i32_0 = arith.constant 0 : i32
    %c0_i32_1 = arith.constant 0 : i32
    return %c0_i32, %c0_i32_0 : i32, i32
  }
  func.func @transform_4(%arg0: i32) -> (i32, i32) {
    %c0_i32 = arith.constant 0 : i32
    %c0_i32_0 = arith.constant 0 : i32
    %c0_i32_1 = arith.constant 0 : i32
    return %c0_i32, %c0_i32_0 : i32, i32
  }
  func.func @transform_5(%arg0: i32) -> (i32, i32) {
    %c0_i32 = arith.constant 0 : i32
    %c0_i32_0 = arith.constant 0 : i32
    return %c0_i32, %arg0 : i32, i32
  }
}

module attributes {stable_mosaic.version = 11 : i64} {
  func.func @_pw_kernel(%arg0: i32, %arg1: memref<8x512xbf16, #tpu.memory_space<vmem>>, %arg2: memref<8x512xbf16, #tpu.memory_space<vmem>>, %arg3: memref<8x8xbf16, #tpu.memory_space<vmem>>, %arg4: memref<8x8xbf16, #tpu.memory_space<vmem>>, %arg5: memref<8x1xf32, #tpu.memory_space<vmem>>, %arg6: memref<8x512xbf16, #tpu.memory_space<vmem>>) attributes {dimension_semantics = [#tpu.dimension_semantics<parallel>], iteration_bounds = array<i64: 1>, scalar_prefetch = 0 : i64, scratch_operands = 0 : i64, tpu.core_type = #tpu.core_type<tc>, window_params = [{transform_indices = @transform_0, window_bounds = array<i64: 8, 512>}, {transform_indices = @transform_1, window_bounds = array<i64: 8, 512>}, {pipeline_mode = #tpu.pipeline_mode<synchronous>, transform_indices = @transform_2, window_bounds = array<i64: 8, 8>}, {pipeline_mode = #tpu.pipeline_mode<synchronous>, transform_indices = @transform_3, window_bounds = array<i64: 8, 8>}, {pipeline_mode = #tpu.pipeline_mode<synchronous>, transform_indices = @transform_4, window_bounds = array<i64: 8, 1>}, {transform_indices = @transform_5, window_bounds = array<i64: 8, 512>}]} {
    %c0 = arith.constant 0 : index
    %c0_0 = arith.constant 0 : index
    %0 = vector.load %arg3[%c0, %c0_0] : memref<8x8xbf16, #tpu.memory_space<vmem>>, vector<8x8xbf16>
    %c0_1 = arith.constant 0 : index
    %c0_2 = arith.constant 0 : index
    %1 = vector.load %arg1[%c0_1, %c0_2] : memref<8x512xbf16, #tpu.memory_space<vmem>>, vector<8x512xbf16>
    %cst = arith.constant dense<0.000000e+00> : vector<8x512xf32>
    %2 = tpu.matmul %0, %1, %cst {dimension_numbers = #tpu.dot_dimension_numbers<[1], [0], [0], [1], [0, 0, 1, 1], [], []>} : vector<8x8xbf16>, vector<8x512xbf16>, vector<8x512xf32> -> vector<8x512xf32>
    %c0_3 = arith.constant 0 : index
    %c0_4 = arith.constant 0 : index
    %3 = vector.load %arg4[%c0_3, %c0_4] : memref<8x8xbf16, #tpu.memory_space<vmem>>, vector<8x8xbf16>
    %c0_5 = arith.constant 0 : index
    %c0_6 = arith.constant 0 : index
    %4 = vector.load %arg2[%c0_5, %c0_6] : memref<8x512xbf16, #tpu.memory_space<vmem>>, vector<8x512xbf16>
    %cst_7 = arith.constant dense<0.000000e+00> : vector<8x512xf32>
    %5 = tpu.matmul %3, %4, %cst_7 {dimension_numbers = #tpu.dot_dimension_numbers<[1], [0], [0], [1], [0, 0, 1, 1], [], []>} : vector<8x8xbf16>, vector<8x512xbf16>, vector<8x512xf32> -> vector<8x512xf32>
    %6 = arith.addf %2, %5 : vector<8x512xf32>
    %c0_8 = arith.constant 0 : index
    %c0_9 = arith.constant 0 : index
    %7 = vector.load %arg5[%c0_8, %c0_9] : memref<8x1xf32, #tpu.memory_space<vmem>>, vector<8x1xf32>
    %8 = vector.broadcast %7 : vector<8x1xf32> to vector<8x512xf32>
    %9 = arith.addf %6, %8 : vector<8x512xf32>
    %cst_10 = arith.constant 0.000000e+00 : f32
    %10 = vector.broadcast %cst_10 : f32 to vector<8x512xf32>
    %11 = arith.maximumf %9, %10 : vector<8x512xf32>
    %12 = arith.truncf %11 : vector<8x512xf32> to vector<8x512xbf16>
    %c0_11 = arith.constant 0 : index
    %c0_12 = arith.constant 0 : index
    %13 = vector.load %arg6[%c0_11, %c0_12] : memref<8x512xbf16, #tpu.memory_space<vmem>>, vector<8x512xbf16>
    tpu.vector_store %arg6[%c0_11, %c0_12], %12 {strides = array<i32>} : memref<8x512xbf16, #tpu.memory_space<vmem>>, vector<8x512xbf16>,
    return
  }
  func.func @transform_0(%arg0: i32) -> (i32, i32) {
    %c0_i32 = arith.constant 0 : i32
    %c0_i32_0 = arith.constant 0 : i32
    return %c0_i32, %arg0 : i32, i32
  }
  func.func @transform_1(%arg0: i32) -> (i32, i32) {
    %c0_i32 = arith.constant 0 : i32
    %c0_i32_0 = arith.constant 0 : i32
    return %c0_i32, %arg0 : i32, i32
  }
  func.func @transform_2(%arg0: i32) -> (i32, i32) {
    %c0_i32 = arith.constant 0 : i32
    %c0_i32_0 = arith.constant 0 : i32
    %c0_i32_1 = arith.constant 0 : i32
    return %c0_i32, %c0_i32_0 : i32, i32
  }
  func.func @transform_3(%arg0: i32) -> (i32, i32) {
    %c0_i32 = arith.constant 0 : i32
    %c0_i32_0 = arith.constant 0 : i32
    %c0_i32_1 = arith.constant 0 : i32
    return %c0_i32, %c0_i32_0 : i32, i32
  }
  func.func @transform_4(%arg0: i32) -> (i32, i32) {
    %c0_i32 = arith.constant 0 : i32
    %c0_i32_0 = arith.constant 0 : i32
    %c0_i32_1 = arith.constant 0 : i32
    return %c0_i32, %c0_i32_0 : i32, i32
  }
  func.func @transform_5(%arg0: i32) -> (i32, i32) {
    %c0_i32 = arith.constant 0 : i32
    %c0_i32_0 = arith.constant 0 : i32
    return %c0_i32, %arg0 : i32, i32
  }
}

module attributes {stable_mosaic.version = 11 : i64} {
  func.func @_pw_kernel(%arg0: i32, %arg1: memref<8x512xbf16, #tpu.memory_space<vmem>>, %arg2: memref<8x512xbf16, #tpu.memory_space<vmem>>, %arg3: memref<8x8xbf16, #tpu.memory_space<vmem>>, %arg4: memref<8x8xbf16, #tpu.memory_space<vmem>>, %arg5: memref<8x1xf32, #tpu.memory_space<vmem>>, %arg6: memref<8x512xbf16, #tpu.memory_space<vmem>>) attributes {dimension_semantics = [#tpu.dimension_semantics<parallel>], iteration_bounds = array<i64: 4>, scalar_prefetch = 0 : i64, scratch_operands = 0 : i64, tpu.core_type = #tpu.core_type<tc>, window_params = [{transform_indices = @transform_0, window_bounds = array<i64: 8, 512>}, {transform_indices = @transform_1, window_bounds = array<i64: 8, 512>}, {pipeline_mode = #tpu.pipeline_mode<synchronous>, transform_indices = @transform_2, window_bounds = array<i64: 8, 8>}, {pipeline_mode = #tpu.pipeline_mode<synchronous>, transform_indices = @transform_3, window_bounds = array<i64: 8, 8>}, {pipeline_mode = #tpu.pipeline_mode<synchronous>, transform_indices = @transform_4, window_bounds = array<i64: 8, 1>}, {transform_indices = @transform_5, window_bounds = array<i64: 8, 512>}]} {
    %c0 = arith.constant 0 : index
    %c0_0 = arith.constant 0 : index
    %0 = vector.load %arg3[%c0, %c0_0] : memref<8x8xbf16, #tpu.memory_space<vmem>>, vector<8x8xbf16>
    %c0_1 = arith.constant 0 : index
    %c0_2 = arith.constant 0 : index
    %1 = vector.load %arg1[%c0_1, %c0_2] : memref<8x512xbf16, #tpu.memory_space<vmem>>, vector<8x512xbf16>
    %cst = arith.constant dense<0.000000e+00> : vector<8x512xf32>
    %2 = tpu.matmul %0, %1, %cst {dimension_numbers = #tpu.dot_dimension_numbers<[1], [0], [0], [1], [0, 0, 1, 1], [], []>} : vector<8x8xbf16>, vector<8x512xbf16>, vector<8x512xf32> -> vector<8x512xf32>
    %c0_3 = arith.constant 0 : index
    %c0_4 = arith.constant 0 : index
    %3 = vector.load %arg4[%c0_3, %c0_4] : memref<8x8xbf16, #tpu.memory_space<vmem>>, vector<8x8xbf16>
    %c0_5 = arith.constant 0 : index
    %c0_6 = arith.constant 0 : index
    %4 = vector.load %arg2[%c0_5, %c0_6] : memref<8x512xbf16, #tpu.memory_space<vmem>>, vector<8x512xbf16>
    %cst_7 = arith.constant dense<0.000000e+00> : vector<8x512xf32>
    %5 = tpu.matmul %3, %4, %cst_7 {dimension_numbers = #tpu.dot_dimension_numbers<[1], [0], [0], [1], [0, 0, 1, 1], [], []>} : vector<8x8xbf16>, vector<8x512xbf16>, vector<8x512xf32> -> vector<8x512xf32>
    %6 = arith.addf %2, %5 : vector<8x512xf32>
    %c0_8 = arith.constant 0 : index
    %c0_9 = arith.constant 0 : index
    %7 = vector.load %arg5[%c0_8, %c0_9] : memref<8x1xf32, #tpu.memory_space<vmem>>, vector<8x1xf32>
    %8 = vector.broadcast %7 : vector<8x1xf32> to vector<8x512xf32>
    %9 = arith.addf %6, %8 : vector<8x512xf32>
    %cst_10 = arith.constant 0.000000e+00 : f32
    %10 = vector.broadcast %cst_10 : f32 to vector<8x512xf32>
    %11 = arith.maximumf %9, %10 : vector<8x512xf32>
    %12 = arith.truncf %11 : vector<8x512xf32> to vector<8x512xbf16>
    %c0_11 = arith.constant 0 : index
    %c0_12 = arith.constant 0 : index
    %13 = vector.load %arg6[%c0_11, %c0_12] : memref<8x512xbf16, #tpu.memory_space<vmem>>, vector<8x512xbf16>
    tpu.vector_store %arg6[%c0_11, %c0_12], %12 {strides = array<i32>} : memref<8x512xbf16, #tpu.memory_space<vmem>>, vector<8x512xbf16>,
    return
  }
  func.func @transform_0(%arg0: i32) -> (i32, i32) {
    %c0_i32 = arith.constant 0 : i32
    %c0_i32_0 = arith.constant 0 : i32
    return %c0_i32, %arg0 : i32, i32
  }
  func.func @transform_1(%arg0: i32) -> (i32, i32) {
    %c0_i32 = arith.constant 0 : i32
    %c0_i32_0 = arith.constant 0 : i32
    return %c0_i32, %arg0 : i32, i32
  }
  func.func @transform_2(%arg0: i32) -> (i32, i32) {
    %c0_i32 = arith.constant 0 : i32
    %c0_i32_0 = arith.constant 0 : i32
    %c0_i32_1 = arith.constant 0 : i32
    return %c0_i32, %c0_i32_0 : i32, i32
  }
  func.func @transform_3(%arg0: i32) -> (i32, i32) {
    %c0_i32 = arith.constant 0 : i32
    %c0_i32_0 = arith.constant 0 : i32
    %c0_i32_1 = arith.constant 0 : i32
    return %c0_i32, %c0_i32_0 : i32, i32
  }
  func.func @transform_4(%arg0: i32) -> (i32, i32) {
    %c0_i32 = arith.constant 0 : i32
    %c0_i32_0 = arith.constant 0 : i32
    %c0_i32_1 = arith.constant 0 : i32
    return %c0_i32, %c0_i32_0 : i32, i32
  }
  func.func @transform_5(%arg0: i32) -> (i32, i32) {
    %c0_i32 = arith.constant 0 : i32
    %c0_i32_0 = arith.constant 0 : i32
    return %c0_i32, %arg0 : i32, i32
  }
}

module attributes {stable_mosaic.version = 11 : i64} {
  func.func @_conv3x3_kernel(%arg0: i32, %arg1: memref<16x2630xbf16, #tpu.memory_space<vmem>>, %arg2: memref<9x8x16xbf16, #tpu.memory_space<vmem>>, %arg3: memref<8x1xf32, #tpu.memory_space<vmem>>, %arg4: memref<8x512xbf16, #tpu.memory_space<vmem>>) attributes {dimension_semantics = [#tpu.dimension_semantics<parallel>], iteration_bounds = array<i64: 5>, scalar_prefetch = 0 : i64, scratch_operands = 0 : i64, tpu.core_type = #tpu.core_type<tc>, window_params = [{pipeline_mode = #tpu.pipeline_mode<synchronous>, transform_indices = @transform_0, window_bounds = array<i64: 16, 2630>}, {pipeline_mode = #tpu.pipeline_mode<synchronous>, transform_indices = @transform_1, window_bounds = array<i64: 9, 8, 16>}, {pipeline_mode = #tpu.pipeline_mode<synchronous>, transform_indices = @transform_2, window_bounds = array<i64: 8, 1>}, {transform_indices = @transform_3, window_bounds = array<i64: 8, 512>}]} {
    %c512_i32 = arith.constant 512 : i32
    %0 = arith.muli %arg0, %c512_i32 : i32
    %1 = tpu.assume_multiple %0, 128 : i32
    %c0 = arith.constant 0 : index
    %2 = arith.index_cast %1 : i32 to index
    %3 = vector.load %arg1[%c0, %2] : memref<16x2630xbf16, #tpu.memory_space<vmem>>, vector<16x582xbf16>
    %cst = arith.constant 0.000000e+00 : f32
    %4 = vector.broadcast %cst : f32 to vector<8x512xf32>
    %5 = vector.extract_strided_slice %3 {offsets = [0, 0], sizes = [16, 512], strides = [1, 1]} : vector<16x582xbf16> to vector<16x512xbf16>
    %c0_0 = arith.constant 0 : index
    %c0_1 = arith.constant 0 : index
    %c0_2 = arith.constant 0 : index
    %6 = vector.load %arg2[%c0_0, %c0_1, %c0_2] : memref<9x8x16xbf16, #tpu.memory_space<vmem>>, vector<1x8x16xbf16>
    %7 = vector.shape_cast %6 : vector<1x8x16xbf16> to vector<8x16xbf16>
    %cst_3 = arith.constant dense<0.000000e+00> : vector<8x512xf32>
    %8 = tpu.matmul %7, %5, %cst_3 {dimension_numbers = #tpu.dot_dimension_numbers<[1], [0], [0], [1], [0, 0, 1, 1], [], []>} : vector<8x16xbf16>, vector<16x512xbf16>, vector<8x512xf32> -> vector<8x512xf32>
    %9 = arith.addf %4, %8 : vector<8x512xf32>
    %10 = vector.extract_strided_slice %3 {offsets = [0, 1], sizes = [16, 512], strides = [1, 1]} : vector<16x582xbf16> to vector<16x512xbf16>
    %c1 = arith.constant 1 : index
    %c0_4 = arith.constant 0 : index
    %c0_5 = arith.constant 0 : index
    %11 = vector.load %arg2[%c1, %c0_4, %c0_5] : memref<9x8x16xbf16, #tpu.memory_space<vmem>>, vector<1x8x16xbf16>
    %12 = vector.shape_cast %11 : vector<1x8x16xbf16> to vector<8x16xbf16>
    %cst_6 = arith.constant dense<0.000000e+00> : vector<8x512xf32>
    %13 = tpu.matmul %12, %10, %cst_6 {dimension_numbers = #tpu.dot_dimension_numbers<[1], [0], [0], [1], [0, 0, 1, 1], [], []>} : vector<8x16xbf16>, vector<16x512xbf16>, vector<8x512xf32> -> vector<8x512xf32>
    %14 = arith.addf %9, %13 : vector<8x512xf32>
    %15 = vector.extract_strided_slice %3 {offsets = [0, 2], sizes = [16, 512], strides = [1, 1]} : vector<16x582xbf16> to vector<16x512xbf16>
    %c2 = arith.constant 2 : index
    %c0_7 = arith.constant 0 : index
    %c0_8 = arith.constant 0 : index
    %16 = vector.load %arg2[%c2, %c0_7, %c0_8] : memref<9x8x16xbf16, #tpu.memory_space<vmem>>, vector<1x8x16xbf16>
    %17 = vector.shape_cast %16 : vector<1x8x16xbf16> to vector<8x16xbf16>
    %cst_9 = arith.constant dense<0.000000e+00> : vector<8x512xf32>
    %18 = tpu.matmul %17, %15, %cst_9 {dimension_numbers = #tpu.dot_dimension_numbers<[1], [0], [0], [1], [0, 0, 1, 1], [], []>} : vector<8x16xbf16>, vector<16x512xbf16>, vector<8x512xf32> -> vector<8x512xf32>
    %19 = arith.addf %14, %18 : vector<8x512xf32>
    %20 = vector.extract_strided_slice %3 {offsets = [0, 34], sizes = [16, 512], strides = [1, 1]} : vector<16x582xbf16> to vector<16x512xbf16>
    %c3 = arith.constant 3 : index
    %c0_10 = arith.constant 0 : index
    %c0_11 = arith.constant 0 : index
    %21 = vector.load %arg2[%c3, %c0_10, %c0_11] : memref<9x8x16xbf16, #tpu.memory_space<vmem>>, vector<1x8x16xbf16>
    %22 = vector.shape_cast %21 : vector<1x8x16xbf16> to vector<8x16xbf16>
    %cst_12 = arith.constant dense<0.000000e+00> : vector<8x512xf32>
    %23 = tpu.matmul %22, %20, %cst_12 {dimension_numbers = #tpu.dot_dimension_numbers<[1], [0], [0], [1], [0, 0, 1, 1], [], []>} : vector<8x16xbf16>, vector<16x512xbf16>, vector<8x512xf32> -> vector<8x512xf32>
    %24 = arith.addf %19, %23 : vector<8x512xf32>
    %25 = vector.extract_strided_slice %3 {offsets = [0, 35], sizes = [16, 512], strides = [1, 1]} : vector<16x582xbf16> to vector<16x512xbf16>
    %c4 = arith.constant 4 : index
    %c0_13 = arith.constant 0 : index
    %c0_14 = arith.constant 0 : index
    %26 = vector.load %arg2[%c4, %c0_13, %c0_14] : memref<9x8x16xbf16, #tpu.memory_space<vmem>>, vector<1x8x16xbf16>
    %27 = vector.shape_cast %26 : vector<1x8x16xbf16> to vector<8x16xbf16>
    %cst_15 = arith.constant dense<0.000000e+00> : vector<8x512xf32>
    %28 = tpu.matmul %27, %25, %cst_15 {dimension_numbers = #tpu.dot_dimension_numbers<[1], [0], [0], [1], [0, 0, 1, 1], [], []>} : vector<8x16xbf16>, vector<16x512xbf16>, vector<8x512xf32> -> vector<8x512xf32>
    %29 = arith.addf %24, %28 : vector<8x512xf32>
    %30 = vector.extract_strided_slice %3 {offsets = [0, 36], sizes = [16, 512], strides = [1, 1]} : vector<16x582xbf16> to vector<16x512xbf16>
    %c5 = arith.constant 5 : index
    %c0_16 = arith.constant 0 : index
    %c0_17 = arith.constant 0 : index
    %31 = vector.load %arg2[%c5, %c0_16, %c0_17] : memref<9x8x16xbf16, #tpu.memory_space<vmem>>, vector<1x8x16xbf16>
    %32 = vector.shape_cast %31 : vector<1x8x16xbf16> to vector<8x16xbf16>
    %cst_18 = arith.constant dense<0.000000e+00> : vector<8x512xf32>
    %33 = tpu.matmul %32, %30, %cst_18 {dimension_numbers = #tpu.dot_dimension_numbers<[1], [0], [0], [1], [0, 0, 1, 1], [], []>} : vector<8x16xbf16>, vector<16x512xbf16>, vector<8x512xf32> -> vector<8x512xf32>
    %34 = arith.addf %29, %33 : vector<8x512xf32>
    %35 = vector.extract_strided_slice %3 {offsets = [0, 68], sizes = [16, 512], strides = [1, 1]} : vector<16x582xbf16> to vector<16x512xbf16>
    %c6 = arith.constant 6 : index
    %c0_19 = arith.constant 0 : index
    %c0_20 = arith.constant 0 : index
    %36 = vector.load %arg2[%c6, %c0_19, %c0_20] : memref<9x8x16xbf16, #tpu.memory_space<vmem>>, vector<1x8x16xbf16>
    %37 = vector.shape_cast %36 : vector<1x8x16xbf16> to vector<8x16xbf16>
    %cst_21 = arith.constant dense<0.000000e+00> : vector<8x512xf32>
    %38 = tpu.matmul %37, %35, %cst_21 {dimension_numbers = #tpu.dot_dimension_numbers<[1], [0], [0], [1], [0, 0, 1, 1], [], []>} : vector<8x16xbf16>, vector<16x512xbf16>, vector<8x512xf32> -> vector<8x512xf32>
    %39 = arith.addf %34, %38 : vector<8x512xf32>
    %40 = vector.extract_strided_slice %3 {offsets = [0, 69], sizes = [16, 512], strides = [1, 1]} : vector<16x582xbf16> to vector<16x512xbf16>
    %c7 = arith.constant 7 : index
    %c0_22 = arith.constant 0 : index
    %c0_23 = arith.constant 0 : index
    %41 = vector.load %arg2[%c7, %c0_22, %c0_23] : memref<9x8x16xbf16, #tpu.memory_space<vmem>>, vector<1x8x16xbf16>
    %42 = vector.shape_cast %41 : vector<1x8x16xbf16> to vector<8x16xbf16>
    %cst_24 = arith.constant dense<0.000000e+00> : vector<8x512xf32>
    %43 = tpu.matmul %42, %40, %cst_24 {dimension_numbers = #tpu.dot_dimension_numbers<[1], [0], [0], [1], [0, 0, 1, 1], [], []>} : vector<8x16xbf16>, vector<16x512xbf16>, vector<8x512xf32> -> vector<8x512xf32>
    %44 = arith.addf %39, %43 : vector<8x512xf32>
    %45 = vector.extract_strided_slice %3 {offsets = [0, 70], sizes = [16, 512], strides = [1, 1]} : vector<16x582xbf16> to vector<16x512xbf16>
    %c8 = arith.constant 8 : index
    %c0_25 = arith.constant 0 : index
    %c0_26 = arith.constant 0 : index
    %46 = vector.load %arg2[%c8, %c0_25, %c0_26] : memref<9x8x16xbf16, #tpu.memory_space<vmem>>, vector<1x8x16xbf16>
    %47 = vector.shape_cast %46 : vector<1x8x16xbf16> to vector<8x16xbf16>
    %cst_27 = arith.constant dense<0.000000e+00> : vector<8x512xf32>
    %48 = tpu.matmul %47, %45, %cst_27 {dimension_numbers = #tpu.dot_dimension_numbers<[1], [0], [0], [1], [0, 0, 1, 1], [], []>} : vector<8x16xbf16>, vector<16x512xbf16>, vector<8x512xf32> -> vector<8x512xf32>
    %49 = arith.addf %44, %48 : vector<8x512xf32>
    %c0_28 = arith.constant 0 : index
    %c0_29 = arith.constant 0 : index
    %50 = vector.load %arg3[%c0_28, %c0_29] : memref<8x1xf32, #tpu.memory_space<vmem>>, vector<8x1xf32>
    %51 = vector.broadcast %50 : vector<8x1xf32> to vector<8x512xf32>
    %52 = arith.addf %49, %51 : vector<8x512xf32>
    %cst_30 = arith.constant 0.000000e+00 : f32
    %53 = vector.broadcast %cst_30 : f32 to vector<8x512xf32>
    %54 = arith.maximumf %52, %53 : vector<8x512xf32>
    %55 = arith.truncf %54 : vector<8x512xf32> to vector<8x512xbf16>
    %c0_31 = arith.constant 0 : index
    %c0_32 = arith.constant 0 : index
    %56 = vector.load %arg4[%c0_31, %c0_32] : memref<8x512xbf16, #tpu.memory_space<vmem>>, vector<8x512xbf16>
    tpu.vector_store %arg4[%c0_31, %c0_32], %55 {strides = array<i32>} : memref<8x512xbf16, #tpu.memory_space<vmem>>, vector<8x512xbf16>,
    return
  }
  func.func @transform_0(%arg0: i32) -> (i32, i32) {
    %c0_i32 = arith.constant 0 : i32
    %c0_i32_0 = arith.constant 0 : i32
    %c0_i32_1 = arith.constant 0 : i32
    return %c0_i32, %c0_i32_0 : i32, i32
  }
  func.func @transform_1(%arg0: i32) -> (i32, i32, i32) {
    %c0_i32 = arith.constant 0 : i32
    %c0_i32_0 = arith.constant 0 : i32
    %c0_i32_1 = arith.constant 0 : i32
    %c0_i32_2 = arith.constant 0 : i32
    return %c0_i32, %c0_i32_0, %c0_i32_1 : i32, i32, i32
  }
  func.func @transform_2(%arg0: i32) -> (i32, i32) {
    %c0_i32 = arith.constant 0 : i32
    %c0_i32_0 = arith.constant 0 : i32
    %c0_i32_1 = arith.constant 0 : i32
    return %c0_i32, %c0_i32_0 : i32, i32
  }
  func.func @transform_3(%arg0: i32) -> (i32, i32) {
    %c0_i32 = arith.constant 0 : i32
    %c0_i32_0 = arith.constant 0 : i32
    return %c0_i32, %arg0 : i32, i32
  }
}

module attributes {stable_mosaic.version = 11 : i64} {
  func.func @_pw_kernel(%arg0: i32, %arg1: memref<16x512xbf16, #tpu.memory_space<vmem>>, %arg2: memref<8x512xbf16, #tpu.memory_space<vmem>>, %arg3: memref<8x16xbf16, #tpu.memory_space<vmem>>, %arg4: memref<8x8xbf16, #tpu.memory_space<vmem>>, %arg5: memref<8x1xf32, #tpu.memory_space<vmem>>, %arg6: memref<8x512xbf16, #tpu.memory_space<vmem>>, %arg7: memref<8x512xbf16, #tpu.memory_space<vmem>>) attributes {dimension_semantics = [#tpu.dimension_semantics<parallel>], iteration_bounds = array<i64: 4>, scalar_prefetch = 0 : i64, scratch_operands = 0 : i64, tpu.core_type = #tpu.core_type<tc>, window_params = [{transform_indices = @transform_0, window_bounds = array<i64: 16, 512>}, {transform_indices = @transform_1, window_bounds = array<i64: 8, 512>}, {pipeline_mode = #tpu.pipeline_mode<synchronous>, transform_indices = @transform_2, window_bounds = array<i64: 8, 16>}, {pipeline_mode = #tpu.pipeline_mode<synchronous>, transform_indices = @transform_3, window_bounds = array<i64: 8, 8>}, {pipeline_mode = #tpu.pipeline_mode<synchronous>, transform_indices = @transform_4, window_bounds = array<i64: 8, 1>}, {transform_indices = @transform_5, window_bounds = array<i64: 8, 512>}, {transform_indices = @transform_6, window_bounds = array<i64: 8, 512>}]} {
    %c0 = arith.constant 0 : index
    %c0_0 = arith.constant 0 : index
    %0 = vector.load %arg3[%c0, %c0_0] : memref<8x16xbf16, #tpu.memory_space<vmem>>, vector<8x16xbf16>
    %c0_1 = arith.constant 0 : index
    %c0_2 = arith.constant 0 : index
    %1 = vector.load %arg1[%c0_1, %c0_2] : memref<16x512xbf16, #tpu.memory_space<vmem>>, vector<16x512xbf16>
    %cst = arith.constant dense<0.000000e+00> : vector<8x512xf32>
    %2 = tpu.matmul %0, %1, %cst {dimension_numbers = #tpu.dot_dimension_numbers<[1], [0], [0], [1], [0, 0, 1, 1], [], []>} : vector<8x16xbf16>, vector<16x512xbf16>, vector<8x512xf32> -> vector<8x512xf32>
    %c0_3 = arith.constant 0 : index
    %c0_4 = arith.constant 0 : index
    %3 = vector.load %arg4[%c0_3, %c0_4] : memref<8x8xbf16, #tpu.memory_space<vmem>>, vector<8x8xbf16>
    %c0_5 = arith.constant 0 : index
    %c0_6 = arith.constant 0 : index
    %4 = vector.load %arg2[%c0_5, %c0_6] : memref<8x512xbf16, #tpu.memory_space<vmem>>, vector<8x512xbf16>
    %cst_7 = arith.constant dense<0.000000e+00> : vector<8x512xf32>
    %5 = tpu.matmul %3, %4, %cst_7 {dimension_numbers = #tpu.dot_dimension_numbers<[1], [0], [0], [1], [0, 0, 1, 1], [], []>} : vector<8x8xbf16>, vector<8x512xbf16>, vector<8x512xf32> -> vector<8x512xf32>
    %6 = arith.addf %2, %5 : vector<8x512xf32>
    %c0_8 = arith.constant 0 : index
    %c0_9 = arith.constant 0 : index
    %7 = vector.load %arg5[%c0_8, %c0_9] : memref<8x1xf32, #tpu.memory_space<vmem>>, vector<8x1xf32>
    %8 = vector.broadcast %7 : vector<8x1xf32> to vector<8x512xf32>
    %9 = arith.addf %6, %8 : vector<8x512xf32>
    %c0_10 = arith.constant 0 : index
    %c0_11 = arith.constant 0 : index
    %10 = vector.load %arg6[%c0_10, %c0_11] : memref<8x512xbf16, #tpu.memory_space<vmem>>, vector<8x512xbf16>
    %11 = arith.extf %10 : vector<8x512xbf16> to vector<8x512xf32>
    %12 = arith.addf %9, %11 : vector<8x512xf32>
    %13 = arith.truncf %12 : vector<8x512xf32> to vector<8x512xbf16>
    %c0_12 = arith.constant 0 : index
    %c0_13 = arith.constant 0 : index
    %14 = vector.load %arg7[%c0_12, %c0_13] : memref<8x512xbf16, #tpu.memory_space<vmem>>, vector<8x512xbf16>
    tpu.vector_store %arg7[%c0_12, %c0_13], %13 {strides = array<i32>} : memref<8x512xbf16, #tpu.memory_space<vmem>>, vector<8x512xbf16>,
    return
  }
  func.func @transform_0(%arg0: i32) -> (i32, i32) {
    %c0_i32 = arith.constant 0 : i32
    %c0_i32_0 = arith.constant 0 : i32
    return %c0_i32, %arg0 : i32, i32
  }
  func.func @transform_1(%arg0: i32) -> (i32, i32) {
    %c0_i32 = arith.constant 0 : i32
    %c0_i32_0 = arith.constant 0 : i32
    return %c0_i32, %arg0 : i32, i32
  }
  func.func @transform_2(%arg0: i32) -> (i32, i32) {
    %c0_i32 = arith.constant 0 : i32
    %c0_i32_0 = arith.constant 0 : i32
    %c0_i32_1 = arith.constant 0 : i32
    return %c0_i32, %c0_i32_0 : i32, i32
  }
  func.func @transform_3(%arg0: i32) -> (i32, i32) {
    %c0_i32 = arith.constant 0 : i32
    %c0_i32_0 = arith.constant 0 : i32
    %c0_i32_1 = arith.constant 0 : i32
    return %c0_i32, %c0_i32_0 : i32, i32
  }
  func.func @transform_4(%arg0: i32) -> (i32, i32) {
    %c0_i32 = arith.constant 0 : i32
    %c0_i32_0 = arith.constant 0 : i32
    %c0_i32_1 = arith.constant 0 : i32
    return %c0_i32, %c0_i32_0 : i32, i32
  }
  func.func @transform_5(%arg0: i32) -> (i32, i32) {
    %c0_i32 = arith.constant 0 : i32
    %c0_i32_0 = arith.constant 0 : i32
    return %c0_i32, %arg0 : i32, i32
  }
  func.func @transform_6(%arg0: i32) -> (i32, i32) {
    %c0_i32 = arith.constant 0 : i32
    %c0_i32_0 = arith.constant 0 : i32
    return %c0_i32, %arg0 : i32, i32
  }
}

module attributes {stable_mosaic.version = 11 : i64} {
  func.func @_pw_kernel(%arg0: i32, %arg1: memref<8x512xbf16, #tpu.memory_space<vmem>>, %arg2: memref<1x8xbf16, #tpu.memory_space<vmem>>, %arg3: memref<1x1xf32, #tpu.memory_space<vmem>>, %arg4: memref<1x512xf32, #tpu.memory_space<vmem>>) attributes {dimension_semantics = [#tpu.dimension_semantics<parallel>], iteration_bounds = array<i64: 4>, scalar_prefetch = 0 : i64, scratch_operands = 0 : i64, tpu.core_type = #tpu.core_type<tc>, window_params = [{transform_indices = @transform_0, window_bounds = array<i64: 8, 512>}, {pipeline_mode = #tpu.pipeline_mode<synchronous>, transform_indices = @transform_1, window_bounds = array<i64: 1, 8>}, {pipeline_mode = #tpu.pipeline_mode<synchronous>, transform_indices = @transform_2, window_bounds = array<i64: 1, 1>}, {transform_indices = @transform_3, window_bounds = array<i64: 1, 512>}]} {
    %c0 = arith.constant 0 : index
    %c0_0 = arith.constant 0 : index
    %0 = vector.load %arg2[%c0, %c0_0] : memref<1x8xbf16, #tpu.memory_space<vmem>>, vector<1x8xbf16>
    %c0_1 = arith.constant 0 : index
    %c0_2 = arith.constant 0 : index
    %1 = vector.load %arg1[%c0_1, %c0_2] : memref<8x512xbf16, #tpu.memory_space<vmem>>, vector<8x512xbf16>
    %cst = arith.constant dense<0.000000e+00> : vector<1x512xf32>
    %2 = tpu.matmul %0, %1, %cst {dimension_numbers = #tpu.dot_dimension_numbers<[1], [0], [0], [1], [0, 0, 1, 1], [], []>} : vector<1x8xbf16>, vector<8x512xbf16>, vector<1x512xf32> -> vector<1x512xf32>
    %c0_3 = arith.constant 0 : index
    %c0_4 = arith.constant 0 : index
    %3 = vector.load %arg3[%c0_3, %c0_4] : memref<1x1xf32, #tpu.memory_space<vmem>>, vector<1x1xf32>
    %4 = vector.broadcast %3 : vector<1x1xf32> to vector<1x512xf32>
    %5 = arith.addf %2, %4 : vector<1x512xf32>
    %c0_5 = arith.constant 0 : index
    %c0_6 = arith.constant 0 : index
    %6 = vector.load %arg4[%c0_5, %c0_6] : memref<1x512xf32, #tpu.memory_space<vmem>>, vector<1x512xf32>
    tpu.vector_store %arg4[%c0_5, %c0_6], %5 {strides = array<i32>} : memref<1x512xf32, #tpu.memory_space<vmem>>, vector<1x512xf32>,
    return
  }
  func.func @transform_0(%arg0: i32) -> (i32, i32) {
    %c0_i32 = arith.constant 0 : i32
    %c0_i32_0 = arith.constant 0 : i32
    return %c0_i32, %arg0 : i32, i32
  }
  func.func @transform_1(%arg0: i32) -> (i32, i32) {
    %c0_i32 = arith.constant 0 : i32
    %c0_i32_0 = arith.constant 0 : i32
    %c0_i32_1 = arith.constant 0 : i32
    return %c0_i32, %c0_i32_0 : i32, i32
  }
  func.func @transform_2(%arg0: i32) -> (i32, i32) {
    %c0_i32 = arith.constant 0 : i32
    %c0_i32_0 = arith.constant 0 : i32
    %c0_i32_1 = arith.constant 0 : i32
    return %c0_i32, %c0_i32_0 : i32, i32
  }
  func.func @transform_3(%arg0: i32) -> (i32, i32) {
    %c0_i32 = arith.constant 0 : i32
    %c0_i32_0 = arith.constant 0 : i32
    return %c0_i32, %arg0 : i32, i32
  }
}

</mosaic_0001>

<bundles_post_ra>
// kernel: network_forward.32
= control target key start
LH: loop header
LB: loop body
LE: loop exit
PB: predicated region body
PF: predicated region fallthrough
CT: control target
= control target key end

     0   :  { %s1415_s12 = smov 0   ;;  %s1611_s0 = inlined_call_operand.vmem [shape: bf16[8,2630], index: 0, kind: input, shape index: {}]   ;;  %s1612_s1 = inlined_call_operand.vmem [shape: bf16[9,8,8], index: 1, kind: input, shape index: {}]   ;;  %s1613_s2 = inlined_call_operand.vmem [shape: f32[8,1], index: 2, kind: input, shape index: {}]   ;;  %s1614_s3 = inlined_call_operand.vmem [shape: bf16[8,2560], index: 3, kind: output, shape index: {}]  }
   0x1 LB: > { %s1292_s13 = sadd.s32 4294967295, %s1384_s12   ;;  %p1295_p0 = scmp.ge.s32.totalorder %s1384_s12, 1  ;;  %s1384_s12 = sphi %s1415_s12, %s13_s12  }
   0x2   : > { %p127_p1 = scmp.lt.s32.totalorder %s1384_s12, 6 }
   0x4   : > { %p128_p2 = pnand %p1295_p0, %p127_p1 }
   0x5   : > { %s1298_s14 = sshll.u32 (!%p128_p2), %s1292_s13, 9  ;;  %v1386_v0 = vmov (!%p128_p2), 0   ;;  %s1387_s20 = smov (!%p128_p2), 127   ;;  %v1214_v8 = vld [vmem:[%s1613_s2] sm:$0xff] (!%p128_p2)  ;;  %vm187_vm0 = vcmask (!%p128_p2), 1039360   ;;  %vm196_vm1 = vcmask (!%p128_p2), 1043456  }
   0x6   : > { %131 = sbr.rel (%p128_p2) target bundleno = 430 (0x1ae), region = 32  ;;  %s154_s15 = sshra.s32 (!%p128_p2), %s1298_s14, 7  ;;  %241 = vmatprep.mubr.bf16.mxu0 (!%p128_p2), %v1386_v0  ;;  %282 = vmatprep.mubr.bf16.mxu1 (!%p128_p2), %v1386_v0  ;;  %v1300_v16 = vld [vmem:[%s1612_s1 + $0x4] sm:$0xf] (!%p128_p2)  ;;  %vm192_vm2 = vcmask (!%p128_p2), 64512   ;;  %vm400_vm3 = vcmask (!%p128_p2), 1031168  }
   0x7   : > { %s1299_s16 = sshll.u32 (!%p128_p2), %s154_s15, 2  ;;  %1372 = vset.pattern.permute.xlu0 (!%p128_p2), %v1386_v0  ;;  %s1388_s21 = smov (!%p128_p2), 126   ;;  %v161_v28 = vld [vmem:[%s1612_s1] sm:$0xf] (!%p128_p2)  ;;  %vm518_vm4 = vcmask (!%p128_p2), 769024   ;;  %vm636_vm5 = vcmask (!%p128_p2), 760832  }
   0x8   : > { %s157_s19 = scalar_lea.vmem (!%p128_p2), %s1611_s0, %s1299_s16  ;;  %s1389_s22 = smov (!%p128_p2), 94   ;;  %v1314_v38 = vld [vmem:[%s1612_s1 + $0x8] sm:$0xf] (!%p128_p2)  ;;  %v1319_v48 = vld [vmem:[%s1612_s1 + $0xc] sm:$0xf] (!%p128_p2)  ;;  %vm754_vm6 = vcmask (!%p128_p2), 752640  }
   0x9   : > { %v159_v1 = vld [vmem:[%s157_s19 + $0x8] sm:$0xff] (!%p128_p2)  ;;  %v158_v2 = vld [vmem:[%s157_s19] sm:$0xff] (!%p128_p2)  ;;  %v1377_v7 = vld [vmem:[%s157_s19 + $0x10] ss:$0 sps:$4 sm:$0xff] (!%p128_p2)   ;;  %s1390_s23 = smov (!%p128_p2), 93   ;;  %s1391_s24 = smov (!%p128_p2), 92  }
   0xa   : > { %v1431_v3 = vcombine.low (!%p128_p2), %v159_v1, %v159_v1  ;;  %v1433_v4 = vcombine.low (!%p128_p2), %v158_v2, %v158_v2  ;;  %v1437_v5 = vcombine.high (!%p128_p2), %v159_v1, %v159_v1  ;;  %v1439_v6 = vcombine.high (!%p128_p2), %v158_v2, %v158_v2  ;;  %s1392_s25 = smov (!%p128_p2), 60   ;;  %s1393_s26 = smov (!%p128_p2), 59   ;;  %v1324_v59 = vld [vmem:[%s1612_s1 + $0x10] sm:$0xf] (!%p128_p2) }
   0xb   : > { %s1394_s27 = smov (!%p128_p2), 58   ;;  %vm872_vm7 = vcmask (!%p128_p2), 490496   ;;  %vm990_vm8 = vcmask (!%p128_p2), 482304   ;;  %vm1108_vm9 = vcmask (!%p128_p2), 474112  }
   0xc   : > { %181 = vrot.lane.b32.xlu1 (!%p128_p2), %v1431_v3, %s1387_s20  ;;  %177 = vrot.lane.b32.xlu0 (!%p128_p2), %v1433_v4, %s1387_s20  ;;  %v295_v20 = vsel (!%p128_p2), %vm196_vm1, %v1433_v4, 0  ;;  %v301_v25 = vsel (!%p128_p2), %vm196_vm1, %v1431_v3, 0 }
  0x10   : > { %183 = vrot.lane.b32.xlu1 %v1437_v5, %s1387_s20  ;;  %179 = vrot.lane.b32.xlu0 %v1439_v6, %s1387_s20 }
  0x14   : > { %390 = vrot.lane.b32.xlu1 %v1433_v4, %s1388_s21  ;;  %185 = vrot.lane.b32.xlu0 %v1377_v7, %s1387_s20 }
  0x18   : > { %394 = vrot.lane.b32.xlu1 %v1431_v3, %s1388_s21  ;;  %392 = vrot.lane.b32.xlu0 %v1439_v6, %s1388_s21 }
  0x1c   : > { %398 = vrot.lane.b32.xlu1 %v1377_v7, %s1388_s21  ;;  %396 = vrot.lane.b32.xlu0 %v1437_v5, %s1388_s21 }
  0x20   : > { %510 = vrot.lane.b32.xlu1 %v1439_v6, %s1389_s22  ;;  %508 = vrot.lane.b32.xlu0 %v1433_v4, %s1389_s22 }
  0x24   : > { %514 = vrot.lane.b32.xlu1 %v1437_v5, %s1389_s22  ;;  %512 = vrot.lane.b32.xlu0 %v1431_v3, %s1389_s22 }
  0x28   : > { %626 = vrot.lane.b32.xlu1 %v1433_v4, %s1390_s23  ;;  %516 = vrot.lane.b32.xlu0 %v1377_v7, %s1389_s22 }
  0x2c   : > { %630 = vrot.lane.b32.xlu1 %v1431_v3, %s1390_s23  ;;  %628 = vrot.lane.b32.xlu0 %v1439_v6, %s1390_s23 }
  0x30   : > { %634 = vrot.lane.b32.xlu1 %v1377_v7, %s1390_s23  ;;  %632 = vrot.lane.b32.xlu0 %v1437_v5, %s1390_s23  ;;  %s1296_s23 = sshll.u32 %s1292_s13, 2 }
  0x31   : > { %p147_p3 = scmp.lt.s32.totalorder %s1296_s23, 19 }
  0x33   : > { %s1616_s23 = smov (!%p147_p3, %s1296_s23), 19 }
  0x34   : > { %746 = vrot.lane.b32.xlu1 %v1439_v6, %s1391_s24  ;;  %744 = vrot.lane.b32.xlu0 %v1433_v4, %s1391_s24  ;;  %s1297_s13 = sshll.u32 %s1616_s23, 2 }
  0x38   : > { %750 = vrot.lane.b32.xlu1 %v1437_v5, %s1391_s24  ;;  %748 = vrot.lane.b32.xlu0 %v1431_v3, %s1391_s24 }
  0x3c   : > { %862 = vrot.lane.b32.xlu1 %v1433_v4, %s1392_s25  ;;  %752 = vrot.lane.b32.xlu0 %v1377_v7, %s1391_s24 }
  0x40   : > { %866 = vrot.lane.b32.xlu1 %v1431_v3, %s1392_s25  ;;  %864 = vrot.lane.b32.xlu0 %v1439_v6, %s1392_s25 }
  0x44   : > { %870 = vrot.lane.b32.xlu1 %v1377_v7, %s1392_s25  ;;  %868 = vrot.lane.b32.xlu0 %v1437_v5, %s1392_s25 }
  0x48   : > { %982 = vrot.lane.b32.xlu1 %v1439_v6, %s1393_s26  ;;  %980 = vrot.lane.b32.xlu0 %v1433_v4, %s1393_s26 }
  0x4c   : > { %986 = vrot.lane.b32.xlu1 %v1437_v5, %s1393_s26  ;;  %984 = vrot.lane.b32.xlu0 %v1431_v3, %s1393_s26 }
  0x50   : > { %1098 = vrot.lane.b32.xlu1 %v1433_v4, %s1394_s27  ;;  %988 = vrot.lane.b32.xlu0 %v1377_v7, %s1393_s26  ;;  %s150_s26 = scalar_lea.vmem %s1614_s3, %s1297_s13 }
  0x54   : > { %1102 = vrot.lane.b32.xlu1 %v1431_v3, %s1394_s27  ;;  %1100 = vrot.lane.b32.xlu0 %v1439_v6, %s1394_s27 }
  0x58   : > { %1106 = vrot.lane.b32.xlu1 %v1377_v7, %s1394_s27  ;;  %1104 = vrot.lane.b32.xlu0 %v1437_v5, %s1394_s27 }
  0x5c   : > { %1217 = vperm.xlu0 %1372, %v1214_v8  }
  0x7e   : > { %v182_v9 = vpop.permute.xlu1 %181  ;;  %v178_v10 = vpop.permute.xlu0 %177 }
  0x82   : > { %v184_v11 = vpop.permute.xlu1 %183  ;;  %v180_v12 = vpop.permute.xlu0 %179 }
  0x83   : > { %v189_v13 = vsel %vm187_vm0, %v180_v12, %v182_v9  ;;  %v188_v14 = vsel %vm187_vm0, %v178_v10, %v180_v12  ;;  %v190_v17 = vsel %vm187_vm0, %v182_v9, %v184_v11 }
  0x84   : > { %1306 = vmatprep.subr.msk.bf16.mxu0 %vm196_vm1, %v189_v13  ;;  %v198_v15 = vsel %vm196_vm1, %v188_v14, 0  ;;  %v204_v22 = vsel %vm196_vm1, %v190_v17, 0 }
  0x85   : > { %210 = vmatpush1.bf16.msra.mxu0 %v198_v15  ;;  %v1334_v15 = vld [vmem:[%s1612_s1 + $0x18] sm:$0xf] }
  0x86   : > { %v391_v18 = vpop.permute.xlu1 %390  ;;  %v186_v19 = vpop.permute.xlu0 %185  ;;  %1310 = vmatprep.subr.msk.bf16.mxu0 %vm196_vm1, %v1439_v6 }
  0x87   : > { %v191_v21 = vsel %vm187_vm0, %v184_v11, %v186_v19 }
  0x88   : > { %1307 = vmatmul.mubr.msk.bf16.vlgmr.msra.gmra.mrb[0].mxu0 %vm192_vm2, %v1300_v16  ;;  %1308 = vmatprep.subr.msk.bf16.mxu1 %vm196_vm1, %v191_v21 }
  0x89   : > { %251 = vmatpush1.bf16.msra.mxu1 %v204_v22  ;;  %307 = vmatpush1.bf16.msra.mxu0 %v295_v20 }
  0x8a   : > { %v395_v23 = vpop.permute.xlu1 %394  ;;  %v393_v24 = vpop.permute.xlu0 %392  ;;  %1312 = vmatprep.subr.msk.bf16.mxu1 %vm196_vm1, %v1437_v5  ;;  %338 = vmatprep.mubr.bf16.mxu0 %v1386_v0  ;;  %v1329_v5 = vld [vmem:[%s1612_s1 + $0x14] sm:$0xf] }
  0x8b   : > { %v402_v26 = vsel %vm400_vm3, %v393_v24, %v395_v23  ;;  %v401_v27 = vsel %vm400_vm3, %v391_v18, %v393_v24 }
  0x8c   : > { %1309 = vmatmul.mubr.msk.bf16.vlgmr.msra.gmra.mrb[0].mxu1 %vm192_vm2, %v1300_v16  ;;  %1315 = vmatprep.subr.msk.bf16.mxu0 %vm196_vm1, %v402_v26  ;;  %v409_v32 = vsel %vm196_vm1, %v401_v27, 0 }
  0x8d   : > { %348 = vmatpush1.bf16.msra.mxu1 %v301_v25  ;;  %379 = vmatprep.mubr.bf16.mxu1 %v1386_v0 }
  0x8e   : > { %v399_v29 = vpop.permute.xlu1 %398  ;;  %v397_v30 = vpop.permute.xlu0 %396 }
  0x8f   : > { %v404_v31 = vsel %vm400_vm3, %v397_v30, %v399_v29  ;;  %v403_v33 = vsel %vm400_vm3, %v395_v23, %v397_v30  ;;  %v1339_v29 = vld [vmem:[%s1612_s1 + $0x1c] sm:$0xf] }
  0x90   : > { %1311 = vmatmul.mubr.msk.bf16.vlgmr.msra.gmra.mrb[4].mxu0 %vm192_vm2, %v161_v28  ;;  %1317 = vmatprep.subr.msk.bf16.mxu1 %vm196_vm1, %v404_v31  ;;  %v415_v36 = vsel %vm196_vm1, %v403_v33, 0 }
  0x91   : > { %421 = vmatpush1.bf16.msra.mxu0 %v409_v32  ;;  %452 = vmatprep.mubr.bf16.mxu0 %v1386_v0 }
  0x92   : > { %v511_v34 = vpop.permute.xlu1 %510  ;;  %v509_v35 = vpop.permute.xlu0 %508 }
  0x93   : > { %v519_v37 = vsel %vm518_vm4, %v509_v35, %v511_v34 }
  0x94   : > { %1313 = vmatmul.mubr.msk.bf16.vlgmr.msra.gmra.mrb[4].mxu1 %vm192_vm2, %v161_v28  ;;  %v527_v42 = vsel %vm196_vm1, %v519_v37, 0 }
  0x95   : > { %462 = vmatpush1.bf16.msra.mxu1 %v415_v36  ;;  %493 = vmatprep.mubr.bf16.mxu1 %v1386_v0 }
  0x96   : > { %v515_v39 = vpop.permute.xlu1 %514  ;;  %v513_v40 = vpop.permute.xlu0 %512 }
  0x97   : > { %v520_v41 = vsel %vm518_vm4, %v511_v34, %v513_v40  ;;  %v521_v43 = vsel %vm518_vm4, %v513_v40, %v515_v39 }
  0x98   : > { %1316 = vmatmul.mubr.msk.bf16.vlgmr.msra.gmra.mrb[8].mxu0 %vm192_vm2, %v1314_v38  ;;  %1320 = vmatprep.subr.msk.bf16.mxu0 %vm196_vm1, %v520_v41  ;;  %v533_v47 = vsel %vm196_vm1, %v521_v43, 0 }
  0x99   : > { %539 = vmatpush1.bf16.msra.mxu0 %v527_v42  ;;  %570 = vmatprep.mubr.bf16.mxu0 %v1386_v0 }
  0x9a   : > { %v627_v44 = vpop.permute.xlu1 %626  ;;  %v517_v45 = vpop.permute.xlu0 %516 }
  0x9b   : > { %v522_v46 = vsel %vm518_vm4, %v515_v39, %v517_v45  ;;  %v1344_v39 = vld [vmem:[%s1612_s1 + $0x20] sm:$0xf] }
  0x9c   : > { %1318 = vmatmul.mubr.msk.bf16.vlgmr.msra.gmra.mrb[8].mxu1 %vm192_vm2, %v1314_v38  ;;  %1322 = vmatprep.subr.msk.bf16.mxu1 %vm196_vm1, %v522_v46 }
  0x9d   : > { %580 = vmatpush1.bf16.msra.mxu1 %v533_v47  ;;  %611 = vmatprep.mubr.bf16.mxu1 %v1386_v0 }
  0x9e   : > { %v631_v49 = vpop.permute.xlu1 %630  ;;  %v629_v50 = vpop.permute.xlu0 %628 }
  0x9f   : > { %v637_v51 = vsel %vm636_vm5, %v627_v44, %v629_v50  ;;  %v638_v52 = vsel %vm636_vm5, %v629_v50, %v631_v49 }
  0xa0   : > { %v645_v53 = vsel %vm196_vm1, %v637_v51, 0  ;;  %1321 = vmatmul.mubr.msk.bf16.vlgmr.msra.gmra.mrb[12].mxu0 %vm192_vm2, %v1319_v48  ;;  %1325 = vmatprep.subr.msk.bf16.mxu0 %vm196_vm1, %v638_v52 }
  0xa1   : > { %657 = vmatpush1.bf16.msra.mxu0 %v645_v53  ;;  %688 = vmatprep.mubr.bf16.mxu0 %v1386_v0 }
  0xa2   : > { %v635_v54 = vpop.permute.xlu1 %634  ;;  %v633_v55 = vpop.permute.xlu0 %632 }
  0xa3   : > { %v639_v56 = vsel %vm636_vm5, %v631_v49, %v633_v55  ;;  %v640_v57 = vsel %vm636_vm5, %v633_v55, %v635_v54 }
  0xa4   : > { %v651_v58 = vsel %vm196_vm1, %v639_v56, 0  ;;  %1323 = vmatmul.mubr.msk.bf16.vlgmr.msra.gmra.mrb[12].mxu1 %vm192_vm2, %v1319_v48  ;;  %1327 = vmatprep.subr.msk.bf16.mxu1 %vm196_vm1, %v640_v57 }
  0xa5   : > { %698 = vmatpush1.bf16.msra.mxu1 %v651_v58  ;;  %729 = vmatprep.mubr.bf16.mxu1 %v1386_v0 }
  0xa6   : > { %v747_v60 = vpop.permute.xlu1 %746  ;;  %v745_v61 = vpop.permute.xlu0 %744 }
  0xa7   : > { %v755_v62 = vsel %vm754_vm6, %v745_v61, %v747_v60 }
  0xa8   : > { %1326 = vmatmul.mubr.msk.bf16.vlgmr.msra.gmra.mrb[16].mxu0 %vm192_vm2, %v1324_v59  ;;  %v763_v3 = vsel %vm196_vm1, %v755_v62, 0 }
  0xa9   : > { %806 = vmatprep.mubr.bf16.mxu0 %v1386_v0 }
  0xaa   : > { %v751_v63 = vpop.permute.xlu1 %750  ;;  %v749_v1 = vpop.permute.xlu0 %748 }
  0xab   : > { %v756_v2 = vsel %vm754_vm6, %v747_v60, %v749_v1  ;;  %v757_v4 = vsel %vm754_vm6, %v749_v1, %v751_v63 }
  0xac   : > { %1328 = vmatmul.mubr.msk.bf16.vlgmr.msra.gmra.mrb[16].mxu1 %vm192_vm2, %v1324_v59  ;;  %1330 = vmatprep.subr.msk.bf16.mxu0 %vm196_vm1, %v756_v2  ;;  %v769_v9 = vsel %vm196_vm1, %v757_v4, 0 }
  0xad   : > { %775 = vmatpush1.bf16.msra.mxu0 %v763_v3  ;;  %847 = vmatprep.mubr.bf16.mxu1 %v1386_v0 }
  0xae   : > { %v863_v6 = vpop.permute.xlu1 %862  ;;  %v753_v7 = vpop.permute.xlu0 %752 }
  0xaf   : > { %v758_v8 = vsel %vm754_vm6, %v751_v63, %v753_v7 }
  0xb0   : > { %1331 = vmatmul.mubr.msk.bf16.vlgmr.msra.gmra.mrb[20].mxu0 %vm192_vm2, %v1329_v5  ;;  %1332 = vmatprep.subr.msk.bf16.mxu1 %vm196_vm1, %v758_v8 }
  0xb1   : > { %816 = vmatpush1.bf16.msra.mxu1 %v769_v9  ;;  %924 = vmatprep.mubr.bf16.mxu0 %v1386_v0 }
  0xb2   : > { %v867_v10 = vpop.permute.xlu1 %866  ;;  %v865_v11 = vpop.permute.xlu0 %864 }
  0xb3   : > { %v873_v12 = vsel %vm872_vm7, %v863_v6, %v865_v11  ;;  %v874_v13 = vsel %vm872_vm7, %v865_v11, %v867_v10 }
  0xb4   : > { %v881_v14 = vsel %vm196_vm1, %v873_v12, 0  ;;  %1333 = vmatmul.mubr.msk.bf16.vlgmr.msra.gmra.mrb[20].mxu1 %vm192_vm2, %v1329_v5  ;;  %1335 = vmatprep.subr.msk.bf16.mxu0 %vm196_vm1, %v874_v13 }
  0xb5   : > { %893 = vmatpush1.bf16.msra.mxu0 %v881_v14  ;;  %965 = vmatprep.mubr.bf16.mxu1 %v1386_v0 }
  0xb6   : > { %v871_v16 = vpop.permute.xlu1 %870  ;;  %v869_v17 = vpop.permute.xlu0 %868 }
  0xb7   : > { %v875_v18 = vsel %vm872_vm7, %v867_v10, %v869_v17  ;;  %v876_v19 = vsel %vm872_vm7, %v869_v17, %v871_v16 }
  0xb8   : > { %v887_v20 = vsel %vm196_vm1, %v875_v18, 0  ;;  %1336 = vmatmul.mubr.msk.bf16.vlgmr.msra.gmra.mrb[24].mxu0 %vm192_vm2, %v1334_v15  ;;  %1337 = vmatprep.subr.msk.bf16.mxu1 %vm196_vm1, %v876_v19 }
  0xb9   : > { %934 = vmatpush1.bf16.msra.mxu1 %v887_v20  ;;  %1042 = vmatprep.mubr.bf16.mxu0 %v1386_v0 }
  0xba   : > { %v983_v21 = vpop.permute.xlu1 %982  ;;  %v981_v22 = vpop.permute.xlu0 %980 }
  0xbb   : > { %v991_v23 = vsel %vm990_vm8, %v981_v22, %v983_v21 }
  0xbc   : > { %1338 = vmatmul.mubr.msk.bf16.vlgmr.msra.gmra.mrb[24].mxu1 %vm192_vm2, %v1334_v15  ;;  %v999_v27 = vsel %vm196_vm1, %v991_v23, 0 }
  0xbd   : > { %1083 = vmatprep.mubr.bf16.mxu1 %v1386_v0 }
  0xbe   : > { %v987_v24 = vpop.permute.xlu1 %986  ;;  %v985_v25 = vpop.permute.xlu0 %984 }
  0xbf   : > { %v992_v26 = vsel %vm990_vm8, %v983_v21, %v985_v25  ;;  %v993_v28 = vsel %vm990_vm8, %v985_v25, %v987_v24 }
  0xc0   : > { %1340 = vmatprep.subr.msk.bf16.mxu0 %vm196_vm1, %v992_v26  ;;  %v1005_v33 = vsel %vm196_vm1, %v993_v28, 0 }
  0xc1   : > { %1011 = vmatpush1.bf16.msra.mxu0 %v999_v27 }
  0xc2   : > { %v1099_v30 = vpop.permute.xlu1 %1098  ;;  %v989_v31 = vpop.permute.xlu0 %988 }
  0xc3   : > { %v994_v32 = vsel %vm990_vm8, %v987_v24, %v989_v31 }
  0xc4   : > { %1341 = vmatmul.mubr.msk.bf16.vlgmr.msra.gmra.mrb[28].mxu0 %vm192_vm2, %v1339_v29  ;;  %1342 = vmatprep.subr.msk.bf16.mxu1 %vm196_vm1, %v994_v32 }
  0xc5   : > { %1052 = vmatpush1.bf16.msra.mxu1 %v1005_v33  ;;  %1160 = vmatprep.mubr.bf16.mxu0 %v1386_v0 }
  0xc6   : > { %v1103_v34 = vpop.permute.xlu1 %1102  ;;  %v1101_v35 = vpop.permute.xlu0 %1100 }
  0xc7   : > { %v1109_v36 = vsel %vm1108_vm9, %v1099_v30, %v1101_v35  ;;  %v1110_v37 = vsel %vm1108_vm9, %v1101_v35, %v1103_v34 }
  0xc8   : > { %v1117_v38 = vsel %vm196_vm1, %v1109_v36, 0  ;;  %1343 = vmatmul.mubr.msk.bf16.vlgmr.msra.gmra.mrb[28].mxu1 %vm192_vm2, %v1339_v29  ;;  %1345 = vmatprep.subr.msk.bf16.mxu0 %vm196_vm1, %v1110_v37 }
  0xc9   : > { %1129 = vmatpush1.bf16.msra.mxu0 %v1117_v38  ;;  %1201 = vmatprep.mubr.bf16.mxu1 %v1386_v0 }
  0xca   : > { %v1107_v40 = vpop.permute.xlu1 %1106  ;;  %v1105_v41 = vpop.permute.xlu0 %1104 }
  0xcb   : > { %v1111_v42 = vsel %vm1108_vm9, %v1103_v34, %v1105_v41  ;;  %v1112_v43 = vsel %vm1108_vm9, %v1105_v41, %v1107_v40 }
  0xcc   : > { %v1123_v44 = vsel %vm196_vm1, %v1111_v42, 0  ;;  %1346 = vmatmul.mubr.msk.bf16.vlgmr.msra.gmra.mrb[32].mxu0 %vm192_vm2, %v1344_v39  ;;  %1347 = vmatprep.subr.msk.bf16.mxu1 %vm196_vm1, %v1112_v43 }
  0xcd   : > { %1170 = vmatpush1.bf16.msra.mxu1 %v1123_v44 }
  0xd0   : > { %1348 = vmatmul.mubr.msk.bf16.vlgmr.msra.gmra.mrb[32].mxu1 %vm192_vm2, %v1344_v39 }
 0x15b   : > { %v243_v45 = vpop.f32.mrb[0].mxu0 }
 0x15c   : > { %v245_v46 = vpop.f32.mrb[1].mxu0 }
 0x15d   : > { %v247_v47 = vpop.f32.mrb[2].mxu0 }
 0x15e   : > { %v248_v48 = vpop.f32.mrb[3].mxu0 }
 0x15f   : > { %v284_v0 = vpop.f32.mrb[0].mxu1 }
 0x160   : > { %v286_v49 = vpop.f32.mrb[1].mxu1 }
 0x161   : > { %v288_v50 = vpop.f32.mrb[2].mxu1 }
 0x162   : > { %v289_v51 = vpop.f32.mrb[3].mxu1 }
 0x163   : > { %v340_v52 = vpop.f32.mrb[4].mxu0 }
 0x164   : > { %v341_v53 = vadd.f32 %v340_v52, %v243_v45  ;;  %v342_v54 = vpop.f32.mrb[5].mxu0 }
 0x165   : > { %v343_v55 = vadd.f32 %v342_v54, %v245_v46  ;;  %v344_v56 = vpop.f32.mrb[6].mxu0 }
 0x166   : > { %v345_v57 = vpop.f32.mrb[7].mxu0 }
 0x167   : > { %v381_v58 = vpop.f32.mrb[4].mxu1 }
 0x168   : > { %v382_v59 = vadd.f32 %v381_v58, %v284_v0  ;;  %v383_v60 = vpop.f32.mrb[5].mxu1 }
 0x169   : > { %v384_v61 = vadd.f32 %v383_v60, %v286_v49  ;;  %v385_v62 = vpop.f32.mrb[6].mxu1 }
 0x16a   : > { %v386_v63 = vpop.f32.mrb[7].mxu1 }
 0x16b   : > { %v454_v1 = vpop.f32.mrb[8].mxu0 }
 0x16c   : > { %v502_v2 = vadd.f32 %v454_v1, %v341_v53  ;;  %v456_v3 = vpop.f32.mrb[9].mxu0 }
 0x16d   : > { %v503_v4 = vadd.f32 %v456_v3, %v343_v55  ;;  %v458_v5 = vpop.f32.mrb[10].mxu0 }
 0x16e   : > { %v459_v6 = vpop.f32.mrb[11].mxu0 }
 0x16f   : > { %v495_v7 = vpop.f32.mrb[8].mxu1 }
 0x170   : > { %v504_v8 = vadd.f32 %v495_v7, %v382_v59  ;;  %v497_v9 = vpop.f32.mrb[9].mxu1 }
 0x171   : > { %v505_v10 = vadd.f32 %v497_v9, %v384_v61  ;;  %v499_v11 = vpop.f32.mrb[10].mxu1 }
 0x172   : > { %v500_v12 = vpop.f32.mrb[11].mxu1 }
 0x173   : > { %v572_v13 = vpop.f32.mrb[12].mxu0 }
 0x174   : > { %v620_v14 = vadd.f32 %v572_v13, %v502_v2  ;;  %v574_v15 = vpop.f32.mrb[13].mxu0 }
 0x175   : > { %v621_v16 = vadd.f32 %v574_v15, %v503_v4  ;;  %v576_v17 = vpop.f32.mrb[14].mxu0 }
 0x176   : > { %v577_v18 = vpop.f32.mrb[15].mxu0 }
 0x177   : > { %v613_v19 = vpop.f32.mrb[12].mxu1 }
 0x178   : > { %v622_v20 = vadd.f32 %v613_v19, %v504_v8  ;;  %v615_v21 = vpop.f32.mrb[13].mxu1 }
 0x179   : > { %v623_v22 = vadd.f32 %v615_v21, %v505_v10  ;;  %v617_v23 = vpop.f32.mrb[14].mxu1  ;;  %v1218_v10 = vpop.permute.xlu0 %1217 }
 0x17a   : > { %v618_v24 = vpop.f32.mrb[15].mxu1 }
 0x17b   : > { %v690_v25 = vpop.f32.mrb[16].mxu0 }
 0x17c   : > { %v738_v26 = vadd.f32 %v690_v25, %v620_v14  ;;  %v692_v27 = vpop.f32.mrb[17].mxu0 }
 0x17d   : > { %v739_v28 = vadd.f32 %v692_v27, %v621_v16  ;;  %v694_v29 = vpop.f32.mrb[18].mxu0 }
 0x17e   : > { %v695_v30 = vpop.f32.mrb[19].mxu0 }
 0x17f   : > { %v731_v31 = vpop.f32.mrb[16].mxu1 }
 0x180   : > { %v740_v32 = vadd.f32 %v731_v31, %v622_v20  ;;  %v733_v33 = vpop.f32.mrb[17].mxu1 }
 0x181   : > { %v741_v34 = vadd.f32 %v733_v33, %v623_v22  ;;  %v735_v35 = vpop.f32.mrb[18].mxu1 }
 0x182   : > { %v736_v36 = vpop.f32.mrb[19].mxu1 }
 0x183   : > { %v808_v37 = vpop.f32.mrb[20].mxu0 }
 0x184   : > { %v856_v38 = vadd.f32 %v808_v37, %v738_v26  ;;  %v810_v39 = vpop.f32.mrb[21].mxu0 }
 0x185   : > { %v857_v40 = vadd.f32 %v810_v39, %v739_v28  ;;  %v812_v41 = vpop.f32.mrb[22].mxu0 }
 0x186   : > { %v813_v42 = vpop.f32.mrb[23].mxu0 }
 0x187   : > { %v849_v43 = vpop.f32.mrb[20].mxu1 }
 0x188   : > { %v858_v44 = vadd.f32 %v849_v43, %v740_v32  ;;  %v851_v45 = vpop.f32.mrb[21].mxu1 }
 0x189   : > { %v859_v46 = vadd.f32 %v851_v45, %v741_v34  ;;  %v853_v47 = vpop.f32.mrb[22].mxu1 }
 0x18a   : > { %v854_v48 = vpop.f32.mrb[23].mxu1 }
 0x18b   : > { %v926_v0 = vpop.f32.mrb[24].mxu0 }
 0x18c   : > { %v974_v49 = vadd.f32 %v926_v0, %v856_v38  ;;  %v928_v50 = vpop.f32.mrb[25].mxu0 }
 0x18d   : > { %v975_v51 = vadd.f32 %v928_v50, %v857_v40  ;;  %v930_v52 = vpop.f32.mrb[26].mxu0 }
 0x18e   : > { %v931_v53 = vpop.f32.mrb[27].mxu0 }
 0x18f   : > { %v967_v54 = vpop.f32.mrb[24].mxu1 }
 0x190   : > { %v976_v55 = vadd.f32 %v967_v54, %v858_v44  ;;  %v969_v56 = vpop.f32.mrb[25].mxu1 }
 0x191   : > { %v977_v57 = vadd.f32 %v969_v56, %v859_v46  ;;  %v971_v58 = vpop.f32.mrb[26].mxu1 }
 0x192   : > { %v972_v59 = vpop.f32.mrb[27].mxu1 }
 0x197   : > { %v1044_v60 = vpop.f32.mrb[28].mxu0 }
 0x198   : > { %v1092_v61 = vadd.f32 %v1044_v60, %v974_v49  ;;  %v1046_v62 = vpop.f32.mrb[29].mxu0 }
 0x199   : > { %v1093_v63 = vadd.f32 %v1046_v62, %v975_v51  ;;  %v1048_v1 = vpop.f32.mrb[30].mxu0 }
 0x19a   : > { %v1049_v2 = vpop.f32.mrb[31].mxu0 }
 0x19b   : > { %v1085_v3 = vpop.f32.mrb[28].mxu1 }
 0x19c   : > { %v1094_v4 = vadd.f32 %v1085_v3, %v976_v55  ;;  %v1087_v5 = vpop.f32.mrb[29].mxu1 }
 0x19d   : > { %v1095_v6 = vadd.f32 %v1087_v5, %v977_v57  ;;  %v1089_v7 = vpop.f32.mrb[30].mxu1 }
 0x19e   : > { %v1090_v8 = vpop.f32.mrb[31].mxu1 }
 0x19f   : > { %v1162_v9 = vpop.f32.mrb[32].mxu0 }
 0x1a0   : > { %v1210_v11 = vadd.f32 %v1162_v9, %v1092_v61  ;;  %v1164_v12 = vpop.f32.mrb[33].mxu0 }
 0x1a1   : > { %v1211_v13 = vadd.f32 %v1164_v12, %v1093_v63  ;;  %v1166_v14 = vpop.f32.mrb[34].mxu0 }
 0x1a2   : > { %v1220_v15 = vadd.f32 %v1218_v10, %v1210_v11  ;;  %v1167_v16 = vpop.f32.mrb[35].mxu0 }
 0x1a3   : > { %v1221_v17 = vadd.f32 %v1218_v10, %v1211_v13  ;;  %v1203_v18 = vpop.f32.mrb[32].mxu1 }
 0x1a4   : > { %v1224_v19 = vmax.f32 %v1220_v15, 0.0  ;;  %v1212_v20 = vadd.f32 %v1203_v18, %v1094_v4  ;;  %v1205_v21 = vpop.f32.mrb[33].mxu1 }
 0x1a5   : > { %v1225_v22 = vmax.f32 %v1221_v17, 0.0  ;;  %v1213_v23 = vadd.f32 %v1205_v21, %v1095_v6  ;;  %v1207_v24 = vpop.f32.mrb[34].mxu1 }
 0x1a6   : > { %v1222_v25 = vadd.f32 %v1218_v10, %v1212_v20  ;;  %v1208_v26 = vpop.f32.mrb[35].mxu1 }
 0x1a7   : > { %v1353_v27 = vpack.c.bf16 %v1225_v22, %v1224_v19  ;;  %v1223_v28 = vadd.f32 %v1218_v10, %v1213_v23 }
 0x1a8   : > { %v1226_v29 = vmax.f32 %v1222_v25, 0.0 }
 0x1a9   : > { %1244 = vst [vmem:[%s150_s26] sm:$0xff] %v1353_v27  ;;  %v1227_v30 = vmax.f32 %v1223_v28, 0.0 }
 0x1ab   : > { %v1354_v31 = vpack.c.bf16 %v1227_v30, %v1226_v29 }
 0x1ad   : > { %1245 = vst [vmem:[%s150_s26 + $0x8] sm:$0xff] %v1354_v31 }
 0x1ae PF: > { %s13_s12 = sadd.s32 1, %s1384_s12  }
 0x1af   : > { %p10_p4 = scmp.ge.s32.totalorder %s13_s12, 7  }
 0x1b1   :  { %12 = sbr.rel (!%p10_p4) target bundleno = 1 (0x1), region = 68 }

// kernel: network_forward.34
= control target key start
LH: loop header
LB: loop body
LE: loop exit
PB: predicated region body
PF: predicated region fallthrough
CT: control target
= control target key end

     0   :  { %s1415_s12 = smov 0   ;;  %s1611_s0 = inlined_call_operand.vmem [shape: bf16[8,1062], index: 0, kind: input, shape index: {}]   ;;  %s1612_s1 = inlined_call_operand.vmem [shape: bf16[9,8,8], index: 1, kind: input, shape index: {}]   ;;  %s1613_s2 = inlined_call_operand.vmem [shape: f32[8,1], index: 2, kind: input, shape index: {}]   ;;  %s1614_s3 = inlined_call_operand.vmem [shape: bf16[8,1024], index: 3, kind: output, shape index: {}]  }
   0x1 LB: > { %s1292_s13 = sadd.s32 4294967295, %s1384_s12   ;;  %p1295_p0 = scmp.ge.s32.totalorder %s1384_s12, 1  ;;  %s1384_s12 = sphi %s1415_s12, %s13_s12  }
   0x2   : > { %p127_p1 = scmp.lt.s32.totalorder %s1384_s12, 3 }
   0x4   : > { %p128_p2 = pnand %p1295_p0, %p127_p1 }
   0x5   : > { %s1298_s14 = sshll.u32 (!%p128_p2), %s1292_s13, 9  ;;  %v1386_v0 = vmov (!%p128_p2), 0   ;;  %s1387_s20 = smov (!%p128_p2), 127   ;;  %v1214_v8 = vld [vmem:[%s1613_s2] sm:$0xff] (!%p128_p2)  ;;  %vm187_vm0 = vcmask (!%p128_p2), 1039360   ;;  %vm196_vm1 = vcmask (!%p128_p2), 1043456  }
   0x6   : > { %131 = sbr.rel (%p128_p2) target bundleno = 430 (0x1ae), region = 32  ;;  %s154_s15 = sshra.s32 (!%p128_p2), %s1298_s14, 7  ;;  %241 = vmatprep.mubr.bf16.mxu0 (!%p128_p2), %v1386_v0  ;;  %282 = vmatprep.mubr.bf16.mxu1 (!%p128_p2), %v1386_v0  ;;  %v1300_v16 = vld [vmem:[%s1612_s1 + $0x4] sm:$0xf] (!%p128_p2)  ;;  %vm192_vm2 = vcmask (!%p128_p2), 64512   ;;  %vm400_vm3 = vcmask (!%p128_p2), 1031168  }
   0x7   : > { %s1299_s16 = sshll.u32 (!%p128_p2), %s154_s15, 2  ;;  %1372 = vset.pattern.permute.xlu0 (!%p128_p2), %v1386_v0  ;;  %s1388_s21 = smov (!%p128_p2), 126   ;;  %v161_v28 = vld [vmem:[%s1612_s1] sm:$0xf] (!%p128_p2)  ;;  %vm518_vm4 = vcmask (!%p128_p2), 900096   ;;  %vm636_vm5 = vcmask (!%p128_p2), 891904  }
   0x8   : > { %s157_s19 = scalar_lea.vmem (!%p128_p2), %s1611_s0, %s1299_s16  ;;  %s1389_s22 = smov (!%p128_p2), 110   ;;  %v1314_v38 = vld [vmem:[%s1612_s1 + $0x8] sm:$0xf] (!%p128_p2)  ;;  %v1319_v48 = vld [vmem:[%s1612_s1 + $0xc] sm:$0xf] (!%p128_p2)  ;;  %vm754_vm6 = vcmask (!%p128_p2), 883712  }
   0x9   : > { %v159_v1 = vld [vmem:[%s157_s19 + $0x8] sm:$0xff] (!%p128_p2)  ;;  %v158_v2 = vld [vmem:[%s157_s19] sm:$0xff] (!%p128_p2)  ;;  %v1377_v7 = vld [vmem:[%s157_s19 + $0x10] ss:$0 sps:$4 sm:$0xff] (!%p128_p2)   ;;  %s1390_s23 = smov (!%p128_p2), 109   ;;  %s1391_s24 = smov (!%p128_p2), 108  }
   0xa   : > { %v1431_v3 = vcombine.low (!%p128_p2), %v159_v1, %v159_v1  ;;  %v1433_v4 = vcombine.low (!%p128_p2), %v158_v2, %v158_v2  ;;  %v1437_v5 = vcombine.high (!%p128_p2), %v159_v1, %v159_v1  ;;  %v1439_v6 = vcombine.high (!%p128_p2), %v158_v2, %v158_v2  ;;  %s1392_s25 = smov (!%p128_p2), 92   ;;  %s1393_s26 = smov (!%p128_p2), 91   ;;  %v1324_v59 = vld [vmem:[%s1612_s1 + $0x10] sm:$0xf] (!%p128_p2) }
   0xb   : > { %s1394_s27 = smov (!%p128_p2), 90   ;;  %vm872_vm7 = vcmask (!%p128_p2), 752640   ;;  %vm990_vm8 = vcmask (!%p128_p2), 744448   ;;  %vm1108_vm9 = vcmask (!%p128_p2), 736256  }
   0xc   : > { %181 = vrot.lane.b32.xlu1 (!%p128_p2), %v1431_v3, %s1387_s20  ;;  %177 = vrot.lane.b32.xlu0 (!%p128_p2), %v1433_v4, %s1387_s20  ;;  %v295_v20 = vsel (!%p128_p2), %vm196_vm1, %v1433_v4, 0  ;;  %v301_v25 = vsel (!%p128_p2), %vm196_vm1, %v1431_v3, 0 }
  0x10   : > { %183 = vrot.lane.b32.xlu1 %v1437_v5, %s1387_s20  ;;  %179 = vrot.lane.b32.xlu0 %v1439_v6, %s1387_s20 }
  0x14   : > { %390 = vrot.lane.b32.xlu1 %v1433_v4, %s1388_s21  ;;  %185 = vrot.lane.b32.xlu0 %v1377_v7, %s1387_s20 }
  0x18   : > { %394 = vrot.lane.b32.xlu1 %v1431_v3, %s1388_s21  ;;  %392 = vrot.lane.b32.xlu0 %v1439_v6, %s1388_s21 }
  0x1c   : > { %398 = vrot.lane.b32.xlu1 %v1377_v7, %s1388_s21  ;;  %396 = vrot.lane.b32.xlu0 %v1437_v5, %s1388_s21 }
  0x20   : > { %510 = vrot.lane.b32.xlu1 %v1439_v6, %s1389_s22  ;;  %508 = vrot.lane.b32.xlu0 %v1433_v4, %s1389_s22 }
  0x24   : > { %514 = vrot.lane.b32.xlu1 %v1437_v5, %s1389_s22  ;;  %512 = vrot.lane.b32.xlu0 %v1431_v3, %s1389_s22 }
  0x28   : > { %626 = vrot.lane.b32.xlu1 %v1433_v4, %s1390_s23  ;;  %516 = vrot.lane.b32.xlu0 %v1377_v7, %s1389_s22 }
  0x2c   : > { %630 = vrot.lane.b32.xlu1 %v1431_v3, %s1390_s23  ;;  %628 = vrot.lane.b32.xlu0 %v1439_v6, %s1390_s23 }
  0x30   : > { %634 = vrot.lane.b32.xlu1 %v1377_v7, %s1390_s23  ;;  %632 = vrot.lane.b32.xlu0 %v1437_v5, %s1390_s23  ;;  %s1296_s23 = sshll.u32 %s1292_s13, 2 }
  0x31   : > { %p147_p3 = scmp.lt.s32.totalorder %s1296_s23, 7 }
  0x33   : > { %s1616_s23 = smov (!%p147_p3, %s1296_s23), 7 }
  0x34   : > { %746 = vrot.lane.b32.xlu1 %v1439_v6, %s1391_s24  ;;  %744 = vrot.lane.b32.xlu0 %v1433_v4, %s1391_s24  ;;  %s1297_s13 = sshll.u32 %s1616_s23, 2 }
  0x38   : > { %750 = vrot.lane.b32.xlu1 %v1437_v5, %s1391_s24  ;;  %748 = vrot.lane.b32.xlu0 %v1431_v3, %s1391_s24 }
  0x3c   : > { %862 = vrot.lane.b32.xlu1 %v1433_v4, %s1392_s25  ;;  %752 = vrot.lane.b32.xlu0 %v1377_v7, %s1391_s24 }
  0x40   : > { %866 = vrot.lane.b32.xlu1 %v1431_v3, %s1392_s25  ;;  %864 = vrot.lane.b32.xlu0 %v1439_v6, %s1392_s25 }
  0x44   : > { %870 = vrot.lane.b32.xlu1 %v1377_v7, %s1392_s25  ;;  %868 = vrot.lane.b32.xlu0 %v1437_v5, %s1392_s25 }
  0x48   : > { %982 = vrot.lane.b32.xlu1 %v1439_v6, %s1393_s26  ;;  %980 = vrot.lane.b32.xlu0 %v1433_v4, %s1393_s26 }
  0x4c   : > { %986 = vrot.lane.b32.xlu1 %v1437_v5, %s1393_s26  ;;  %984 = vrot.lane.b32.xlu0 %v1431_v3, %s1393_s26 }
  0x50   : > { %1098 = vrot.lane.b32.xlu1 %v1433_v4, %s1394_s27  ;;  %988 = vrot.lane.b32.xlu0 %v1377_v7, %s1393_s26  ;;  %s150_s26 = scalar_lea.vmem %s1614_s3, %s1297_s13 }
  0x54   : > { %1102 = vrot.lane.b32.xlu1 %v1431_v3, %s1394_s27  ;;  %1100 = vrot.lane.b32.xlu0 %v1439_v6, %s1394_s27 }
  0x58   : > { %1106 = vrot.lane.b32.xlu1 %v1377_v7, %s1394_s27  ;;  %1104 = vrot.lane.b32.xlu0 %v1437_v5, %s1394_s27 }
  0x5c   : > { %1217 = vperm.xlu0 %1372, %v1214_v8  }
  0x7e   : > { %v182_v9 = vpop.permute.xlu1 %181  ;;  %v178_v10 = vpop.permute.xlu0 %177 }
  0x82   : > { %v184_v11 = vpop.permute.xlu1 %183  ;;  %v180_v12 = vpop.permute.xlu0 %179 }
  0x83   : > { %v189_v13 = vsel %vm187_vm0, %v180_v12, %v182_v9  ;;  %v188_v14 = vsel %vm187_vm0, %v178_v10, %v180_v12  ;;  %v190_v17 = vsel %vm187_vm0, %v182_v9, %v184_v11 }
  0x84   : > { %1306 = vmatprep.subr.msk.bf16.mxu0 %vm196_vm1, %v189_v13  ;;  %v198_v15 = vsel %vm196_vm1, %v188_v14, 0  ;;  %v204_v22 = vsel %vm196_vm1, %v190_v17, 0 }
  0x85   : > { %210 = vmatpush1.bf16.msra.mxu0 %v198_v15  ;;  %v1334_v15 = vld [vmem:[%s1612_s1 + $0x18] sm:$0xf] }
  0x86   : > { %v391_v18 = vpop.permute.xlu1 %390  ;;  %v186_v19 = vpop.permute.xlu0 %185  ;;  %1310 = vmatprep.subr.msk.bf16.mxu0 %vm196_vm1, %v1439_v6 }
  0x87   : > { %v191_v21 = vsel %vm187_vm0, %v184_v11, %v186_v19 }
  0x88   : > { %1307 = vmatmul.mubr.msk.bf16.vlgmr.msra.gmra.mrb[0].mxu0 %vm192_vm2, %v1300_v16  ;;  %1308 = vmatprep.subr.msk.bf16.mxu1 %vm196_vm1, %v191_v21 }
  0x89   : > { %251 = vmatpush1.bf16.msra.mxu1 %v204_v22  ;;  %307 = vmatpush1.bf16.msra.mxu0 %v295_v20 }
  0x8a   : > { %v395_v23 = vpop.permute.xlu1 %394  ;;  %v393_v24 = vpop.permute.xlu0 %392  ;;  %1312 = vmatprep.subr.msk.bf16.mxu1 %vm196_vm1, %v1437_v5  ;;  %338 = vmatprep.mubr.bf16.mxu0 %v1386_v0  ;;  %v1329_v5 = vld [vmem:[%s1612_s1 + $0x14] sm:$0xf] }
  0x8b   : > { %v402_v26 = vsel %vm400_vm3, %v393_v24, %v395_v23  ;;  %v401_v27 = vsel %vm400_vm3, %v391_v18, %v393_v24 }
  0x8c   : > { %1309 = vmatmul.mubr.msk.bf16.vlgmr.msra.gmra.mrb[0].mxu1 %vm192_vm2, %v1300_v16  ;;  %1315 = vmatprep.subr.msk.bf16.mxu0 %vm196_vm1, %v402_v26  ;;  %v409_v32 = vsel %vm196_vm1, %v401_v27, 0 }
  0x8d   : > { %348 = vmatpush1.bf16.msra.mxu1 %v301_v25  ;;  %379 = vmatprep.mubr.bf16.mxu1 %v1386_v0 }
  0x8e   : > { %v399_v29 = vpop.permute.xlu1 %398  ;;  %v397_v30 = vpop.permute.xlu0 %396 }
  0x8f   : > { %v404_v31 = vsel %vm400_vm3, %v397_v30, %v399_v29  ;;  %v403_v33 = vsel %vm400_vm3, %v395_v23, %v397_v30  ;;  %v1339_v29 = vld [vmem:[%s1612_s1 + $0x1c] sm:$0xf] }
  0x90   : > { %1311 = vmatmul.mubr.msk.bf16.vlgmr.msra.gmra.mrb[4].mxu0 %vm192_vm2, %v161_v28  ;;  %1317 = vmatprep.subr.msk.bf16.mxu1 %vm196_vm1, %v404_v31  ;;  %v415_v36 = vsel %vm196_vm1, %v403_v33, 0 }
  0x91   : > { %421 = vmatpush1.bf16.msra.mxu0 %v409_v32  ;;  %452 = vmatprep.mubr.bf16.mxu0 %v1386_v0 }
  0x92   : > { %v511_v34 = vpop.permute.xlu1 %510  ;;  %v509_v35 = vpop.permute.xlu0 %508 }
  0x93   : > { %v519_v37 = vsel %vm518_vm4, %v509_v35, %v511_v34 }
  0x94   : > { %1313 = vmatmul.mubr.msk.bf16.vlgmr.msra.gmra.mrb[4].mxu1 %vm192_vm2, %v161_v28  ;;  %v527_v42 = vsel %vm196_vm1, %v519_v37, 0 }
  0x95   : > { %462 = vmatpush1.bf16.msra.mxu1 %v415_v36  ;;  %493 = vmatprep.mubr.bf16.mxu1 %v1386_v0 }
  0x96   : > { %v515_v39 = vpop.permute.xlu1 %514  ;;  %v513_v40 = vpop.permute.xlu0 %512 }
  0x97   : > { %v520_v41 = vsel %vm518_vm4, %v511_v34, %v513_v40  ;;  %v521_v43 = vsel %vm518_vm4, %v513_v40, %v515_v39 }
  0x98   : > { %1316 = vmatmul.mubr.msk.bf16.vlgmr.msra.gmra.mrb[8].mxu0 %vm192_vm2, %v1314_v38  ;;  %1320 = vmatprep.subr.msk.bf16.mxu0 %vm196_vm1, %v520_v41  ;;  %v533_v47 = vsel %vm196_vm1, %v521_v43, 0 }
  0x99   : > { %539 = vmatpush1.bf16.msra.mxu0 %v527_v42  ;;  %570 = vmatprep.mubr.bf16.mxu0 %v1386_v0 }
  0x9a   : > { %v627_v44 = vpop.permute.xlu1 %626  ;;  %v517_v45 = vpop.permute.xlu0 %516 }
  0x9b   : > { %v522_v46 = vsel %vm518_vm4, %v515_v39, %v517_v45  ;;  %v1344_v39 = vld [vmem:[%s1612_s1 + $0x20] sm:$0xf] }
  0x9c   : > { %1318 = vmatmul.mubr.msk.bf16.vlgmr.msra.gmra.mrb[8].mxu1 %vm192_vm2, %v1314_v38  ;;  %1322 = vmatprep.subr.msk.bf16.mxu1 %vm196_vm1, %v522_v46 }
  0x9d   : > { %580 = vmatpush1.bf16.msra.mxu1 %v533_v47  ;;  %611 = vmatprep.mubr.bf16.mxu1 %v1386_v0 }
  0x9e   : > { %v631_v49 = vpop.permute.xlu1 %630  ;;  %v629_v50 = vpop.permute.xlu0 %628 }
  0x9f   : > { %v637_v51 = vsel %vm636_vm5, %v627_v44, %v629_v50  ;;  %v638_v52 = vsel %vm636_vm5, %v629_v50, %v631_v49 }
  0xa0   : > { %v645_v53 = vsel %vm196_vm1, %v637_v51, 0  ;;  %1321 = vmatmul.mubr.msk.bf16.vlgmr.msra.gmra.mrb[12].mxu0 %vm192_vm2, %v1319_v48  ;;  %1325 = vmatprep.subr.msk.bf16.mxu0 %vm196_vm1, %v638_v52 }
  0xa1   : > { %657 = vmatpush1.bf16.msra.mxu0 %v645_v53  ;;  %688 = vmatprep.mubr.bf16.mxu0 %v1386_v0 }
  0xa2   : > { %v635_v54 = vpop.permute.xlu1 %634  ;;  %v633_v55 = vpop.permute.xlu0 %632 }
  0xa3   : > { %v639_v56 = vsel %vm636_vm5, %v631_v49, %v633_v55  ;;  %v640_v57 = vsel %vm636_vm5, %v633_v55, %v635_v54 }
  0xa4   : > { %v651_v58 = vsel %vm196_vm1, %v639_v56, 0  ;;  %1323 = vmatmul.mubr.msk.bf16.vlgmr.msra.gmra.mrb[12].mxu1 %vm192_vm2, %v1319_v48  ;;  %1327 = vmatprep.subr.msk.bf16.mxu1 %vm196_vm1, %v640_v57 }
  0xa5   : > { %698 = vmatpush1.bf16.msra.mxu1 %v651_v58  ;;  %729 = vmatprep.mubr.bf16.mxu1 %v1386_v0 }
  0xa6   : > { %v747_v60 = vpop.permute.xlu1 %746  ;;  %v745_v61 = vpop.permute.xlu0 %744 }
  0xa7   : > { %v755_v62 = vsel %vm754_vm6, %v745_v61, %v747_v60 }
  0xa8   : > { %1326 = vmatmul.mubr.msk.bf16.vlgmr.msra.gmra.mrb[16].mxu0 %vm192_vm2, %v1324_v59  ;;  %v763_v3 = vsel %vm196_vm1, %v755_v62, 0 }
  0xa9   : > { %806 = vmatprep.mubr.bf16.mxu0 %v1386_v0 }
  0xaa   : > { %v751_v63 = vpop.permute.xlu1 %750  ;;  %v749_v1 = vpop.permute.xlu0 %748 }
  0xab   : > { %v756_v2 = vsel %vm754_vm6, %v747_v60, %v749_v1  ;;  %v757_v4 = vsel %vm754_vm6, %v749_v1, %v751_v63 }
  0xac   : > { %1328 = vmatmul.mubr.msk.bf16.vlgmr.msra.gmra.mrb[16].mxu1 %vm192_vm2, %v1324_v59  ;;  %1330 = vmatprep.subr.msk.bf16.mxu0 %vm196_vm1, %v756_v2  ;;  %v769_v9 = vsel %vm196_vm1, %v757_v4, 0 }
  0xad   : > { %775 = vmatpush1.bf16.msra.mxu0 %v763_v3  ;;  %847 = vmatprep.mubr.bf16.mxu1 %v1386_v0 }
  0xae   : > { %v863_v6 = vpop.permute.xlu1 %862  ;;  %v753_v7 = vpop.permute.xlu0 %752 }
  0xaf   : > { %v758_v8 = vsel %vm754_vm6, %v751_v63, %v753_v7 }
  0xb0   : > { %1331 = vmatmul.mubr.msk.bf16.vlgmr.msra.gmra.mrb[20].mxu0 %vm192_vm2, %v1329_v5  ;;  %1332 = vmatprep.subr.msk.bf16.mxu1 %vm196_vm1, %v758_v8 }
  0xb1   : > { %816 = vmatpush1.bf16.msra.mxu1 %v769_v9  ;;  %924 = vmatprep.mubr.bf16.mxu0 %v1386_v0 }
  0xb2   : > { %v867_v10 = vpop.permute.xlu1 %866  ;;  %v865_v11 = vpop.permute.xlu0 %864 }
  0xb3   : > { %v873_v12 = vsel %vm872_vm7, %v863_v6, %v865_v11  ;;  %v874_v13 = vsel %vm872_vm7, %v865_v11, %v867_v10 }
  0xb4   : > { %v881_v14 = vsel %vm196_vm1, %v873_v12, 0  ;;  %1333 = vmatmul.mubr.msk.bf16.vlgmr.msra.gmra.mrb[20].mxu1 %vm192_vm2, %v1329_v5  ;;  %1335 = vmatprep.subr.msk.bf16.mxu0 %vm196_vm1, %v874_v13 }
  0xb5   : > { %893 = vmatpush1.bf16.msra.mxu0 %v881_v14  ;;  %965 = vmatprep.mubr.bf16.mxu1 %v1386_v0 }
  0xb6   : > { %v871_v16 = vpop.permute.xlu1 %870  ;;  %v869_v17 = vpop.permute.xlu0 %868 }
  0xb7   : > { %v875_v18 = vsel %vm872_vm7, %v867_v10, %v869_v17  ;;  %v876_v19 = vsel %vm872_vm7, %v869_v17, %v871_v16 }
  0xb8   : > { %v887_v20 = vsel %vm196_vm1, %v875_v18, 0  ;;  %1336 = vmatmul.mubr.msk.bf16.vlgmr.msra.gmra.mrb[24].mxu0 %vm192_vm2, %v1334_v15  ;;  %1337 = vmatprep.subr.msk.bf16.mxu1 %vm196_vm1, %v876_v19 }
  0xb9   : > { %934 = vmatpush1.bf16.msra.mxu1 %v887_v20  ;;  %1042 = vmatprep.mubr.bf16.mxu0 %v1386_v0 }
  0xba   : > { %v983_v21 = vpop.permute.xlu1 %982  ;;  %v981_v22 = vpop.permute.xlu0 %980 }
  0xbb   : > { %v991_v23 = vsel %vm990_vm8, %v981_v22, %v983_v21 }
  0xbc   : > { %1338 = vmatmul.mubr.msk.bf16.vlgmr.msra.gmra.mrb[24].mxu1 %vm192_vm2, %v1334_v15  ;;  %v999_v27 = vsel %vm196_vm1, %v991_v23, 0 }
  0xbd   : > { %1083 = vmatprep.mubr.bf16.mxu1 %v1386_v0 }
  0xbe   : > { %v987_v24 = vpop.permute.xlu1 %986  ;;  %v985_v25 = vpop.permute.xlu0 %984 }
  0xbf   : > { %v992_v26 = vsel %vm990_vm8, %v983_v21, %v985_v25  ;;  %v993_v28 = vsel %vm990_vm8, %v985_v25, %v987_v24 }
  0xc0   : > { %1340 = vmatprep.subr.msk.bf16.mxu0 %vm196_vm1, %v992_v26  ;;  %v1005_v33 = vsel %vm196_vm1, %v993_v28, 0 }
  0xc1   : > { %1011 = vmatpush1.bf16.msra.mxu0 %v999_v27 }
  0xc2   : > { %v1099_v30 = vpop.permute.xlu1 %1098  ;;  %v989_v31 = vpop.permute.xlu0 %988 }
  0xc3   : > { %v994_v32 = vsel %vm990_vm8, %v987_v24, %v989_v31 }
  0xc4   : > { %1341 = vmatmul.mubr.msk.bf16.vlgmr.msra.gmra.mrb[28].mxu0 %vm192_vm2, %v1339_v29  ;;  %1342 = vmatprep.subr.msk.bf16.mxu1 %vm196_vm1, %v994_v32 }
  0xc5   : > { %1052 = vmatpush1.bf16.msra.mxu1 %v1005_v33  ;;  %1160 = vmatprep.mubr.bf16.mxu0 %v1386_v0 }
  0xc6   : > { %v1103_v34 = vpop.permute.xlu1 %1102  ;;  %v1101_v35 = vpop.permute.xlu0 %1100 }
  0xc7   : > { %v1109_v36 = vsel %vm1108_vm9, %v1099_v30, %v1101_v35  ;;  %v1110_v37 = vsel %vm1108_vm9, %v1101_v35, %v1103_v34 }
  0xc8   : > { %v1117_v38 = vsel %vm196_vm1, %v1109_v36, 0  ;;  %1343 = vmatmul.mubr.msk.bf16.vlgmr.msra.gmra.mrb[28].mxu1 %vm192_vm2, %v1339_v29  ;;  %1345 = vmatprep.subr.msk.bf16.mxu0 %vm196_vm1, %v1110_v37 }
  0xc9   : > { %1129 = vmatpush1.bf16.msra.mxu0 %v1117_v38  ;;  %1201 = vmatprep.mubr.bf16.mxu1 %v1386_v0 }
  0xca   : > { %v1107_v40 = vpop.permute.xlu1 %1106  ;;  %v1105_v41 = vpop.permute.xlu0 %1104 }
  0xcb   : > { %v1111_v42 = vsel %vm1108_vm9, %v1103_v34, %v1105_v41  ;;  %v1112_v43 = vsel %vm1108_vm9, %v1105_v41, %v1107_v40 }
  0xcc   : > { %v1123_v44 = vsel %vm196_vm1, %v1111_v42, 0  ;;  %1346 = vmatmul.mubr.msk.bf16.vlgmr.msra.gmra.mrb[32].mxu0 %vm192_vm2, %v1344_v39  ;;  %1347 = vmatprep.subr.msk.bf16.mxu1 %vm196_vm1, %v1112_v43 }
  0xcd   : > { %1170 = vmatpush1.bf16.msra.mxu1 %v1123_v44 }
  0xd0   : > { %1348 = vmatmul.mubr.msk.bf16.vlgmr.msra.gmra.mrb[32].mxu1 %vm192_vm2, %v1344_v39 }
 0x15b   : > { %v243_v45 = vpop.f32.mrb[0].mxu0 }
 0x15c   : > { %v245_v46 = vpop.f32.mrb[1].mxu0 }
 0x15d   : > { %v247_v47 = vpop.f32.mrb[2].mxu0 }
 0x15e   : > { %v248_v48 = vpop.f32.mrb[3].mxu0 }
 0x15f   : > { %v284_v0 = vpop.f32.mrb[0].mxu1 }
 0x160   : > { %v286_v49 = vpop.f32.mrb[1].mxu1 }
 0x161   : > { %v288_v50 = vpop.f32.mrb[2].mxu1 }
 0x162   : > { %v289_v51 = vpop.f32.mrb[3].mxu1 }
 0x163   : > { %v340_v52 = vpop.f32.mrb[4].mxu0 }
 0x164   : > { %v341_v53 = vadd.f32 %v340_v52, %v243_v45  ;;  %v342_v54 = vpop.f32.mrb[5].mxu0 }
 0x165   : > { %v343_v55 = vadd.f32 %v342_v54, %v245_v46  ;;  %v344_v56 = vpop.f32.mrb[6].mxu0 }
 0x166   : > { %v345_v57 = vpop.f32.mrb[7].mxu0 }
 0x167   : > { %v381_v58 = vpop.f32.mrb[4].mxu1 }
 0x168   : > { %v382_v59 = vadd.f32 %v381_v58, %v284_v0  ;;  %v383_v60 = vpop.f32.mrb[5].mxu1 }
 0x169   : > { %v384_v61 = vadd.f32 %v383_v60, %v286_v49  ;;  %v385_v62 = vpop.f32.mrb[6].mxu1 }
 0x16a   : > { %v386_v63 = vpop.f32.mrb[7].mxu1 }
 0x16b   : > { %v454_v1 = vpop.f32.mrb[8].mxu0 }
 0x16c   : > { %v502_v2 = vadd.f32 %v454_v1, %v341_v53  ;;  %v456_v3 = vpop.f32.mrb[9].mxu0 }
 0x16d   : > { %v503_v4 = vadd.f32 %v456_v3, %v343_v55  ;;  %v458_v5 = vpop.f32.mrb[10].mxu0 }
 0x16e   : > { %v459_v6 = vpop.f32.mrb[11].mxu0 }
 0x16f   : > { %v495_v7 = vpop.f32.mrb[8].mxu1 }
 0x170   : > { %v504_v8 = vadd.f32 %v495_v7, %v382_v59  ;;  %v497_v9 = vpop.f32.mrb[9].mxu1 }
 0x171   : > { %v505_v10 = vadd.f32 %v497_v9, %v384_v61  ;;  %v499_v11 = vpop.f32.mrb[10].mxu1 }
 0x172   : > { %v500_v12 = vpop.f32.mrb[11].mxu1 }
 0x173   : > { %v572_v13 = vpop.f32.mrb[12].mxu0 }
 0x174   : > { %v620_v14 = vadd.f32 %v572_v13, %v502_v2  ;;  %v574_v15 = vpop.f32.mrb[13].mxu0 }
 0x175   : > { %v621_v16 = vadd.f32 %v574_v15, %v503_v4  ;;  %v576_v17 = vpop.f32.mrb[14].mxu0 }
 0x176   : > { %v577_v18 = vpop.f32.mrb[15].mxu0 }
 0x177   : > { %v613_v19 = vpop.f32.mrb[12].mxu1 }
 0x178   : > { %v622_v20 = vadd.f32 %v613_v19, %v504_v8  ;;  %v615_v21 = vpop.f32.mrb[13].mxu1 }
 0x179   : > { %v623_v22 = vadd.f32 %v615_v21, %v505_v10  ;;  %v617_v23 = vpop.f32.mrb[14].mxu1  ;;  %v1218_v10 = vpop.permute.xlu0 %1217 }
 0x17a   : > { %v618_v24 = vpop.f32.mrb[15].mxu1 }
 0x17b   : > { %v690_v25 = vpop.f32.mrb[16].mxu0 }
 0x17c   : > { %v738_v26 = vadd.f32 %v690_v25, %v620_v14  ;;  %v692_v27 = vpop.f32.mrb[17].mxu0 }
 0x17d   : > { %v739_v28 = vadd.f32 %v692_v27, %v621_v16  ;;  %v694_v29 = vpop.f32.mrb[18].mxu0 }
 0x17e   : > { %v695_v30 = vpop.f32.mrb[19].mxu0 }
 0x17f   : > { %v731_v31 = vpop.f32.mrb[16].mxu1 }
 0x180   : > { %v740_v32 = vadd.f32 %v731_v31, %v622_v20  ;;  %v733_v33 = vpop.f32.mrb[17].mxu1 }
 0x181   : > { %v741_v34 = vadd.f32 %v733_v33, %v623_v22  ;;  %v735_v35 = vpop.f32.mrb[18].mxu1 }
 0x182   : > { %v736_v36 = vpop.f32.mrb[19].mxu1 }
 0x183   : > { %v808_v37 = vpop.f32.mrb[20].mxu0 }
 0x184   : > { %v856_v38 = vadd.f32 %v808_v37, %v738_v26  ;;  %v810_v39 = vpop.f32.mrb[21].mxu0 }
 0x185   : > { %v857_v40 = vadd.f32 %v810_v39, %v739_v28  ;;  %v812_v41 = vpop.f32.mrb[22].mxu0 }
 0x186   : > { %v813_v42 = vpop.f32.mrb[23].mxu0 }
 0x187   : > { %v849_v43 = vpop.f32.mrb[20].mxu1 }
 0x188   : > { %v858_v44 = vadd.f32 %v849_v43, %v740_v32  ;;  %v851_v45 = vpop.f32.mrb[21].mxu1 }
 0x189   : > { %v859_v46 = vadd.f32 %v851_v45, %v741_v34  ;;  %v853_v47 = vpop.f32.mrb[22].mxu1 }
 0x18a   : > { %v854_v48 = vpop.f32.mrb[23].mxu1 }
 0x18b   : > { %v926_v0 = vpop.f32.mrb[24].mxu0 }
 0x18c   : > { %v974_v49 = vadd.f32 %v926_v0, %v856_v38  ;;  %v928_v50 = vpop.f32.mrb[25].mxu0 }
 0x18d   : > { %v975_v51 = vadd.f32 %v928_v50, %v857_v40  ;;  %v930_v52 = vpop.f32.mrb[26].mxu0 }
 0x18e   : > { %v931_v53 = vpop.f32.mrb[27].mxu0 }
 0x18f   : > { %v967_v54 = vpop.f32.mrb[24].mxu1 }
 0x190   : > { %v976_v55 = vadd.f32 %v967_v54, %v858_v44  ;;  %v969_v56 = vpop.f32.mrb[25].mxu1 }
 0x191   : > { %v977_v57 = vadd.f32 %v969_v56, %v859_v46  ;;  %v971_v58 = vpop.f32.mrb[26].mxu1 }
 0x192   : > { %v972_v59 = vpop.f32.mrb[27].mxu1 }
 0x197   : > { %v1044_v60 = vpop.f32.mrb[28].mxu0 }
 0x198   : > { %v1092_v61 = vadd.f32 %v1044_v60, %v974_v49  ;;  %v1046_v62 = vpop.f32.mrb[29].mxu0 }
 0x199   : > { %v1093_v63 = vadd.f32 %v1046_v62, %v975_v51  ;;  %v1048_v1 = vpop.f32.mrb[30].mxu0 }
 0x19a   : > { %v1049_v2 = vpop.f32.mrb[31].mxu0 }
 0x19b   : > { %v1085_v3 = vpop.f32.mrb[28].mxu1 }
 0x19c   : > { %v1094_v4 = vadd.f32 %v1085_v3, %v976_v55  ;;  %v1087_v5 = vpop.f32.mrb[29].mxu1 }
 0x19d   : > { %v1095_v6 = vadd.f32 %v1087_v5, %v977_v57  ;;  %v1089_v7 = vpop.f32.mrb[30].mxu1 }
 0x19e   : > { %v1090_v8 = vpop.f32.mrb[31].mxu1 }
 0x19f   : > { %v1162_v9 = vpop.f32.mrb[32].mxu0 }
 0x1a0   : > { %v1210_v11 = vadd.f32 %v1162_v9, %v1092_v61  ;;  %v1164_v12 = vpop.f32.mrb[33].mxu0 }
 0x1a1   : > { %v1211_v13 = vadd.f32 %v1164_v12, %v1093_v63  ;;  %v1166_v14 = vpop.f32.mrb[34].mxu0 }
 0x1a2   : > { %v1220_v15 = vadd.f32 %v1218_v10, %v1210_v11  ;;  %v1167_v16 = vpop.f32.mrb[35].mxu0 }
 0x1a3   : > { %v1221_v17 = vadd.f32 %v1218_v10, %v1211_v13  ;;  %v1203_v18 = vpop.f32.mrb[32].mxu1 }
 0x1a4   : > { %v1224_v19 = vmax.f32 %v1220_v15, 0.0  ;;  %v1212_v20 = vadd.f32 %v1203_v18, %v1094_v4  ;;  %v1205_v21 = vpop.f32.mrb[33].mxu1 }
 0x1a5   : > { %v1225_v22 = vmax.f32 %v1221_v17, 0.0  ;;  %v1213_v23 = vadd.f32 %v1205_v21, %v1095_v6  ;;  %v1207_v24 = vpop.f32.mrb[34].mxu1 }
 0x1a6   : > { %v1222_v25 = vadd.f32 %v1218_v10, %v1212_v20  ;;  %v1208_v26 = vpop.f32.mrb[35].mxu1 }
 0x1a7   : > { %v1353_v27 = vpack.c.bf16 %v1225_v22, %v1224_v19  ;;  %v1223_v28 = vadd.f32 %v1218_v10, %v1213_v23 }
 0x1a8   : > { %v1226_v29 = vmax.f32 %v1222_v25, 0.0 }
 0x1a9   : > { %1244 = vst [vmem:[%s150_s26] sm:$0xff] %v1353_v27  ;;  %v1227_v30 = vmax.f32 %v1223_v28, 0.0 }
 0x1ab   : > { %v1354_v31 = vpack.c.bf16 %v1227_v30, %v1226_v29 }
 0x1ad   : > { %1245 = vst [vmem:[%s150_s26 + $0x8] sm:$0xff] %v1354_v31 }
 0x1ae PF: > { %s13_s12 = sadd.s32 1, %s1384_s12  }
 0x1af   : > { %p10_p4 = scmp.ge.s32.totalorder %s13_s12, 4  }
 0x1b1   :  { %12 = sbr.rel (!%p10_p4) target bundleno = 1 (0x1), region = 68 }

// kernel: network_forward.35
= control target key start
LH: loop header
LB: loop body
LE: loop exit
PB: predicated region body
PF: predicated region fallthrough
CT: control target
= control target key end

     0   :  { %s1337_s12 = smov 0   ;;  %s1497_s0 = inlined_call_operand.vmem [shape: bf16[16,1062], index: 0, kind: input, shape index: {}]   ;;  %s1498_s1 = inlined_call_operand.vmem [shape: bf16[9,8,16], index: 1, kind: input, shape index: {}]   ;;  %s1499_s2 = inlined_call_operand.vmem [shape: f32[8,1], index: 2, kind: input, shape index: {}]   ;;  %s1500_s3 = inlined_call_operand.vmem [shape: bf16[8,1024], index: 3, kind: output, shape index: {}]  }
   0x1 LB: > { %s1230_s13 = sadd.s32 4294967295, %s1306_s12   ;;  %p1233_p0 = scmp.ge.s32.totalorder %s1306_s12, 1  ;;  %s1306_s12 = sphi %s1337_s12, %s13_s12  }
   0x2   : > { %p127_p1 = scmp.lt.s32.totalorder %s1306_s12, 3 }
   0x4   : > { %p128_p2 = pnand %p1233_p0, %p127_p1 }
   0x5   : > { %s1236_s14 = sshll.u32 (!%p128_p2), %s1230_s13, 9  ;;  %v1308_v0 = vmov (!%p128_p2), 0   ;;  %s1309_s20 = smov (!%p128_p2), 127   ;;  %v1152_v6 = vld [vmem:[%s1499_s2] sm:$0xff] (!%p128_p2)  ;;  %vm198_vm0 = vcmask (!%p128_p2), 1039360   ;;  %vm207_vm1 = vcmask (!%p128_p2), 130048  }
   0x6   : > { %131 = sbr.rel (%p128_p2) target bundleno = 429 (0x1ad), region = 32  ;;  %s154_s15 = sshra.s32 (!%p128_p2), %s1236_s14, 7  ;;  %243 = vmatprep.mubr.bf16.mxu0 (!%p128_p2), %v1308_v0  ;;  %284 = vmatprep.mubr.bf16.mxu1 (!%p128_p2), %v1308_v0  ;;  %v1238_v13 = vld [vmem:[%s1498_s1 + $0x4] sm:$0xf] (!%p128_p2)  ;;  %vm394_vm2 = vcmask (!%p128_p2), 1031168   ;;  %vm504_vm3 = vcmask (!%p128_p2), 900096  }
   0x7   : > { %s1237_s16 = sshll.u32 (!%p128_p2), %s154_s15, 2  ;;  %1292 = vset.pattern.permute.xlu0 (!%p128_p2), %v1308_v0  ;;  %s1310_s21 = smov (!%p128_p2), 126   ;;  %v164_v21 = vld [vmem:[%s1498_s1] sm:$0xf] (!%p128_p2)  ;;  %v1248_v30 = vld [vmem:[%s1498_s1 + $0x8] sm:$0xf] (!%p128_p2) }
   0x8   : > { %s157_s19 = scalar_lea.vmem (!%p128_p2), %s1497_s0, %s1237_s16  ;;  %s1311_s22 = smov (!%p128_p2), 110   ;;  %vm614_vm4 = vcmask (!%p128_p2), 891904   ;;  %v1251_v38 = vld [vmem:[%s1498_s1 + $0xc] sm:$0xf] (!%p128_p2)  ;;  %v1254_v47 = vld [vmem:[%s1498_s1 + $0x10] sm:$0xf] (!%p128_p2) }
   0x9   : > { %v1353_v1 = vld [vmem:[%s157_s19 + $0x4] ss:$36 sps:$4 sm:$0xff] (!%p128_p2)   ;;  %v1361_v4 = vld [vmem:[%s157_s19 + $0xc] ss:$36 sps:$4 sm:$0xff] (!%p128_p2)   ;;  %s1312_s23 = smov (!%p128_p2), 109   ;;  %s1313_s24 = smov (!%p128_p2), 108  }
   0xa   : > { %v1355_v2 = vld [vmem:[%s157_s19] ss:$36 sps:$4 sm:$0xff] (!%p128_p2)   ;;  %190 = vrot.lane.b32.xlu0 (!%p128_p2), %v1353_v1, %s1309_s20  ;;  %v1358_v3 = vld [vmem:[%s157_s19 + $0x8] ss:$36 sps:$4 sm:$0xff] (!%p128_p2)   ;;  %v1299_v5 = vld [vmem:[%s157_s19 + $0x10] ss:$36 sps:$4 sm:$0xff] (!%p128_p2)  }
   0xb   : > { %188 = vrot.lane.b32.xlu1 (!%p128_p2), %v1355_v2, %s1309_s20  ;;  %s1314_s25 = smov (!%p128_p2), 92   ;;  %s1315_s26 = smov (!%p128_p2), 91   ;;  %vm724_vm5 = vcmask (!%p128_p2), 883712   ;;  %v1257_v54 = vld [vmem:[%s1498_s1 + $0x14] sm:$0xf] (!%p128_p2)  ;;  %vm834_vm6 = vcmask (!%p128_p2), 752640  }
   0xc   : > { %s1316_s27 = smov (!%p128_p2), 90   ;;  %v1260_v63 = vld [vmem:[%s1498_s1 + $0x18] sm:$0xf] (!%p128_p2)  ;;  %vm944_vm7 = vcmask (!%p128_p2), 744448   ;;  %vm1054_vm8 = vcmask (!%p128_p2), 736256  }
   0xe   : > { %192 = vrot.lane.b32.xlu0 %v1358_v3, %s1309_s20 }
   0xf   : > { %194 = vrot.lane.b32.xlu1 %v1361_v4, %s1309_s20 }
  0x12   : > { %196 = vrot.lane.b32.xlu0 %v1299_v5, %s1309_s20 }
  0x13   : > { %386 = vrot.lane.b32.xlu1 %v1353_v1, %s1310_s21 }
  0x16   : > { %388 = vrot.lane.b32.xlu0 %v1358_v3, %s1310_s21 }
  0x17   : > { %384 = vrot.lane.b32.xlu1 %v1355_v2, %s1310_s21 }
  0x1a   : > { %390 = vrot.lane.b32.xlu0 %v1361_v4, %s1310_s21 }
  0x1b   : > { %392 = vrot.lane.b32.xlu1 %v1299_v5, %s1310_s21 }
  0x1e   : > { %496 = vrot.lane.b32.xlu0 %v1353_v1, %s1311_s22 }
  0x1f   : > { %498 = vrot.lane.b32.xlu1 %v1358_v3, %s1311_s22 }
  0x22   : > { %494 = vrot.lane.b32.xlu0 %v1355_v2, %s1311_s22 }
  0x23   : > { %500 = vrot.lane.b32.xlu1 %v1361_v4, %s1311_s22 }
  0x26   : > { %502 = vrot.lane.b32.xlu0 %v1299_v5, %s1311_s22 }
  0x27   : > { %606 = vrot.lane.b32.xlu1 %v1353_v1, %s1312_s23 }
  0x2a   : > { %608 = vrot.lane.b32.xlu0 %v1358_v3, %s1312_s23 }
  0x2b   : > { %604 = vrot.lane.b32.xlu1 %v1355_v2, %s1312_s23 }
  0x2e   : > { %610 = vrot.lane.b32.xlu0 %v1361_v4, %s1312_s23 }
  0x2f   : > { %612 = vrot.lane.b32.xlu1 %v1299_v5, %s1312_s23  ;;  %s1234_s23 = sshll.u32 %s1230_s13, 2 }
  0x30   : > { %p147_p3 = scmp.lt.s32.totalorder %s1234_s23, 7 }
  0x32   : > { %716 = vrot.lane.b32.xlu0 %v1353_v1, %s1313_s24  ;;  %s1502_s23 = smov (!%p147_p3, %s1234_s23), 7 }
  0x33   : > { %718 = vrot.lane.b32.xlu1 %v1358_v3, %s1313_s24 }
  0x36   : > { %714 = vrot.lane.b32.xlu0 %v1355_v2, %s1313_s24 }
  0x37   : > { %720 = vrot.lane.b32.xlu1 %v1361_v4, %s1313_s24 }
  0x3a   : > { %722 = vrot.lane.b32.xlu0 %v1299_v5, %s1313_s24  ;;  %s1235_s24 = sshll.u32 %s1502_s23, 2 }
  0x3b   : > { %826 = vrot.lane.b32.xlu1 %v1353_v1, %s1314_s25 }
  0x3e   : > { %828 = vrot.lane.b32.xlu0 %v1358_v3, %s1314_s25 }
  0x3f   : > { %824 = vrot.lane.b32.xlu1 %v1355_v2, %s1314_s25 }
  0x42   : > { %830 = vrot.lane.b32.xlu0 %v1361_v4, %s1314_s25 }
  0x43   : > { %832 = vrot.lane.b32.xlu1 %v1299_v5, %s1314_s25 }
  0x46   : > { %936 = vrot.lane.b32.xlu0 %v1353_v1, %s1315_s26 }
  0x47   : > { %938 = vrot.lane.b32.xlu1 %v1358_v3, %s1315_s26 }
  0x4a   : > { %934 = vrot.lane.b32.xlu0 %v1355_v2, %s1315_s26 }
  0x4b   : > { %940 = vrot.lane.b32.xlu1 %v1361_v4, %s1315_s26 }
  0x4e   : > { %942 = vrot.lane.b32.xlu0 %v1299_v5, %s1315_s26  ;;  %s150_s26 = scalar_lea.vmem %s1500_s3, %s1235_s24 }
  0x4f   : > { %1046 = vrot.lane.b32.xlu1 %v1353_v1, %s1316_s27 }
  0x52   : > { %1048 = vrot.lane.b32.xlu0 %v1358_v3, %s1316_s27 }
  0x53   : > { %1044 = vrot.lane.b32.xlu1 %v1355_v2, %s1316_s27 }
  0x56   : > { %1050 = vrot.lane.b32.xlu0 %v1361_v4, %s1316_s27 }
  0x57   : > { %1052 = vrot.lane.b32.xlu1 %v1299_v5, %s1316_s27 }
  0x5a   : > { %1155 = vperm.xlu0 %1292, %v1152_v6  }
  0x7c   : > { %v191_v7 = vpop.permute.xlu0 %190 }
  0x7d   : > { %v189_v8 = vpop.permute.xlu1 %188 }
  0x7e   : > { %v199_v12 = vsel %vm198_vm0, %v189_v8, %v191_v7 }
  0x80   : > { %v193_v9 = vpop.permute.xlu0 %192 }
  0x81   : > { %v195_v10 = vpop.permute.xlu1 %194  ;;  %v200_v11 = vsel %vm198_vm0, %v191_v7, %v193_v9 }
  0x82   : > { %211 = vmatprep.subr.bf16.mxu0 %v200_v11  ;;  %v201_v17 = vsel %vm198_vm0, %v193_v9, %v195_v10  ;;  %v1263_v11 = vld [vmem:[%s1498_s1 + $0x1c] sm:$0xf] }
  0x83   : > { %212 = vmatpush1.bf16.msra.mxu0 %v199_v12 }
  0x84   : > { %v197_v14 = vpop.permute.xlu0 %196  ;;  %300 = vmatprep.subr.bf16.mxu0 %v1353_v1 }
  0x85   : > { %v387_v15 = vpop.permute.xlu1 %386  ;;  %v202_v16 = vsel %vm198_vm0, %v195_v10, %v197_v14 }
  0x86   : > { %1244 = vmatmul.mubr.msk.bf16.vlgmr.msra.gmra.mrb[0].mxu0 %vm207_vm1, %v1238_v13  ;;  %252 = vmatprep.subr.bf16.mxu1 %v202_v16 }
  0x87   : > { %253 = vmatpush1.bf16.msra.mxu1 %v201_v17  ;;  %301 = vmatpush1.bf16.msra.mxu0 %v1355_v2 }
  0x88   : > { %v389_v18 = vpop.permute.xlu0 %388  ;;  %341 = vmatprep.subr.bf16.mxu1 %v1361_v4  ;;  %332 = vmatprep.mubr.bf16.mxu0 %v1308_v0 }
  0x89   : > { %v385_v19 = vpop.permute.xlu1 %384  ;;  %v396_v20 = vsel %vm394_vm2, %v387_v15, %v389_v18 }
  0x8a   : > { %1245 = vmatmul.mubr.msk.bf16.vlgmr.msra.gmra.mrb[0].mxu1 %vm207_vm1, %v1238_v13  ;;  %406 = vmatprep.subr.bf16.mxu0 %v396_v20  ;;  %v395_v24 = vsel %vm394_vm2, %v385_v19, %v387_v15  ;;  %v1266_v20 = vld [vmem:[%s1498_s1 + $0x20] sm:$0xf] }
  0x8b   : > { %342 = vmatpush1.bf16.msra.mxu1 %v1358_v3  ;;  %373 = vmatprep.mubr.bf16.mxu1 %v1308_v0 }
  0x8c   : > { %v391_v22 = vpop.permute.xlu0 %390 }
  0x8d   : > { %v393_v23 = vpop.permute.xlu1 %392  ;;  %v397_v28 = vsel %vm394_vm2, %v389_v18, %v391_v22 }
  0x8e   : > { %1246 = vmatmul.mubr.msk.bf16.vlgmr.msra.gmra.mrb[4].mxu0 %vm207_vm1, %v164_v21  ;;  %v398_v25 = vsel %vm394_vm2, %v391_v22, %v393_v23 }
  0x8f   : > { %407 = vmatpush1.bf16.msra.mxu0 %v395_v24  ;;  %447 = vmatprep.subr.bf16.mxu1 %v398_v25 }
  0x90   : > { %v497_v26 = vpop.permute.xlu0 %496  ;;  %438 = vmatprep.mubr.bf16.mxu0 %v1308_v0 }
  0x91   : > { %v499_v27 = vpop.permute.xlu1 %498 }
  0x92   : > { %1247 = vmatmul.mubr.msk.bf16.vlgmr.msra.gmra.mrb[4].mxu1 %vm207_vm1, %v164_v21  ;;  %v506_v29 = vsel %vm504_vm3, %v497_v26, %v499_v27 }
  0x93   : > { %448 = vmatpush1.bf16.msra.mxu1 %v397_v28  ;;  %516 = vmatprep.subr.bf16.mxu0 %v506_v29 }
  0x94   : > { %v495_v31 = vpop.permute.xlu0 %494  ;;  %479 = vmatprep.mubr.bf16.mxu1 %v1308_v0 }
  0x95   : > { %v505_v32 = vsel %vm504_vm3, %v495_v31, %v497_v26  ;;  %v501_v33 = vpop.permute.xlu1 %500 }
  0x96   : > { %1249 = vmatmul.mubr.msk.bf16.vlgmr.msra.gmra.mrb[8].mxu0 %vm207_vm1, %v1248_v30  ;;  %v507_v37 = vsel %vm504_vm3, %v499_v27, %v501_v33 }
  0x97   : > { %517 = vmatpush1.bf16.msra.mxu0 %v505_v32  ;;  %548 = vmatprep.mubr.bf16.mxu0 %v1308_v0 }
  0x98   : > { %v503_v34 = vpop.permute.xlu0 %502 }
  0x99   : > { %v607_v35 = vpop.permute.xlu1 %606  ;;  %v508_v36 = vsel %vm504_vm3, %v501_v33, %v503_v34 }
  0x9a   : > { %1250 = vmatmul.mubr.msk.bf16.vlgmr.msra.gmra.mrb[8].mxu1 %vm207_vm1, %v1248_v30  ;;  %557 = vmatprep.subr.bf16.mxu1 %v508_v36 }
  0x9b   : > { %558 = vmatpush1.bf16.msra.mxu1 %v507_v37  ;;  %589 = vmatprep.mubr.bf16.mxu1 %v1308_v0 }
  0x9c   : > { %v609_v39 = vpop.permute.xlu0 %608 }
  0x9d   : > { %v605_v40 = vpop.permute.xlu1 %604  ;;  %v616_v41 = vsel %vm614_vm4, %v607_v35, %v609_v39 }
  0x9e   : > { %v615_v42 = vsel %vm614_vm4, %v605_v40, %v607_v35  ;;  %1252 = vmatmul.mubr.msk.bf16.vlgmr.msra.gmra.mrb[12].mxu0 %vm207_vm1, %v1251_v38  ;;  %626 = vmatprep.subr.bf16.mxu0 %v616_v41 }
  0x9f   : > { %627 = vmatpush1.bf16.msra.mxu0 %v615_v42  ;;  %658 = vmatprep.mubr.bf16.mxu0 %v1308_v0 }
  0xa0   : > { %v611_v43 = vpop.permute.xlu0 %610 }
  0xa1   : > { %v617_v44 = vsel %vm614_vm4, %v609_v39, %v611_v43  ;;  %v613_v45 = vpop.permute.xlu1 %612 }
  0xa2   : > { %1253 = vmatmul.mubr.msk.bf16.vlgmr.msra.gmra.mrb[12].mxu1 %vm207_vm1, %v1251_v38  ;;  %v618_v46 = vsel %vm614_vm4, %v611_v43, %v613_v45 }
  0xa3   : > { %667 = vmatprep.subr.bf16.mxu1 %v618_v46  ;;  %699 = vmatprep.mubr.bf16.mxu1 %v1308_v0 }
  0xa4   : > { %668 = vmatpush1.bf16.msra.mxu1 %v617_v44  ;;  %v717_v48 = vpop.permute.xlu0 %716 }
  0xa5   : > { %v719_v49 = vpop.permute.xlu1 %718 }
  0xa6   : > { %1255 = vmatmul.mubr.msk.bf16.vlgmr.msra.gmra.mrb[16].mxu0 %vm207_vm1, %v1254_v47  ;;  %v726_v50 = vsel %vm724_vm5, %v717_v48, %v719_v49 }
  0xa7   : > { %736 = vmatprep.subr.bf16.mxu0 %v726_v50  ;;  %768 = vmatprep.mubr.bf16.mxu0 %v1308_v0 }
  0xa8   : > { %v715_v51 = vpop.permute.xlu0 %714 }
  0xa9   : > { %v725_v52 = vsel %vm724_vm5, %v715_v51, %v717_v48  ;;  %v721_v53 = vpop.permute.xlu1 %720 }
  0xaa   : > { %1256 = vmatmul.mubr.msk.bf16.vlgmr.msra.gmra.mrb[16].mxu1 %vm207_vm1, %v1254_v47  ;;  %737 = vmatpush1.bf16.msra.mxu0 %v725_v52  ;;  %v727_v58 = vsel %vm724_vm5, %v719_v49, %v721_v53 }
  0xab   : > { %809 = vmatprep.mubr.bf16.mxu1 %v1308_v0 }
  0xac   : > { %v723_v55 = vpop.permute.xlu0 %722 }
  0xad   : > { %v827_v56 = vpop.permute.xlu1 %826  ;;  %v728_v57 = vsel %vm724_vm5, %v721_v53, %v723_v55 }
  0xae   : > { %1258 = vmatmul.mubr.msk.bf16.vlgmr.msra.gmra.mrb[20].mxu0 %vm207_vm1, %v1257_v54  ;;  %777 = vmatprep.subr.bf16.mxu1 %v728_v57 }
  0xaf   : > { %778 = vmatpush1.bf16.msra.mxu1 %v727_v58  ;;  %878 = vmatprep.mubr.bf16.mxu0 %v1308_v0 }
  0xb0   : > { %v829_v59 = vpop.permute.xlu0 %828 }
  0xb1   : > { %v825_v60 = vpop.permute.xlu1 %824  ;;  %v836_v61 = vsel %vm834_vm6, %v827_v56, %v829_v59 }
  0xb2   : > { %v835_v62 = vsel %vm834_vm6, %v825_v60, %v827_v56  ;;  %1259 = vmatmul.mubr.msk.bf16.vlgmr.msra.gmra.mrb[20].mxu1 %vm207_vm1, %v1257_v54  ;;  %846 = vmatprep.subr.bf16.mxu0 %v836_v61 }
  0xb3   : > { %847 = vmatpush1.bf16.msra.mxu0 %v835_v62  ;;  %919 = vmatprep.mubr.bf16.mxu1 %v1308_v0 }
  0xb4   : > { %v831_v1 = vpop.permute.xlu0 %830 }
  0xb5   : > { %v837_v2 = vsel %vm834_vm6, %v829_v59, %v831_v1  ;;  %v833_v3 = vpop.permute.xlu1 %832 }
  0xb6   : > { %1261 = vmatmul.mubr.msk.bf16.vlgmr.msra.gmra.mrb[24].mxu0 %vm207_vm1, %v1260_v63  ;;  %v838_v4 = vsel %vm834_vm6, %v831_v1, %v833_v3 }
  0xb7   : > { %887 = vmatprep.subr.bf16.mxu1 %v838_v4  ;;  %988 = vmatprep.mubr.bf16.mxu0 %v1308_v0 }
  0xb8   : > { %888 = vmatpush1.bf16.msra.mxu1 %v837_v2  ;;  %v937_v5 = vpop.permute.xlu0 %936 }
  0xb9   : > { %v939_v6 = vpop.permute.xlu1 %938 }
  0xba   : > { %v946_v7 = vsel %vm944_vm7, %v937_v5, %v939_v6 }
  0xbb   : > { %1262 = vmatmul.mubr.msk.bf16.vlgmr.msra.gmra.mrb[24].mxu1 %vm207_vm1, %v1260_v63  ;;  %956 = vmatprep.subr.bf16.mxu0 %v946_v7 }
  0xbc   : > { %v935_v8 = vpop.permute.xlu0 %934  ;;  %1029 = vmatprep.mubr.bf16.mxu1 %v1308_v0 }
  0xbd   : > { %v945_v9 = vsel %vm944_vm7, %v935_v8, %v937_v5  ;;  %v941_v10 = vpop.permute.xlu1 %940 }
  0xbe   : > { %957 = vmatpush1.bf16.msra.mxu0 %v945_v9  ;;  %v947_v15 = vsel %vm944_vm7, %v939_v6, %v941_v10 }
  0xc0   : > { %v943_v12 = vpop.permute.xlu0 %942 }
  0xc1   : > { %v1047_v13 = vpop.permute.xlu1 %1046  ;;  %1264 = vmatmul.mubr.msk.bf16.vlgmr.msra.gmra.mrb[28].mxu0 %vm207_vm1, %v1263_v11  ;;  %v948_v14 = vsel %vm944_vm7, %v941_v10, %v943_v12 }
  0xc2   : > { %997 = vmatprep.subr.bf16.mxu1 %v948_v14  ;;  %1098 = vmatprep.mubr.bf16.mxu0 %v1308_v0 }
  0xc3   : > { %998 = vmatpush1.bf16.msra.mxu1 %v947_v15 }
  0xc4   : > { %v1049_v16 = vpop.permute.xlu0 %1048 }
  0xc5   : > { %v1045_v17 = vpop.permute.xlu1 %1044  ;;  %v1056_v18 = vsel %vm1054_vm8, %v1047_v13, %v1049_v16 }
  0xc6   : > { %v1055_v19 = vsel %vm1054_vm8, %v1045_v17, %v1047_v13  ;;  %1265 = vmatmul.mubr.msk.bf16.vlgmr.msra.gmra.mrb[28].mxu1 %vm207_vm1, %v1263_v11  ;;  %1066 = vmatprep.subr.bf16.mxu0 %v1056_v18 }
  0xc7   : > { %1067 = vmatpush1.bf16.msra.mxu0 %v1055_v19  ;;  %1139 = vmatprep.mubr.bf16.mxu1 %v1308_v0 }
  0xc8   : > { %v1051_v21 = vpop.permute.xlu0 %1050 }
  0xc9   : > { %v1057_v22 = vsel %vm1054_vm8, %v1049_v16, %v1051_v21  ;;  %v1053_v23 = vpop.permute.xlu1 %1052 }
  0xca   : > { %1267 = vmatmul.mubr.msk.bf16.vlgmr.msra.gmra.mrb[32].mxu0 %vm207_vm1, %v1266_v20  ;;  %v1058_v24 = vsel %vm1054_vm8, %v1051_v21, %v1053_v23 }
  0xcb   : > { %1107 = vmatprep.subr.bf16.mxu1 %v1058_v24 }
  0xcc   : > { %1108 = vmatpush1.bf16.msra.mxu1 %v1057_v22 }
  0xcf   : > { %1268 = vmatmul.mubr.msk.bf16.vlgmr.msra.gmra.mrb[32].mxu1 %vm207_vm1, %v1266_v20 }
 0x159   : > { %v245_v25 = vpop.f32.mrb[0].mxu0 }
 0x15a   : > { %v247_v26 = vpop.f32.mrb[1].mxu0 }
 0x15b   : > { %v249_v27 = vpop.f32.mrb[2].mxu0 }
 0x15c   : > { %v250_v28 = vpop.f32.mrb[3].mxu0 }
 0x15d   : > { %v286_v29 = vpop.f32.mrb[0].mxu1 }
 0x15e   : > { %v288_v30 = vpop.f32.mrb[1].mxu1 }
 0x15f   : > { %v290_v31 = vpop.f32.mrb[2].mxu1 }
 0x160   : > { %v291_v0 = vpop.f32.mrb[3].mxu1 }
 0x161   : > { %v334_v32 = vpop.f32.mrb[4].mxu0 }
 0x162   : > { %v335_v33 = vadd.f32 %v334_v32, %v245_v25  ;;  %v336_v34 = vpop.f32.mrb[5].mxu0 }
 0x163   : > { %v337_v35 = vadd.f32 %v336_v34, %v247_v26  ;;  %v338_v36 = vpop.f32.mrb[6].mxu0 }
 0x164   : > { %v339_v37 = vpop.f32.mrb[7].mxu0 }
 0x165   : > { %v375_v38 = vpop.f32.mrb[4].mxu1 }
 0x166   : > { %v376_v39 = vadd.f32 %v375_v38, %v286_v29  ;;  %v377_v40 = vpop.f32.mrb[5].mxu1 }
 0x167   : > { %v378_v41 = vadd.f32 %v377_v40, %v288_v30  ;;  %v379_v42 = vpop.f32.mrb[6].mxu1 }
 0x168   : > { %v380_v43 = vpop.f32.mrb[7].mxu1 }
 0x169   : > { %v440_v44 = vpop.f32.mrb[8].mxu0 }
 0x16a   : > { %v488_v45 = vadd.f32 %v440_v44, %v335_v33  ;;  %v442_v46 = vpop.f32.mrb[9].mxu0 }
 0x16b   : > { %v489_v47 = vadd.f32 %v442_v46, %v337_v35  ;;  %v444_v48 = vpop.f32.mrb[10].mxu0 }
 0x16c   : > { %v445_v49 = vpop.f32.mrb[11].mxu0 }
 0x16d   : > { %v481_v50 = vpop.f32.mrb[8].mxu1 }
 0x16e   : > { %v490_v51 = vadd.f32 %v481_v50, %v376_v39  ;;  %v483_v52 = vpop.f32.mrb[9].mxu1 }
 0x16f   : > { %v491_v53 = vadd.f32 %v483_v52, %v378_v41  ;;  %v485_v54 = vpop.f32.mrb[10].mxu1 }
 0x170   : > { %v486_v55 = vpop.f32.mrb[11].mxu1 }
 0x171   : > { %v550_v56 = vpop.f32.mrb[12].mxu0 }
 0x172   : > { %v598_v57 = vadd.f32 %v550_v56, %v488_v45  ;;  %v552_v58 = vpop.f32.mrb[13].mxu0 }
 0x173   : > { %v599_v59 = vadd.f32 %v552_v58, %v489_v47  ;;  %v554_v60 = vpop.f32.mrb[14].mxu0 }
 0x174   : > { %v555_v61 = vpop.f32.mrb[15].mxu0 }
 0x175   : > { %v591_v62 = vpop.f32.mrb[12].mxu1 }
 0x176   : > { %v600_v63 = vadd.f32 %v591_v62, %v490_v51  ;;  %v593_v1 = vpop.f32.mrb[13].mxu1 }
 0x177   : > { %v601_v2 = vadd.f32 %v593_v1, %v491_v53  ;;  %v595_v3 = vpop.f32.mrb[14].mxu1  ;;  %v1156_v53 = vpop.permute.xlu0 %1155 }
 0x178   : > { %v596_v4 = vpop.f32.mrb[15].mxu1 }
 0x179   : > { %v660_v5 = vpop.f32.mrb[16].mxu0 }
 0x17a   : > { %v708_v6 = vadd.f32 %v660_v5, %v598_v57  ;;  %v662_v7 = vpop.f32.mrb[17].mxu0 }
 0x17b   : > { %v709_v8 = vadd.f32 %v662_v7, %v599_v59  ;;  %v664_v9 = vpop.f32.mrb[18].mxu0 }
 0x17c   : > { %v665_v10 = vpop.f32.mrb[19].mxu0 }
 0x17d   : > { %v701_v11 = vpop.f32.mrb[16].mxu1 }
 0x17e   : > { %v710_v12 = vadd.f32 %v701_v11, %v600_v63  ;;  %v703_v13 = vpop.f32.mrb[17].mxu1 }
 0x17f   : > { %v711_v14 = vadd.f32 %v703_v13, %v601_v2  ;;  %v705_v15 = vpop.f32.mrb[18].mxu1 }
 0x180   : > { %v706_v16 = vpop.f32.mrb[19].mxu1 }
 0x181   : > { %v770_v17 = vpop.f32.mrb[20].mxu0 }
 0x182   : > { %v818_v18 = vadd.f32 %v770_v17, %v708_v6  ;;  %v772_v19 = vpop.f32.mrb[21].mxu0 }
 0x183   : > { %v819_v20 = vadd.f32 %v772_v19, %v709_v8  ;;  %v774_v21 = vpop.f32.mrb[22].mxu0 }
 0x184   : > { %v775_v22 = vpop.f32.mrb[23].mxu0 }
 0x185   : > { %v811_v23 = vpop.f32.mrb[20].mxu1 }
 0x186   : > { %v820_v24 = vadd.f32 %v811_v23, %v710_v12  ;;  %v813_v25 = vpop.f32.mrb[21].mxu1 }
 0x187   : > { %v821_v26 = vadd.f32 %v813_v25, %v711_v14  ;;  %v815_v27 = vpop.f32.mrb[22].mxu1 }
 0x188   : > { %v816_v28 = vpop.f32.mrb[23].mxu1 }
 0x189   : > { %v880_v29 = vpop.f32.mrb[24].mxu0 }
 0x18a   : > { %v928_v30 = vadd.f32 %v880_v29, %v818_v18  ;;  %v882_v31 = vpop.f32.mrb[25].mxu0 }
 0x18b   : > { %v929_v0 = vadd.f32 %v882_v31, %v819_v20  ;;  %v884_v32 = vpop.f32.mrb[26].mxu0 }
 0x18c   : > { %v885_v33 = vpop.f32.mrb[27].mxu0 }
 0x18e   : > { %v921_v34 = vpop.f32.mrb[24].mxu1 }
 0x18f   : > { %v930_v35 = vadd.f32 %v921_v34, %v820_v24  ;;  %v923_v36 = vpop.f32.mrb[25].mxu1 }
 0x190   : > { %v931_v37 = vadd.f32 %v923_v36, %v821_v26  ;;  %v925_v38 = vpop.f32.mrb[26].mxu1 }
 0x191   : > { %v926_v39 = vpop.f32.mrb[27].mxu1 }
 0x194   : > { %v990_v40 = vpop.f32.mrb[28].mxu0 }
 0x195   : > { %v1038_v41 = vadd.f32 %v990_v40, %v928_v30  ;;  %v992_v42 = vpop.f32.mrb[29].mxu0 }
 0x196   : > { %v1039_v43 = vadd.f32 %v992_v42, %v929_v0  ;;  %v994_v44 = vpop.f32.mrb[30].mxu0 }
 0x197   : > { %v995_v45 = vpop.f32.mrb[31].mxu0 }
 0x199   : > { %v1031_v46 = vpop.f32.mrb[28].mxu1 }
 0x19a   : > { %v1040_v47 = vadd.f32 %v1031_v46, %v930_v35  ;;  %v1033_v48 = vpop.f32.mrb[29].mxu1 }
 0x19b   : > { %v1041_v49 = vadd.f32 %v1033_v48, %v931_v37  ;;  %v1035_v50 = vpop.f32.mrb[30].mxu1 }
 0x19c   : > { %v1036_v51 = vpop.f32.mrb[31].mxu1 }
 0x19d   : > { %v1100_v52 = vpop.f32.mrb[32].mxu0 }
 0x19e   : > { %v1148_v54 = vadd.f32 %v1100_v52, %v1038_v41  ;;  %v1102_v55 = vpop.f32.mrb[33].mxu0 }
 0x19f   : > { %v1149_v56 = vadd.f32 %v1102_v55, %v1039_v43  ;;  %v1104_v57 = vpop.f32.mrb[34].mxu0 }
 0x1a0   : > { %v1158_v58 = vadd.f32 %v1156_v53, %v1148_v54  ;;  %v1105_v59 = vpop.f32.mrb[35].mxu0 }
 0x1a1   : > { %v1159_v60 = vadd.f32 %v1156_v53, %v1149_v56 }
 0x1a2   : > { %v1162_v61 = vmax.f32 %v1158_v58, 0.0  ;;  %v1141_v62 = vpop.f32.mrb[32].mxu1 }
 0x1a3   : > { %v1163_v63 = vmax.f32 %v1159_v60, 0.0  ;;  %v1150_v1 = vadd.f32 %v1141_v62, %v1040_v47  ;;  %v1143_v2 = vpop.f32.mrb[33].mxu1 }
 0x1a4   : > { %v1151_v3 = vadd.f32 %v1143_v2, %v1041_v49  ;;  %v1145_v4 = vpop.f32.mrb[34].mxu1 }
 0x1a5   : > { %v1273_v5 = vpack.c.bf16 %v1163_v63, %v1162_v61  ;;  %v1160_v6 = vadd.f32 %v1156_v53, %v1150_v1  ;;  %v1146_v7 = vpop.f32.mrb[35].mxu1 }
 0x1a6   : > { %v1161_v8 = vadd.f32 %v1156_v53, %v1151_v3 }
 0x1a7   : > { %1182 = vst [vmem:[%s150_s26] sm:$0xff] %v1273_v5  ;;  %v1164_v9 = vmax.f32 %v1160_v6, 0.0 }
 0x1a8   : > { %v1165_v10 = vmax.f32 %v1161_v8, 0.0 }
 0x1aa   : > { %v1274_v11 = vpack.c.bf16 %v1165_v10, %v1164_v9 }
 0x1ac   : > { %1183 = vst [vmem:[%s150_s26 + $0x8] sm:$0xff] %v1274_v11 }
 0x1ad PF: > { %s13_s12 = sadd.s32 1, %s1306_s12  }
 0x1ae   : > { %p10_p4 = scmp.ge.s32.totalorder %s13_s12, 4  }
 0x1b0   :  { %12 = sbr.rel (!%p10_p4) target bundleno = 1 (0x1), region = 68 }

// kernel: network_forward.36
= control target key start
LH: loop header
LB: loop body
LE: loop exit
PB: predicated region body
PF: predicated region fallthrough
CT: control target
= control target key end

     0   :  { %vm46_vm0 = vcmask 1043456   ;;  %v319_v2 = vmov 0   ;;  %vm42_vm1 = vcmask 64512   ;;  %vm161_vm2 = vcmask 130048   ;;  %s398_s1 = inlined_call_operand.vmem [shape: bf16[8,512], index: 1, kind: input, shape index: {}]   ;;  %s399_s0 = inlined_call_operand.vmem [shape: bf16[16,512], index: 0, kind: input, shape index: {}]   ;;  %s400_s3 = inlined_call_operand.vmem [shape: bf16[8,8], index: 3, kind: input, shape index: {}]   ;;  %s401_s4 = inlined_call_operand.vmem [shape: f32[8,1], index: 4, kind: input, shape index: {}]   ;;  %s402_s2 = inlined_call_operand.vmem [shape: bf16[8,16], index: 2, kind: input, shape index: {}]   ;;  %s403_s5 = inlined_call_operand.vmem [shape: bf16[8,512], index: 5, kind: input, shape index: {}]   ;;  %s404_s6 = inlined_call_operand.vmem [shape: bf16[8,512], index: 6, kind: output, shape index: {}]  }
   0x1   :  { %v30_v0 = vld [vmem:[%s398_s1] sm:$0xff]  ;;  %v31_v1 = vld [vmem:[%s398_s1 + $0x8] sm:$0xff]  ;;  %91 = vmatprep.mubr.bf16.mxu0 %v319_v2  ;;  %132 = vmatprep.mubr.bf16.mxu1 %v319_v2 }
   0x2   :  { %v290_v3 = vcombine.high %v30_v0, %v30_v0  ;;  %v292_v4 = vcombine.high %v31_v1, %v31_v1  ;;  %v289_v5 = vcombine.low %v30_v0, %v30_v0  ;;  %v291_v6 = vcombine.low %v31_v1, %v31_v1  ;;  %308 = vset.pattern.permute.xlu0 %v319_v2  ;;  %v315_v7 = vld [vmem:[%s399_s0 + $0x4] ss:$16 sps:$4 sm:$0xff]   ;;  %v29_v10 = vld [vmem:[%s400_s3] sm:$0xf]  ;;  %v318_v11 = vld [vmem:[%s399_s0 + $0xc] ss:$16 sps:$4 sm:$0xff]  }
   0x3   :  { %v313_v12 = vld [vmem:[%s399_s0] ss:$16 sps:$4 sm:$0xff]   ;;  %v316_v13 = vld [vmem:[%s399_s0 + $0x8] ss:$16 sps:$4 sm:$0xff]  }
   0x4   :  { %293 = vmatprep.subr.msk.bf16.mxu0 %vm46_vm0, %v290_v3  ;;  %295 = vmatprep.subr.msk.bf16.mxu1 %vm46_vm0, %v292_v4  ;;  %v48_v8 = vsel %vm46_vm0, %v289_v5, 0  ;;  %v54_v9 = vsel %vm46_vm0, %v291_v6, 0  ;;  %v247_v14 = vld [vmem:[%s401_s4] sm:$0xff]  ;;  %v258_v25 = vld [vmem:[%s403_s5 + $0x8] sm:$0xff] }
   0x5   :  { %60 = vmatpush1.bf16.msra.mxu0 %v48_v8  ;;  %101 = vmatpush1.bf16.msra.mxu1 %v54_v9  ;;  %v24_v15 = vld [vmem:[%s402_s2] sm:$0xf]  ;;  %v261_v34 = vunpack.c.l.bf16 %v258_v25  ;;  %v262_v38 = vunpack.c.h.bf16 %v258_v25 }
   0x6   :  { %165 = vmatprep.subr.bf16.mxu0 %v315_v7  ;;  %206 = vmatprep.subr.bf16.mxu1 %v318_v11  ;;  %v257_v24 = vld [vmem:[%s403_s5] sm:$0xff] }
   0x7   :  { %250 = vperm.xlu0 %308, %v247_v14   ;;  %v259_v33 = vunpack.c.l.bf16 %v257_v24  ;;  %v260_v37 = vunpack.c.h.bf16 %v257_v24 }
   0x8   :  { %294 = vmatmul.mubr.msk.bf16.vlgmr.msra.gmra.mrb[0].mxu0 %vm42_vm1, %v29_v10  ;;  %296 = vmatmul.mubr.msk.bf16.vlgmr.msra.gmra.mrb[0].mxu1 %vm42_vm1, %v29_v10 }
   0x9   :  { %166 = vmatpush1.bf16.msra.mxu0 %v313_v12  ;;  %207 = vmatpush1.bf16.msra.mxu1 %v316_v13 }
   0xa   :  { %197 = vmatprep.mubr.bf16.mxu0 %v319_v2  ;;  %238 = vmatprep.mubr.bf16.mxu1 %v319_v2 }
  0x10   :  { %301 = vmatmul.mubr.msk.bf16.vlgmr.msra.gmra.mrb[4].mxu0 %vm161_vm2, %v24_v15  ;;  %302 = vmatmul.mubr.msk.bf16.vlgmr.msra.gmra.mrb[4].mxu1 %vm161_vm2, %v24_v15 }
  0x86   :  { %v251_v26 = vpop.permute.xlu0 %250 }
  0xdb   :  { %v93_v16 = vpop.f32.mrb[0].mxu0  ;;  %v134_v17 = vpop.f32.mrb[0].mxu1 }
  0xdc   :  { %v95_v18 = vpop.f32.mrb[1].mxu0  ;;  %v136_v19 = vpop.f32.mrb[1].mxu1 }
  0xdd   :  { %v97_v20 = vpop.f32.mrb[2].mxu0  ;;  %v138_v21 = vpop.f32.mrb[2].mxu1 }
  0xde   :  { %v98_v22 = vpop.f32.mrb[3].mxu0  ;;  %v139_v23 = vpop.f32.mrb[3].mxu1 }
  0xe3   :  { %v199_v27 = vpop.f32.mrb[4].mxu0  ;;  %v240_v28 = vpop.f32.mrb[4].mxu1 }
  0xe4   :  { %v200_v29 = vadd.f32 %v199_v27, %v93_v16  ;;  %v241_v30 = vadd.f32 %v240_v28, %v134_v17  ;;  %v201_v31 = vpop.f32.mrb[5].mxu0  ;;  %v242_v32 = vpop.f32.mrb[5].mxu1 }
  0xe5   :  { %v202_v35 = vadd.f32 %v201_v31, %v95_v18  ;;  %v243_v36 = vadd.f32 %v242_v32, %v136_v19  ;;  %v203_v39 = vpop.f32.mrb[6].mxu0  ;;  %v244_v40 = vpop.f32.mrb[6].mxu1 }
  0xe6   :  { %v253_v41 = vadd.f32 %v251_v26, %v200_v29  ;;  %v255_v42 = vadd.f32 %v251_v26, %v241_v30  ;;  %v204_v43 = vpop.f32.mrb[7].mxu0  ;;  %v245_v44 = vpop.f32.mrb[7].mxu1 }
  0xe7   :  { %v254_v45 = vadd.f32 %v251_v26, %v202_v35  ;;  %v256_v46 = vadd.f32 %v251_v26, %v243_v36 }
  0xe8   :  { %v263_v47 = vadd.f32 %v259_v33, %v253_v41  ;;  %v265_v48 = vadd.f32 %v261_v34, %v255_v42 }
  0xe9   :  { %v264_v49 = vadd.f32 %v260_v37, %v254_v45  ;;  %v266_v50 = vadd.f32 %v262_v38, %v256_v46 }
  0xeb   :  { %v305_v51 = vpack.c.bf16 %v264_v49, %v263_v47  ;;  %v306_v52 = vpack.c.bf16 %v266_v50, %v265_v48 }
  0xed   :  { %283 = vst [vmem:[%s404_s6] sm:$0xff] %v305_v51  ;;  %284 = vst [vmem:[%s404_s6 + $0x8] sm:$0xff] %v306_v52 }

// kernel: network_forward.37
= control target key start
LH: loop header
LB: loop body
LE: loop exit
PB: predicated region body
PF: predicated region fallthrough
CT: control target
= control target key end

     0   :  { %v654_v2 = vmov 0   ;;  %s655_s16 = smov 127   ;;  %vm46_vm0 = vcmask 1043456   ;;  %s656_s18 = smov 126   ;;  %vm42_vm1 = vcmask 64512   ;;  %vm39_vm2 = vcmask 1039360   ;;  %s759_s0 = inlined_call_operand.vmem [shape: bf16[8,278], index: 0, kind: input, shape index: {}]   ;;  %s760_s1 = inlined_call_operand.vmem [shape: bf16[9,8,8], index: 1, kind: input, shape index: {}]   ;;  %s761_s2 = inlined_call_operand.vmem [shape: f32[8,1], index: 2, kind: input, shape index: {}]   ;;  %s762_s3 = inlined_call_operand.vmem [shape: bf16[8,256], index: 3, kind: output, shape index: {}]  }
   0x1   :  { %v651_v0 = vld [vmem:[%s759_s0 + $0x8] ss:$0 sps:$4 sm:$0xff]   ;;  %v20_v1 = vld [vmem:[%s759_s0] sm:$0xff]  ;;  %85 = vmatprep.mubr.bf16.mxu0 %v654_v2  ;;  %135 = vmatprep.mubr.bf16.mxu1 %v654_v2  ;;  %s657_s19 = smov 118   ;;  %s658_s20 = smov 117   ;;  %vm152_vm3 = vcmask 1031168  }
   0x2   :  { %v611_v3 = vcombine.low %v20_v1, %v20_v1  ;;  %v612_v4 = vcombine.high %v20_v1, %v20_v1  ;;  %650 = vset.pattern.permute.xlu0 %v654_v2  ;;  %37 = vrot.lane.b32.xlu1 %v651_v0, %s655_s16  ;;  %v22_v6 = vld [vmem:[%s760_s1] sm:$0xf]  ;;  %s659_s21 = smov 116   ;;  %s660_s22 = smov 108   ;;  %v610_v16 = vld [vmem:[%s760_s1 + $0x4] sm:$0xf] }
   0x3   :  { %s661_s23 = smov 107   ;;  %s662_s24 = smov 106   ;;  %v585_v7 = vld [vmem:[%s761_s2] sm:$0xff]  ;;  %vm215_vm4 = vcmask 965632   ;;  %v618_v25 = vld [vmem:[%s760_s1 + $0x8] sm:$0xf] }
   0x4   :  { %33 = vrot.lane.b32.xlu0 %v611_v3, %s655_s16  ;;  %616 = vmatprep.subr.msk.bf16.mxu1 %vm46_vm0, %v612_v4  ;;  %v98_v5 = vsel %vm46_vm0, %v611_v3, 0  ;;  %vm278_vm5 = vcmask 957440   ;;  %v621_v30 = vld [vmem:[%s760_s1 + $0xc] sm:$0xf]  ;;  %v624_v36 = vld [vmem:[%s760_s1 + $0x10] sm:$0xf] }
   0x5   :  { %104 = vmatpush1.bf16.msra.mxu1 %v98_v5  ;;  %vm341_vm6 = vcmask 949248   ;;  %vm404_vm7 = vcmask 883712   ;;  %v627_v44 = vld [vmem:[%s760_s1 + $0x14] sm:$0xf]  ;;  %v630_v50 = vld [vmem:[%s760_s1 + $0x18] sm:$0xf] }
   0x6   :  { %146 = vrot.lane.b32.xlu1 %v611_v3, %s656_s18  ;;  %vm467_vm8 = vcmask 875520   ;;  %vm530_vm9 = vcmask 867328   ;;  %v633_v58 = vld [vmem:[%s760_s1 + $0x1c] sm:$0xf]  ;;  %v636_v63 = vld [vmem:[%s760_s1 + $0x20] sm:$0xf] }
   0x8   :  { %35 = vrot.lane.b32.xlu0 %v612_v4, %s655_s16  ;;  %617 = vmatmul.mubr.msk.bf16.vlgmr.msra.gmra.mrb[0].mxu1 %vm42_vm1, %v22_v6 }
   0x9   :  { %259 = vmatprep.mubr.bf16.mxu1 %v654_v2 }
   0xa   :  { %150 = vrot.lane.b32.xlu1 %v651_v0, %s656_s18 }
   0xc   :  { %148 = vrot.lane.b32.xlu0 %v612_v4, %s656_s18 }
   0xe   :  { %211 = vrot.lane.b32.xlu1 %v612_v4, %s657_s19 }
  0x10   :  { %209 = vrot.lane.b32.xlu0 %v611_v3, %s657_s19 }
  0x12   :  { %272 = vrot.lane.b32.xlu1 %v611_v3, %s658_s20 }
  0x14   :  { %213 = vrot.lane.b32.xlu0 %v651_v0, %s657_s19 }
  0x16   :  { %276 = vrot.lane.b32.xlu1 %v651_v0, %s658_s20 }
  0x18   :  { %274 = vrot.lane.b32.xlu0 %v612_v4, %s658_s20 }
  0x1a   :  { %337 = vrot.lane.b32.xlu1 %v612_v4, %s659_s21 }
  0x1c   :  { %335 = vrot.lane.b32.xlu0 %v611_v3, %s659_s21 }
  0x1e   :  { %398 = vrot.lane.b32.xlu1 %v611_v3, %s660_s22 }
  0x20   :  { %339 = vrot.lane.b32.xlu0 %v651_v0, %s659_s21 }
  0x22   :  { %402 = vrot.lane.b32.xlu1 %v651_v0, %s660_s22 }
  0x24   :  { %400 = vrot.lane.b32.xlu0 %v612_v4, %s660_s22 }
  0x26   :  { %463 = vrot.lane.b32.xlu1 %v612_v4, %s661_s23 }
  0x28   :  { %461 = vrot.lane.b32.xlu0 %v611_v3, %s661_s23 }
  0x2a   :  { %524 = vrot.lane.b32.xlu1 %v611_v3, %s662_s24 }
  0x2c   :  { %465 = vrot.lane.b32.xlu0 %v651_v0, %s661_s23 }
  0x2e   :  { %528 = vrot.lane.b32.xlu1 %v651_v0, %s662_s24 }
  0x30   :  { %526 = vrot.lane.b32.xlu0 %v612_v4, %s662_s24 }
  0x34   :  { %588 = vperm.xlu0 %650, %v585_v7  }
  0x74   :  { %v38_v8 = vpop.permute.xlu1 %37 }
  0x76   :  { %v34_v9 = vpop.permute.xlu0 %33 }
  0x78   :  { %v147_v10 = vpop.permute.xlu1 %146 }
  0x7a   :  { %v36_v11 = vpop.permute.xlu0 %35 }
  0x7b   :  { %v41_v12 = vsel %vm39_vm2, %v36_v11, %v38_v8  ;;  %v40_v13 = vsel %vm39_vm2, %v34_v9, %v36_v11 }
  0x7c   :  { %614 = vmatprep.subr.msk.bf16.mxu0 %vm46_vm0, %v41_v12  ;;  %v48_v14 = vsel %vm46_vm0, %v40_v13, 0  ;;  %v151_v15 = vpop.permute.xlu1 %150 }
  0x7d   :  { %54 = vmatpush1.bf16.msra.mxu0 %v48_v14 }
  0x7e   :  { %v149_v17 = vpop.permute.xlu0 %148 }
  0x7f   :  { %v153_v18 = vsel %vm152_vm3, %v147_v10, %v149_v17  ;;  %v154_v19 = vsel %vm152_vm3, %v149_v17, %v151_v15 }
  0x80   :  { %v159_v20 = vsel %vm46_vm0, %v153_v18, 0  ;;  %619 = vmatprep.subr.msk.bf16.mxu0 %vm46_vm0, %v154_v19  ;;  %615 = vmatmul.mubr.msk.bf16.vlgmr.msra.gmra.mrb[0].mxu0 %vm42_vm1, %v610_v16  ;;  %v212_v21 = vpop.permute.xlu1 %211 }
  0x81   :  { %165 = vmatpush1.bf16.msra.mxu0 %v159_v20  ;;  %196 = vmatprep.mubr.bf16.mxu0 %v654_v2 }
  0x82   :  { %v210_v22 = vpop.permute.xlu0 %209 }
  0x83   :  { %v216_v23 = vsel %vm215_vm4, %v210_v22, %v212_v21 }
  0x84   :  { %v273_v24 = vpop.permute.xlu1 %272  ;;  %v222_v28 = vsel %vm46_vm0, %v216_v23, 0 }
  0x86   :  { %v214_v26 = vpop.permute.xlu0 %213 }
  0x87   :  { %v217_v27 = vsel %vm215_vm4, %v212_v21, %v214_v26 }
  0x88   :  { %622 = vmatprep.subr.msk.bf16.mxu1 %vm46_vm0, %v217_v27  ;;  %620 = vmatmul.mubr.msk.bf16.vlgmr.msra.gmra.mrb[4].mxu0 %vm42_vm1, %v618_v25  ;;  %v277_v29 = vpop.permute.xlu1 %276 }
  0x89   :  { %228 = vmatpush1.bf16.msra.mxu1 %v222_v28  ;;  %322 = vmatprep.mubr.bf16.mxu0 %v654_v2 }
  0x8a   :  { %v275_v31 = vpop.permute.xlu0 %274 }
  0x8b   :  { %v279_v32 = vsel %vm278_vm5, %v273_v24, %v275_v31  ;;  %v280_v33 = vsel %vm278_vm5, %v275_v31, %v277_v29 }
  0x8c   :  { %v285_v34 = vsel %vm46_vm0, %v279_v32, 0  ;;  %625 = vmatprep.subr.msk.bf16.mxu0 %vm46_vm0, %v280_v33  ;;  %623 = vmatmul.mubr.msk.bf16.vlgmr.msra.gmra.mrb[4].mxu1 %vm42_vm1, %v621_v30  ;;  %v338_v35 = vpop.permute.xlu1 %337 }
  0x8d   :  { %291 = vmatpush1.bf16.msra.mxu0 %v285_v34  ;;  %385 = vmatprep.mubr.bf16.mxu1 %v654_v2 }
  0x8e   :  { %v336_v37 = vpop.permute.xlu0 %335 }
  0x8f   :  { %v342_v38 = vsel %vm341_vm6, %v336_v37, %v338_v35 }
  0x90   :  { %626 = vmatmul.mubr.msk.bf16.vlgmr.msra.gmra.mrb[8].mxu0 %vm42_vm1, %v624_v36  ;;  %v399_v39 = vpop.permute.xlu1 %398  ;;  %v348_v42 = vsel %vm46_vm0, %v342_v38, 0 }
  0x91   :  { %448 = vmatprep.mubr.bf16.mxu0 %v654_v2 }
  0x92   :  { %v340_v40 = vpop.permute.xlu0 %339 }
  0x93   :  { %v343_v41 = vsel %vm341_vm6, %v338_v35, %v340_v40 }
  0x94   :  { %628 = vmatprep.subr.msk.bf16.mxu1 %vm46_vm0, %v343_v41  ;;  %v403_v43 = vpop.permute.xlu1 %402 }
  0x95   :  { %354 = vmatpush1.bf16.msra.mxu1 %v348_v42 }
  0x96   :  { %v401_v45 = vpop.permute.xlu0 %400 }
  0x97   :  { %v405_v46 = vsel %vm404_vm7, %v399_v39, %v401_v45  ;;  %v406_v47 = vsel %vm404_vm7, %v401_v45, %v403_v43 }
  0x98   :  { %v411_v48 = vsel %vm46_vm0, %v405_v46, 0  ;;  %629 = vmatmul.mubr.msk.bf16.vlgmr.msra.gmra.mrb[8].mxu1 %vm42_vm1, %v627_v44  ;;  %631 = vmatprep.subr.msk.bf16.mxu0 %vm46_vm0, %v406_v47  ;;  %v464_v49 = vpop.permute.xlu1 %463 }
  0x99   :  { %417 = vmatpush1.bf16.msra.mxu0 %v411_v48  ;;  %511 = vmatprep.mubr.bf16.mxu1 %v654_v2 }
  0x9a   :  { %v462_v51 = vpop.permute.xlu0 %461 }
  0x9b   :  { %v468_v52 = vsel %vm467_vm8, %v462_v51, %v464_v49 }
  0x9c   :  { %632 = vmatmul.mubr.msk.bf16.vlgmr.msra.gmra.mrb[12].mxu0 %vm42_vm1, %v630_v50  ;;  %v525_v53 = vpop.permute.xlu1 %524  ;;  %v474_v56 = vsel %vm46_vm0, %v468_v52, 0 }
  0x9d   :  { %574 = vmatprep.mubr.bf16.mxu0 %v654_v2 }
  0x9e   :  { %v466_v54 = vpop.permute.xlu0 %465 }
  0x9f   :  { %v469_v55 = vsel %vm467_vm8, %v464_v49, %v466_v54 }
  0xa0   :  { %634 = vmatprep.subr.msk.bf16.mxu1 %vm46_vm0, %v469_v55  ;;  %v529_v57 = vpop.permute.xlu1 %528 }
  0xa1   :  { %480 = vmatpush1.bf16.msra.mxu1 %v474_v56 }
  0xa2   :  { %v527_v59 = vpop.permute.xlu0 %526 }
  0xa3   :  { %v531_v60 = vsel %vm530_vm9, %v525_v53, %v527_v59  ;;  %v532_v61 = vsel %vm530_vm9, %v527_v59, %v529_v57 }
  0xa4   :  { %v537_v62 = vsel %vm46_vm0, %v531_v60, 0  ;;  %635 = vmatmul.mubr.msk.bf16.vlgmr.msra.gmra.mrb[12].mxu1 %vm42_vm1, %v633_v58  ;;  %637 = vmatprep.subr.msk.bf16.mxu0 %vm46_vm0, %v532_v61 }
  0xa5   :  { %543 = vmatpush1.bf16.msra.mxu0 %v537_v62 }
  0xa8   :  { %638 = vmatmul.mubr.msk.bf16.vlgmr.msra.gmra.mrb[16].mxu0 %vm42_vm1, %v636_v63 }
  0xb3   :  { %v589_v47 = vpop.permute.xlu0 %588 }
  0xdb   :  { %v137_v0 = vpop.f32.mrb[0].mxu1 }
  0xdc   :  { %v139_v1 = vpop.f32.mrb[1].mxu1 }
  0xdd   :  { %v141_v2 = vpop.f32.mrb[2].mxu1 }
  0xde   :  { %v142_v3 = vpop.f32.mrb[3].mxu1 }
 0x153   :  { %v87_v4 = vpop.f32.mrb[0].mxu0 }
 0x154   :  { %v89_v5 = vpop.f32.mrb[1].mxu0  ;;  %v138_v6 = vadd.f32 %v137_v0, %v87_v4 }
 0x155   :  { %v91_v7 = vpop.f32.mrb[2].mxu0  ;;  %v140_v8 = vadd.f32 %v139_v1, %v89_v5 }
 0x156   :  { %v92_v9 = vpop.f32.mrb[3].mxu0 }
 0x15b   :  { %v198_v10 = vpop.f32.mrb[4].mxu0 }
 0x15c   :  { %v205_v11 = vadd.f32 %v198_v10, %v138_v6  ;;  %v200_v12 = vpop.f32.mrb[5].mxu0 }
 0x15d   :  { %v206_v13 = vadd.f32 %v200_v12, %v140_v8  ;;  %v202_v14 = vpop.f32.mrb[6].mxu0 }
 0x15e   :  { %v203_v15 = vpop.f32.mrb[7].mxu0 }
 0x15f   :  { %v261_v16 = vpop.f32.mrb[4].mxu1 }
 0x160   :  { %v268_v17 = vadd.f32 %v261_v16, %v205_v11  ;;  %v263_v18 = vpop.f32.mrb[5].mxu1 }
 0x161   :  { %v269_v19 = vadd.f32 %v263_v18, %v206_v13  ;;  %v265_v20 = vpop.f32.mrb[6].mxu1 }
 0x162   :  { %v266_v21 = vpop.f32.mrb[7].mxu1 }
 0x163   :  { %v324_v22 = vpop.f32.mrb[8].mxu0 }
 0x164   :  { %v331_v23 = vadd.f32 %v324_v22, %v268_v17  ;;  %v326_v24 = vpop.f32.mrb[9].mxu0 }
 0x165   :  { %v332_v25 = vadd.f32 %v326_v24, %v269_v19  ;;  %v328_v26 = vpop.f32.mrb[10].mxu0 }
 0x166   :  { %v329_v27 = vpop.f32.mrb[11].mxu0 }
 0x16b   :  { %v387_v28 = vpop.f32.mrb[8].mxu1 }
 0x16c   :  { %v394_v29 = vadd.f32 %v387_v28, %v331_v23  ;;  %v389_v30 = vpop.f32.mrb[9].mxu1 }
 0x16d   :  { %v395_v31 = vadd.f32 %v389_v30, %v332_v25  ;;  %v391_v32 = vpop.f32.mrb[10].mxu1 }
 0x16e   :  { %v392_v33 = vpop.f32.mrb[11].mxu1 }
 0x16f   :  { %v450_v34 = vpop.f32.mrb[12].mxu0 }
 0x170   :  { %v457_v35 = vadd.f32 %v450_v34, %v394_v29  ;;  %v452_v36 = vpop.f32.mrb[13].mxu0 }
 0x171   :  { %v458_v37 = vadd.f32 %v452_v36, %v395_v31  ;;  %v454_v38 = vpop.f32.mrb[14].mxu0 }
 0x172   :  { %v455_v39 = vpop.f32.mrb[15].mxu0 }
 0x177   :  { %v513_v40 = vpop.f32.mrb[12].mxu1 }
 0x178   :  { %v520_v41 = vadd.f32 %v513_v40, %v457_v35  ;;  %v515_v42 = vpop.f32.mrb[13].mxu1 }
 0x179   :  { %v521_v43 = vadd.f32 %v515_v42, %v458_v37  ;;  %v517_v44 = vpop.f32.mrb[14].mxu1 }
 0x17a   :  { %v518_v45 = vpop.f32.mrb[15].mxu1 }
 0x17b   :  { %v576_v46 = vpop.f32.mrb[16].mxu0 }
 0x17c   :  { %v583_v48 = vadd.f32 %v576_v46, %v520_v41  ;;  %v578_v49 = vpop.f32.mrb[17].mxu0 }
 0x17d   :  { %v584_v50 = vadd.f32 %v578_v49, %v521_v43  ;;  %v580_v51 = vpop.f32.mrb[18].mxu0 }
 0x17e   :  { %v591_v52 = vadd.f32 %v589_v47, %v583_v48  ;;  %v581_v53 = vpop.f32.mrb[19].mxu0 }
 0x17f   :  { %v592_v54 = vadd.f32 %v589_v47, %v584_v50 }
 0x180   :  { %v593_v55 = vmax.f32 %v591_v52, 0.0 }
 0x181   :  { %v594_v56 = vmax.f32 %v592_v54, 0.0 }
 0x183   :  { %v640_v57 = vpack.c.bf16 %v594_v56, %v593_v55 }
 0x185   :  { %603 = vst [vmem:[%s762_s3] sm:$0xff] %v640_v57 }

// kernel: network_forward.39
= control target key start
LH: loop header
LB: loop body
LE: loop exit
PB: predicated region body
PF: predicated region fallthrough
CT: control target
= control target key end

     0   :  { %vm33_vm0 = vcmask 1043456   ;;  %v167_v0 = vmov 0.0   ;;  %vm168_vm1 = vmmov 0   ;;  %vm29_vm2 = vcmask 64512   ;;  %s226_s1 = inlined_call_operand.vmem [shape: bf16[8,128], index: 1, kind: input, shape index: {}]   ;;  %s227_s0 = inlined_call_operand.vmem [shape: bf16[16,128], index: 0, kind: input, shape index: {}]   ;;  %s228_s3 = inlined_call_operand.vmem [shape: bf16[8,8], index: 3, kind: input, shape index: {}]   ;;  %s229_s4 = inlined_call_operand.vmem [shape: f32[8,1], index: 4, kind: input, shape index: {}]   ;;  %s230_s2 = inlined_call_operand.vmem [shape: bf16[8,16], index: 2, kind: input, shape index: {}]   ;;  %s231_s5 = inlined_call_operand.vmem [shape: bf16[8,128], index: 5, kind: input, shape index: {}]   ;;  %s232_s6 = inlined_call_operand.vmem [shape: bf16[8,128], index: 6, kind: output, shape index: {}]  }
   0x1   :  { %150 = vmatprep.subr.bf16.mxu0 %v167_v0  ;;  %v28_v1 = vld [vmem:[%s226_s1] sm:$0xf]  ;;  %156 = vmatprep.subr.bf16.mxu1 %v167_v0  ;;  %vm83_vm3 = vcmask 130048   ;;  %v169_v7 = vmov 0  }
   0x2   :  { %v35_v2 = vsel %vm33_vm0, %v28_v1, 0  ;;  %v166_v3 = vld [vmem:[%s227_s0] sm:$0xff]   ;;  %152 = vmatprep.mubr.msk.bf16.mxu0 %vm168_vm1, %v167_v0  ;;  %158 = vmatprep.mubr.msk.bf16.mxu1 %vm168_vm1, %v167_v0 }
   0x3   :  { %151 = vmatpush3.bf16.msra.mxu0 %v35_v2  ;;  %v27_v4 = vld [vmem:[%s228_s3] sm:$0xf]  ;;  %157 = vmatpush3.bf16.msra.mxu1 %v166_v3 }
   0x4   :  { %v127_v5 = vld [vmem:[%s229_s4] sm:$0xff]  ;;  %165 = vset.pattern.permute.xlu0 %v169_v7 }
   0x5   :  { %v24_v6 = vld [vmem:[%s230_s2] sm:$0xf]  ;;  %130 = vperm.xlu0 %165, %v127_v5  }
   0x6   :  { %153 = vmatmul.mubr.msk.bf16.vlgmr.msra.gmra.mrb[0].mxu0 %vm29_vm2, %v27_v4  ;;  %159 = vmatmul.mubr.msk.bf16.vlgmr.msra.gmra.mrb[0].mxu1 %vm83_vm3, %v24_v6  ;;  %v134_v8 = vld [vmem:[%s231_s5] sm:$0xf] }
   0x7   :  { %v135_v16 = vunpack.c.l.bf16 %v134_v8 }
  0x84   :  { %v131_v10 = vpop.permute.xlu0 %130 }
  0xd9   :  { %v71_v9 = vpop.f32.mrb[0].mxu0  ;;  %v121_v12 = vpop.f32.mrb[0].mxu1 }
  0xda   :  { %v154_v11 = vpop.f32.mrb[1].mxu0  ;;  %v122_v13 = vadd.f32 %v121_v12, %v71_v9  ;;  %v160_v15 = vpop.f32.mrb[1].mxu1 }
  0xdb   :  { %v74_v14 = vpop.f32.mrb[2].mxu0  ;;  %v124_v18 = vpop.f32.mrb[2].mxu1 }
  0xdc   :  { %v155_v17 = vpop.f32.mrb[3].mxu0  ;;  %v133_v19 = vadd.f32 %v131_v10, %v122_v13  ;;  %v161_v20 = vpop.f32.mrb[3].mxu1 }
  0xde   :  { %v136_v21 = vadd.f32 %v135_v16, %v133_v19 }
  0xe0   :  { %v137_v22 = vpack.c.bf16 %v136_v21, %v136_v21 }
  0xe2   :  { %138 = vst [vmem:[%s232_s6] sm:$0xf] %v137_v22 }

// kernel: network_forward.38
= control target key start
LH: loop header
LB: loop body
LE: loop exit
PB: predicated region body
PF: predicated region fallthrough
CT: control target
= control target key end

     0   :  { %v616_v1 = vmov 0   ;;  %s617_s16 = smov 127   ;;  %vm51_vm0 = vcmask 130048   ;;  %s618_s21 = smov 126   ;;  %vm46_vm1 = vcmask 1039360   ;;  %vm150_vm2 = vcmask 1031168   ;;  %s706_s0 = inlined_call_operand.vmem [shape: bf16[16,278], index: 0, kind: input, shape index: {}]   ;;  %s707_s1 = inlined_call_operand.vmem [shape: bf16[9,8,16], index: 1, kind: input, shape index: {}]   ;;  %s708_s2 = inlined_call_operand.vmem [shape: f32[8,1], index: 2, kind: input, shape index: {}]   ;;  %s709_s3 = inlined_call_operand.vmem [shape: bf16[8,256], index: 3, kind: output, shape index: {}]  }
   0x1   :  { %v612_v0 = vld [vmem:[%s706_s0 + $0x4] ss:$12 sps:$4 sm:$0xff]   ;;  %87 = vmatprep.mubr.bf16.mxu0 %v616_v1  ;;  %133 = vmatprep.mubr.bf16.mxu1 %v616_v1  ;;  %v614_v2 = vld [vmem:[%s706_s0] ss:$12 sps:$4 sm:$0xff]   ;;  %v615_v3 = vld [vmem:[%s706_s0 + $0x8] ss:$12 sps:$4 sm:$0xff]  }
   0x2   :  { %611 = vset.pattern.permute.xlu0 %v616_v1  ;;  %101 = vmatprep.subr.bf16.mxu1 %v612_v0  ;;  %v24_v4 = vld [vmem:[%s707_s1] sm:$0xf]  ;;  %s619_s22 = smov 118   ;;  %s620_s0 = smov 117   ;;  %v580_v12 = vld [vmem:[%s707_s1 + $0x4] sm:$0xf] }
   0x3   :  { %42 = vrot.lane.b32.xlu0 %v612_v0, %s617_s16  ;;  %40 = vrot.lane.b32.xlu1 %v614_v2, %s617_s16  ;;  %s621_s23 = smov 116   ;;  %s622_s24 = smov 108   ;;  %v555_v5 = vld [vmem:[%s708_s2] sm:$0xff]  ;;  %vm209_vm3 = vcmask 965632   ;;  %v586_v20 = vld [vmem:[%s707_s1 + $0x8] sm:$0xf] }
   0x4   :  { %102 = vmatpush1.bf16.msra.mxu1 %v614_v2  ;;  %s623_s25 = smov 107   ;;  %s624_s26 = smov 106   ;;  %vm268_vm4 = vcmask 957440   ;;  %v588_v24 = vld [vmem:[%s707_s1 + $0xc] sm:$0xf]  ;;  %vm327_vm5 = vcmask 949248  }
   0x5   :  { %v590_v29 = vld [vmem:[%s707_s1 + $0x10] sm:$0xf]  ;;  %vm386_vm6 = vcmask 883712   ;;  %v592_v36 = vld [vmem:[%s707_s1 + $0x14] sm:$0xf]  ;;  %vm445_vm7 = vcmask 875520  }
   0x6   :  { %v594_v41 = vld [vmem:[%s707_s1 + $0x18] sm:$0xf]  ;;  %vm504_vm8 = vcmask 867328   ;;  %v596_v48 = vld [vmem:[%s707_s1 + $0x1c] sm:$0xf] }
   0x7   :  { %44 = vrot.lane.b32.xlu0 %v615_v3, %s617_s16  ;;  %585 = vmatmul.mubr.msk.bf16.vlgmr.msra.gmra.mrb[0].mxu1 %vm51_vm0, %v24_v4  ;;  %v598_v53 = vld [vmem:[%s707_s1 + $0x20] sm:$0xf] }
   0x8   :  { %146 = vrot.lane.b32.xlu1 %v612_v0, %s618_s21  ;;  %249 = vmatprep.mubr.bf16.mxu1 %v616_v1 }
   0xb   :  { %148 = vrot.lane.b32.xlu0 %v615_v3, %s618_s21 }
   0xc   :  { %144 = vrot.lane.b32.xlu1 %v614_v2, %s618_s21 }
   0xf   :  { %205 = vrot.lane.b32.xlu0 %v612_v0, %s619_s22 }
  0x10   :  { %207 = vrot.lane.b32.xlu1 %v615_v3, %s619_s22 }
  0x13   :  { %203 = vrot.lane.b32.xlu0 %v614_v2, %s619_s22 }
  0x14   :  { %264 = vrot.lane.b32.xlu1 %v612_v0, %s620_s0 }
  0x17   :  { %266 = vrot.lane.b32.xlu0 %v615_v3, %s620_s0 }
  0x18   :  { %262 = vrot.lane.b32.xlu1 %v614_v2, %s620_s0 }
  0x1b   :  { %323 = vrot.lane.b32.xlu0 %v612_v0, %s621_s23 }
  0x1c   :  { %325 = vrot.lane.b32.xlu1 %v615_v3, %s621_s23 }
  0x1f   :  { %321 = vrot.lane.b32.xlu0 %v614_v2, %s621_s23 }
  0x20   :  { %382 = vrot.lane.b32.xlu1 %v612_v0, %s622_s24 }
  0x23   :  { %384 = vrot.lane.b32.xlu0 %v615_v3, %s622_s24 }
  0x24   :  { %380 = vrot.lane.b32.xlu1 %v614_v2, %s622_s24 }
  0x27   :  { %441 = vrot.lane.b32.xlu0 %v612_v0, %s623_s25 }
  0x28   :  { %443 = vrot.lane.b32.xlu1 %v615_v3, %s623_s25 }
  0x2b   :  { %439 = vrot.lane.b32.xlu0 %v614_v2, %s623_s25 }
  0x2c   :  { %500 = vrot.lane.b32.xlu1 %v612_v0, %s624_s26 }
  0x2f   :  { %502 = vrot.lane.b32.xlu0 %v615_v3, %s624_s26 }
  0x30   :  { %498 = vrot.lane.b32.xlu1 %v614_v2, %s624_s26 }
  0x33   :  { %558 = vperm.xlu0 %611, %v555_v5  }
  0x75   :  { %v43_v6 = vpop.permute.xlu0 %42  ;;  %v41_v7 = vpop.permute.xlu1 %40 }
  0x76   :  { %v47_v11 = vsel %vm46_vm1, %v41_v7, %v43_v6 }
  0x79   :  { %v45_v8 = vpop.permute.xlu0 %44 }
  0x7a   :  { %v147_v9 = vpop.permute.xlu1 %146  ;;  %v48_v10 = vsel %vm46_vm1, %v43_v6, %v45_v8 }
  0x7b   :  { %55 = vmatprep.subr.bf16.mxu0 %v48_v10 }
  0x7c   :  { %56 = vmatpush1.bf16.msra.mxu0 %v47_v11 }
  0x7d   :  { %v149_v13 = vpop.permute.xlu0 %148 }
  0x7e   :  { %v145_v14 = vpop.permute.xlu1 %144  ;;  %v152_v15 = vsel %vm150_vm2, %v147_v9, %v149_v13 }
  0x7f   :  { %v151_v16 = vsel %vm150_vm2, %v145_v14, %v147_v9  ;;  %158 = vmatprep.subr.bf16.mxu0 %v152_v15  ;;  %584 = vmatmul.mubr.msk.bf16.vlgmr.msra.gmra.mrb[0].mxu0 %vm51_vm0, %v580_v12 }
  0x80   :  { %159 = vmatpush1.bf16.msra.mxu0 %v151_v16  ;;  %190 = vmatprep.mubr.bf16.mxu0 %v616_v1 }
  0x81   :  { %v206_v17 = vpop.permute.xlu0 %205 }
  0x82   :  { %v208_v18 = vpop.permute.xlu1 %207 }
  0x83   :  { %v211_v19 = vsel %vm209_vm3, %v206_v17, %v208_v18 }
  0x84   :  { %217 = vmatprep.subr.bf16.mxu1 %v211_v19 }
  0x85   :  { %v204_v21 = vpop.permute.xlu0 %203 }
  0x86   :  { %v210_v22 = vsel %vm209_vm3, %v204_v21, %v206_v17  ;;  %v265_v23 = vpop.permute.xlu1 %264 }
  0x87   :  { %218 = vmatpush1.bf16.msra.mxu1 %v210_v22  ;;  %587 = vmatmul.mubr.msk.bf16.vlgmr.msra.gmra.mrb[4].mxu0 %vm51_vm0, %v586_v20 }
  0x88   :  { %308 = vmatprep.mubr.bf16.mxu0 %v616_v1 }
  0x89   :  { %v267_v25 = vpop.permute.xlu0 %266 }
  0x8a   :  { %v263_v26 = vpop.permute.xlu1 %262  ;;  %v270_v27 = vsel %vm268_vm4, %v265_v23, %v267_v25  ;;  %589 = vmatmul.mubr.msk.bf16.vlgmr.msra.gmra.mrb[4].mxu1 %vm51_vm0, %v588_v24 }
  0x8b   :  { %v269_v28 = vsel %vm268_vm4, %v263_v26, %v265_v23  ;;  %276 = vmatprep.subr.bf16.mxu0 %v270_v27  ;;  %367 = vmatprep.mubr.bf16.mxu1 %v616_v1 }
  0x8c   :  { %277 = vmatpush1.bf16.msra.mxu0 %v269_v28 }
  0x8d   :  { %v324_v30 = vpop.permute.xlu0 %323 }
  0x8e   :  { %v326_v31 = vpop.permute.xlu1 %325 }
  0x8f   :  { %v329_v32 = vsel %vm327_vm5, %v324_v30, %v326_v31  ;;  %591 = vmatmul.mubr.msk.bf16.vlgmr.msra.gmra.mrb[8].mxu0 %vm51_vm0, %v590_v29 }
  0x90   :  { %335 = vmatprep.subr.bf16.mxu1 %v329_v32  ;;  %426 = vmatprep.mubr.bf16.mxu0 %v616_v1 }
  0x91   :  { %v322_v33 = vpop.permute.xlu0 %321 }
  0x92   :  { %v328_v34 = vsel %vm327_vm5, %v322_v33, %v324_v30  ;;  %v383_v35 = vpop.permute.xlu1 %382 }
  0x93   :  { %336 = vmatpush1.bf16.msra.mxu1 %v328_v34 }
  0x95   :  { %v385_v37 = vpop.permute.xlu0 %384 }
  0x96   :  { %v381_v38 = vpop.permute.xlu1 %380  ;;  %593 = vmatmul.mubr.msk.bf16.vlgmr.msra.gmra.mrb[8].mxu1 %vm51_vm0, %v592_v36  ;;  %v388_v39 = vsel %vm386_vm6, %v383_v35, %v385_v37 }
  0x97   :  { %v387_v40 = vsel %vm386_vm6, %v381_v38, %v383_v35  ;;  %394 = vmatprep.subr.bf16.mxu0 %v388_v39  ;;  %485 = vmatprep.mubr.bf16.mxu1 %v616_v1 }
  0x98   :  { %395 = vmatpush1.bf16.msra.mxu0 %v387_v40 }
  0x99   :  { %v442_v42 = vpop.permute.xlu0 %441 }
  0x9a   :  { %v444_v43 = vpop.permute.xlu1 %443 }
  0x9b   :  { %595 = vmatmul.mubr.msk.bf16.vlgmr.msra.gmra.mrb[12].mxu0 %vm51_vm0, %v594_v41  ;;  %v447_v44 = vsel %vm445_vm7, %v442_v42, %v444_v43 }
  0x9c   :  { %453 = vmatprep.subr.bf16.mxu1 %v447_v44  ;;  %544 = vmatprep.mubr.bf16.mxu0 %v616_v1 }
  0x9d   :  { %v440_v45 = vpop.permute.xlu0 %439 }
  0x9e   :  { %v446_v46 = vsel %vm445_vm7, %v440_v45, %v442_v42  ;;  %v501_v47 = vpop.permute.xlu1 %500 }
  0x9f   :  { %454 = vmatpush1.bf16.msra.mxu1 %v446_v46 }
  0xa1   :  { %v503_v49 = vpop.permute.xlu0 %502 }
  0xa2   :  { %v499_v50 = vpop.permute.xlu1 %498  ;;  %597 = vmatmul.mubr.msk.bf16.vlgmr.msra.gmra.mrb[12].mxu1 %vm51_vm0, %v596_v48  ;;  %v506_v51 = vsel %vm504_vm8, %v501_v47, %v503_v49 }
  0xa3   :  { %v505_v52 = vsel %vm504_vm8, %v499_v50, %v501_v47  ;;  %512 = vmatprep.subr.bf16.mxu0 %v506_v51 }
  0xa4   :  { %513 = vmatpush1.bf16.msra.mxu0 %v505_v52 }
  0xa7   :  { %599 = vmatmul.mubr.msk.bf16.vlgmr.msra.gmra.mrb[16].mxu0 %vm51_vm0, %v598_v53 }
  0xb2   :  { %v559_v37 = vpop.permute.xlu0 %558 }
  0xda   :  { %v135_v54 = vpop.f32.mrb[0].mxu1 }
  0xdb   :  { %v137_v55 = vpop.f32.mrb[1].mxu1 }
  0xdc   :  { %v139_v56 = vpop.f32.mrb[2].mxu1 }
  0xdd   :  { %v140_v57 = vpop.f32.mrb[3].mxu1 }
 0x152   :  { %v89_v58 = vpop.f32.mrb[0].mxu0 }
 0x153   :  { %v91_v59 = vpop.f32.mrb[1].mxu0  ;;  %v136_v60 = vadd.f32 %v135_v54, %v89_v58 }
 0x154   :  { %v93_v61 = vpop.f32.mrb[2].mxu0  ;;  %v138_v62 = vadd.f32 %v137_v55, %v91_v59 }
 0x155   :  { %v94_v63 = vpop.f32.mrb[3].mxu0 }
 0x15a   :  { %v192_v0 = vpop.f32.mrb[4].mxu0 }
 0x15b   :  { %v199_v1 = vadd.f32 %v192_v0, %v136_v60  ;;  %v194_v2 = vpop.f32.mrb[5].mxu0 }
 0x15c   :  { %v200_v3 = vadd.f32 %v194_v2, %v138_v62  ;;  %v196_v4 = vpop.f32.mrb[6].mxu0 }
 0x15d   :  { %v251_v5 = vpop.f32.mrb[4].mxu1  ;;  %v197_v6 = vpop.f32.mrb[7].mxu0 }
 0x15e   :  { %v258_v7 = vadd.f32 %v251_v5, %v199_v1  ;;  %v253_v8 = vpop.f32.mrb[5].mxu1 }
 0x15f   :  { %v259_v9 = vadd.f32 %v253_v8, %v200_v3  ;;  %v255_v10 = vpop.f32.mrb[6].mxu1 }
 0x160   :  { %v256_v11 = vpop.f32.mrb[7].mxu1 }
 0x162   :  { %v310_v12 = vpop.f32.mrb[8].mxu0 }
 0x163   :  { %v317_v13 = vadd.f32 %v310_v12, %v258_v7  ;;  %v312_v14 = vpop.f32.mrb[9].mxu0 }
 0x164   :  { %v318_v15 = vadd.f32 %v312_v14, %v259_v9  ;;  %v314_v16 = vpop.f32.mrb[10].mxu0 }
 0x165   :  { %v315_v17 = vpop.f32.mrb[11].mxu0 }
 0x169   :  { %v369_v18 = vpop.f32.mrb[8].mxu1 }
 0x16a   :  { %v376_v19 = vadd.f32 %v369_v18, %v317_v13  ;;  %v371_v20 = vpop.f32.mrb[9].mxu1 }
 0x16b   :  { %v377_v21 = vadd.f32 %v371_v20, %v318_v15  ;;  %v373_v22 = vpop.f32.mrb[10].mxu1 }
 0x16c   :  { %v374_v23 = vpop.f32.mrb[11].mxu1 }
 0x16e   :  { %v428_v24 = vpop.f32.mrb[12].mxu0 }
 0x16f   :  { %v435_v25 = vadd.f32 %v428_v24, %v376_v19  ;;  %v430_v26 = vpop.f32.mrb[13].mxu0 }
 0x170   :  { %v436_v27 = vadd.f32 %v430_v26, %v377_v21  ;;  %v432_v28 = vpop.f32.mrb[14].mxu0 }
 0x171   :  { %v433_v29 = vpop.f32.mrb[15].mxu0 }
 0x175   :  { %v487_v30 = vpop.f32.mrb[12].mxu1 }
 0x176   :  { %v494_v31 = vadd.f32 %v487_v30, %v435_v25  ;;  %v489_v32 = vpop.f32.mrb[13].mxu1 }
 0x177   :  { %v495_v33 = vadd.f32 %v489_v32, %v436_v27  ;;  %v491_v34 = vpop.f32.mrb[14].mxu1 }
 0x178   :  { %v492_v35 = vpop.f32.mrb[15].mxu1 }
 0x17a   :  { %v546_v36 = vpop.f32.mrb[16].mxu0 }
 0x17b   :  { %v553_v38 = vadd.f32 %v546_v36, %v494_v31  ;;  %v548_v39 = vpop.f32.mrb[17].mxu0 }
 0x17c   :  { %v554_v40 = vadd.f32 %v548_v39, %v495_v33  ;;  %v550_v41 = vpop.f32.mrb[18].mxu0 }
 0x17d   :  { %v561_v42 = vadd.f32 %v559_v37, %v553_v38  ;;  %v551_v43 = vpop.f32.mrb[19].mxu0 }
 0x17e   :  { %v562_v44 = vadd.f32 %v559_v37, %v554_v40 }
 0x17f   :  { %v563_v45 = vmax.f32 %v561_v42, 0.0 }
 0x180   :  { %v564_v46 = vmax.f32 %v562_v44, 0.0 }
 0x182   :  { %v601_v47 = vpack.c.bf16 %v564_v46, %v563_v45 }
 0x184   :  { %573 = vst [vmem:[%s709_s3] sm:$0xff] %v601_v47 }

// kernel: network_forward.40
= control target key start
LH: loop header
LB: loop body
LE: loop exit
PB: predicated region body
PF: predicated region fallthrough
CT: control target
= control target key end

     0   :  { %vm39_vm0 = vcmask 1043456   ;;  %v635_v1 = vmov 0.0   ;;  %vm636_vm1 = vmmov 0   ;;  %vm35_vm2 = vcmask 64512   ;;  %s638_s16 = smov 127   ;;  %s639_s17 = smov 122   ;;  %s747_s0 = inlined_call_operand.vmem [shape: bf16[8,142], index: 0, kind: input, shape index: {}]   ;;  %s748_s1 = inlined_call_operand.vmem [shape: bf16[9,8,8], index: 1, kind: input, shape index: {}]   ;;  %s749_s2 = inlined_call_operand.vmem [shape: f32[8,1], index: 2, kind: input, shape index: {}]   ;;  %s750_s3 = inlined_call_operand.vmem [shape: bf16[8,128], index: 3, kind: output, shape index: {}]  }
   0x1   :  { %v20_v0 = vld [vmem:[%s747_s0] sm:$0xff]  ;;  %567 = vmatprep.subr.bf16.mxu0 %v635_v1  ;;  %573 = vmatprep.subr.bf16.mxu1 %v635_v1  ;;  %s637_s0 = smov 126   ;;  %s640_s18 = smov 121   ;;  %v645_v6 = vmov 0   ;;  %vm135_vm3 = vcmask 1031168   ;;  %vm33_vm4 = vcmask 1039360  }
   0x2   :  { %v531_v2 = vcombine.low %v20_v0, %v20_v0  ;;  %v87_v3 = vsel %vm39_vm0, %v20_v0, 0  ;;  %569 = vmatprep.mubr.msk.bf16.mxu0 %vm636_vm1, %v635_v1  ;;  %575 = vmatprep.mubr.msk.bf16.mxu1 %vm636_vm1, %v635_v1  ;;  %v21_v4 = vld [vmem:[%s748_s1] sm:$0xf]  ;;  %v532_v5 = vcombine.high %v20_v0, %v20_v0  ;;  %s641_s19 = smov 120   ;;  %s642_s20 = smov 116   ;;  %vm190_vm5 = vcmask 998400  }
   0x3   :  { %574 = vmatpush3.bf16.msra.mxu1 %v87_v3  ;;  %s643_s21 = smov 115   ;;  %s644_s22 = smov 114   ;;  %632 = vset.pattern.permute.xlu0 %v645_v6  ;;  %v514_v7 = vld [vmem:[%s749_s2] sm:$0xff]  ;;  %vm245_vm6 = vcmask 990208   ;;  %v537_v21 = vld [vmem:[%s748_s1 + $0xc] sm:$0xf] }
   0x4   :  { %131 = vrot.lane.b32.xlu1 %v531_v2, %s637_s0  ;;  %29 = vrot.lane.b32.xlu0 %v531_v2, %s638_s16  ;;  %v530_v15 = vld [vmem:[%s748_s1 + $0x4] sm:$0xf]  ;;  %vm300_vm7 = vcmask 982016   ;;  %v535_v25 = vld [vmem:[%s748_s1 + $0x8] sm:$0xf]  ;;  %vm355_vm8 = vcmask 949248  }
   0x5   :  { %585 = vmatprep.subr.bf16.mxu1 %v635_v1  ;;  %v541_v31 = vld [vmem:[%s748_s1 + $0x14] sm:$0xf]  ;;  %vm410_vm9 = vcmask 941056   ;;  %v539_v35 = vld [vmem:[%s748_s1 + $0x10] sm:$0xf]  ;;  %vm465_vm10 = vcmask 932864  }
   0x6   :  { %576 = vmatmul.mubr.msk.bf16.vlgmr.msra.gmra.mrb[0].mxu1 %vm35_vm2, %v21_v4  ;;  %v545_v41 = vld [vmem:[%s748_s1 + $0x1c] sm:$0xf]  ;;  %v543_v45 = vld [vmem:[%s748_s1 + $0x18] sm:$0xf]  ;;  %v547_v47 = vld [vmem:[%s748_s1 + $0x20] sm:$0xf] }
   0x7   :  { %587 = vmatprep.mubr.msk.bf16.mxu1 %vm636_vm1, %v635_v1 }
   0x8   :  { %133 = vrot.lane.b32.xlu1 %v532_v5, %s637_s0  ;;  %31 = vrot.lane.b32.xlu0 %v532_v5, %s638_s16 }
   0xc   :  { %188 = vrot.lane.b32.xlu1 %v532_v5, %s639_s17  ;;  %186 = vrot.lane.b32.xlu0 %v531_v2, %s639_s17 }
  0x10   :  { %243 = vrot.lane.b32.xlu1 %v532_v5, %s640_s18  ;;  %241 = vrot.lane.b32.xlu0 %v531_v2, %s640_s18 }
  0x14   :  { %298 = vrot.lane.b32.xlu1 %v532_v5, %s641_s19  ;;  %296 = vrot.lane.b32.xlu0 %v531_v2, %s641_s19 }
  0x18   :  { %353 = vrot.lane.b32.xlu1 %v532_v5, %s642_s20  ;;  %351 = vrot.lane.b32.xlu0 %v531_v2, %s642_s20 }
  0x1c   :  { %408 = vrot.lane.b32.xlu1 %v532_v5, %s643_s21  ;;  %406 = vrot.lane.b32.xlu0 %v531_v2, %s643_s21 }
  0x20   :  { %463 = vrot.lane.b32.xlu1 %v532_v5, %s644_s22  ;;  %461 = vrot.lane.b32.xlu0 %v531_v2, %s644_s22 }
  0x24   :  { %517 = vperm.xlu0 %632, %v514_v7  }
  0x76   :  { %v132_v8 = vpop.permute.xlu1 %131  ;;  %v30_v9 = vpop.permute.xlu0 %29 }
  0x7a   :  { %v134_v10 = vpop.permute.xlu1 %133  ;;  %v32_v11 = vpop.permute.xlu0 %31 }
  0x7b   :  { %v136_v12 = vsel %vm135_vm3, %v132_v8, %v134_v10  ;;  %v34_v13 = vsel %vm33_vm4, %v30_v9, %v32_v11 }
  0x7c   :  { %v41_v14 = vsel %vm39_vm0, %v34_v13, 0  ;;  %v141_v16 = vsel %vm39_vm0, %v136_v12, 0 }
  0x7d   :  { %568 = vmatpush3.bf16.msra.mxu0 %v41_v14 }
  0x7e   :  { %579 = vmatprep.subr.bf16.mxu0 %v635_v1  ;;  %v189_v17 = vpop.permute.xlu1 %188  ;;  %v187_v18 = vpop.permute.xlu0 %186 }
  0x7f   :  { %v191_v19 = vsel %vm190_vm5, %v187_v18, %v189_v17 }
  0x80   :  { %570 = vmatmul.mubr.msk.bf16.vlgmr.msra.gmra.mrb[0].mxu0 %vm35_vm2, %v530_v15  ;;  %v196_v20 = vsel %vm39_vm0, %v191_v19, 0 }
  0x81   :  { %580 = vmatpush3.bf16.msra.mxu0 %v141_v16  ;;  %586 = vmatpush3.bf16.msra.mxu1 %v196_v20 }
  0x82   :  { %v244_v22 = vpop.permute.xlu1 %243  ;;  %v242_v23 = vpop.permute.xlu0 %241  ;;  %581 = vmatprep.mubr.msk.bf16.mxu0 %vm636_vm1, %v635_v1  ;;  %591 = vmatprep.subr.bf16.mxu0 %v635_v1 }
  0x83   :  { %v246_v24 = vsel %vm245_vm6, %v242_v23, %v244_v22  ;;  %597 = vmatprep.subr.bf16.mxu1 %v635_v1 }
  0x84   :  { %588 = vmatmul.mubr.msk.bf16.vlgmr.msra.gmra.mrb[4].mxu1 %vm35_vm2, %v537_v21  ;;  %v251_v26 = vsel %vm39_vm0, %v246_v24, 0 }
  0x85   :  { %599 = vmatprep.mubr.msk.bf16.mxu1 %vm636_vm1, %v635_v1 }
  0x86   :  { %v299_v27 = vpop.permute.xlu1 %298  ;;  %v297_v28 = vpop.permute.xlu0 %296 }
  0x87   :  { %v301_v29 = vsel %vm300_vm7, %v297_v28, %v299_v27 }
  0x88   :  { %582 = vmatmul.mubr.msk.bf16.vlgmr.msra.gmra.mrb[4].mxu0 %vm35_vm2, %v535_v25  ;;  %v306_v30 = vsel %vm39_vm0, %v301_v29, 0 }
  0x89   :  { %592 = vmatpush3.bf16.msra.mxu0 %v251_v26  ;;  %598 = vmatpush3.bf16.msra.mxu1 %v306_v30 }
  0x8a   :  { %v354_v32 = vpop.permute.xlu1 %353  ;;  %v352_v33 = vpop.permute.xlu0 %351  ;;  %593 = vmatprep.mubr.msk.bf16.mxu0 %vm636_vm1, %v635_v1  ;;  %603 = vmatprep.subr.bf16.mxu0 %v635_v1 }
  0x8b   :  { %v356_v34 = vsel %vm355_vm8, %v352_v33, %v354_v32  ;;  %609 = vmatprep.subr.bf16.mxu1 %v635_v1 }
  0x8c   :  { %600 = vmatmul.mubr.msk.bf16.vlgmr.msra.gmra.mrb[8].mxu1 %vm35_vm2, %v541_v31  ;;  %v361_v36 = vsel %vm39_vm0, %v356_v34, 0 }
  0x8d   :  { %611 = vmatprep.mubr.msk.bf16.mxu1 %vm636_vm1, %v635_v1 }
  0x8e   :  { %v409_v37 = vpop.permute.xlu1 %408  ;;  %v407_v38 = vpop.permute.xlu0 %406 }
  0x8f   :  { %v411_v39 = vsel %vm410_vm9, %v407_v38, %v409_v37 }
  0x90   :  { %594 = vmatmul.mubr.msk.bf16.vlgmr.msra.gmra.mrb[8].mxu0 %vm35_vm2, %v539_v35  ;;  %v416_v40 = vsel %vm39_vm0, %v411_v39, 0 }
  0x91   :  { %604 = vmatpush3.bf16.msra.mxu0 %v361_v36  ;;  %610 = vmatpush3.bf16.msra.mxu1 %v416_v40 }
  0x92   :  { %v464_v42 = vpop.permute.xlu1 %463  ;;  %v462_v43 = vpop.permute.xlu0 %461  ;;  %605 = vmatprep.mubr.msk.bf16.mxu0 %vm636_vm1, %v635_v1  ;;  %615 = vmatprep.subr.bf16.mxu0 %v635_v1 }
  0x93   :  { %v466_v44 = vsel %vm465_vm10, %v462_v43, %v464_v42 }
  0x94   :  { %612 = vmatmul.mubr.msk.bf16.vlgmr.msra.gmra.mrb[12].mxu1 %vm35_vm2, %v545_v41  ;;  %v471_v46 = vsel %vm39_vm0, %v466_v44, 0 }
  0x98   :  { %606 = vmatmul.mubr.msk.bf16.vlgmr.msra.gmra.mrb[12].mxu0 %vm35_vm2, %v543_v45 }
  0x99   :  { %616 = vmatpush3.bf16.msra.mxu0 %v471_v46  ;;  %617 = vmatprep.mubr.msk.bf16.mxu0 %vm636_vm1, %v635_v1 }
  0xa0   :  { %618 = vmatmul.mubr.msk.bf16.vlgmr.msra.gmra.mrb[16].mxu0 %vm35_vm2, %v547_v47 }
  0xa3   :  { %v518_v24 = vpop.permute.xlu0 %517 }
  0xd9   :  { %v123_v48 = vpop.f32.mrb[0].mxu1 }
  0xda   :  { %v577_v49 = vpop.f32.mrb[1].mxu1 }
  0xdb   :  { %v126_v50 = vpop.f32.mrb[2].mxu1 }
  0xdc   :  { %v578_v51 = vpop.f32.mrb[3].mxu1 }
 0x153   :  { %v77_v52 = vpop.f32.mrb[0].mxu0 }
 0x154   :  { %v571_v53 = vpop.f32.mrb[1].mxu0  ;;  %v124_v54 = vadd.f32 %v123_v48, %v77_v52 }
 0x155   :  { %v80_v55 = vpop.f32.mrb[2].mxu0 }
 0x156   :  { %v572_v56 = vpop.f32.mrb[3].mxu0 }
 0x157   :  { %v232_v57 = vpop.f32.mrb[4].mxu1 }
 0x158   :  { %v589_v58 = vpop.f32.mrb[5].mxu1 }
 0x159   :  { %v235_v59 = vpop.f32.mrb[6].mxu1 }
 0x15a   :  { %v590_v60 = vpop.f32.mrb[7].mxu1 }
 0x15b   :  { %v177_v61 = vpop.f32.mrb[4].mxu0 }
 0x15c   :  { %v183_v62 = vadd.f32 %v177_v61, %v124_v54  ;;  %v583_v63 = vpop.f32.mrb[5].mxu0 }
 0x15d   :  { %v180_v0 = vpop.f32.mrb[6].mxu0 }
 0x15e   :  { %v238_v1 = vadd.f32 %v232_v57, %v183_v62  ;;  %v584_v2 = vpop.f32.mrb[7].mxu0 }
 0x15f   :  { %v342_v3 = vpop.f32.mrb[8].mxu1 }
 0x160   :  { %v601_v4 = vpop.f32.mrb[9].mxu1 }
 0x161   :  { %v345_v5 = vpop.f32.mrb[10].mxu1 }
 0x162   :  { %v602_v6 = vpop.f32.mrb[11].mxu1 }
 0x163   :  { %v287_v7 = vpop.f32.mrb[8].mxu0 }
 0x164   :  { %v293_v8 = vadd.f32 %v287_v7, %v238_v1  ;;  %v595_v9 = vpop.f32.mrb[9].mxu0 }
 0x165   :  { %v290_v10 = vpop.f32.mrb[10].mxu0 }
 0x166   :  { %v348_v11 = vadd.f32 %v342_v3, %v293_v8  ;;  %v596_v12 = vpop.f32.mrb[11].mxu0 }
 0x167   :  { %v452_v13 = vpop.f32.mrb[12].mxu1 }
 0x168   :  { %v613_v14 = vpop.f32.mrb[13].mxu1 }
 0x169   :  { %v455_v15 = vpop.f32.mrb[14].mxu1 }
 0x16a   :  { %v614_v16 = vpop.f32.mrb[15].mxu1 }
 0x16b   :  { %v397_v17 = vpop.f32.mrb[12].mxu0 }
 0x16c   :  { %v403_v18 = vadd.f32 %v397_v17, %v348_v11  ;;  %v607_v19 = vpop.f32.mrb[13].mxu0 }
 0x16d   :  { %v400_v20 = vpop.f32.mrb[14].mxu0 }
 0x16e   :  { %v458_v21 = vadd.f32 %v452_v13, %v403_v18  ;;  %v608_v22 = vpop.f32.mrb[15].mxu0 }
 0x173   :  { %v507_v23 = vpop.f32.mrb[16].mxu0 }
 0x174   :  { %v513_v25 = vadd.f32 %v507_v23, %v458_v21  ;;  %v619_v26 = vpop.f32.mrb[17].mxu0 }
 0x175   :  { %v510_v27 = vpop.f32.mrb[18].mxu0 }
 0x176   :  { %v520_v28 = vadd.f32 %v518_v24, %v513_v25  ;;  %v620_v29 = vpop.f32.mrb[19].mxu0 }
 0x178   :  { %v521_v30 = vmax.f32 %v520_v28, 0.0 }
 0x17a   :  { %v522_v31 = vpack.c.bf16 %v521_v30, %v521_v30 }
 0x17c   :  { %523 = vst [vmem:[%s750_s3] sm:$0xf] %v522_v31 }

// kernel: network_forward.42
= control target key start
LH: loop header
LB: loop body
LE: loop exit
PB: predicated region body
PF: predicated region fallthrough
CT: control target
= control target key end

     0   :  { %vm33_vm0 = vcmask 1043456   ;;  %v168_v0 = vmov 0.0   ;;  %vm169_vm1 = vmmov 0   ;;  %vm29_vm2 = vcmask 64512   ;;  %s227_s1 = inlined_call_operand.vmem [shape: bf16[8,32], index: 1, kind: input, shape index: {}]   ;;  %s228_s0 = inlined_call_operand.vmem [shape: bf16[16,32], index: 0, kind: input, shape index: {}]   ;;  %s229_s3 = inlined_call_operand.vmem [shape: bf16[8,8], index: 3, kind: input, shape index: {}]   ;;  %s230_s4 = inlined_call_operand.vmem [shape: f32[8,1], index: 4, kind: input, shape index: {}]   ;;  %s231_s2 = inlined_call_operand.vmem [shape: bf16[8,16], index: 2, kind: input, shape index: {}]   ;;  %s232_s5 = inlined_call_operand.vmem [shape: bf16[8,32], index: 5, kind: input, shape index: {}]   ;;  %s233_s6 = inlined_call_operand.vmem [shape: bf16[8,32], index: 6, kind: output, shape index: {}]  }
   0x1   :  { %151 = vmatprep.subr.bf16.mxu0 %v168_v0  ;;  %v28_v1 = vld [vmem:[%s227_s1] sm:$0xf]  ;;  %157 = vmatprep.subr.bf16.mxu1 %v168_v0  ;;  %vm83_vm3 = vcmask 130048   ;;  %v170_v7 = vmov 0   ;;  %vm138_vm4 = vcmask 257024  }
   0x2   :  { %v35_v2 = vsel %vm33_vm0, %v28_v1, 0  ;;  %v167_v3 = vld [vmem:[%s228_s0] sm:$0xff]   ;;  %153 = vmatprep.mubr.msk.bf16.mxu0 %vm169_vm1, %v168_v0  ;;  %159 = vmatprep.mubr.msk.bf16.mxu1 %vm169_vm1, %v168_v0 }
   0x3   :  { %152 = vmatpush3.bf16.msra.mxu0 %v35_v2  ;;  %v27_v4 = vld [vmem:[%s229_s3] sm:$0xf]  ;;  %158 = vmatpush3.bf16.msra.mxu1 %v167_v3 }
   0x4   :  { %v127_v5 = vld [vmem:[%s230_s4] sm:$0xff]  ;;  %166 = vset.pattern.permute.xlu0 %v170_v7 }
   0x5   :  { %v24_v6 = vld [vmem:[%s231_s2] sm:$0xf]  ;;  %130 = vperm.xlu0 %166, %v127_v5  }
   0x6   :  { %154 = vmatmul.mubr.msk.bf16.vlgmr.msra.gmra.mrb[0].mxu0 %vm29_vm2, %v27_v4  ;;  %160 = vmatmul.mubr.msk.bf16.vlgmr.msra.gmra.mrb[0].mxu1 %vm83_vm3, %v24_v6  ;;  %v134_v8 = vld [vmem:[%s232_s5] sm:$0xf] }
   0x7   :  { %v135_v16 = vunpack.c.l.bf16 %v134_v8 }
  0x84   :  { %v131_v10 = vpop.permute.xlu0 %130 }
  0xd9   :  { %v71_v9 = vpop.f32.mrb[0].mxu0  ;;  %v121_v12 = vpop.f32.mrb[0].mxu1 }
  0xda   :  { %v155_v11 = vpop.f32.mrb[1].mxu0  ;;  %v122_v13 = vadd.f32 %v121_v12, %v71_v9  ;;  %v161_v15 = vpop.f32.mrb[1].mxu1 }
  0xdb   :  { %v74_v14 = vpop.f32.mrb[2].mxu0  ;;  %v124_v18 = vpop.f32.mrb[2].mxu1 }
  0xdc   :  { %v156_v17 = vpop.f32.mrb[3].mxu0  ;;  %v133_v19 = vadd.f32 %v131_v10, %v122_v13  ;;  %v162_v20 = vpop.f32.mrb[3].mxu1 }
  0xde   :  { %v136_v21 = vadd.f32 %v135_v16, %v133_v19 }
  0xe0   :  { %v137_v22 = vpack.c.bf16 %v136_v21, %v136_v21 }
  0xe2   :  { %139 = vst.msk [vmem:[%s233_s6] sm:$0xf] %vm138_vm4, %v137_v22 }

// kernel: network_forward.41
= control target key start
LH: loop header
LB: loop body
LE: loop exit
PB: predicated region body
PF: predicated region fallthrough
CT: control target
= control target key end

     0   :  { %v621_v1 = vmov 0.0   ;;  %vm622_vm0 = vmmov 0   ;;  %s623_s14 = smov 126   ;;  %s624_s15 = smov 127   ;;  %vm40_vm1 = vcmask 130048   ;;  %v631_v4 = vmov 0   ;;  %s727_s0 = inlined_call_operand.vmem [shape: bf16[16,142], index: 0, kind: input, shape index: {}]   ;;  %s728_s1 = inlined_call_operand.vmem [shape: bf16[9,8,16], index: 1, kind: input, shape index: {}]   ;;  %s729_s2 = inlined_call_operand.vmem [shape: f32[8,1], index: 2, kind: input, shape index: {}]   ;;  %s730_s3 = inlined_call_operand.vmem [shape: bf16[8,128], index: 3, kind: output, shape index: {}]  }
   0x1   :  { %v618_v0 = vld [vmem:[%s727_s0] ss:$8 sps:$4 sm:$0xff]   ;;  %552 = vmatprep.subr.bf16.mxu0 %v621_v1  ;;  %558 = vmatprep.subr.bf16.mxu1 %v621_v1  ;;  %v620_v2 = vld [vmem:[%s727_s0 + $0x4] ss:$8 sps:$4 sm:$0xff]   ;;  %s625_s20 = smov 122   ;;  %s626_s21 = smov 121  }
   0x2   :  { %554 = vmatprep.mubr.msk.bf16.mxu0 %vm622_vm0, %v621_v1  ;;  %560 = vmatprep.mubr.msk.bf16.mxu1 %vm622_vm0, %v621_v1  ;;  %v22_v3 = vld [vmem:[%s728_s1] sm:$0xf]  ;;  %s627_s0 = smov 120   ;;  %s628_s22 = smov 116   ;;  %vm37_vm2 = vcmask 1039360   ;;  %vm134_vm3 = vcmask 1031168  }
   0x3   :  { %130 = vrot.lane.b32.xlu1 %v618_v0, %s623_s14  ;;  %33 = vrot.lane.b32.xlu0 %v618_v0, %s624_s15  ;;  %s629_s23 = smov 115   ;;  %s630_s24 = smov 114   ;;  %v499_v5 = vld [vmem:[%s729_s2] sm:$0xff]  ;;  %vm187_vm4 = vcmask 998400   ;;  %v522_v16 = vld [vmem:[%s728_s1 + $0xc] sm:$0xf] }
   0x4   :  { %559 = vmatpush3.bf16.msra.mxu1 %v618_v0  ;;  %617 = vset.pattern.permute.xlu0 %v631_v4  ;;  %v515_v11 = vld [vmem:[%s728_s1 + $0x4] sm:$0xf]  ;;  %vm240_vm5 = vcmask 990208   ;;  %v520_v19 = vld [vmem:[%s728_s1 + $0x8] sm:$0xf]  ;;  %vm293_vm6 = vcmask 982016  }
   0x5   :  { %570 = vmatprep.subr.bf16.mxu1 %v621_v1  ;;  %v526_v24 = vld [vmem:[%s728_s1 + $0x14] sm:$0xf]  ;;  %vm346_vm7 = vcmask 949248   ;;  %v524_v27 = vld [vmem:[%s728_s1 + $0x10] sm:$0xf]  ;;  %vm399_vm8 = vcmask 941056  }
   0x6   :  { %v530_v32 = vld [vmem:[%s728_s1 + $0x1c] sm:$0xf]  ;;  %vm452_vm9 = vcmask 932864   ;;  %v528_v35 = vld [vmem:[%s728_s1 + $0x18] sm:$0xf] }
   0x7   :  { %132 = vrot.lane.b32.xlu1 %v620_v2, %s623_s14  ;;  %35 = vrot.lane.b32.xlu0 %v620_v2, %s624_s15  ;;  %v532_v37 = vld [vmem:[%s728_s1 + $0x20] sm:$0xf] }
   0x8   :  { %561 = vmatmul.mubr.msk.bf16.vlgmr.msra.gmra.mrb[0].mxu1 %vm40_vm1, %v22_v3 }
   0x9   :  { %572 = vmatprep.mubr.msk.bf16.mxu1 %vm622_vm0, %v621_v1 }
   0xb   :  { %185 = vrot.lane.b32.xlu1 %v620_v2, %s625_s20  ;;  %183 = vrot.lane.b32.xlu0 %v618_v0, %s625_s20 }
   0xf   :  { %238 = vrot.lane.b32.xlu1 %v620_v2, %s626_s21  ;;  %236 = vrot.lane.b32.xlu0 %v618_v0, %s626_s21 }
  0x13   :  { %291 = vrot.lane.b32.xlu1 %v620_v2, %s627_s0  ;;  %289 = vrot.lane.b32.xlu0 %v618_v0, %s627_s0 }
  0x17   :  { %344 = vrot.lane.b32.xlu1 %v620_v2, %s628_s22  ;;  %342 = vrot.lane.b32.xlu0 %v618_v0, %s628_s22 }
  0x1b   :  { %397 = vrot.lane.b32.xlu1 %v620_v2, %s629_s23  ;;  %395 = vrot.lane.b32.xlu0 %v618_v0, %s629_s23 }
  0x1f   :  { %450 = vrot.lane.b32.xlu1 %v620_v2, %s630_s24  ;;  %448 = vrot.lane.b32.xlu0 %v618_v0, %s630_s24 }
  0x23   :  { %502 = vperm.xlu0 %617, %v499_v5  }
  0x75   :  { %v131_v6 = vpop.permute.xlu1 %130  ;;  %v34_v7 = vpop.permute.xlu0 %33 }
  0x79   :  { %v133_v8 = vpop.permute.xlu1 %132  ;;  %v36_v9 = vpop.permute.xlu0 %35 }
  0x7a   :  { %v38_v10 = vsel %vm37_vm2, %v34_v7, %v36_v9  ;;  %v135_v12 = vsel %vm134_vm3, %v131_v6, %v133_v8 }
  0x7b   :  { %553 = vmatpush3.bf16.msra.mxu0 %v38_v10 }
  0x7c   :  { %564 = vmatprep.subr.bf16.mxu0 %v621_v1 }
  0x7d   :  { %v186_v13 = vpop.permute.xlu1 %185  ;;  %v184_v14 = vpop.permute.xlu0 %183 }
  0x7e   :  { %555 = vmatmul.mubr.msk.bf16.vlgmr.msra.gmra.mrb[0].mxu0 %vm40_vm1, %v515_v11  ;;  %v188_v15 = vsel %vm187_vm4, %v184_v14, %v186_v13 }
  0x7f   :  { %565 = vmatpush3.bf16.msra.mxu0 %v135_v12  ;;  %571 = vmatpush3.bf16.msra.mxu1 %v188_v15 }
  0x80   :  { %566 = vmatprep.mubr.msk.bf16.mxu0 %vm622_vm0, %v621_v1  ;;  %576 = vmatprep.subr.bf16.mxu0 %v621_v1 }
  0x81   :  { %v239_v17 = vpop.permute.xlu1 %238  ;;  %v237_v18 = vpop.permute.xlu0 %236  ;;  %582 = vmatprep.subr.bf16.mxu1 %v621_v1 }
  0x82   :  { %573 = vmatmul.mubr.msk.bf16.vlgmr.msra.gmra.mrb[4].mxu1 %vm40_vm1, %v522_v16  ;;  %v241_v20 = vsel %vm240_vm5, %v237_v18, %v239_v17 }
  0x83   :  { %584 = vmatprep.mubr.msk.bf16.mxu1 %vm622_vm0, %v621_v1 }
  0x85   :  { %v292_v21 = vpop.permute.xlu1 %291  ;;  %v290_v22 = vpop.permute.xlu0 %289 }
  0x86   :  { %567 = vmatmul.mubr.msk.bf16.vlgmr.msra.gmra.mrb[4].mxu0 %vm40_vm1, %v520_v19  ;;  %v294_v23 = vsel %vm293_vm6, %v290_v22, %v292_v21 }
  0x87   :  { %577 = vmatpush3.bf16.msra.mxu0 %v241_v20  ;;  %583 = vmatpush3.bf16.msra.mxu1 %v294_v23 }
  0x88   :  { %578 = vmatprep.mubr.msk.bf16.mxu0 %vm622_vm0, %v621_v1  ;;  %588 = vmatprep.subr.bf16.mxu0 %v621_v1 }
  0x89   :  { %v345_v25 = vpop.permute.xlu1 %344  ;;  %v343_v26 = vpop.permute.xlu0 %342  ;;  %594 = vmatprep.subr.bf16.mxu1 %v621_v1 }
  0x8a   :  { %585 = vmatmul.mubr.msk.bf16.vlgmr.msra.gmra.mrb[8].mxu1 %vm40_vm1, %v526_v24  ;;  %v347_v28 = vsel %vm346_vm7, %v343_v26, %v345_v25 }
  0x8b   :  { %596 = vmatprep.mubr.msk.bf16.mxu1 %vm622_vm0, %v621_v1 }
  0x8d   :  { %v398_v29 = vpop.permute.xlu1 %397  ;;  %v396_v30 = vpop.permute.xlu0 %395 }
  0x8e   :  { %579 = vmatmul.mubr.msk.bf16.vlgmr.msra.gmra.mrb[8].mxu0 %vm40_vm1, %v524_v27  ;;  %v400_v31 = vsel %vm399_vm8, %v396_v30, %v398_v29 }
  0x8f   :  { %589 = vmatpush3.bf16.msra.mxu0 %v347_v28  ;;  %595 = vmatpush3.bf16.msra.mxu1 %v400_v31 }
  0x90   :  { %590 = vmatprep.mubr.msk.bf16.mxu0 %vm622_vm0, %v621_v1  ;;  %600 = vmatprep.subr.bf16.mxu0 %v621_v1 }
  0x91   :  { %v451_v33 = vpop.permute.xlu1 %450  ;;  %v449_v34 = vpop.permute.xlu0 %448 }
  0x92   :  { %597 = vmatmul.mubr.msk.bf16.vlgmr.msra.gmra.mrb[12].mxu1 %vm40_vm1, %v530_v32  ;;  %v453_v36 = vsel %vm452_vm9, %v449_v34, %v451_v33 }
  0x96   :  { %591 = vmatmul.mubr.msk.bf16.vlgmr.msra.gmra.mrb[12].mxu0 %vm40_vm1, %v528_v35 }
  0x97   :  { %601 = vmatpush3.bf16.msra.mxu0 %v453_v36  ;;  %602 = vmatprep.mubr.msk.bf16.mxu0 %vm622_vm0, %v621_v1 }
  0x9e   :  { %603 = vmatmul.mubr.msk.bf16.vlgmr.msra.gmra.mrb[16].mxu0 %vm40_vm1, %v532_v37 }
  0xa2   :  { %v503_v14 = vpop.permute.xlu0 %502 }
  0xdb   :  { %v122_v38 = vpop.f32.mrb[0].mxu1 }
  0xdc   :  { %v562_v39 = vpop.f32.mrb[1].mxu1 }
  0xdd   :  { %v125_v40 = vpop.f32.mrb[2].mxu1 }
  0xde   :  { %v563_v41 = vpop.f32.mrb[3].mxu1 }
 0x151   :  { %v78_v42 = vpop.f32.mrb[0].mxu0 }
 0x152   :  { %v556_v43 = vpop.f32.mrb[1].mxu0  ;;  %v123_v44 = vadd.f32 %v122_v38, %v78_v42 }
 0x153   :  { %v81_v45 = vpop.f32.mrb[2].mxu0 }
 0x154   :  { %v557_v46 = vpop.f32.mrb[3].mxu0 }
 0x155   :  { %v227_v47 = vpop.f32.mrb[4].mxu1 }
 0x156   :  { %v574_v48 = vpop.f32.mrb[5].mxu1 }
 0x157   :  { %v230_v49 = vpop.f32.mrb[6].mxu1 }
 0x158   :  { %v575_v50 = vpop.f32.mrb[7].mxu1 }
 0x159   :  { %v174_v51 = vpop.f32.mrb[4].mxu0 }
 0x15a   :  { %v180_v52 = vadd.f32 %v174_v51, %v123_v44  ;;  %v568_v53 = vpop.f32.mrb[5].mxu0 }
 0x15b   :  { %v177_v54 = vpop.f32.mrb[6].mxu0 }
 0x15c   :  { %v233_v55 = vadd.f32 %v227_v47, %v180_v52  ;;  %v569_v56 = vpop.f32.mrb[7].mxu0 }
 0x15d   :  { %v333_v57 = vpop.f32.mrb[8].mxu1 }
 0x15e   :  { %v586_v58 = vpop.f32.mrb[9].mxu1 }
 0x15f   :  { %v336_v59 = vpop.f32.mrb[10].mxu1 }
 0x160   :  { %v587_v60 = vpop.f32.mrb[11].mxu1 }
 0x161   :  { %v280_v61 = vpop.f32.mrb[8].mxu0 }
 0x162   :  { %v286_v62 = vadd.f32 %v280_v61, %v233_v55  ;;  %v580_v63 = vpop.f32.mrb[9].mxu0 }
 0x163   :  { %v283_v0 = vpop.f32.mrb[10].mxu0 }
 0x164   :  { %v339_v1 = vadd.f32 %v333_v57, %v286_v62  ;;  %v581_v2 = vpop.f32.mrb[11].mxu0 }
 0x165   :  { %v439_v3 = vpop.f32.mrb[12].mxu1 }
 0x166   :  { %v598_v4 = vpop.f32.mrb[13].mxu1 }
 0x167   :  { %v442_v5 = vpop.f32.mrb[14].mxu1 }
 0x168   :  { %v599_v6 = vpop.f32.mrb[15].mxu1 }
 0x169   :  { %v386_v7 = vpop.f32.mrb[12].mxu0 }
 0x16a   :  { %v392_v8 = vadd.f32 %v386_v7, %v339_v1  ;;  %v592_v9 = vpop.f32.mrb[13].mxu0 }
 0x16b   :  { %v389_v10 = vpop.f32.mrb[14].mxu0 }
 0x16c   :  { %v445_v11 = vadd.f32 %v439_v3, %v392_v8  ;;  %v593_v12 = vpop.f32.mrb[15].mxu0 }
 0x171   :  { %v492_v13 = vpop.f32.mrb[16].mxu0 }
 0x172   :  { %v498_v15 = vadd.f32 %v492_v13, %v445_v11  ;;  %v604_v16 = vpop.f32.mrb[17].mxu0 }
 0x173   :  { %v495_v17 = vpop.f32.mrb[18].mxu0 }
 0x174   :  { %v505_v18 = vadd.f32 %v503_v14, %v498_v15  ;;  %v605_v19 = vpop.f32.mrb[19].mxu0 }
 0x176   :  { %v506_v20 = vmax.f32 %v505_v18, 0.0 }
 0x178   :  { %v507_v21 = vpack.c.bf16 %v506_v20, %v506_v20 }
 0x17a   :  { %508 = vst [vmem:[%s730_s3] sm:$0xf] %v507_v21 }

// kernel: network_forward.43
= control target key start
LH: loop header
LB: loop body
LE: loop exit
PB: predicated region body
PF: predicated region fallthrough
CT: control target
= control target key end

     0   :  { %vm39_vm0 = vcmask 1043456   ;;  %v635_v1 = vmov 0.0   ;;  %vm636_vm1 = vmmov 0   ;;  %vm35_vm2 = vcmask 64512   ;;  %s638_s16 = smov 127   ;;  %s639_s17 = smov 124   ;;  %s747_s0 = inlined_call_operand.vmem [shape: bf16[8,138], index: 0, kind: input, shape index: {}]   ;;  %s748_s1 = inlined_call_operand.vmem [shape: bf16[9,8,8], index: 1, kind: input, shape index: {}]   ;;  %s749_s2 = inlined_call_operand.vmem [shape: f32[8,1], index: 2, kind: input, shape index: {}]   ;;  %s750_s3 = inlined_call_operand.vmem [shape: bf16[8,128], index: 3, kind: output, shape index: {}]  }
   0x1   :  { %v20_v0 = vld [vmem:[%s747_s0] sm:$0xff]  ;;  %567 = vmatprep.subr.bf16.mxu0 %v635_v1  ;;  %573 = vmatprep.subr.bf16.mxu1 %v635_v1  ;;  %s637_s0 = smov 126   ;;  %s640_s18 = smov 123   ;;  %v645_v6 = vmov 0   ;;  %vm135_vm3 = vcmask 1031168   ;;  %vm33_vm4 = vcmask 1039360  }
   0x2   :  { %v531_v2 = vcombine.low %v20_v0, %v20_v0  ;;  %v87_v3 = vsel %vm39_vm0, %v20_v0, 0  ;;  %569 = vmatprep.mubr.msk.bf16.mxu0 %vm636_vm1, %v635_v1  ;;  %575 = vmatprep.mubr.msk.bf16.mxu1 %vm636_vm1, %v635_v1  ;;  %v21_v4 = vld [vmem:[%s748_s1] sm:$0xf]  ;;  %v532_v5 = vcombine.high %v20_v0, %v20_v0  ;;  %s641_s19 = smov 122   ;;  %s642_s20 = smov 120   ;;  %vm190_vm5 = vcmask 1014784  }
   0x3   :  { %574 = vmatpush3.bf16.msra.mxu1 %v87_v3  ;;  %s643_s21 = smov 119   ;;  %s644_s22 = smov 118   ;;  %632 = vset.pattern.permute.xlu0 %v645_v6  ;;  %v514_v7 = vld [vmem:[%s749_s2] sm:$0xff]  ;;  %vm245_vm6 = vcmask 1006592   ;;  %v537_v21 = vld [vmem:[%s748_s1 + $0xc] sm:$0xf] }
   0x4   :  { %131 = vrot.lane.b32.xlu1 %v531_v2, %s637_s0  ;;  %29 = vrot.lane.b32.xlu0 %v531_v2, %s638_s16  ;;  %v530_v15 = vld [vmem:[%s748_s1 + $0x4] sm:$0xf]  ;;  %vm300_vm7 = vcmask 998400   ;;  %v535_v25 = vld [vmem:[%s748_s1 + $0x8] sm:$0xf]  ;;  %vm355_vm8 = vcmask 982016  }
   0x5   :  { %585 = vmatprep.subr.bf16.mxu1 %v635_v1  ;;  %v541_v31 = vld [vmem:[%s748_s1 + $0x14] sm:$0xf]  ;;  %vm410_vm9 = vcmask 973824   ;;  %v539_v35 = vld [vmem:[%s748_s1 + $0x10] sm:$0xf]  ;;  %vm465_vm10 = vcmask 965632  }
   0x6   :  { %576 = vmatmul.mubr.msk.bf16.vlgmr.msra.gmra.mrb[0].mxu1 %vm35_vm2, %v21_v4  ;;  %v545_v41 = vld [vmem:[%s748_s1 + $0x1c] sm:$0xf]  ;;  %v543_v45 = vld [vmem:[%s748_s1 + $0x18] sm:$0xf]  ;;  %v547_v47 = vld [vmem:[%s748_s1 + $0x20] sm:$0xf] }
   0x7   :  { %587 = vmatprep.mubr.msk.bf16.mxu1 %vm636_vm1, %v635_v1 }
   0x8   :  { %133 = vrot.lane.b32.xlu1 %v532_v5, %s637_s0  ;;  %31 = vrot.lane.b32.xlu0 %v532_v5, %s638_s16 }
   0xc   :  { %188 = vrot.lane.b32.xlu1 %v532_v5, %s639_s17  ;;  %186 = vrot.lane.b32.xlu0 %v531_v2, %s639_s17 }
  0x10   :  { %243 = vrot.lane.b32.xlu1 %v532_v5, %s640_s18  ;;  %241 = vrot.lane.b32.xlu0 %v531_v2, %s640_s18 }
  0x14   :  { %298 = vrot.lane.b32.xlu1 %v532_v5, %s641_s19  ;;  %296 = vrot.lane.b32.xlu0 %v531_v2, %s641_s19 }
  0x18   :  { %353 = vrot.lane.b32.xlu1 %v532_v5, %s642_s20  ;;  %351 = vrot.lane.b32.xlu0 %v531_v2, %s642_s20 }
  0x1c   :  { %408 = vrot.lane.b32.xlu1 %v532_v5, %s643_s21  ;;  %406 = vrot.lane.b32.xlu0 %v531_v2, %s643_s21 }
  0x20   :  { %463 = vrot.lane.b32.xlu1 %v532_v5, %s644_s22  ;;  %461 = vrot.lane.b32.xlu0 %v531_v2, %s644_s22 }
  0x24   :  { %517 = vperm.xlu0 %632, %v514_v7  }
  0x76   :  { %v132_v8 = vpop.permute.xlu1 %131  ;;  %v30_v9 = vpop.permute.xlu0 %29 }
  0x7a   :  { %v134_v10 = vpop.permute.xlu1 %133  ;;  %v32_v11 = vpop.permute.xlu0 %31 }
  0x7b   :  { %v136_v12 = vsel %vm135_vm3, %v132_v8, %v134_v10  ;;  %v34_v13 = vsel %vm33_vm4, %v30_v9, %v32_v11 }
  0x7c   :  { %v41_v14 = vsel %vm39_vm0, %v34_v13, 0  ;;  %v141_v16 = vsel %vm39_vm0, %v136_v12, 0 }
  0x7d   :  { %568 = vmatpush3.bf16.msra.mxu0 %v41_v14 }
  0x7e   :  { %579 = vmatprep.subr.bf16.mxu0 %v635_v1  ;;  %v189_v17 = vpop.permute.xlu1 %188  ;;  %v187_v18 = vpop.permute.xlu0 %186 }
  0x7f   :  { %v191_v19 = vsel %vm190_vm5, %v187_v18, %v189_v17 }
  0x80   :  { %570 = vmatmul.mubr.msk.bf16.vlgmr.msra.gmra.mrb[0].mxu0 %vm35_vm2, %v530_v15  ;;  %v196_v20 = vsel %vm39_vm0, %v191_v19, 0 }
  0x81   :  { %580 = vmatpush3.bf16.msra.mxu0 %v141_v16  ;;  %586 = vmatpush3.bf16.msra.mxu1 %v196_v20 }
  0x82   :  { %v244_v22 = vpop.permute.xlu1 %243  ;;  %v242_v23 = vpop.permute.xlu0 %241  ;;  %581 = vmatprep.mubr.msk.bf16.mxu0 %vm636_vm1, %v635_v1  ;;  %591 = vmatprep.subr.bf16.mxu0 %v635_v1 }
  0x83   :  { %v246_v24 = vsel %vm245_vm6, %v242_v23, %v244_v22  ;;  %597 = vmatprep.subr.bf16.mxu1 %v635_v1 }
  0x84   :  { %588 = vmatmul.mubr.msk.bf16.vlgmr.msra.gmra.mrb[4].mxu1 %vm35_vm2, %v537_v21  ;;  %v251_v26 = vsel %vm39_vm0, %v246_v24, 0 }
  0x85   :  { %599 = vmatprep.mubr.msk.bf16.mxu1 %vm636_vm1, %v635_v1 }
  0x86   :  { %v299_v27 = vpop.permute.xlu1 %298  ;;  %v297_v28 = vpop.permute.xlu0 %296 }
  0x87   :  { %v301_v29 = vsel %vm300_vm7, %v297_v28, %v299_v27 }
  0x88   :  { %582 = vmatmul.mubr.msk.bf16.vlgmr.msra.gmra.mrb[4].mxu0 %vm35_vm2, %v535_v25  ;;  %v306_v30 = vsel %vm39_vm0, %v301_v29, 0 }
  0x89   :  { %592 = vmatpush3.bf16.msra.mxu0 %v251_v26  ;;  %598 = vmatpush3.bf16.msra.mxu1 %v306_v30 }
  0x8a   :  { %v354_v32 = vpop.permute.xlu1 %353  ;;  %v352_v33 = vpop.permute.xlu0 %351  ;;  %593 = vmatprep.mubr.msk.bf16.mxu0 %vm636_vm1, %v635_v1  ;;  %603 = vmatprep.subr.bf16.mxu0 %v635_v1 }
  0x8b   :  { %v356_v34 = vsel %vm355_vm8, %v352_v33, %v354_v32  ;;  %609 = vmatprep.subr.bf16.mxu1 %v635_v1 }
  0x8c   :  { %600 = vmatmul.mubr.msk.bf16.vlgmr.msra.gmra.mrb[8].mxu1 %vm35_vm2, %v541_v31  ;;  %v361_v36 = vsel %vm39_vm0, %v356_v34, 0 }
  0x8d   :  { %611 = vmatprep.mubr.msk.bf16.mxu1 %vm636_vm1, %v635_v1 }
  0x8e   :  { %v409_v37 = vpop.permute.xlu1 %408  ;;  %v407_v38 = vpop.permute.xlu0 %406 }
  0x8f   :  { %v411_v39 = vsel %vm410_vm9, %v407_v38, %v409_v37 }
  0x90   :  { %594 = vmatmul.mubr.msk.bf16.vlgmr.msra.gmra.mrb[8].mxu0 %vm35_vm2, %v539_v35  ;;  %v416_v40 = vsel %vm39_vm0, %v411_v39, 0 }
  0x91   :  { %604 = vmatpush3.bf16.msra.mxu0 %v361_v36  ;;  %610 = vmatpush3.bf16.msra.mxu1 %v416_v40 }
  0x92   :  { %v464_v42 = vpop.permute.xlu1 %463  ;;  %v462_v43 = vpop.permute.xlu0 %461  ;;  %605 = vmatprep.mubr.msk.bf16.mxu0 %vm636_vm1, %v635_v1  ;;  %615 = vmatprep.subr.bf16.mxu0 %v635_v1 }
  0x93   :  { %v466_v44 = vsel %vm465_vm10, %v462_v43, %v464_v42 }
  0x94   :  { %612 = vmatmul.mubr.msk.bf16.vlgmr.msra.gmra.mrb[12].mxu1 %vm35_vm2, %v545_v41  ;;  %v471_v46 = vsel %vm39_vm0, %v466_v44, 0 }
  0x98   :  { %606 = vmatmul.mubr.msk.bf16.vlgmr.msra.gmra.mrb[12].mxu0 %vm35_vm2, %v543_v45 }
  0x99   :  { %616 = vmatpush3.bf16.msra.mxu0 %v471_v46  ;;  %617 = vmatprep.mubr.msk.bf16.mxu0 %vm636_vm1, %v635_v1 }
  0xa0   :  { %618 = vmatmul.mubr.msk.bf16.vlgmr.msra.gmra.mrb[16].mxu0 %vm35_vm2, %v547_v47 }
  0xa3   :  { %v518_v24 = vpop.permute.xlu0 %517 }
  0xd9   :  { %v123_v48 = vpop.f32.mrb[0].mxu1 }
  0xda   :  { %v577_v49 = vpop.f32.mrb[1].mxu1 }
  0xdb   :  { %v126_v50 = vpop.f32.mrb[2].mxu1 }
  0xdc   :  { %v578_v51 = vpop.f32.mrb[3].mxu1 }
 0x153   :  { %v77_v52 = vpop.f32.mrb[0].mxu0 }
 0x154   :  { %v571_v53 = vpop.f32.mrb[1].mxu0  ;;  %v124_v54 = vadd.f32 %v123_v48, %v77_v52 }
 0x155   :  { %v80_v55 = vpop.f32.mrb[2].mxu0 }
 0x156   :  { %v572_v56 = vpop.f32.mrb[3].mxu0 }
 0x157   :  { %v232_v57 = vpop.f32.mrb[4].mxu1 }
 0x158   :  { %v589_v58 = vpop.f32.mrb[5].mxu1 }
 0x159   :  { %v235_v59 = vpop.f32.mrb[6].mxu1 }
 0x15a   :  { %v590_v60 = vpop.f32.mrb[7].mxu1 }
 0x15b   :  { %v177_v61 = vpop.f32.mrb[4].mxu0 }
 0x15c   :  { %v183_v62 = vadd.f32 %v177_v61, %v124_v54  ;;  %v583_v63 = vpop.f32.mrb[5].mxu0 }
 0x15d   :  { %v180_v0 = vpop.f32.mrb[6].mxu0 }
 0x15e   :  { %v238_v1 = vadd.f32 %v232_v57, %v183_v62  ;;  %v584_v2 = vpop.f32.mrb[7].mxu0 }
 0x15f   :  { %v342_v3 = vpop.f32.mrb[8].mxu1 }
 0x160   :  { %v601_v4 = vpop.f32.mrb[9].mxu1 }
 0x161   :  { %v345_v5 = vpop.f32.mrb[10].mxu1 }
 0x162   :  { %v602_v6 = vpop.f32.mrb[11].mxu1 }
 0x163   :  { %v287_v7 = vpop.f32.mrb[8].mxu0 }
 0x164   :  { %v293_v8 = vadd.f32 %v287_v7, %v238_v1  ;;  %v595_v9 = vpop.f32.mrb[9].mxu0 }
 0x165   :  { %v290_v10 = vpop.f32.mrb[10].mxu0 }
 0x166   :  { %v348_v11 = vadd.f32 %v342_v3, %v293_v8  ;;  %v596_v12 = vpop.f32.mrb[11].mxu0 }
 0x167   :  { %v452_v13 = vpop.f32.mrb[12].mxu1 }
 0x168   :  { %v613_v14 = vpop.f32.mrb[13].mxu1 }
 0x169   :  { %v455_v15 = vpop.f32.mrb[14].mxu1 }
 0x16a   :  { %v614_v16 = vpop.f32.mrb[15].mxu1 }
 0x16b   :  { %v397_v17 = vpop.f32.mrb[12].mxu0 }
 0x16c   :  { %v403_v18 = vadd.f32 %v397_v17, %v348_v11  ;;  %v607_v19 = vpop.f32.mrb[13].mxu0 }
 0x16d   :  { %v400_v20 = vpop.f32.mrb[14].mxu0 }
 0x16e   :  { %v458_v21 = vadd.f32 %v452_v13, %v403_v18  ;;  %v608_v22 = vpop.f32.mrb[15].mxu0 }
 0x173   :  { %v507_v23 = vpop.f32.mrb[16].mxu0 }
 0x174   :  { %v513_v25 = vadd.f32 %v507_v23, %v458_v21  ;;  %v619_v26 = vpop.f32.mrb[17].mxu0 }
 0x175   :  { %v510_v27 = vpop.f32.mrb[18].mxu0 }
 0x176   :  { %v520_v28 = vadd.f32 %v518_v24, %v513_v25  ;;  %v620_v29 = vpop.f32.mrb[19].mxu0 }
 0x178   :  { %v521_v30 = vmax.f32 %v520_v28, 0.0 }
 0x17a   :  { %v522_v31 = vpack.c.bf16 %v521_v30, %v521_v30 }
 0x17c   :  { %523 = vst [vmem:[%s750_s3] sm:$0xf] %v522_v31 }

// kernel: network_forward.44
= control target key start
LH: loop header
LB: loop body
LE: loop exit
PB: predicated region body
PF: predicated region fallthrough
CT: control target
= control target key end

     0   :  { %v621_v1 = vmov 0.0   ;;  %vm622_vm0 = vmmov 0   ;;  %s623_s14 = smov 126   ;;  %s624_s15 = smov 127   ;;  %vm40_vm1 = vcmask 130048   ;;  %v631_v4 = vmov 0   ;;  %s727_s0 = inlined_call_operand.vmem [shape: bf16[16,138], index: 0, kind: input, shape index: {}]   ;;  %s728_s1 = inlined_call_operand.vmem [shape: bf16[9,8,16], index: 1, kind: input, shape index: {}]   ;;  %s729_s2 = inlined_call_operand.vmem [shape: f32[8,1], index: 2, kind: input, shape index: {}]   ;;  %s730_s3 = inlined_call_operand.vmem [shape: bf16[8,128], index: 3, kind: output, shape index: {}]  }
   0x1   :  { %v618_v0 = vld [vmem:[%s727_s0] ss:$8 sps:$4 sm:$0xff]   ;;  %552 = vmatprep.subr.bf16.mxu0 %v621_v1  ;;  %558 = vmatprep.subr.bf16.mxu1 %v621_v1  ;;  %v620_v2 = vld [vmem:[%s727_s0 + $0x4] ss:$8 sps:$4 sm:$0xff]   ;;  %s625_s20 = smov 124   ;;  %s626_s21 = smov 123  }
   0x2   :  { %554 = vmatprep.mubr.msk.bf16.mxu0 %vm622_vm0, %v621_v1  ;;  %560 = vmatprep.mubr.msk.bf16.mxu1 %vm622_vm0, %v621_v1  ;;  %v22_v3 = vld [vmem:[%s728_s1] sm:$0xf]  ;;  %s627_s0 = smov 122   ;;  %s628_s22 = smov 120   ;;  %vm37_vm2 = vcmask 1039360   ;;  %vm134_vm3 = vcmask 1031168  }
   0x3   :  { %130 = vrot.lane.b32.xlu1 %v618_v0, %s623_s14  ;;  %33 = vrot.lane.b32.xlu0 %v618_v0, %s624_s15  ;;  %s629_s23 = smov 119   ;;  %s630_s24 = smov 118   ;;  %v499_v5 = vld [vmem:[%s729_s2] sm:$0xff]  ;;  %vm187_vm4 = vcmask 1014784   ;;  %v522_v16 = vld [vmem:[%s728_s1 + $0xc] sm:$0xf] }
   0x4   :  { %559 = vmatpush3.bf16.msra.mxu1 %v618_v0  ;;  %617 = vset.pattern.permute.xlu0 %v631_v4  ;;  %v515_v11 = vld [vmem:[%s728_s1 + $0x4] sm:$0xf]  ;;  %vm240_vm5 = vcmask 1006592   ;;  %v520_v19 = vld [vmem:[%s728_s1 + $0x8] sm:$0xf]  ;;  %vm293_vm6 = vcmask 998400  }
   0x5   :  { %570 = vmatprep.subr.bf16.mxu1 %v621_v1  ;;  %v526_v24 = vld [vmem:[%s728_s1 + $0x14] sm:$0xf]  ;;  %vm346_vm7 = vcmask 982016   ;;  %v524_v27 = vld [vmem:[%s728_s1 + $0x10] sm:$0xf]  ;;  %vm399_vm8 = vcmask 973824  }
   0x6   :  { %v530_v32 = vld [vmem:[%s728_s1 + $0x1c] sm:$0xf]  ;;  %vm452_vm9 = vcmask 965632   ;;  %v528_v35 = vld [vmem:[%s728_s1 + $0x18] sm:$0xf] }
   0x7   :  { %132 = vrot.lane.b32.xlu1 %v620_v2, %s623_s14  ;;  %35 = vrot.lane.b32.xlu0 %v620_v2, %s624_s15  ;;  %v532_v37 = vld [vmem:[%s728_s1 + $0x20] sm:$0xf] }
   0x8   :  { %561 = vmatmul.mubr.msk.bf16.vlgmr.msra.gmra.mrb[0].mxu1 %vm40_vm1, %v22_v3 }
   0x9   :  { %572 = vmatprep.mubr.msk.bf16.mxu1 %vm622_vm0, %v621_v1 }
   0xb   :  { %185 = vrot.lane.b32.xlu1 %v620_v2, %s625_s20  ;;  %183 = vrot.lane.b32.xlu0 %v618_v0, %s625_s20 }
   0xf   :  { %238 = vrot.lane.b32.xlu1 %v620_v2, %s626_s21  ;;  %236 = vrot.lane.b32.xlu0 %v618_v0, %s626_s21 }
  0x13   :  { %291 = vrot.lane.b32.xlu1 %v620_v2, %s627_s0  ;;  %289 = vrot.lane.b32.xlu0 %v618_v0, %s627_s0 }
  0x17   :  { %344 = vrot.lane.b32.xlu1 %v620_v2, %s628_s22  ;;  %342 = vrot.lane.b32.xlu0 %v618_v0, %s628_s22 }
  0x1b   :  { %397 = vrot.lane.b32.xlu1 %v620_v2, %s629_s23  ;;  %395 = vrot.lane.b32.xlu0 %v618_v0, %s629_s23 }
  0x1f   :  { %450 = vrot.lane.b32.xlu1 %v620_v2, %s630_s24  ;;  %448 = vrot.lane.b32.xlu0 %v618_v0, %s630_s24 }
  0x23   :  { %502 = vperm.xlu0 %617, %v499_v5  }
  0x75   :  { %v131_v6 = vpop.permute.xlu1 %130  ;;  %v34_v7 = vpop.permute.xlu0 %33 }
  0x79   :  { %v133_v8 = vpop.permute.xlu1 %132  ;;  %v36_v9 = vpop.permute.xlu0 %35 }
  0x7a   :  { %v38_v10 = vsel %vm37_vm2, %v34_v7, %v36_v9  ;;  %v135_v12 = vsel %vm134_vm3, %v131_v6, %v133_v8 }
  0x7b   :  { %553 = vmatpush3.bf16.msra.mxu0 %v38_v10 }
  0x7c   :  { %564 = vmatprep.subr.bf16.mxu0 %v621_v1 }
  0x7d   :  { %v186_v13 = vpop.permute.xlu1 %185  ;;  %v184_v14 = vpop.permute.xlu0 %183 }
  0x7e   :  { %555 = vmatmul.mubr.msk.bf16.vlgmr.msra.gmra.mrb[0].mxu0 %vm40_vm1, %v515_v11  ;;  %v188_v15 = vsel %vm187_vm4, %v184_v14, %v186_v13 }
  0x7f   :  { %565 = vmatpush3.bf16.msra.mxu0 %v135_v12  ;;  %571 = vmatpush3.bf16.msra.mxu1 %v188_v15 }
  0x80   :  { %566 = vmatprep.mubr.msk.bf16.mxu0 %vm622_vm0, %v621_v1  ;;  %576 = vmatprep.subr.bf16.mxu0 %v621_v1 }
  0x81   :  { %v239_v17 = vpop.permute.xlu1 %238  ;;  %v237_v18 = vpop.permute.xlu0 %236  ;;  %582 = vmatprep.subr.bf16.mxu1 %v621_v1 }
  0x82   :  { %573 = vmatmul.mubr.msk.bf16.vlgmr.msra.gmra.mrb[4].mxu1 %vm40_vm1, %v522_v16  ;;  %v241_v20 = vsel %vm240_vm5, %v237_v18, %v239_v17 }
  0x83   :  { %584 = vmatprep.mubr.msk.bf16.mxu1 %vm622_vm0, %v621_v1 }
  0x85   :  { %v292_v21 = vpop.permute.xlu1 %291  ;;  %v290_v22 = vpop.permute.xlu0 %289 }
  0x86   :  { %567 = vmatmul.mubr.msk.bf16.vlgmr.msra.gmra.mrb[4].mxu0 %vm40_vm1, %v520_v19  ;;  %v294_v23 = vsel %vm293_vm6, %v290_v22, %v292_v21 }
  0x87   :  { %577 = vmatpush3.bf16.msra.mxu0 %v241_v20  ;;  %583 = vmatpush3.bf16.msra.mxu1 %v294_v23 }
  0x88   :  { %578 = vmatprep.mubr.msk.bf16.mxu0 %vm622_vm0, %v621_v1  ;;  %588 = vmatprep.subr.bf16.mxu0 %v621_v1 }
  0x89   :  { %v345_v25 = vpop.permute.xlu1 %344  ;;  %v343_v26 = vpop.permute.xlu0 %342  ;;  %594 = vmatprep.subr.bf16.mxu1 %v621_v1 }
  0x8a   :  { %585 = vmatmul.mubr.msk.bf16.vlgmr.msra.gmra.mrb[8].mxu1 %vm40_vm1, %v526_v24  ;;  %v347_v28 = vsel %vm346_vm7, %v343_v26, %v345_v25 }
  0x8b   :  { %596 = vmatprep.mubr.msk.bf16.mxu1 %vm622_vm0, %v621_v1 }
  0x8d   :  { %v398_v29 = vpop.permute.xlu1 %397  ;;  %v396_v30 = vpop.permute.xlu0 %395 }
  0x8e   :  { %579 = vmatmul.mubr.msk.bf16.vlgmr.msra.gmra.mrb[8].mxu0 %vm40_vm1, %v524_v27  ;;  %v400_v31 = vsel %vm399_vm8, %v396_v30, %v398_v29 }
  0x8f   :  { %589 = vmatpush3.bf16.msra.mxu0 %v347_v28  ;;  %595 = vmatpush3.bf16.msra.mxu1 %v400_v31 }
  0x90   :  { %590 = vmatprep.mubr.msk.bf16.mxu0 %vm622_vm0, %v621_v1  ;;  %600 = vmatprep.subr.bf16.mxu0 %v621_v1 }
  0x91   :  { %v451_v33 = vpop.permute.xlu1 %450  ;;  %v449_v34 = vpop.permute.xlu0 %448 }
  0x92   :  { %597 = vmatmul.mubr.msk.bf16.vlgmr.msra.gmra.mrb[12].mxu1 %vm40_vm1, %v530_v32  ;;  %v453_v36 = vsel %vm452_vm9, %v449_v34, %v451_v33 }
  0x96   :  { %591 = vmatmul.mubr.msk.bf16.vlgmr.msra.gmra.mrb[12].mxu0 %vm40_vm1, %v528_v35 }
  0x97   :  { %601 = vmatpush3.bf16.msra.mxu0 %v453_v36  ;;  %602 = vmatprep.mubr.msk.bf16.mxu0 %vm622_vm0, %v621_v1 }
  0x9e   :  { %603 = vmatmul.mubr.msk.bf16.vlgmr.msra.gmra.mrb[16].mxu0 %vm40_vm1, %v532_v37 }
  0xa2   :  { %v503_v14 = vpop.permute.xlu0 %502 }
  0xdb   :  { %v122_v38 = vpop.f32.mrb[0].mxu1 }
  0xdc   :  { %v562_v39 = vpop.f32.mrb[1].mxu1 }
  0xdd   :  { %v125_v40 = vpop.f32.mrb[2].mxu1 }
  0xde   :  { %v563_v41 = vpop.f32.mrb[3].mxu1 }
 0x151   :  { %v78_v42 = vpop.f32.mrb[0].mxu0 }
 0x152   :  { %v556_v43 = vpop.f32.mrb[1].mxu0  ;;  %v123_v44 = vadd.f32 %v122_v38, %v78_v42 }
 0x153   :  { %v81_v45 = vpop.f32.mrb[2].mxu0 }
 0x154   :  { %v557_v46 = vpop.f32.mrb[3].mxu0 }
 0x155   :  { %v227_v47 = vpop.f32.mrb[4].mxu1 }
 0x156   :  { %v574_v48 = vpop.f32.mrb[5].mxu1 }
 0x157   :  { %v230_v49 = vpop.f32.mrb[6].mxu1 }
 0x158   :  { %v575_v50 = vpop.f32.mrb[7].mxu1 }
 0x159   :  { %v174_v51 = vpop.f32.mrb[4].mxu0 }
 0x15a   :  { %v180_v52 = vadd.f32 %v174_v51, %v123_v44  ;;  %v568_v53 = vpop.f32.mrb[5].mxu0 }
 0x15b   :  { %v177_v54 = vpop.f32.mrb[6].mxu0 }
 0x15c   :  { %v233_v55 = vadd.f32 %v227_v47, %v180_v52  ;;  %v569_v56 = vpop.f32.mrb[7].mxu0 }
 0x15d   :  { %v333_v57 = vpop.f32.mrb[8].mxu1 }
 0x15e   :  { %v586_v58 = vpop.f32.mrb[9].mxu1 }
 0x15f   :  { %v336_v59 = vpop.f32.mrb[10].mxu1 }
 0x160   :  { %v587_v60 = vpop.f32.mrb[11].mxu1 }
 0x161   :  { %v280_v61 = vpop.f32.mrb[8].mxu0 }
 0x162   :  { %v286_v62 = vadd.f32 %v280_v61, %v233_v55  ;;  %v580_v63 = vpop.f32.mrb[9].mxu0 }
 0x163   :  { %v283_v0 = vpop.f32.mrb[10].mxu0 }
 0x164   :  { %v339_v1 = vadd.f32 %v333_v57, %v286_v62  ;;  %v581_v2 = vpop.f32.mrb[11].mxu0 }
 0x165   :  { %v439_v3 = vpop.f32.mrb[12].mxu1 }
 0x166   :  { %v598_v4 = vpop.f32.mrb[13].mxu1 }
 0x167   :  { %v442_v5 = vpop.f32.mrb[14].mxu1 }
 0x168   :  { %v599_v6 = vpop.f32.mrb[15].mxu1 }
 0x169   :  { %v386_v7 = vpop.f32.mrb[12].mxu0 }
 0x16a   :  { %v392_v8 = vadd.f32 %v386_v7, %v339_v1  ;;  %v592_v9 = vpop.f32.mrb[13].mxu0 }
 0x16b   :  { %v389_v10 = vpop.f32.mrb[14].mxu0 }
 0x16c   :  { %v445_v11 = vadd.f32 %v439_v3, %v392_v8  ;;  %v593_v12 = vpop.f32.mrb[15].mxu0 }
 0x171   :  { %v492_v13 = vpop.f32.mrb[16].mxu0 }
 0x172   :  { %v498_v15 = vadd.f32 %v492_v13, %v445_v11  ;;  %v604_v16 = vpop.f32.mrb[17].mxu0 }
 0x173   :  { %v495_v17 = vpop.f32.mrb[18].mxu0 }
 0x174   :  { %v505_v18 = vadd.f32 %v503_v14, %v498_v15  ;;  %v605_v19 = vpop.f32.mrb[19].mxu0 }
 0x176   :  { %v506_v20 = vmax.f32 %v505_v18, 0.0 }
 0x178   :  { %v507_v21 = vpack.c.bf16 %v506_v20, %v506_v20 }
 0x17a   :  { %508 = vst [vmem:[%s730_s3] sm:$0xf] %v507_v21 }

// kernel: network_forward.45
= control target key start
LH: loop header
LB: loop body
LE: loop exit
PB: predicated region body
PF: predicated region fallthrough
CT: control target
= control target key end

     0   :  { %vm30_vm0 = vcmask 1043456   ;;  %v162_v0 = vmov 0.0   ;;  %vm163_vm1 = vmmov 0   ;;  %vm26_vm2 = vcmask 64512   ;;  %s213_s1 = inlined_call_operand.vmem [shape: bf16[8,8], index: 1, kind: input, shape index: {}]   ;;  %s214_s0 = inlined_call_operand.vmem [shape: bf16[16,8], index: 0, kind: input, shape index: {}]   ;;  %s215_s3 = inlined_call_operand.vmem [shape: bf16[8,8], index: 3, kind: input, shape index: {}]   ;;  %s216_s4 = inlined_call_operand.vmem [shape: f32[8,1], index: 4, kind: input, shape index: {}]   ;;  %s217_s2 = inlined_call_operand.vmem [shape: bf16[8,16], index: 2, kind: input, shape index: {}]   ;;  %s218_s5 = inlined_call_operand.vmem [shape: bf16[8,8], index: 5, kind: output, shape index: {}]  }
   0x1   :  { %145 = vmatprep.subr.bf16.mxu0 %v162_v0  ;;  %v25_v1 = vld [vmem:[%s213_s1] sm:$0xf]  ;;  %151 = vmatprep.subr.bf16.mxu1 %v162_v0  ;;  %vm80_vm3 = vcmask 130048   ;;  %v164_v7 = vmov 0   ;;  %vm132_vm4 = vcmask 60416  }
   0x2   :  { %v32_v2 = vsel %vm30_vm0, %v25_v1, 0  ;;  %v161_v3 = vld [vmem:[%s214_s0] sm:$0xff]   ;;  %147 = vmatprep.mubr.msk.bf16.mxu0 %vm163_vm1, %v162_v0  ;;  %153 = vmatprep.mubr.msk.bf16.mxu1 %vm163_vm1, %v162_v0 }
   0x3   :  { %146 = vmatpush3.bf16.msra.mxu0 %v32_v2  ;;  %v24_v4 = vld [vmem:[%s215_s3] sm:$0xf]  ;;  %152 = vmatpush3.bf16.msra.mxu1 %v161_v3 }
   0x4   :  { %v124_v5 = vld [vmem:[%s216_s4] sm:$0xff]  ;;  %160 = vset.pattern.permute.xlu0 %v164_v7 }
   0x5   :  { %v21_v6 = vld [vmem:[%s217_s2] sm:$0xf]  ;;  %127 = vperm.xlu0 %160, %v124_v5  }
   0x6   :  { %148 = vmatmul.mubr.msk.bf16.vlgmr.msra.gmra.mrb[0].mxu0 %vm26_vm2, %v24_v4  ;;  %154 = vmatmul.mubr.msk.bf16.vlgmr.msra.gmra.mrb[0].mxu1 %vm80_vm3, %v21_v6 }
  0x84   :  { %v128_v9 = vpop.permute.xlu0 %127 }
  0xd9   :  { %v68_v8 = vpop.f32.mrb[0].mxu0  ;;  %v118_v11 = vpop.f32.mrb[0].mxu1 }
  0xda   :  { %v149_v10 = vpop.f32.mrb[1].mxu0  ;;  %v119_v12 = vadd.f32 %v118_v11, %v68_v8  ;;  %v155_v14 = vpop.f32.mrb[1].mxu1 }
  0xdb   :  { %v71_v13 = vpop.f32.mrb[2].mxu0  ;;  %v121_v16 = vpop.f32.mrb[2].mxu1 }
  0xdc   :  { %v150_v15 = vpop.f32.mrb[3].mxu0  ;;  %v130_v17 = vadd.f32 %v128_v9, %v119_v12  ;;  %v156_v18 = vpop.f32.mrb[3].mxu1 }
  0xde   :  { %v131_v19 = vpack.c.bf16 %v130_v17, %v130_v17 }
  0xe0   :  { %133 = vst.msk [vmem:[%s218_s5] sm:$0xf] %vm132_vm4, %v131_v19 }

// kernel: network_forward.46
= control target key start
LH: loop header
LB: loop body
LE: loop exit
PB: predicated region body
PF: predicated region fallthrough
CT: control target
= control target key end

     0   :  { %vm33_vm0 = vcmask 1043456   ;;  %v96_v0 = vmov 0.0   ;;  %vm97_vm1 = vmmov 0   ;;  %v98_v4 = vmov 0   ;;  %s131_s0 = inlined_call_operand.vmem [shape: bf16[8,8], index: 0, kind: input, shape index: {}]   ;;  %s132_s1 = inlined_call_operand.vmem [shape: bf16[1,8], index: 1, kind: input, shape index: {}]   ;;  %s133_s2 = inlined_call_operand.<no memory space> [shape: f32[1,1], index: 2, kind: input, shape index: {}]   ;;  %s134_s3 = inlined_call_operand.vmem [shape: f32[1,8], index: 3, kind: output, shape index: {}]  }
   0x1   :  { %86 = vmatprep.subr.bf16.mxu0 %v96_v0  ;;  %v18_v1 = vld [vmem:[%s131_s0] sm:$0xf]  ;;  %88 = vmatprep.mubr.msk.bf16.mxu0 %vm97_vm1, %v96_v0  ;;  %v8_v2 = vstv %s133_s2  ;;  %vm29_vm2 = vcmask 64512   ;;  %v25_v7 = vlaneseq  ;;  %vm77_vm3 = vcmask 57344  }
   0x2   :  { %v35_v3 = vsel %vm33_vm0, %v18_v1, 0  ;;  %95 = vset.pattern.permute.xlu0 %v98_v4  ;;  %9 = vst [vmem:[#allocation2] sm:$0x1] %v8_v2  ;;  %v17_v5 = vld [vmem:[%s132_s1] sm:$0x1] }
   0x3   :  { %87 = vmatpush3.bf16.msra.mxu0 %v35_v3  ;;  %v26_v8 = vshrl.u32 %v25_v7, 7 }
   0x5   :  { %v27_v9 = vsub.s32 0, %v26_v8 }
   0x6   :  { %89 = vmatmul.mubr.msk.bf16.vlgmr.msra.gmra.mrb[0].mxu0 %vm29_vm2, %v17_v5 }
   0x9   :  { %v19_v6 = vld [vmem:[#allocation2] sm:$0x1] }
   0xa   :  { %22 = vperm.xlu0 %95, %v19_v6  }
  0x89   :  { %v23_v10 = vpop.permute.xlu0 %22 }
  0x8a   :  { %v28_v11 = vrot.slane %v23_v10, %v27_v9 }
  0xd9   :  { %v71_v12 = vpop.f32.mrb[0].mxu0 }
  0xda   :  { %v72_v13 = vadd.f32 %v71_v12, %v28_v11  ;;  %v90_v14 = vpop.f32.mrb[1].mxu0 }
  0xdb   :  { %v74_v15 = vpop.f32.mrb[2].mxu0 }
  0xdc   :  { %78 = vst.msk [vmem:[%s134_s3] sm:$0x1] %vm77_vm3, %v72_v13  ;;  %v91_v16 = vpop.f32.mrb[3].mxu0 }

// kernel: network_forward.47
= control target key start
LH: loop header
LB: loop body
LE: loop exit
PB: predicated region body
PF: predicated region fallthrough
CT: control target
= control target key end

     0   :  { %vm29_vm0 = vcmask 1043456   ;;  %v156_v0 = vmov 0.0   ;;  %vm157_vm1 = vmmov 0   ;;  %vm25_vm2 = vcmask 64512   ;;  %s207_s1 = inlined_call_operand.vmem [shape: bf16[8,32], index: 1, kind: input, shape index: {}]   ;;  %s208_s0 = inlined_call_operand.vmem [shape: bf16[8,32], index: 0, kind: input, shape index: {}]   ;;  %s209_s3 = inlined_call_operand.vmem [shape: bf16[8,8], index: 3, kind: input, shape index: {}]   ;;  %s210_s2 = inlined_call_operand.vmem [shape: bf16[8,8], index: 2, kind: input, shape index: {}]   ;;  %s211_s4 = inlined_call_operand.vmem [shape: f32[8,1], index: 4, kind: input, shape index: {}]   ;;  %s212_s5 = inlined_call_operand.vmem [shape: bf16[8,32], index: 5, kind: output, shape index: {}]  }
   0x1   :  { %140 = vmatprep.subr.bf16.mxu0 %v156_v0  ;;  %146 = vmatprep.subr.bf16.mxu1 %v156_v0  ;;  %v24_v1 = vld [vmem:[%s207_s1] sm:$0xf]  ;;  %v158_v8 = vmov 0   ;;  %vm128_vm3 = vcmask 257024  }
   0x2   :  { %v22_v2 = vld [vmem:[%s208_s0] sm:$0xf]  ;;  %v31_v3 = vsel %vm29_vm0, %v24_v1, 0  ;;  %142 = vmatprep.mubr.msk.bf16.mxu0 %vm157_vm1, %v156_v0  ;;  %148 = vmatprep.mubr.msk.bf16.mxu1 %vm157_vm1, %v156_v0 }
   0x3   :  { %v77_v4 = vsel %vm29_vm0, %v22_v2, 0  ;;  %v119_v5 = vld [vmem:[%s211_s4] sm:$0xff]  ;;  %141 = vmatpush3.bf16.msra.mxu0 %v31_v3  ;;  %155 = vset.pattern.permute.xlu0 %v158_v8 }
   0x4   :  { %147 = vmatpush3.bf16.msra.mxu1 %v77_v4  ;;  %v23_v6 = vld [vmem:[%s209_s3] sm:$0xf]  ;;  %122 = vperm.xlu0 %155, %v119_v5  }
   0x5   :  { %v21_v7 = vld [vmem:[%s210_s2] sm:$0xf] }
   0x6   :  { %143 = vmatmul.mubr.msk.bf16.vlgmr.msra.gmra.mrb[0].mxu0 %vm25_vm2, %v23_v6 }
   0x7   :  { %149 = vmatmul.mubr.msk.bf16.vlgmr.msra.gmra.mrb[0].mxu1 %vm25_vm2, %v21_v7 }
  0x83   :  { %v123_v9 = vpop.permute.xlu0 %122 }
  0xd9   :  { %v67_v10 = vpop.f32.mrb[0].mxu0 }
  0xda   :  { %v113_v11 = vpop.f32.mrb[0].mxu1  ;;  %v144_v13 = vpop.f32.mrb[1].mxu0 }
  0xdb   :  { %v114_v12 = vadd.f32 %v113_v11, %v67_v10  ;;  %v150_v14 = vpop.f32.mrb[1].mxu1  ;;  %v70_v15 = vpop.f32.mrb[2].mxu0 }
  0xdc   :  { %v116_v16 = vpop.f32.mrb[2].mxu1  ;;  %v145_v18 = vpop.f32.mrb[3].mxu0 }
  0xdd   :  { %v125_v17 = vadd.f32 %v123_v9, %v114_v12  ;;  %v151_v19 = vpop.f32.mrb[3].mxu1 }
  0xdf   :  { %v126_v20 = vmax.f32 %v125_v17, 0.0 }
  0xe1   :  { %v127_v21 = vpack.c.bf16 %v126_v20, %v126_v20 }
  0xe3   :  { %129 = vst.msk [vmem:[%s212_s5] sm:$0xf] %vm128_vm3, %v127_v21 }

// kernel: network_forward.51
= control target key start
LH: loop header
LB: loop body
LE: loop exit
PB: predicated region body
PF: predicated region fallthrough
CT: control target
= control target key end

     0   :  { %vm29_vm0 = vcmask 1043456   ;;  %v155_v0 = vmov 0.0   ;;  %vm156_vm1 = vmmov 0   ;;  %vm25_vm2 = vcmask 64512   ;;  %s206_s1 = inlined_call_operand.vmem [shape: bf16[8,128], index: 1, kind: input, shape index: {}]   ;;  %s207_s0 = inlined_call_operand.vmem [shape: bf16[8,128], index: 0, kind: input, shape index: {}]   ;;  %s208_s3 = inlined_call_operand.vmem [shape: bf16[8,8], index: 3, kind: input, shape index: {}]   ;;  %s209_s2 = inlined_call_operand.vmem [shape: bf16[8,8], index: 2, kind: input, shape index: {}]   ;;  %s210_s4 = inlined_call_operand.vmem [shape: f32[8,1], index: 4, kind: input, shape index: {}]   ;;  %s211_s5 = inlined_call_operand.vmem [shape: bf16[8,128], index: 5, kind: output, shape index: {}]  }
   0x1   :  { %139 = vmatprep.subr.bf16.mxu0 %v155_v0  ;;  %145 = vmatprep.subr.bf16.mxu1 %v155_v0  ;;  %v24_v1 = vld [vmem:[%s206_s1] sm:$0xf]  ;;  %v157_v8 = vmov 0  }
   0x2   :  { %v22_v2 = vld [vmem:[%s207_s0] sm:$0xf]  ;;  %v31_v3 = vsel %vm29_vm0, %v24_v1, 0  ;;  %141 = vmatprep.mubr.msk.bf16.mxu0 %vm156_vm1, %v155_v0  ;;  %147 = vmatprep.mubr.msk.bf16.mxu1 %vm156_vm1, %v155_v0 }
   0x3   :  { %v77_v4 = vsel %vm29_vm0, %v22_v2, 0  ;;  %v119_v5 = vld [vmem:[%s210_s4] sm:$0xff]  ;;  %140 = vmatpush3.bf16.msra.mxu0 %v31_v3  ;;  %154 = vset.pattern.permute.xlu0 %v157_v8 }
   0x4   :  { %146 = vmatpush3.bf16.msra.mxu1 %v77_v4  ;;  %v23_v6 = vld [vmem:[%s208_s3] sm:$0xf]  ;;  %122 = vperm.xlu0 %154, %v119_v5  }
   0x5   :  { %v21_v7 = vld [vmem:[%s209_s2] sm:$0xf] }
   0x6   :  { %142 = vmatmul.mubr.msk.bf16.vlgmr.msra.gmra.mrb[0].mxu0 %vm25_vm2, %v23_v6 }
   0x7   :  { %148 = vmatmul.mubr.msk.bf16.vlgmr.msra.gmra.mrb[0].mxu1 %vm25_vm2, %v21_v7 }
  0x83   :  { %v123_v9 = vpop.permute.xlu0 %122 }
  0xd9   :  { %v67_v10 = vpop.f32.mrb[0].mxu0 }
  0xda   :  { %v113_v11 = vpop.f32.mrb[0].mxu1  ;;  %v143_v13 = vpop.f32.mrb[1].mxu0 }
  0xdb   :  { %v114_v12 = vadd.f32 %v113_v11, %v67_v10  ;;  %v149_v14 = vpop.f32.mrb[1].mxu1  ;;  %v70_v15 = vpop.f32.mrb[2].mxu0 }
  0xdc   :  { %v116_v16 = vpop.f32.mrb[2].mxu1  ;;  %v144_v18 = vpop.f32.mrb[3].mxu0 }
  0xdd   :  { %v125_v17 = vadd.f32 %v123_v9, %v114_v12  ;;  %v150_v19 = vpop.f32.mrb[3].mxu1 }
  0xdf   :  { %v126_v20 = vmax.f32 %v125_v17, 0.0 }
  0xe1   :  { %v127_v21 = vpack.c.bf16 %v126_v20, %v126_v20 }
  0xe3   :  { %128 = vst [vmem:[%s211_s5] sm:$0xf] %v127_v21 }

// kernel: network_forward.55
= control target key start
LH: loop header
LB: loop body
LE: loop exit
PB: predicated region body
PF: predicated region fallthrough
CT: control target
= control target key end

     0   :  { %vm41_vm0 = vcmask 1043456   ;;  %v309_v2 = vmov 0   ;;  %vm37_vm1 = vcmask 64512   ;;  %s375_s1 = inlined_call_operand.vmem [shape: bf16[8,512], index: 1, kind: input, shape index: {}]   ;;  %s376_s0 = inlined_call_operand.vmem [shape: bf16[8,512], index: 0, kind: input, shape index: {}]   ;;  %s377_s4 = inlined_call_operand.vmem [shape: f32[8,1], index: 4, kind: input, shape index: {}]   ;;  %s378_s3 = inlined_call_operand.vmem [shape: bf16[8,8], index: 3, kind: input, shape index: {}]   ;;  %s379_s2 = inlined_call_operand.vmem [shape: bf16[8,8], index: 2, kind: input, shape index: {}]   ;;  %s380_s5 = inlined_call_operand.vmem [shape: bf16[8,512], index: 5, kind: output, shape index: {}]  }
   0x1   :  { %v25_v0 = vld [vmem:[%s375_s1] sm:$0xff]  ;;  %v26_v1 = vld [vmem:[%s375_s1 + $0x8] sm:$0xff]  ;;  %86 = vmatprep.mubr.bf16.mxu0 %v309_v2  ;;  %127 = vmatprep.mubr.bf16.mxu1 %v309_v2 }
   0x2   :  { %v280_v3 = vcombine.high %v25_v0, %v25_v0  ;;  %v282_v4 = vcombine.high %v26_v1, %v26_v1  ;;  %v279_v5 = vcombine.low %v25_v0, %v25_v0  ;;  %v281_v6 = vcombine.low %v26_v1, %v26_v1  ;;  %v22_v7 = vld [vmem:[%s376_s0] sm:$0xff]  ;;  %v23_v8 = vld [vmem:[%s376_s0 + $0x8] sm:$0xff]  ;;  %300 = vset.pattern.permute.xlu0 %v309_v2 }
   0x3   :  { %v288_v9 = vcombine.high %v22_v7, %v22_v7  ;;  %v290_v10 = vcombine.high %v23_v8, %v23_v8  ;;  %v287_v11 = vcombine.low %v22_v7, %v22_v7  ;;  %v289_v12 = vcombine.low %v23_v8, %v23_v8  ;;  %v243_v15 = vld [vmem:[%s377_s4] sm:$0xff] }
   0x4   :  { %283 = vmatprep.subr.msk.bf16.mxu0 %vm41_vm0, %v280_v3  ;;  %285 = vmatprep.subr.msk.bf16.mxu1 %vm41_vm0, %v282_v4  ;;  %v43_v13 = vsel %vm41_vm0, %v279_v5, 0  ;;  %v49_v14 = vsel %vm41_vm0, %v281_v6, 0  ;;  %v24_v16 = vld [vmem:[%s378_s3] sm:$0xf] }
   0x5   :  { %55 = vmatpush1.bf16.msra.mxu0 %v43_v13  ;;  %96 = vmatpush1.bf16.msra.mxu1 %v49_v14  ;;  %v150_v17 = vsel %vm41_vm0, %v287_v11, 0  ;;  %v156_v18 = vsel %vm41_vm0, %v289_v12, 0  ;;  %v21_v19 = vld [vmem:[%s379_s2] sm:$0xf] }
   0x6   :  { %291 = vmatprep.subr.msk.bf16.mxu0 %vm41_vm0, %v288_v9  ;;  %293 = vmatprep.subr.msk.bf16.mxu1 %vm41_vm0, %v290_v10 }
   0x7   :  { %246 = vperm.xlu0 %300, %v243_v15  }
   0x8   :  { %284 = vmatmul.mubr.msk.bf16.vlgmr.msra.gmra.mrb[0].mxu0 %vm37_vm1, %v24_v16  ;;  %286 = vmatmul.mubr.msk.bf16.vlgmr.msra.gmra.mrb[0].mxu1 %vm37_vm1, %v24_v16 }
   0x9   :  { %162 = vmatpush1.bf16.msra.mxu0 %v150_v17  ;;  %203 = vmatpush1.bf16.msra.mxu1 %v156_v18 }
   0xa   :  { %193 = vmatprep.mubr.bf16.mxu0 %v309_v2  ;;  %234 = vmatprep.mubr.bf16.mxu1 %v309_v2 }
  0x10   :  { %292 = vmatmul.mubr.msk.bf16.vlgmr.msra.gmra.mrb[4].mxu0 %vm37_vm1, %v21_v19  ;;  %294 = vmatmul.mubr.msk.bf16.vlgmr.msra.gmra.mrb[4].mxu1 %vm37_vm1, %v21_v19 }
  0x86   :  { %v247_v28 = vpop.permute.xlu0 %246 }
  0xdb   :  { %v88_v20 = vpop.f32.mrb[0].mxu0  ;;  %v129_v21 = vpop.f32.mrb[0].mxu1 }
  0xdc   :  { %v90_v22 = vpop.f32.mrb[1].mxu0  ;;  %v131_v23 = vpop.f32.mrb[1].mxu1 }
  0xdd   :  { %v92_v24 = vpop.f32.mrb[2].mxu0  ;;  %v133_v25 = vpop.f32.mrb[2].mxu1 }
  0xde   :  { %v93_v26 = vpop.f32.mrb[3].mxu0  ;;  %v134_v27 = vpop.f32.mrb[3].mxu1 }
  0xe3   :  { %v195_v29 = vpop.f32.mrb[4].mxu0  ;;  %v236_v30 = vpop.f32.mrb[4].mxu1 }
  0xe4   :  { %v196_v31 = vadd.f32 %v195_v29, %v88_v20  ;;  %v237_v32 = vadd.f32 %v236_v30, %v129_v21  ;;  %v197_v33 = vpop.f32.mrb[5].mxu0  ;;  %v238_v34 = vpop.f32.mrb[5].mxu1 }
  0xe5   :  { %v198_v35 = vadd.f32 %v197_v33, %v90_v22  ;;  %v239_v36 = vadd.f32 %v238_v34, %v131_v23  ;;  %v199_v37 = vpop.f32.mrb[6].mxu0  ;;  %v240_v38 = vpop.f32.mrb[6].mxu1 }
  0xe6   :  { %v249_v39 = vadd.f32 %v247_v28, %v196_v31  ;;  %v251_v40 = vadd.f32 %v247_v28, %v237_v32  ;;  %v200_v41 = vpop.f32.mrb[7].mxu0  ;;  %v241_v42 = vpop.f32.mrb[7].mxu1 }
  0xe7   :  { %v250_v43 = vadd.f32 %v247_v28, %v198_v35  ;;  %v252_v44 = vadd.f32 %v247_v28, %v239_v36 }
  0xe8   :  { %v253_v45 = vmax.f32 %v249_v39, 0.0  ;;  %v255_v46 = vmax.f32 %v251_v40, 0.0 }
  0xe9   :  { %v254_v47 = vmax.f32 %v250_v43, 0.0  ;;  %v256_v48 = vmax.f32 %v252_v44, 0.0 }
  0xeb   :  { %v297_v49 = vpack.c.bf16 %v254_v47, %v253_v45  ;;  %v298_v50 = vpack.c.bf16 %v256_v48, %v255_v46 }
  0xed   :  { %273 = vst [vmem:[%s380_s5] sm:$0xff] %v297_v49  ;;  %274 = vst [vmem:[%s380_s5 + $0x8] sm:$0xff] %v298_v50 }

// kernel: network_forward.59
= control target key start
LH: loop header
LB: loop body
LE: loop exit
PB: predicated region body
PF: predicated region fallthrough
CT: control target
= control target key end

     0   :  { %s663_s18 = smov 0   ;;  %s705_s0 = inlined_call_operand.vmem [shape: bf16[8,2048], index: 0, kind: input, shape index: {}]   ;;  %s706_s1 = inlined_call_operand.vmem [shape: bf16[8,2048], index: 1, kind: input, shape index: {}]   ;;  %s707_s2 = inlined_call_operand.vmem [shape: bf16[8,8], index: 2, kind: input, shape index: {}]   ;;  %s708_s3 = inlined_call_operand.vmem [shape: bf16[8,8], index: 3, kind: input, shape index: {}]   ;;  %s709_s4 = inlined_call_operand.vmem [shape: f32[8,1], index: 4, kind: input, shape index: {}]   ;;  %s710_s5 = inlined_call_operand.vmem [shape: bf16[8,2048], index: 5, kind: output, shape index: {}]  }
   0x1 LB: > { %s573_s19 = sadd.s32 4294967295, %s630_s18   ;;  %p577_p0 = scmp.ge.s32.totalorder %s630_s18, 1  ;;  %s630_s18 = sphi %s663_s18, %s15_s18  }
   0x2   : > { %p199_p1 = scmp.lt.s32.totalorder %s630_s18, 5 }
   0x4   : > { %p200_p2 = pnand %p577_p0, %p199_p1 }
   0x5   : > { %s578_s20 = sshll.u32 (!%p200_p2), %s573_s19, 2  ;;  %v632_v0 = vmov (!%p200_p2), 0   ;;  %v473_v1 = vld [vmem:[%s709_s4] sm:$0xff] (!%p200_p2)  ;;  %vm271_vm0 = vcmask (!%p200_p2), 1043456   ;;  %vm267_vm1 = vcmask (!%p200_p2), 64512  }
   0x6   : > { %203 = sbr.rel (%p200_p2) target bundleno = 253 (0xfd), region = 40  ;;  %p233_p3 = scmp.lt.s32.totalorder (!%p200_p2), %s578_s20, 15  ;;  %316 = vmatprep.mubr.bf16.mxu0 (!%p200_p2), %v632_v0  ;;  %357 = vmatprep.mubr.bf16.mxu1 (!%p200_p2), %v632_v0  ;;  %v254_v16 = vld [vmem:[%s708_s3] sm:$0xf] (!%p200_p2) }
   0x7   : > { %615 = vset.pattern.permute.xlu0 (!%p200_p2), %v632_v0  ;;  %v251_v19 = vld [vmem:[%s707_s2] sm:$0xf] (!%p200_p2) }
   0x8   : > { %476 = vperm.xlu0 (!%p200_p2), %615, %v473_v1  }
   0xd   : > { %s712_s20 = smov (!%p233_p3, %s578_s20), 15 }
   0xe   : > { %s674_s23 = sshll.u32 %s712_s20, 2 }
   0xf   : > { %s236_s26 = scalar_lea.vmem %s705_s0, %s674_s23  ;;  %s242_s29 = scalar_lea.vmem %s706_s1, %s674_s23 }
  0x10   : > { %v255_v2 = vld [vmem:[%s242_s29] sm:$0xff]  ;;  %v256_v3 = vld [vmem:[%s242_s29 + $0x8] sm:$0xff]  ;;  %s248_s11 = scalar_lea.vmem %s710_s5, %s674_s23 }
  0x11   : > { %v252_v4 = vld [vmem:[%s236_s26] sm:$0xff]  ;;  %v585_v5 = vcombine.high %v255_v2, %v255_v2  ;;  %v587_v6 = vcombine.high %v256_v3, %v256_v3  ;;  %v584_v7 = vcombine.low %v255_v2, %v255_v2  ;;  %v586_v8 = vcombine.low %v256_v3, %v256_v3  ;;  %v253_v9 = vld [vmem:[%s236_s26 + $0x8] sm:$0xff] }
  0x12   : > { %v593_v10 = vcombine.high %v252_v4, %v252_v4  ;;  %v595_v11 = vcombine.high %v253_v9, %v253_v9  ;;  %v592_v12 = vcombine.low %v252_v4, %v252_v4  ;;  %v594_v13 = vcombine.low %v253_v9, %v253_v9 }
  0x13   : > { %588 = vmatprep.subr.msk.bf16.mxu0 %vm271_vm0, %v585_v5  ;;  %590 = vmatprep.subr.msk.bf16.mxu1 %vm271_vm0, %v587_v6  ;;  %v273_v14 = vsel %vm271_vm0, %v584_v7, 0  ;;  %v279_v15 = vsel %vm271_vm0, %v586_v8, 0 }
  0x14   : > { %285 = vmatpush1.bf16.msra.mxu0 %v273_v14  ;;  %326 = vmatpush1.bf16.msra.mxu1 %v279_v15  ;;  %v380_v17 = vsel %vm271_vm0, %v592_v12, 0  ;;  %v386_v18 = vsel %vm271_vm0, %v594_v13, 0 }
  0x15   : > { %596 = vmatprep.subr.msk.bf16.mxu0 %vm271_vm0, %v593_v10  ;;  %598 = vmatprep.subr.msk.bf16.mxu1 %vm271_vm0, %v595_v11 }
  0x17   : > { %589 = vmatmul.mubr.msk.bf16.vlgmr.msra.gmra.mrb[0].mxu0 %vm267_vm1, %v254_v16  ;;  %591 = vmatmul.mubr.msk.bf16.vlgmr.msra.gmra.mrb[0].mxu1 %vm267_vm1, %v254_v16 }
  0x18   : > { %392 = vmatpush1.bf16.msra.mxu0 %v380_v17  ;;  %433 = vmatpush1.bf16.msra.mxu1 %v386_v18 }
  0x19   : > { %423 = vmatprep.mubr.bf16.mxu0 %v632_v0  ;;  %464 = vmatprep.mubr.bf16.mxu1 %v632_v0 }
  0x1f   : > { %597 = vmatmul.mubr.msk.bf16.vlgmr.msra.gmra.mrb[4].mxu0 %vm267_vm1, %v251_v19  ;;  %599 = vmatmul.mubr.msk.bf16.vlgmr.msra.gmra.mrb[4].mxu1 %vm267_vm1, %v251_v19 }
  0x87   : > { %v477_v28 = vpop.permute.xlu0 %476 }
  0xea   : > { %v318_v20 = vpop.f32.mrb[0].mxu0  ;;  %v359_v21 = vpop.f32.mrb[0].mxu1 }
  0xeb   : > { %v320_v22 = vpop.f32.mrb[1].mxu0  ;;  %v361_v23 = vpop.f32.mrb[1].mxu1 }
  0xec   : > { %v322_v24 = vpop.f32.mrb[2].mxu0  ;;  %v363_v25 = vpop.f32.mrb[2].mxu1 }
  0xed   : > { %v323_v26 = vpop.f32.mrb[3].mxu0  ;;  %v364_v27 = vpop.f32.mrb[3].mxu1 }
  0xf2   : > { %v425_v29 = vpop.f32.mrb[4].mxu0  ;;  %v466_v30 = vpop.f32.mrb[4].mxu1 }
  0xf3   : > { %v426_v31 = vadd.f32 %v425_v29, %v318_v20  ;;  %v467_v32 = vadd.f32 %v466_v30, %v359_v21  ;;  %v427_v33 = vpop.f32.mrb[5].mxu0  ;;  %v468_v34 = vpop.f32.mrb[5].mxu1 }
  0xf4   : > { %v428_v35 = vadd.f32 %v427_v33, %v320_v22  ;;  %v469_v36 = vadd.f32 %v468_v34, %v361_v23  ;;  %v429_v37 = vpop.f32.mrb[6].mxu0  ;;  %v470_v38 = vpop.f32.mrb[6].mxu1 }
  0xf5   : > { %v479_v39 = vadd.f32 %v477_v28, %v426_v31  ;;  %v481_v40 = vadd.f32 %v477_v28, %v467_v32  ;;  %v430_v41 = vpop.f32.mrb[7].mxu0  ;;  %v471_v42 = vpop.f32.mrb[7].mxu1 }
  0xf6   : > { %v480_v43 = vadd.f32 %v477_v28, %v428_v35  ;;  %v482_v44 = vadd.f32 %v477_v28, %v469_v36 }
  0xf7   : > { %v483_v45 = vmax.f32 %v479_v39, 0.0  ;;  %v485_v46 = vmax.f32 %v481_v40, 0.0 }
  0xf8   : > { %v484_v47 = vmax.f32 %v480_v43, 0.0  ;;  %v486_v48 = vmax.f32 %v482_v44, 0.0 }
  0xfa   : > { %v604_v49 = vpack.c.bf16 %v484_v47, %v483_v45  ;;  %v605_v50 = vpack.c.bf16 %v486_v48, %v485_v46 }
  0xfc   : > { %503 = vst [vmem:[%s248_s11] sm:$0xff] %v604_v49  ;;  %504 = vst [vmem:[%s248_s11 + $0x8] sm:$0xff] %v605_v50 }
  0xfd PF: > { %s15_s18 = sadd.s32 1, %s630_s18  }
  0xfe   : > { %p12_p4 = scmp.ge.s32.totalorder %s15_s18, 6  }
 0x100   :  { %14 = sbr.rel (!%p12_p4) target bundleno = 1 (0x1), region = 73 }

// kernel: network_forward.62
= control target key start
LH: loop header
LB: loop body
LE: loop exit
PB: predicated region body
PF: predicated region fallthrough
CT: control target
= control target key end

     0   :  { %s804_s21 = smov 0   ;;  %s806_s22 = smov 0   ;;  %s876_s0 = inlined_call_operand.vmem [shape: bf16[16,2048], index: 0, kind: input, shape index: {}]   ;;  %s877_s1 = inlined_call_operand.vmem [shape: bf16[8,2048], index: 1, kind: input, shape index: {}]   ;;  %s878_s2 = inlined_call_operand.vmem [shape: bf16[8,16], index: 2, kind: input, shape index: {}]   ;;  %s879_s3 = inlined_call_operand.vmem [shape: bf16[8,8], index: 3, kind: input, shape index: {}]   ;;  %s880_s4 = inlined_call_operand.vmem [shape: f32[8,1], index: 4, kind: input, shape index: {}]   ;;  %s881_s5 = inlined_call_operand.vmem [shape: bf16[8,2048], index: 5, kind: input, shape index: {}]   ;;  %s882_s6 = inlined_call_operand.vmem [shape: bf16[8,2048], index: 6, kind: output, shape index: {}]  }
   0x1   :  { %s808_s23 = smov 0  }
   0x2 LB: > { %s672_s24 = sadd.s32 4294967295, %s766_s23   ;;  %s821_s25 = sadd.s32 1, %s766_s23   ;;  %s766_s23 = sphi %s808_s23, %s885_s23   ;;  %s762_s22 = sphi %s806_s22, %s884_s22   ;;  %s758_s21 = sphi %s804_s21, %s883_s21  }
   0x3   : > { %s20_s26 = ssub.s32 %s766_s23, %s821_s25  ;;  %s23_s27 = sadd.s32 1, %s762_s22 }
   0x4   : > { %p21_p0 = scmp.eq.s32.totalorder %s20_s26, 0  ;;  %p30_p1 = scmp.ne.s32.totalorder %s762_s22, %s758_s21 }
   0x5   : > { %p31_p2 = scmp.eq.s32.totalorder %s766_s23, 0  ;;  %p675_p4 = scmp.ge.s32.totalorder %s766_s23, 4 }
   0x6   : > { %s830_s28 = scalar_select %p21_p0, %s762_s22, %s23_s27  }
   0x7   : > { %p32_p3 = por %p31_p2, %p30_p1  ;;  %206 = sbr.rel (%p675_p4) target bundleno = 21 (0x15), region = 28 }
   0xe   : > { %209 = sbr.rel (!%p32_p3) target bundleno = 21 (0x15), region = 32  ;;  %s211_s29 = sand.u32 (%p32_p3), 1, %s762_s22  }
   0xf   : > { %s705_s30 = sshll.u32 (%p32_p3), %s766_s23, 4  ;;  %s676_s7 = sshll.u32 (%p32_p3), %s211_s29, 5 }
  0x10   : > { %s216_s10 = scalar_lea.vmem (%p32_p3), %s876_s0, %s705_s30  ;;  %s213_s11 = scalar_lea.vmem (%p32_p3), [#allocation2], %s676_s7 }
  0x11   : > { %v229_v0 = vld [vmem:[%s216_s10] sm:$0xff] (%p32_p3)  ;;  %v231_v1 = vld [vmem:[%s216_s10 + $0x8] sm:$0xff] (%p32_p3) }
  0x12   : > { %v233_v2 = vld [vmem:[%s216_s10 + $0x40] sm:$0xff] (%p32_p3)  ;;  %230 = vst [vmem:[%s213_s11] sm:$0xff] (%p32_p3), %v229_v0  ;;  %232 = vst [vmem:[%s213_s11 + $0x8] sm:$0xff] (%p32_p3), %v231_v1  ;;  %v235_v3 = vld [vmem:[%s216_s10 + $0x48] sm:$0xff] (%p32_p3) }
  0x13   : > { %234 = vst [vmem:[%s213_s11 + $0x10] sm:$0xff] (%p32_p3), %v233_v2  ;;  %236 = vst [vmem:[%s213_s11 + $0x18] sm:$0xff] (%p32_p3), %v235_v3 }
  0x15 PF: > { %p679_p5 = scmp.ge.s32.totalorder %s766_s23, 1  ;;  %p259_p6 = scmp.lt.s32.totalorder %s766_s23, 5 }
  0x17   : > { %p260_p7 = pnand %p679_p5, %p259_p6 }
  0x18   : > { %s681_s12 = sshll.u32 (!%p260_p7), %s672_s24, 2  ;;  %v768_v4 = vmov (!%p260_p7), 0   ;;  %s266_s13 = sand.u32 (!%p260_p7), 1, %s758_s21   ;;  %v548_v5 = vld [vmem:[%s880_s4] sm:$0xff] (!%p260_p7)  ;;  %vm347_vm0 = vcmask (!%p260_p7), 1043456   ;;  %vm343_vm1 = vcmask (!%p260_p7), 64512  }
  0x19   : > { %263 = sbr.rel (%p260_p7) target bundleno = 272 (0x110), region = 63  ;;  %p307_p8 = scmp.lt.s32.totalorder (!%p260_p7), %s681_s12, 15  ;;  %392 = vmatprep.mubr.bf16.mxu0 (!%p260_p7), %v768_v4  ;;  %433 = vmatprep.mubr.bf16.mxu1 (!%p260_p7), %v768_v4  ;;  %v330_v16 = vld [vmem:[%s879_s3] sm:$0xf] (!%p260_p7)  ;;  %vm462_vm2 = vcmask (!%p260_p7), 130048  }
  0x1a   : > { %s680_s16 = sshll.u32 (!%p260_p7), %s266_s13, 5  ;;  %733 = vset.pattern.permute.xlu0 (!%p260_p7), %v768_v4  ;;  %v325_v19 = vld [vmem:[%s878_s2] sm:$0xf] (!%p260_p7) }
  0x1b   : > { %551 = vperm.xlu0 (!%p260_p7), %733, %v548_v5   ;;  %s268_s18 = scalar_lea.vmem (!%p260_p7), [#allocation2], %s680_s16 }
  0x1c   : > { %v740_v12 = vld [vmem:[%s268_s18 + $0x4] ss:$16 sps:$4 sm:$0xff] (!%p260_p7)   ;;  %v743_v13 = vld [vmem:[%s268_s18 + $0xc] ss:$16 sps:$4 sm:$0xff] (!%p260_p7)   ;;  %v738_v17 = vld [vmem:[%s268_s18] ss:$16 sps:$4 sm:$0xff] (!%p260_p7)  }
  0x1d   : > { %v741_v18 = vld [vmem:[%s268_s18 + $0x8] ss:$16 sps:$4 sm:$0xff] (!%p260_p7)  }
  0x20   : > { %s887_s12 = smov (!%p307_p8, %s681_s12), 15 }
  0x21   : > { %s846_s17 = sshll.u32 %s887_s12, 2 }
  0x22   : > { %s310_s23 = scalar_lea.vmem %s877_s1, %s846_s17  ;;  %s316_s7 = scalar_lea.vmem %s881_s5, %s846_s17 }
  0x23   : > { %v331_v6 = vld [vmem:[%s310_s23] sm:$0xff]  ;;  %v332_v7 = vld [vmem:[%s310_s23 + $0x8] sm:$0xff]  ;;  %s322_s10 = scalar_lea.vmem %s882_s6, %s846_s17 }
  0x24   : > { %v688_v8 = vcombine.high %v331_v6, %v331_v6  ;;  %v690_v9 = vcombine.high %v332_v7, %v332_v7  ;;  %v687_v10 = vcombine.low %v331_v6, %v331_v6  ;;  %v689_v11 = vcombine.low %v332_v7, %v332_v7  ;;  %v558_v28 = vld [vmem:[%s316_s7] sm:$0xff]  ;;  %v559_v29 = vld [vmem:[%s316_s7 + $0x8] sm:$0xff] }
  0x25   : > { %v560_v37 = vunpack.c.l.bf16 %v558_v28  ;;  %v562_v38 = vunpack.c.l.bf16 %v559_v29  ;;  %v561_v41 = vunpack.c.h.bf16 %v558_v28  ;;  %v563_v42 = vunpack.c.h.bf16 %v559_v29 }
  0x26   : > { %691 = vmatprep.subr.msk.bf16.mxu0 %vm347_vm0, %v688_v8  ;;  %693 = vmatprep.subr.msk.bf16.mxu1 %vm347_vm0, %v690_v9  ;;  %v349_v14 = vsel %vm347_vm0, %v687_v10, 0  ;;  %v355_v15 = vsel %vm347_vm0, %v689_v11, 0 }
  0x27   : > { %361 = vmatpush1.bf16.msra.mxu0 %v349_v14  ;;  %402 = vmatpush1.bf16.msra.mxu1 %v355_v15 }
  0x28   : > { %466 = vmatprep.subr.bf16.mxu0 %v740_v12  ;;  %507 = vmatprep.subr.bf16.mxu1 %v743_v13 }
  0x2a   : > { %692 = vmatmul.mubr.msk.bf16.vlgmr.msra.gmra.mrb[0].mxu0 %vm343_vm1, %v330_v16  ;;  %694 = vmatmul.mubr.msk.bf16.vlgmr.msra.gmra.mrb[0].mxu1 %vm343_vm1, %v330_v16 }
  0x2b   : > { %467 = vmatpush1.bf16.msra.mxu0 %v738_v17  ;;  %508 = vmatpush1.bf16.msra.mxu1 %v741_v18 }
  0x2c   : > { %498 = vmatprep.mubr.bf16.mxu0 %v768_v4  ;;  %539 = vmatprep.mubr.bf16.mxu1 %v768_v4 }
  0x32   : > { %699 = vmatmul.mubr.msk.bf16.vlgmr.msra.gmra.mrb[4].mxu0 %vm462_vm2, %v325_v19  ;;  %700 = vmatmul.mubr.msk.bf16.vlgmr.msra.gmra.mrb[4].mxu1 %vm462_vm2, %v325_v19 }
  0x9a   : > { %v552_v30 = vpop.permute.xlu0 %551 }
  0xfd   : > { %v394_v20 = vpop.f32.mrb[0].mxu0  ;;  %v435_v21 = vpop.f32.mrb[0].mxu1 }
  0xfe   : > { %v396_v22 = vpop.f32.mrb[1].mxu0  ;;  %v437_v23 = vpop.f32.mrb[1].mxu1 }
  0xff   : > { %v398_v24 = vpop.f32.mrb[2].mxu0  ;;  %v439_v25 = vpop.f32.mrb[2].mxu1 }
 0x100   : > { %v399_v26 = vpop.f32.mrb[3].mxu0  ;;  %v440_v27 = vpop.f32.mrb[3].mxu1 }
 0x105   : > { %v500_v31 = vpop.f32.mrb[4].mxu0  ;;  %v541_v32 = vpop.f32.mrb[4].mxu1 }
 0x106   : > { %v501_v33 = vadd.f32 %v500_v31, %v394_v20  ;;  %v542_v34 = vadd.f32 %v541_v32, %v435_v21  ;;  %v502_v35 = vpop.f32.mrb[5].mxu0  ;;  %v543_v36 = vpop.f32.mrb[5].mxu1 }
 0x107   : > { %v503_v39 = vadd.f32 %v502_v35, %v396_v22  ;;  %v544_v40 = vadd.f32 %v543_v36, %v437_v23  ;;  %v504_v43 = vpop.f32.mrb[6].mxu0  ;;  %v545_v44 = vpop.f32.mrb[6].mxu1 }
 0x108   : > { %v554_v45 = vadd.f32 %v552_v30, %v501_v33  ;;  %v556_v46 = vadd.f32 %v552_v30, %v542_v34  ;;  %v505_v47 = vpop.f32.mrb[7].mxu0  ;;  %v546_v48 = vpop.f32.mrb[7].mxu1 }
 0x109   : > { %v555_v49 = vadd.f32 %v552_v30, %v503_v39  ;;  %v557_v50 = vadd.f32 %v552_v30, %v544_v40 }
 0x10a   : > { %v564_v51 = vadd.f32 %v560_v37, %v554_v45  ;;  %v566_v52 = vadd.f32 %v562_v38, %v556_v46 }
 0x10b   : > { %v565_v53 = vadd.f32 %v561_v41, %v555_v49  ;;  %v567_v54 = vadd.f32 %v563_v42, %v557_v50 }
 0x10d   : > { %v706_v55 = vpack.c.bf16 %v565_v53, %v564_v51  ;;  %v707_v56 = vpack.c.bf16 %v567_v54, %v566_v52 }
 0x10f   : > { %584 = vst [vmem:[%s322_s10] sm:$0xff] %v706_v55  ;;  %585 = vst [vmem:[%s322_s10 + $0x8] sm:$0xff] %v707_v56 }
 0x110 PF: > { %p13_p9 = scmp.ge.s32.totalorder %s821_s25, 6   ;;  %s883_s21 = smov %s762_s22 }
 0x111   : > { %s884_s22 = smov %s830_s28  ;;  %s885_s23 = smov %s821_s25 }
 0x112   :  { %15 = sbr.rel (!%p13_p9) target bundleno = 2 (0x2), region = 108 }

// kernel: network_forward.61
= control target key start
LH: loop header
LB: loop body
LE: loop exit
PB: predicated region body
PF: predicated region fallthrough
CT: control target
= control target key end

     0   :  { %s1337_s12 = smov 0   ;;  %s1485_s0 = inlined_call_operand.vmem [shape: bf16[16,2630], index: 0, kind: input, shape index: {}]   ;;  %s1486_s1 = inlined_call_operand.vmem [shape: bf16[9,8,16], index: 1, kind: input, shape index: {}]   ;;  %s1487_s2 = inlined_call_operand.vmem [shape: f32[8,1], index: 2, kind: input, shape index: {}]   ;;  %s1488_s3 = inlined_call_operand.vmem [shape: bf16[8,2560], index: 3, kind: output, shape index: {}]  }
   0x1 LB: > { %s1230_s13 = sadd.s32 4294967295, %s1306_s12   ;;  %p1233_p0 = scmp.ge.s32.totalorder %s1306_s12, 1  ;;  %s1306_s12 = sphi %s1337_s12, %s13_s12  }
   0x2   : > { %p127_p1 = scmp.lt.s32.totalorder %s1306_s12, 6 }
   0x4   : > { %p128_p2 = pnand %p1233_p0, %p127_p1 }
   0x5   : > { %s1236_s14 = sshll.u32 (!%p128_p2), %s1230_s13, 9  ;;  %v1308_v0 = vmov (!%p128_p2), 0   ;;  %s1309_s20 = smov (!%p128_p2), 127   ;;  %v1152_v6 = vld [vmem:[%s1487_s2] sm:$0xff] (!%p128_p2)  ;;  %vm198_vm0 = vcmask (!%p128_p2), 1039360   ;;  %vm207_vm1 = vcmask (!%p128_p2), 130048  }
   0x6   : > { %131 = sbr.rel (%p128_p2) target bundleno = 428 (0x1ac), region = 32  ;;  %s154_s15 = sshra.s32 (!%p128_p2), %s1236_s14, 7  ;;  %284 = vmatprep.mubr.bf16.mxu1 (!%p128_p2), %v1308_v0  ;;  %243 = vmatprep.mubr.bf16.mxu0 (!%p128_p2), %v1308_v0  ;;  %v1238_v14 = vld [vmem:[%s1486_s1 + $0x4] sm:$0xf] (!%p128_p2)  ;;  %vm394_vm2 = vcmask (!%p128_p2), 1031168   ;;  %vm504_vm3 = vcmask (!%p128_p2), 769024  }
   0x7   : > { %s1237_s16 = sshll.u32 (!%p128_p2), %s154_s15, 2  ;;  %1292 = vset.pattern.permute.xlu0 (!%p128_p2), %v1308_v0  ;;  %s1310_s21 = smov (!%p128_p2), 126   ;;  %v164_v21 = vld [vmem:[%s1486_s1] sm:$0xf] (!%p128_p2)  ;;  %v1248_v30 = vld [vmem:[%s1486_s1 + $0x8] sm:$0xf] (!%p128_p2) }
   0x8   : > { %s157_s19 = scalar_lea.vmem (!%p128_p2), %s1485_s0, %s1237_s16  ;;  %s1311_s22 = smov (!%p128_p2), 94   ;;  %vm614_vm4 = vcmask (!%p128_p2), 760832   ;;  %v1251_v38 = vld [vmem:[%s1486_s1 + $0xc] sm:$0xf] (!%p128_p2)  ;;  %vm724_vm5 = vcmask (!%p128_p2), 752640   ;;  %vm834_vm6 = vcmask (!%p128_p2), 490496  }
   0x9   : > { %v1353_v1 = vld [vmem:[%s157_s19 + $0xc] ss:$84 sps:$4 sm:$0xff] (!%p128_p2)   ;;  %v1355_v2 = vld [vmem:[%s157_s19 + $0x4] ss:$84 sps:$4 sm:$0xff] (!%p128_p2)   ;;  %v1359_v4 = vld [vmem:[%s157_s19 + $0x8] ss:$84 sps:$4 sm:$0xff] (!%p128_p2)  }
   0xa   : > { %194 = vrot.lane.b32.xlu1 (!%p128_p2), %v1353_v1, %s1309_s20  ;;  %v1297_v3 = vld [vmem:[%s157_s19 + $0x10] ss:$84 sps:$4 sm:$0xff] (!%p128_p2)   ;;  %190 = vrot.lane.b32.xlu0 (!%p128_p2), %v1355_v2, %s1309_s20  ;;  %v1362_v5 = vld [vmem:[%s157_s19] ss:$84 sps:$4 sm:$0xff] (!%p128_p2)   ;;  %s1312_s23 = smov (!%p128_p2), 93   ;;  %s1313_s24 = smov (!%p128_p2), 92  }
   0xb   : > { %s1314_s25 = smov (!%p128_p2), 60   ;;  %s1315_s26 = smov (!%p128_p2), 59   ;;  %v1254_v48 = vld [vmem:[%s1486_s1 + $0x10] sm:$0xf] (!%p128_p2)  ;;  %v1257_v56 = vld [vmem:[%s1486_s1 + $0x14] sm:$0xf] (!%p128_p2) }
   0xc   : > { %s1316_s27 = smov (!%p128_p2), 58   ;;  %vm944_vm7 = vcmask (!%p128_p2), 482304   ;;  %vm1054_vm8 = vcmask (!%p128_p2), 474112  }
   0xe   : > { %196 = vrot.lane.b32.xlu1 %v1297_v3, %s1309_s20  ;;  %192 = vrot.lane.b32.xlu0 %v1359_v4, %s1309_s20 }
  0x12   : > { %386 = vrot.lane.b32.xlu1 %v1355_v2, %s1310_s21  ;;  %188 = vrot.lane.b32.xlu0 %v1362_v5, %s1309_s20 }
  0x16   : > { %390 = vrot.lane.b32.xlu1 %v1353_v1, %s1310_s21  ;;  %388 = vrot.lane.b32.xlu0 %v1359_v4, %s1310_s21 }
  0x1a   : > { %384 = vrot.lane.b32.xlu1 %v1362_v5, %s1310_s21  ;;  %392 = vrot.lane.b32.xlu0 %v1297_v3, %s1310_s21 }
  0x1e   : > { %498 = vrot.lane.b32.xlu1 %v1359_v4, %s1311_s22  ;;  %496 = vrot.lane.b32.xlu0 %v1355_v2, %s1311_s22 }
  0x22   : > { %502 = vrot.lane.b32.xlu1 %v1297_v3, %s1311_s22  ;;  %500 = vrot.lane.b32.xlu0 %v1353_v1, %s1311_s22 }
  0x26   : > { %606 = vrot.lane.b32.xlu1 %v1355_v2, %s1312_s23  ;;  %494 = vrot.lane.b32.xlu0 %v1362_v5, %s1311_s22 }
  0x2a   : > { %610 = vrot.lane.b32.xlu1 %v1353_v1, %s1312_s23  ;;  %608 = vrot.lane.b32.xlu0 %v1359_v4, %s1312_s23 }
  0x2e   : > { %604 = vrot.lane.b32.xlu1 %v1362_v5, %s1312_s23  ;;  %612 = vrot.lane.b32.xlu0 %v1297_v3, %s1312_s23  ;;  %s1234_s23 = sshll.u32 %s1230_s13, 2 }
  0x2f   : > { %p147_p3 = scmp.lt.s32.totalorder %s1234_s23, 19 }
  0x31   : > { %s1490_s23 = smov (!%p147_p3, %s1234_s23), 19 }
  0x32   : > { %718 = vrot.lane.b32.xlu1 %v1359_v4, %s1313_s24  ;;  %716 = vrot.lane.b32.xlu0 %v1355_v2, %s1313_s24 }
  0x36   : > { %722 = vrot.lane.b32.xlu1 %v1297_v3, %s1313_s24  ;;  %720 = vrot.lane.b32.xlu0 %v1353_v1, %s1313_s24 }
  0x3a   : > { %826 = vrot.lane.b32.xlu1 %v1355_v2, %s1314_s25  ;;  %714 = vrot.lane.b32.xlu0 %v1362_v5, %s1313_s24  ;;  %s1235_s24 = sshll.u32 %s1490_s23, 2 }
  0x3e   : > { %830 = vrot.lane.b32.xlu1 %v1353_v1, %s1314_s25  ;;  %828 = vrot.lane.b32.xlu0 %v1359_v4, %s1314_s25 }
  0x42   : > { %824 = vrot.lane.b32.xlu1 %v1362_v5, %s1314_s25  ;;  %832 = vrot.lane.b32.xlu0 %v1297_v3, %s1314_s25 }
  0x46   : > { %938 = vrot.lane.b32.xlu1 %v1359_v4, %s1315_s26  ;;  %936 = vrot.lane.b32.xlu0 %v1355_v2, %s1315_s26 }
  0x4a   : > { %942 = vrot.lane.b32.xlu1 %v1297_v3, %s1315_s26  ;;  %940 = vrot.lane.b32.xlu0 %v1353_v1, %s1315_s26 }
  0x4e   : > { %1046 = vrot.lane.b32.xlu1 %v1355_v2, %s1316_s27  ;;  %934 = vrot.lane.b32.xlu0 %v1362_v5, %s1315_s26  ;;  %s150_s26 = scalar_lea.vmem %s1488_s3, %s1235_s24 }
  0x52   : > { %1050 = vrot.lane.b32.xlu1 %v1353_v1, %s1316_s27  ;;  %1048 = vrot.lane.b32.xlu0 %v1359_v4, %s1316_s27 }
  0x56   : > { %1044 = vrot.lane.b32.xlu1 %v1362_v5, %s1316_s27  ;;  %1052 = vrot.lane.b32.xlu0 %v1297_v3, %s1316_s27 }
  0x5a   : > { %1155 = vperm.xlu0 %1292, %v1152_v6  }
  0x7c   : > { %v195_v7 = vpop.permute.xlu1 %194  ;;  %v191_v8 = vpop.permute.xlu0 %190 }
  0x80   : > { %v197_v9 = vpop.permute.xlu1 %196  ;;  %v193_v10 = vpop.permute.xlu0 %192 }
  0x81   : > { %v202_v11 = vsel %vm198_vm0, %v195_v7, %v197_v9  ;;  %v200_v12 = vsel %vm198_vm0, %v191_v8, %v193_v10  ;;  %v201_v13 = vsel %vm198_vm0, %v193_v10, %v195_v7 }
  0x82   : > { %252 = vmatprep.subr.bf16.mxu1 %v202_v11  ;;  %211 = vmatprep.subr.bf16.mxu0 %v200_v12 }
  0x83   : > { %253 = vmatpush1.bf16.msra.mxu1 %v201_v13  ;;  %v1263_v13 = vld [vmem:[%s1486_s1 + $0x1c] sm:$0xf] }
  0x84   : > { %v387_v15 = vpop.permute.xlu1 %386  ;;  %341 = vmatprep.subr.bf16.mxu1 %v1353_v1  ;;  %v189_v16 = vpop.permute.xlu0 %188 }
  0x85   : > { %v199_v17 = vsel %vm198_vm0, %v189_v16, %v191_v8 }
  0x86   : > { %1245 = vmatmul.mubr.msk.bf16.vlgmr.msra.gmra.mrb[0].mxu1 %vm207_vm1, %v1238_v14  ;;  %212 = vmatpush1.bf16.msra.mxu0 %v199_v17 }
  0x87   : > { %342 = vmatpush1.bf16.msra.mxu1 %v1359_v4  ;;  %300 = vmatprep.subr.bf16.mxu0 %v1355_v2  ;;  %v1260_v4 = vld [vmem:[%s1486_s1 + $0x18] sm:$0xf] }
  0x88   : > { %v391_v18 = vpop.permute.xlu1 %390  ;;  %373 = vmatprep.mubr.bf16.mxu1 %v1308_v0  ;;  %v389_v19 = vpop.permute.xlu0 %388 }
  0x89   : > { %1244 = vmatmul.mubr.msk.bf16.vlgmr.msra.gmra.mrb[0].mxu0 %vm207_vm1, %v1238_v14  ;;  %v396_v20 = vsel %vm394_vm2, %v387_v15, %v389_v19  ;;  %v397_v25 = vsel %vm394_vm2, %v389_v19, %v391_v18 }
  0x8a   : > { %301 = vmatpush1.bf16.msra.mxu0 %v1362_v5  ;;  %332 = vmatprep.mubr.bf16.mxu0 %v1308_v0 }
  0x8b   : > { %406 = vmatprep.subr.bf16.mxu0 %v396_v20 }
  0x8c   : > { %v385_v22 = vpop.permute.xlu1 %384  ;;  %v393_v23 = vpop.permute.xlu0 %392 }
  0x8d   : > { %v398_v24 = vsel %vm394_vm2, %v391_v18, %v393_v23  ;;  %v395_v28 = vsel %vm394_vm2, %v385_v22, %v387_v15 }
  0x8e   : > { %1247 = vmatmul.mubr.msk.bf16.vlgmr.msra.gmra.mrb[4].mxu1 %vm207_vm1, %v164_v21  ;;  %447 = vmatprep.subr.bf16.mxu1 %v398_v24  ;;  %v1266_v24 = vld [vmem:[%s1486_s1 + $0x20] sm:$0xf] }
  0x8f   : > { %479 = vmatprep.mubr.bf16.mxu1 %v1308_v0  ;;  %448 = vmatpush1.bf16.msra.mxu1 %v397_v25 }
  0x90   : > { %v499_v26 = vpop.permute.xlu1 %498  ;;  %v497_v27 = vpop.permute.xlu0 %496 }
  0x91   : > { %1246 = vmatmul.mubr.msk.bf16.vlgmr.msra.gmra.mrb[4].mxu0 %vm207_vm1, %v164_v21  ;;  %v506_v29 = vsel %vm504_vm3, %v497_v27, %v499_v26 }
  0x92   : > { %407 = vmatpush1.bf16.msra.mxu0 %v395_v28  ;;  %438 = vmatprep.mubr.bf16.mxu0 %v1308_v0 }
  0x93   : > { %516 = vmatprep.subr.bf16.mxu0 %v506_v29 }
  0x94   : > { %v503_v31 = vpop.permute.xlu1 %502  ;;  %v501_v32 = vpop.permute.xlu0 %500 }
  0x95   : > { %v507_v33 = vsel %vm504_vm3, %v499_v26, %v501_v32  ;;  %v508_v34 = vsel %vm504_vm3, %v501_v32, %v503_v31 }
  0x96   : > { %1250 = vmatmul.mubr.msk.bf16.vlgmr.msra.gmra.mrb[8].mxu1 %vm207_vm1, %v1248_v30  ;;  %557 = vmatprep.subr.bf16.mxu1 %v508_v34 }
  0x97   : > { %589 = vmatprep.mubr.bf16.mxu1 %v1308_v0  ;;  %558 = vmatpush1.bf16.msra.mxu1 %v507_v33 }
  0x98   : > { %v607_v35 = vpop.permute.xlu1 %606  ;;  %v495_v36 = vpop.permute.xlu0 %494 }
  0x99   : > { %v505_v37 = vsel %vm504_vm3, %v495_v36, %v497_v27  ;;  %1249 = vmatmul.mubr.msk.bf16.vlgmr.msra.gmra.mrb[8].mxu0 %vm207_vm1, %v1248_v30 }
  0x9a   : > { %517 = vmatpush1.bf16.msra.mxu0 %v505_v37  ;;  %548 = vmatprep.mubr.bf16.mxu0 %v1308_v0 }
  0x9c   : > { %v611_v39 = vpop.permute.xlu1 %610  ;;  %v609_v40 = vpop.permute.xlu0 %608 }
  0x9d   : > { %v616_v41 = vsel %vm614_vm4, %v607_v35, %v609_v40  ;;  %v617_v46 = vsel %vm614_vm4, %v609_v40, %v611_v39 }
  0x9e   : > { %1253 = vmatmul.mubr.msk.bf16.vlgmr.msra.gmra.mrb[12].mxu1 %vm207_vm1, %v1251_v38  ;;  %626 = vmatprep.subr.bf16.mxu0 %v616_v41 }
  0x9f   : > { %699 = vmatprep.mubr.bf16.mxu1 %v1308_v0 }
  0xa0   : > { %v605_v42 = vpop.permute.xlu1 %604  ;;  %v613_v44 = vpop.permute.xlu0 %612 }
  0xa1   : > { %v615_v43 = vsel %vm614_vm4, %v605_v42, %v607_v35  ;;  %1252 = vmatmul.mubr.msk.bf16.vlgmr.msra.gmra.mrb[12].mxu0 %vm207_vm1, %v1251_v38  ;;  %v618_v45 = vsel %vm614_vm4, %v611_v39, %v613_v44 }
  0xa2   : > { %627 = vmatpush1.bf16.msra.mxu0 %v615_v43  ;;  %667 = vmatprep.subr.bf16.mxu1 %v618_v45 }
  0xa3   : > { %668 = vmatpush1.bf16.msra.mxu1 %v617_v46  ;;  %658 = vmatprep.mubr.bf16.mxu0 %v1308_v0 }
  0xa4   : > { %v719_v47 = vpop.permute.xlu1 %718  ;;  %v717_v49 = vpop.permute.xlu0 %716 }
  0xa5   : > { %v726_v50 = vsel %vm724_vm5, %v717_v49, %v719_v47 }
  0xa6   : > { %1256 = vmatmul.mubr.msk.bf16.vlgmr.msra.gmra.mrb[16].mxu1 %vm207_vm1, %v1254_v48  ;;  %736 = vmatprep.subr.bf16.mxu0 %v726_v50 }
  0xa7   : > { %809 = vmatprep.mubr.bf16.mxu1 %v1308_v0 }
  0xa8   : > { %v723_v51 = vpop.permute.xlu1 %722  ;;  %v721_v52 = vpop.permute.xlu0 %720 }
  0xa9   : > { %v727_v53 = vsel %vm724_vm5, %v719_v47, %v721_v52  ;;  %1255 = vmatmul.mubr.msk.bf16.vlgmr.msra.gmra.mrb[16].mxu0 %vm207_vm1, %v1254_v48  ;;  %v728_v54 = vsel %vm724_vm5, %v721_v52, %v723_v51 }
  0xaa   : > { %777 = vmatprep.subr.bf16.mxu1 %v728_v54  ;;  %768 = vmatprep.mubr.bf16.mxu0 %v1308_v0 }
  0xab   : > { %778 = vmatpush1.bf16.msra.mxu1 %v727_v53 }
  0xac   : > { %v827_v55 = vpop.permute.xlu1 %826  ;;  %v715_v57 = vpop.permute.xlu0 %714 }
  0xad   : > { %v725_v58 = vsel %vm724_vm5, %v715_v57, %v717_v49 }
  0xae   : > { %737 = vmatpush1.bf16.msra.mxu0 %v725_v58  ;;  %1259 = vmatmul.mubr.msk.bf16.vlgmr.msra.gmra.mrb[20].mxu1 %vm207_vm1, %v1257_v56 }
  0xaf   : > { %919 = vmatprep.mubr.bf16.mxu1 %v1308_v0 }
  0xb0   : > { %v831_v59 = vpop.permute.xlu1 %830  ;;  %v829_v60 = vpop.permute.xlu0 %828 }
  0xb1   : > { %1258 = vmatmul.mubr.msk.bf16.vlgmr.msra.gmra.mrb[20].mxu0 %vm207_vm1, %v1257_v56  ;;  %v836_v61 = vsel %vm834_vm6, %v827_v55, %v829_v60  ;;  %v837_v3 = vsel %vm834_vm6, %v829_v60, %v831_v59 }
  0xb2   : > { %846 = vmatprep.subr.bf16.mxu0 %v836_v61  ;;  %878 = vmatprep.mubr.bf16.mxu0 %v1308_v0 }
  0xb4   : > { %v825_v62 = vpop.permute.xlu1 %824  ;;  %v833_v1 = vpop.permute.xlu0 %832 }
  0xb5   : > { %v835_v63 = vsel %vm834_vm6, %v825_v62, %v827_v55  ;;  %v838_v2 = vsel %vm834_vm6, %v831_v59, %v833_v1 }
  0xb6   : > { %847 = vmatpush1.bf16.msra.mxu0 %v835_v63  ;;  %887 = vmatprep.subr.bf16.mxu1 %v838_v2 }
  0xb7   : > { %888 = vmatpush1.bf16.msra.mxu1 %v837_v3 }
  0xb8   : > { %v939_v5 = vpop.permute.xlu1 %938  ;;  %v937_v6 = vpop.permute.xlu0 %936 }
  0xb9   : > { %1261 = vmatmul.mubr.msk.bf16.vlgmr.msra.gmra.mrb[24].mxu0 %vm207_vm1, %v1260_v4  ;;  %v946_v7 = vsel %vm944_vm7, %v937_v6, %v939_v5 }
  0xba   : > { %1262 = vmatmul.mubr.msk.bf16.vlgmr.msra.gmra.mrb[24].mxu1 %vm207_vm1, %v1260_v4  ;;  %956 = vmatprep.subr.bf16.mxu0 %v946_v7 }
  0xbb   : > { %1029 = vmatprep.mubr.bf16.mxu1 %v1308_v0  ;;  %988 = vmatprep.mubr.bf16.mxu0 %v1308_v0 }
  0xbc   : > { %v943_v8 = vpop.permute.xlu1 %942  ;;  %v941_v9 = vpop.permute.xlu0 %940 }
  0xbd   : > { %v947_v10 = vsel %vm944_vm7, %v939_v5, %v941_v9  ;;  %v948_v11 = vsel %vm944_vm7, %v941_v9, %v943_v8 }
  0xbe   : > { %997 = vmatprep.subr.bf16.mxu1 %v948_v11 }
  0xbf   : > { %998 = vmatpush1.bf16.msra.mxu1 %v947_v10 }
  0xc0   : > { %v1047_v12 = vpop.permute.xlu1 %1046  ;;  %v935_v14 = vpop.permute.xlu0 %934 }
  0xc1   : > { %v945_v15 = vsel %vm944_vm7, %v935_v14, %v937_v6 }
  0xc2   : > { %957 = vmatpush1.bf16.msra.mxu0 %v945_v15  ;;  %1265 = vmatmul.mubr.msk.bf16.vlgmr.msra.gmra.mrb[28].mxu1 %vm207_vm1, %v1263_v13 }
  0xc3   : > { %1139 = vmatprep.mubr.bf16.mxu1 %v1308_v0 }
  0xc4   : > { %v1051_v16 = vpop.permute.xlu1 %1050  ;;  %v1049_v17 = vpop.permute.xlu0 %1048 }
  0xc5   : > { %1264 = vmatmul.mubr.msk.bf16.vlgmr.msra.gmra.mrb[28].mxu0 %vm207_vm1, %v1263_v13  ;;  %v1056_v18 = vsel %vm1054_vm8, %v1047_v12, %v1049_v17  ;;  %v1057_v23 = vsel %vm1054_vm8, %v1049_v17, %v1051_v16 }
  0xc6   : > { %1066 = vmatprep.subr.bf16.mxu0 %v1056_v18  ;;  %1098 = vmatprep.mubr.bf16.mxu0 %v1308_v0 }
  0xc8   : > { %v1045_v19 = vpop.permute.xlu1 %1044  ;;  %v1053_v21 = vpop.permute.xlu0 %1052 }
  0xc9   : > { %v1055_v20 = vsel %vm1054_vm8, %v1045_v19, %v1047_v12  ;;  %v1058_v22 = vsel %vm1054_vm8, %v1051_v16, %v1053_v21 }
  0xca   : > { %1067 = vmatpush1.bf16.msra.mxu0 %v1055_v20  ;;  %1107 = vmatprep.subr.bf16.mxu1 %v1058_v22 }
  0xcb   : > { %1108 = vmatpush1.bf16.msra.mxu1 %v1057_v23 }
  0xcd   : > { %1267 = vmatmul.mubr.msk.bf16.vlgmr.msra.gmra.mrb[32].mxu0 %vm207_vm1, %v1266_v24 }
  0xce   : > { %1268 = vmatmul.mubr.msk.bf16.vlgmr.msra.gmra.mrb[32].mxu1 %vm207_vm1, %v1266_v24 }
 0x159   : > { %v286_v25 = vpop.f32.mrb[0].mxu1 }
 0x15a   : > { %v288_v26 = vpop.f32.mrb[1].mxu1 }
 0x15b   : > { %v290_v27 = vpop.f32.mrb[2].mxu1 }
 0x15c   : > { %v291_v0 = vpop.f32.mrb[3].mxu1  ;;  %v245_v28 = vpop.f32.mrb[0].mxu0 }
 0x15d   : > { %v247_v29 = vpop.f32.mrb[1].mxu0 }
 0x15e   : > { %v249_v30 = vpop.f32.mrb[2].mxu0 }
 0x15f   : > { %v250_v31 = vpop.f32.mrb[3].mxu0 }
 0x161   : > { %v375_v32 = vpop.f32.mrb[4].mxu1 }
 0x162   : > { %v376_v33 = vadd.f32 %v375_v32, %v286_v25  ;;  %v377_v34 = vpop.f32.mrb[5].mxu1 }
 0x163   : > { %v378_v35 = vadd.f32 %v377_v34, %v288_v26  ;;  %v379_v36 = vpop.f32.mrb[6].mxu1 }
 0x164   : > { %v380_v37 = vpop.f32.mrb[7].mxu1  ;;  %v334_v38 = vpop.f32.mrb[4].mxu0 }
 0x165   : > { %v335_v39 = vadd.f32 %v334_v38, %v245_v28  ;;  %v336_v40 = vpop.f32.mrb[5].mxu0 }
 0x166   : > { %v337_v41 = vadd.f32 %v336_v40, %v247_v29  ;;  %v338_v42 = vpop.f32.mrb[6].mxu0 }
 0x167   : > { %v339_v43 = vpop.f32.mrb[7].mxu0 }
 0x169   : > { %v481_v44 = vpop.f32.mrb[8].mxu1 }
 0x16a   : > { %v490_v45 = vadd.f32 %v481_v44, %v376_v33  ;;  %v483_v46 = vpop.f32.mrb[9].mxu1 }
 0x16b   : > { %v491_v47 = vadd.f32 %v483_v46, %v378_v35  ;;  %v485_v48 = vpop.f32.mrb[10].mxu1 }
 0x16c   : > { %v486_v49 = vpop.f32.mrb[11].mxu1  ;;  %v440_v50 = vpop.f32.mrb[8].mxu0 }
 0x16d   : > { %v488_v51 = vadd.f32 %v440_v50, %v335_v39  ;;  %v442_v52 = vpop.f32.mrb[9].mxu0 }
 0x16e   : > { %v489_v53 = vadd.f32 %v442_v52, %v337_v41  ;;  %v444_v54 = vpop.f32.mrb[10].mxu0 }
 0x16f   : > { %v445_v55 = vpop.f32.mrb[11].mxu0 }
 0x171   : > { %v591_v56 = vpop.f32.mrb[12].mxu1 }
 0x172   : > { %v600_v57 = vadd.f32 %v591_v56, %v490_v45  ;;  %v593_v58 = vpop.f32.mrb[13].mxu1 }
 0x173   : > { %v601_v59 = vadd.f32 %v593_v58, %v491_v47  ;;  %v595_v60 = vpop.f32.mrb[14].mxu1 }
 0x174   : > { %v596_v61 = vpop.f32.mrb[15].mxu1  ;;  %v550_v62 = vpop.f32.mrb[12].mxu0 }
 0x175   : > { %v598_v63 = vadd.f32 %v550_v62, %v488_v51  ;;  %v552_v1 = vpop.f32.mrb[13].mxu0 }
 0x176   : > { %v599_v2 = vadd.f32 %v552_v1, %v489_v53  ;;  %v554_v3 = vpop.f32.mrb[14].mxu0  ;;  %v1156_v53 = vpop.permute.xlu0 %1155 }
 0x177   : > { %v555_v4 = vpop.f32.mrb[15].mxu0 }
 0x179   : > { %v701_v5 = vpop.f32.mrb[16].mxu1 }
 0x17a   : > { %v710_v6 = vadd.f32 %v701_v5, %v600_v57  ;;  %v703_v7 = vpop.f32.mrb[17].mxu1 }
 0x17b   : > { %v711_v8 = vadd.f32 %v703_v7, %v601_v59  ;;  %v705_v9 = vpop.f32.mrb[18].mxu1 }
 0x17c   : > { %v660_v10 = vpop.f32.mrb[16].mxu0  ;;  %v706_v11 = vpop.f32.mrb[19].mxu1 }
 0x17d   : > { %v708_v12 = vadd.f32 %v660_v10, %v598_v63  ;;  %v662_v13 = vpop.f32.mrb[17].mxu0 }
 0x17e   : > { %v709_v14 = vadd.f32 %v662_v13, %v599_v2  ;;  %v664_v15 = vpop.f32.mrb[18].mxu0 }
 0x17f   : > { %v665_v16 = vpop.f32.mrb[19].mxu0 }
 0x181   : > { %v811_v17 = vpop.f32.mrb[20].mxu1 }
 0x182   : > { %v820_v18 = vadd.f32 %v811_v17, %v710_v6  ;;  %v813_v19 = vpop.f32.mrb[21].mxu1 }
 0x183   : > { %v821_v20 = vadd.f32 %v813_v19, %v711_v8  ;;  %v815_v21 = vpop.f32.mrb[22].mxu1 }
 0x184   : > { %v770_v22 = vpop.f32.mrb[20].mxu0  ;;  %v816_v23 = vpop.f32.mrb[23].mxu1 }
 0x185   : > { %v818_v24 = vadd.f32 %v770_v22, %v708_v12  ;;  %v772_v25 = vpop.f32.mrb[21].mxu0 }
 0x186   : > { %v819_v26 = vadd.f32 %v772_v25, %v709_v14  ;;  %v774_v27 = vpop.f32.mrb[22].mxu0 }
 0x187   : > { %v775_v0 = vpop.f32.mrb[23].mxu0 }
 0x18c   : > { %v880_v28 = vpop.f32.mrb[24].mxu0 }
 0x18d   : > { %v928_v29 = vadd.f32 %v880_v28, %v818_v24  ;;  %v882_v30 = vpop.f32.mrb[25].mxu0  ;;  %v921_v31 = vpop.f32.mrb[24].mxu1 }
 0x18e   : > { %v929_v32 = vadd.f32 %v882_v30, %v819_v26  ;;  %v930_v33 = vadd.f32 %v921_v31, %v820_v18  ;;  %v923_v34 = vpop.f32.mrb[25].mxu1  ;;  %v884_v35 = vpop.f32.mrb[26].mxu0 }
 0x18f   : > { %v931_v36 = vadd.f32 %v923_v34, %v821_v20  ;;  %v925_v37 = vpop.f32.mrb[26].mxu1  ;;  %v885_v38 = vpop.f32.mrb[27].mxu0 }
 0x190   : > { %v926_v39 = vpop.f32.mrb[27].mxu1 }
 0x195   : > { %v1031_v40 = vpop.f32.mrb[28].mxu1 }
 0x196   : > { %v1040_v41 = vadd.f32 %v1031_v40, %v930_v33  ;;  %v1033_v42 = vpop.f32.mrb[29].mxu1 }
 0x197   : > { %v1041_v43 = vadd.f32 %v1033_v42, %v931_v36  ;;  %v1035_v44 = vpop.f32.mrb[30].mxu1 }
 0x198   : > { %v990_v45 = vpop.f32.mrb[28].mxu0  ;;  %v1036_v46 = vpop.f32.mrb[31].mxu1 }
 0x199   : > { %v1038_v47 = vadd.f32 %v990_v45, %v928_v29  ;;  %v992_v48 = vpop.f32.mrb[29].mxu0 }
 0x19a   : > { %v1039_v49 = vadd.f32 %v992_v48, %v929_v32  ;;  %v994_v50 = vpop.f32.mrb[30].mxu0 }
 0x19b   : > { %v995_v51 = vpop.f32.mrb[31].mxu0 }
 0x1a0   : > { %v1100_v52 = vpop.f32.mrb[32].mxu0 }
 0x1a1   : > { %v1148_v54 = vadd.f32 %v1100_v52, %v1038_v47  ;;  %v1102_v55 = vpop.f32.mrb[33].mxu0  ;;  %v1141_v56 = vpop.f32.mrb[32].mxu1 }
 0x1a2   : > { %v1149_v57 = vadd.f32 %v1102_v55, %v1039_v49  ;;  %v1150_v58 = vadd.f32 %v1141_v56, %v1040_v41  ;;  %v1143_v59 = vpop.f32.mrb[33].mxu1  ;;  %v1104_v60 = vpop.f32.mrb[34].mxu0 }
 0x1a3   : > { %v1151_v61 = vadd.f32 %v1143_v59, %v1041_v43  ;;  %v1158_v62 = vadd.f32 %v1156_v53, %v1148_v54  ;;  %v1145_v63 = vpop.f32.mrb[34].mxu1  ;;  %v1105_v1 = vpop.f32.mrb[35].mxu0 }
 0x1a4   : > { %v1159_v2 = vadd.f32 %v1156_v53, %v1149_v57  ;;  %v1160_v3 = vadd.f32 %v1156_v53, %v1150_v58  ;;  %v1146_v4 = vpop.f32.mrb[35].mxu1 }
 0x1a5   : > { %v1161_v5 = vadd.f32 %v1156_v53, %v1151_v61  ;;  %v1162_v6 = vmax.f32 %v1158_v62, 0.0 }
 0x1a6   : > { %v1163_v7 = vmax.f32 %v1159_v2, 0.0  ;;  %v1164_v8 = vmax.f32 %v1160_v3, 0.0 }
 0x1a7   : > { %v1165_v9 = vmax.f32 %v1161_v5, 0.0 }
 0x1a8   : > { %v1273_v10 = vpack.c.bf16 %v1163_v7, %v1162_v6 }
 0x1a9   : > { %v1274_v11 = vpack.c.bf16 %v1165_v9, %v1164_v8 }
 0x1aa   : > { %1182 = vst [vmem:[%s150_s26] sm:$0xff] %v1273_v10 }
 0x1ab   : > { %1183 = vst [vmem:[%s150_s26 + $0x8] sm:$0xff] %v1274_v11 }
 0x1ac PF: > { %s13_s12 = sadd.s32 1, %s1306_s12  }
 0x1ad   : > { %p10_p4 = scmp.ge.s32.totalorder %s13_s12, 7  }
 0x1af   :  { %12 = sbr.rel (!%p10_p4) target bundleno = 1 (0x1), region = 68 }

// kernel: network_forward.63
= control target key start
LH: loop header
LB: loop body
LE: loop exit
PB: predicated region body
PF: predicated region fallthrough
CT: control target
= control target key end

     0   :  { %s447_s14 = smov 0   ;;  %s471_s0 = inlined_call_operand.vmem [shape: bf16[8,2048], index: 0, kind: input, shape index: {}]   ;;  %s472_s1 = inlined_call_operand.vmem [shape: bf16[1,8], index: 1, kind: input, shape index: {}]   ;;  %s473_s2 = inlined_call_operand.<no memory space> [shape: f32[1,1], index: 2, kind: input, shape index: {}]   ;;  %s474_s3 = inlined_call_operand.vmem [shape: f32[1,2048], index: 3, kind: output, shape index: {}]  }
   0x1   :  { %v8_v0 = vstv %s473_s2 }
   0x2   :  { %9 = vst [vmem:[#allocation2] sm:$0x1] %v8_v0 }
   0x3 LB: > { %s381_s15 = sadd.s32 4294967295, %s420_s14   ;;  %p385_p0 = scmp.ge.s32.totalorder %s420_s14, 1  ;;  %s420_s14 = sphi %s447_s14, %s15_s14  }
   0x4   : > { %p140_p1 = scmp.lt.s32.totalorder %s420_s14, 5 }
   0x6   : > { %p141_p2 = pnand %p385_p0, %p140_p1 }
   0x7   : > { %s386_s16 = sshll.u32 (!%p141_p2), %s381_s15, 2  ;;  %v422_v1 = vmov (!%p141_p2), 0   ;;  %vm202_vm0 = vcmask (!%p141_p2), 1043456   ;;  %v175_v11 = vld [vmem:[%s472_s1] sm:$0x1] (!%p141_p2)  ;;  %vm198_vm1 = vcmask (!%p141_p2), 64512   ;;  %v184_v12 = vlaneseq (!%p141_p2) }
   0x8   : > { %144 = sbr.rel (%p141_p2) target bundleno = 249 (0xf9), region = 32  ;;  %p164_p3 = scmp.lt.s32.totalorder (!%p141_p2), %s386_s16, 15  ;;  %247 = vmatprep.mubr.bf16.mxu0 (!%p141_p2), %v422_v1  ;;  %288 = vmatprep.mubr.bf16.mxu1 (!%p141_p2), %v422_v1  ;;  %v423_v15 = vmov (!%p141_p2), 1966171168  }
   0x9   : > { %v178_v2 = vld [vmem:[#allocation2] sm:$0x1] (!%p141_p2)  ;;  %409 = vset.pattern.permute.xlu0 (!%p141_p2), %v422_v1  ;;  %v185_v13 = vshrl.u32 (!%p141_p2), %v184_v12, 7  ;;  %v304_v16 = vunpack.c.l.s4 (!%p141_p2), %v423_v15  ;;  %vm328_vm2 = vcmp.lt.s32.totalorder (!%p141_p2), %v184_v12, 512 }
   0xa   : > { %181 = vperm.xlu0 (!%p141_p2), %409, %v178_v2  }
   0xb   : > { %v186_v14 = vsub.s32 (!%p141_p2), 0, %v185_v13  ;;  %v305_v19 = vunpack.c.0.s8 (!%p141_p2), %v304_v16 }
   0xd   : > { %v308_v26 = vsub.s32 (!%p141_p2), %v305_v19, %v185_v13 }
   0xf   : > { %s476_s16 = smov (!%p164_p3, %s386_s16), 15 }
  0x10   : > { %s387_s2 = sshll.u32 %s476_s16, 2  ;;  %s172_s24 = scalar_lea.vmem %s474_s3, %s476_s16 }
  0x11   : > { %s167_s19 = scalar_lea.vmem %s471_s0, %s387_s2 }
  0x12   : > { %v176_v3 = vld [vmem:[%s167_s19] sm:$0xff]  ;;  %v177_v4 = vld [vmem:[%s167_s19 + $0x8] sm:$0xff] }
  0x13   : > { %v390_v5 = vcombine.high %v176_v3, %v176_v3  ;;  %v392_v6 = vcombine.high %v177_v4, %v177_v4  ;;  %v389_v7 = vcombine.low %v176_v3, %v176_v3  ;;  %v391_v8 = vcombine.low %v177_v4, %v177_v4 }
  0x15   : > { %393 = vmatprep.subr.msk.bf16.mxu0 %vm202_vm0, %v390_v5  ;;  %395 = vmatprep.subr.msk.bf16.mxu1 %vm202_vm0, %v392_v6  ;;  %v204_v9 = vsel %vm202_vm0, %v389_v7, 0  ;;  %v210_v10 = vsel %vm202_vm0, %v391_v8, 0 }
  0x16   : > { %216 = vmatpush1.bf16.msra.mxu0 %v204_v9  ;;  %257 = vmatpush1.bf16.msra.mxu1 %v210_v10 }
  0x19   : > { %394 = vmatmul.mubr.msk.bf16.vlgmr.msra.gmra.mrb[0].mxu0 %vm198_vm1, %v175_v11  ;;  %396 = vmatmul.mubr.msk.bf16.vlgmr.msra.gmra.mrb[0].mxu1 %vm198_vm1, %v175_v11 }
  0x89   : > { %v182_v17 = vpop.permute.xlu0 %181 }
  0x8a   : > { %v187_v18 = vrot.slane %v182_v17, %v186_v14 }
  0xec   : > { %v249_v20 = vpop.f32.mrb[0].mxu0  ;;  %v290_v21 = vpop.f32.mrb[0].mxu1 }
  0xed   : > { %v250_v22 = vadd.f32 %v249_v20, %v187_v18  ;;  %v291_v23 = vadd.f32 %v290_v21, %v187_v18  ;;  %v251_v24 = vpop.f32.mrb[1].mxu0  ;;  %v292_v25 = vpop.f32.mrb[1].mxu1 }
  0xee   : > { %v252_v27 = vadd.f32 %v251_v24, %v187_v18  ;;  %v293_v28 = vadd.f32 %v292_v25, %v187_v18  ;;  %v253_v29 = vpop.f32.mrb[2].mxu0  ;;  %v294_v30 = vpop.f32.mrb[2].mxu1 }
  0xef   : > { %v254_v31 = vpop.f32.mrb[3].mxu0  ;;  %v295_v32 = vpop.f32.mrb[3].mxu1 }
  0xf0   : > { %v301_v33 = vcombine.low %v250_v22, %v252_v27  ;;  %v302_v34 = vcombine.low %v291_v23, %v293_v28 }
  0xf2   : > { %v309_v35 = vrot.slane %v301_v33, %v308_v26  ;;  %v316_v36 = vrot.slane %v302_v34, %v308_v26 }
  0xf4   : > { %v317_v37 = vcombine.low %v309_v35, %v316_v36 }
  0xf6   : > { %v324_v38 = vrot.slane %v317_v37, %v308_v26 }
  0xf8   : > { %330 = vst.msk [vmem:[%s172_s24] sm:$0xf] %vm328_vm2, %v324_v38 }
  0xf9 PF: > { %s15_s14 = sadd.s32 1, %s420_s14  }
  0xfa   : > { %p12_p4 = scmp.ge.s32.totalorder %s15_s14, 6  }
  0xfc   :  { %14 = sbr.rel (!%p12_p4) target bundleno = 3 (0x3), region = 62 }

</bundles_post_ra>
